<compile_context>
chip_gen: v6e
topology: v6e:2x2x1
jax: 0.10.0
libtpu: 0.0.40
codegen_flags: <defaults>
</compile_context>

<pallas_src>
import math
from functools import partial

import jax
import jax.numpy as jnp
from jax.experimental import pallas as pl
from jax.experimental.pallas import tpu as pltpu

_BN_EPS = 1e-5


# ----------------------------------------------------------------------------
# wrapper-side glue helpers
# ----------------------------------------------------------------------------
def _vmem_limit_bytes():
    """Per-generation scoped-VMEM budget: raise on v6e, keep 32 MiB elsewhere."""
    try:
        kind = jax.devices()[0].device_kind.lower()
    except Exception:  # pragma: no cover - defensive
        kind = ""
    if "v6" in kind:
        return 64 * 1024 * 1024
    return 32 * 1024 * 1024


def _flat3x3(w_oihw):
    """OIHW 3x3 conv weight -> (9*Cin, Cout) bf16, tap-major row order."""
    hwio = jnp.transpose(w_oihw, (2, 3, 1, 0))          # (kh, kw, Cin, Cout)
    return hwio.reshape(-1, hwio.shape[-1]).astype(jnp.bfloat16)


def _space_to_depth(xpad, sd):
    """For stride sd>1: (N,Hp,Wp,C) -> (sd*sd, N, ceil(Hp/sd), ceil(Wp/sd), C).

    Block b = pr*sd + pc holds xpad[:, sd*r+pr, sd*c+pc, :] so every conv tap
    becomes a unit-stride slice inside the kernel.  sd == 1 is the identity.
    """
    if sd == 1:
        return xpad
    n, hp, wp, c = xpad.shape
    hr = -(-hp // sd)
    wr = -(-wp // sd)
    xpad = jnp.pad(xpad, ((0, 0), (0, hr * sd - hp), (0, wr * sd - wp), (0, 0)))
    xr = xpad.reshape(n, hr, sd, wr, sd, c)
    return jnp.transpose(xr, (2, 4, 0, 1, 3, 5)).reshape(sd * sd, n, hr, wr, c)


# ----------------------------------------------------------------------------
# kernels
# ----------------------------------------------------------------------------
def _emit_stats(st_ref, acc, m):
    """Per-image [sum, centered sum-of-squares] -> one packed (1, 2, C) output."""
    s = jnp.sum(acc, axis=0, keepdims=True)              # (1, C) f32
    d = acc - s * (1.0 / m)
    m2 = jnp.sum(d * d, axis=0, keepdims=True)           # (1, C) f32
    st_ref[0, 0:1, :] = s
    st_ref[0, 1:2, :] = m2


def _make_pass1(ho, wo, cin, planes, sd, has_proj, fuse):
    """conv1 (3x3, stride sd) and optional 1x1 projection conv, plus per-image
    BN partial statistics."""
    m = ho * wo

    def kernel(*refs):
        if has_proj:
            x_ref, w1_ref, ws_ref, y1_ref, st1_ref, ys_ref, sts_ref = refs
        else:
            x_ref, w1_ref, y1_ref, st1_ref = refs

        def tap(kh, kw):
            if sd == 1:
                return x_ref[0, kh:kh + ho, kw:kw + wo, :]
            blk = (kh % sd) * sd + (kw % sd)
            r0, c0 = kh // sd, kw // sd
            return x_ref[blk, 0, r0:r0 + ho, c0:c0 + wo, :]

        w1 = w1_ref[...]                                   # (9*cin, planes) bf16
        if fuse:
            # Single K=9*Cin im2col matmul (production channel counts).
            cols = jnp.concatenate(
                [tap(kh, kw) for kh in range(3) for kw in range(3)], axis=-1)
            acc = jnp.dot(cols.reshape(m, 9 * cin), w1,
                          preferred_element_type=jnp.float32)
        else:
            acc = None
            for kh in range(3):
                for kw in range(3):
                    k = kh * 3 + kw
                    part = jnp.dot(tap(kh, kw).reshape(m, cin),
                                   w1[k * cin:(k + 1) * cin, :],
                                   preferred_element_type=jnp.float32)
                    acc = part if acc is None else acc + part

        y1_ref[...] = acc.astype(y1_ref.dtype)[None]       # bf16 intermediate
        _emit_stats(st1_ref, acc, m)

        if has_proj:
            # 1x1 stride-sd projection conv == the centre tap of the 3x3 window.
            sc = jnp.dot(tap(1, 1).reshape(m, cin), ws_ref[...],
                         preferred_element_type=jnp.float32)
            ys_ref[...] = sc.astype(ys_ref.dtype)[None]
            _emit_stats(sts_ref, sc, m)

    return kernel


def _make_pass2(ho, wo, planes, fuse):
    """bn1 (precomputed scale/bias) + relu -> conv2 (3x3, stride 1), plus the
    per-image partial stats for bn2.  The 1-px halo of the persistent VMEM pad
    scratch is zeroed only on the first grid step."""
    m = ho * wo

    def kernel(y1_ref, sc_ref, bi_ref, w2_ref, y2_ref, st2_ref, pad_ref):
        @pl.when(pl.program_id(0) == 0)
        def _():
            z = pad_ref.dtype
            pad_ref[0, 0:1, :, :] = jnp.zeros((1, wo + 2, planes), z)
            pad_ref[0, ho + 1:ho + 2, :, :] = jnp.zeros((1, wo + 2, planes), z)
            pad_ref[0, 1:ho + 1, 0:1, :] = jnp.zeros((ho, 1, planes), z)
            pad_ref[0, 1:ho + 1, wo + 1:wo + 2, :] = jnp.zeros((ho, 1, planes), z)

        a1 = jnp.maximum(y1_ref[0].astype(jnp.float32) * sc_ref[...] + bi_ref[...],
                         0.0)                               # (m, planes) f32
        pad_ref[0, 1:ho + 1, 1:wo + 1, :] = (
            a1.reshape(ho, wo, planes).astype(pad_ref.dtype))

        w2 = w2_ref[...]                                   # (9*planes, planes) bf16
        if fuse:
            cols = jnp.concatenate(
                [pad_ref[0, kh:kh + ho, kw:kw + wo, :]
                 for kh in range(3) for kw in range(3)], axis=-1)
            acc = jnp.dot(cols.reshape(m, 9 * planes), w2,
                          preferred_element_type=jnp.float32)
        else:
            acc = None
            for kh in range(3):
                for kw in range(3):
                    k = kh * 3 + kw
                    part = jnp.dot(
                        pad_ref[0, kh:kh + ho, kw:kw + wo, :].reshape(m, planes),
                        w2[k * planes:(k + 1) * planes, :],
                        preferred_element_type=jnp.float32)
                    acc = part if acc is None else acc + part

        y2_ref[...] = acc.astype(y2_ref.dtype)[None]        # bf16 intermediate
        _emit_stats(st2_ref, acc, m)

    return kernel


def _make_pass3(has_proj):
    """bn2 + shortcut (identity, or precomputed projection-BN affine) + relu."""

    def kernel(*refs):
        if has_proj:
            y2_ref, sc2_ref, bi2_ref, ys_ref, scs_ref, bis_ref, out_ref = refs
            short = ys_ref[0].astype(jnp.float32) * scs_ref[...] + bis_ref[...]
        else:
            y2_ref, sc2_ref, bi2_ref, x_ref, out_ref = refs
            short = x_ref[0].astype(jnp.float32)
        out2 = y2_ref[0].astype(jnp.float32) * sc2_ref[...] + bi2_ref[...]
        out_ref[...] = jnp.maximum(out2 + short, 0.0)[None].astype(out_ref.dtype)

    return kernel


# ----------------------------------------------------------------------------
# public forward
# ----------------------------------------------------------------------------
@partial(jax.jit, static_argnames=("stride",))
def basic_block_forward(x_nchw, params, *, stride=1):
    """Pallas implementation of BasicBlock.forward (training-mode BN).  NCHW io."""
    n, cin, h, w = x_nchw.shape
    planes = params["w1"].shape[0]
    sd = int(stride)
    has_proj = (sd != 1) or (cin != planes)
    ho = (h - 1) // sd + 1
    wo = (w - 1) // sd + 1
    m = ho * wo
    f32 = jnp.float32
    bf16 = jnp.bfloat16

    vmem = _vmem_limit_bytes()
    cp_par = pltpu.CompilerParams(dimension_semantics=("parallel",),
                                  vmem_limit_bytes=vmem)
    # pass 2 relies on the pad scratch persisting across grid steps (halo zeroed
    # only at program_id==0), so keep its grid axis un-split across cores.
    cp_arb = pltpu.CompilerParams(dimension_semantics=("arbitrary",),
                                  vmem_limit_bytes=vmem)

    # ---- glue: NCHW -> NHWC (bf16), spatial pad 1, space-to-depth for stride
    x_bf = jnp.transpose(x_nchw, (0, 2, 3, 1)).astype(bf16)
    xpad = jnp.pad(x_bf, ((0, 0), (1, 1), (1, 1), (0, 0)))
    xd = _space_to_depth(xpad, sd)
    hr, wr = xd.shape[-3], xd.shape[-2]

    w1f = _flat3x3(params["w1"])
    w2f = _flat3x3(params["w2"])

    # Fused im2col matmul only when K = 9*C fills the MXU; per-tap otherwise.
    fuse1 = (9 * cin) >= 128
    fuse2 = (9 * planes) >= 128

    def img_spec(shape):
        nd = len(shape)
        return pl.BlockSpec((1,) + tuple(shape[1:]),
                            lambda i, _nd=nd: (i,) + (0,) * (_nd - 1))

    def rep_spec(a):
        nd = a.ndim
        return pl.BlockSpec(a.shape, lambda i, _nd=nd: (0,) * _nd)

    if sd == 1:
        xd_spec = img_spec(xd.shape)                       # (1, H+2, W+2, cin)
    else:
        xd_spec = pl.BlockSpec((sd * sd, 1, hr, wr, cin),
                               lambda i: (0, i, 0, 0, 0))

    act_shape = jax.ShapeDtypeStruct((n, m, planes), bf16)   # bf16 intermediates
    stat_shape = jax.ShapeDtypeStruct((n, 2, planes), f32)   # [sum, centered M2]

    # ---- pass 1: conv1 (+ projection 1x1 conv) + BN partial stats -------------
    in1 = [xd, w1f]
    in1_specs = [xd_spec, rep_spec(w1f)]
    out1_shapes = [act_shape, stat_shape]
    if has_proj:
        wsf = jnp.transpose(params["ws"].reshape(planes, cin), (1, 0)).astype(bf16)
        in1.append(wsf)
        in1_specs.append(rep_spec(wsf))
        out1_shapes += [act_shape, stat_shape]
    out1_specs = tuple(img_spec(s.shape) for s in out1_shapes)

    res1 = pl.pallas_call(
        _make_pass1(ho, wo, cin, planes, sd, has_proj, fuse1),
        out_shape=tuple(out1_shapes),
        grid_spec=pltpu.PrefetchScalarGridSpec(
            num_scalar_prefetch=0, grid=(n,),
            in_specs=in1_specs, out_specs=out1_specs),
        compiler_params=cp_par,
    )(*in1)
    if has_proj:
        y1, st1, ys, sts = res1
    else:
        y1, st1 = res1

    def affine(stat, g, b):
        # Chan-style merge of per-image (sum, centered M2) -> BN scale/bias (f32).
        s = stat[:, 0, :]                       # (n, planes)
        m2 = stat[:, 1, :]                      # (n, planes)
        mu_i = s / m
        mu = jnp.mean(mu_i, axis=0)
        var = (jnp.sum(m2, axis=0)
               + m * jnp.sum(jnp.square(mu_i - mu), axis=0)) / (n * m)
        scale = g.astype(f32) * jax.lax.rsqrt(var + _BN_EPS)
        bias = b.astype(f32) - mu * scale
        return scale.reshape(1, planes), bias.reshape(1, planes)

    sc1, bi1 = affine(st1, params["g1"], params["b1"])

    # ---- pass 2: bn1 + relu -> conv2 + BN partial stats ------------------------
    y2, st2 = pl.pallas_call(
        _make_pass2(ho, wo, planes, fuse2),
        out_shape=(act_shape, stat_shape),
        grid_spec=pltpu.PrefetchScalarGridSpec(
            num_scalar_prefetch=0, grid=(n,),
            in_specs=[img_spec(y1.shape), rep_spec(sc1), rep_spec(bi1),
                      rep_spec(w2f)],
            out_specs=(img_spec(act_shape.shape), img_spec(stat_shape.shape)),
            scratch_shapes=[pltpu.VMEM((1, ho + 2, wo + 2, planes), bf16)]),
        compiler_params=cp_arb,
    )(y1, sc1, bi1, w2f)

    sc2, bi2 = affine(st2, params["g2"], params["b2"])

    # ---- pass 3: bn2 + shortcut(+bn) + add + relu -------------------------------
    in3 = [y2, sc2, bi2]
    in3_specs = [img_spec(y2.shape), rep_spec(sc2), rep_spec(bi2)]
    if has_proj:
        scs, bis = affine(sts, params["gs"], params["bs"])
        in3 += [ys, scs, bis]
        in3_specs += [img_spec(ys.shape), rep_spec(scs), rep_spec(bis)]
    else:
        x_id = x_bf.reshape(n, m, planes)      # identity shortcut, bf16 (no f32 re-read)
        in3.append(x_id)
        in3_specs.append(img_spec(x_id.shape))

    out_flat = pl.pallas_call(
        _make_pass3(has_proj),
        out_shape=jax.ShapeDtypeStruct((n, m, planes), x_nchw.dtype),
        grid_spec=pltpu.PrefetchScalarGridSpec(
            num_scalar_prefetch=0, grid=(n,),
            in_specs=in3_specs,
            out_specs=img_spec((n, m, planes))),
        compiler_params=cp_par,
    )(*in3)

    # glue: (n, ho*wo, planes) -> NCHW
    return jnp.transpose(out_flat.reshape(n, ho, wo, planes), (0, 3, 1, 2))


# ----------------------------------------------------------------------------
# references and test
# ----------------------------------------------------------------------------
def _reference(x, params, stride, quantize=False):
    """Pure-JAX reference mirroring the PyTorch forward (training-mode BN).

    quantize=True casts conv operands to bf16 (and back) to mimic the kernel's
    bf16-MXU / f32-accumulate arithmetic for a tighter comparison.
    """
    qf = (lambda a: a.astype(jnp.bfloat16).astype(jnp.float32)) if quantize else (lambda a: a)

    def conv(xx, ww, s, pad):
        return jax.lax.conv_general_dilated(
            qf(xx), qf(ww), (s, s), pad,
            dimension_numbers=("NCHW", "OIHW", "NCHW"),
            precision=jax.lax.Precision.HIGHEST)

    def bn(xx, g, b):
        mu = xx.mean(axis=(0, 2, 3), keepdims=True)
        var = jnp.square(xx - mu).mean(axis=(0, 2, 3), keepdims=True)
        return ((xx - mu) * jax.lax.rsqrt(var + _BN_EPS)
                * g.reshape(1, -1, 1, 1) + b.reshape(1, -1, 1, 1))

    planes = params["w1"].shape[0]
    out = jax.nn.relu(bn(conv(x, params["w1"], stride, ((1, 1), (1, 1))),
                         params["g1"], params["b1"]))
    out = bn(conv(out, params["w2"], 1, ((1, 1), (1, 1))),
             params["g2"], params["b2"])
    if stride != 1 or x.shape[1] != planes:
        sc = bn(conv(x, params["ws"], stride, ((0, 0), (0, 0))),
                params["gs"], params["bs"])
    else:
        sc = x
    return jax.nn.relu(out + sc)


if __name__ == "__main__":
    key = jax.random.PRNGKey(0)

    def kaiming(k, shape):
        fan_in = shape[1] * shape[2] * shape[3]
        return jax.random.normal(k, shape, jnp.float32) * math.sqrt(2.0 / fan_in)

    def make_case(k, n, cin, planes, h, w, stride):
        ks = jax.random.split(k, 10)
        params = {
            "w1": kaiming(ks[1], (planes, cin, 3, 3)),
            "g1": 1.0 + 0.1 * jax.random.normal(ks[2], (planes,), jnp.float32),
            "b1": 0.1 * jax.random.normal(ks[3], (planes,), jnp.float32),
            "w2": kaiming(ks[4], (planes, planes, 3, 3)),
            "g2": 1.0 + 0.1 * jax.random.normal(ks[5], (planes,), jnp.float32),
            "b2": 0.1 * jax.random.normal(ks[6], (planes,), jnp.float32),
        }
        if stride != 1 or cin != planes:
            params.update({
                "ws": kaiming(ks[7], (planes, cin, 1, 1)),
                "gs": 1.0 + 0.1 * jax.random.normal(ks[8], (planes,), jnp.float32),
                "bs": 0.1 * jax.random.normal(ks[9], (planes,), jnp.float32),
            })
        x = jax.random.normal(ks[0], (n, cin, h, w), jnp.float32)
        return x, params

    cases = [
        (2, 4, 8, 16, 16, 1),   # projection shortcut (Cin != planes), stride 1  (primary)
        (2, 8, 8, 16, 16, 1),   # identity shortcut
        (2, 4, 8, 16, 16, 2),   # stride-2 projection shortcut
    ]
    for idx, (n, cin, planes, h, w, stride) in enumerate(cases):
        x, params = make_case(jax.random.fold_in(key, idx), n, cin, planes, h, w, stride)
        out = jax.block_until_ready(basic_block_forward(x, params, stride=stride))

        ref_q = _reference(x, params, stride, quantize=True)    # bf16-operand reference
        ref_f = _reference(x, params, stride, quantize=False)   # full-f32 reference
        assert out.shape == ref_f.shape, (out.shape, ref_f.shape)

        err_q = float(jnp.max(jnp.abs(out - ref_q)))
        err_f = float(jnp.max(jnp.abs(out - ref_f)))
        # Tight-ish check vs the bf16-quantized reference (kernel also keeps
        # bf16 intermediates, so allow a little extra slack), plus a loose
        # sanity check vs the full-f32 reference.
        assert jnp.allclose(out, ref_q, atol=5e-2, rtol=5e-2), (idx, err_q)
        assert jnp.allclose(out, ref_f, atol=1e-1, rtol=1e-1), (idx, err_f)

    print("KERNEL_OK")
</pallas_src>

<mosaic_0001>
module attributes {stable_mosaic.version = 11 : i64} {
  func.func @kernel(%arg0: i32, %arg1: memref<1x18x18x4xbf16, #tpu.memory_space<vmem>>, %arg2: memref<36x8xbf16, #tpu.memory_space<vmem>>, %arg3: memref<4x8xbf16, #tpu.memory_space<vmem>>, %arg4: memref<1x256x8xbf16, #tpu.memory_space<vmem>>, %arg5: memref<1x2x8xf32, #tpu.memory_space<vmem>>, %arg6: memref<1x256x8xbf16, #tpu.memory_space<vmem>>, %arg7: memref<1x2x8xf32, #tpu.memory_space<vmem>>) attributes {dimension_semantics = [#tpu.dimension_semantics<parallel>], iteration_bounds = array<i64: 2>, scalar_prefetch = 0 : i64, scratch_operands = 0 : i64, tpu.core_type = #tpu.core_type<tc>, window_params = [{transform_indices = @transform_0, window_bounds = array<i64: 1, 18, 18, 4>}, {pipeline_mode = #tpu.pipeline_mode<synchronous>, transform_indices = @transform_1, window_bounds = array<i64: 36, 8>}, {pipeline_mode = #tpu.pipeline_mode<synchronous>, transform_indices = @transform_2, window_bounds = array<i64: 4, 8>}, {transform_indices = @transform_3, window_bounds = array<i64: 1, 256, 8>}, {transform_indices = @transform_4, window_bounds = array<i64: 1, 2, 8>}, {transform_indices = @transform_5, window_bounds = array<i64: 1, 256, 8>}, {transform_indices = @transform_6, window_bounds = array<i64: 1, 2, 8>}]} {
    %c0 = arith.constant 0 : index
    %c0_0 = arith.constant 0 : index
    %0 = vector.load %arg2[%c0, %c0_0] : memref<36x8xbf16, #tpu.memory_space<vmem>>, vector<36x8xbf16>
    %c0_1 = arith.constant 0 : index
    %c0_2 = arith.constant 0 : index
    %c0_3 = arith.constant 0 : index
    %c0_4 = arith.constant 0 : index
    %1 = vector.load %arg1[%c0_1, %c0_2, %c0_3, %c0_4] : memref<1x18x18x4xbf16, #tpu.memory_space<vmem>>, vector<1x16x16x4xbf16>
    %2 = vector.shape_cast %1 : vector<1x16x16x4xbf16> to vector<16x16x4xbf16>
    %3 = vector.shape_cast %2 : vector<16x16x4xbf16> to vector<256x4xbf16>
    %4 = vector.extract_strided_slice %0 {offsets = [0, 0], sizes = [4, 8], strides = [1, 1]} : vector<36x8xbf16> to vector<4x8xbf16>
    %cst = arith.constant dense<0.000000e+00> : vector<256x8xf32>
    %5 = tpu.matmul %3, %4, %cst {dimension_numbers = #tpu.dot_dimension_numbers<[1], [0], [0], [1], [0, 0, 1, 1], [], []>} : vector<256x4xbf16>, vector<4x8xbf16>, vector<256x8xf32> -> vector<256x8xf32>
    %c0_5 = arith.constant 0 : index
    %c0_6 = arith.constant 0 : index
    %c1 = arith.constant 1 : index
    %c0_7 = arith.constant 0 : index
    %6 = vector.load %arg1[%c0_5, %c0_6, %c1, %c0_7] : memref<1x18x18x4xbf16, #tpu.memory_space<vmem>>, vector<1x16x16x4xbf16>
    %7 = vector.shape_cast %6 : vector<1x16x16x4xbf16> to vector<16x16x4xbf16>
    %8 = vector.shape_cast %7 : vector<16x16x4xbf16> to vector<256x4xbf16>
    %9 = vector.extract_strided_slice %0 {offsets = [4, 0], sizes = [4, 8], strides = [1, 1]} : vector<36x8xbf16> to vector<4x8xbf16>
    %cst_8 = arith.constant dense<0.000000e+00> : vector<256x8xf32>
    %10 = tpu.matmul %8, %9, %cst_8 {dimension_numbers = #tpu.dot_dimension_numbers<[1], [0], [0], [1], [0, 0, 1, 1], [], []>} : vector<256x4xbf16>, vector<4x8xbf16>, vector<256x8xf32> -> vector<256x8xf32>
    %11 = arith.addf %5, %10 : vector<256x8xf32>
    %c0_9 = arith.constant 0 : index
    %c0_10 = arith.constant 0 : index
    %c2 = arith.constant 2 : index
    %c0_11 = arith.constant 0 : index
    %12 = vector.load %arg1[%c0_9, %c0_10, %c2, %c0_11] : memref<1x18x18x4xbf16, #tpu.memory_space<vmem>>, vector<1x16x16x4xbf16>
    %13 = vector.shape_cast %12 : vector<1x16x16x4xbf16> to vector<16x16x4xbf16>
    %14 = vector.shape_cast %13 : vector<16x16x4xbf16> to vector<256x4xbf16>
    %15 = vector.extract_strided_slice %0 {offsets = [8, 0], sizes = [4, 8], strides = [1, 1]} : vector<36x8xbf16> to vector<4x8xbf16>
    %cst_12 = arith.constant dense<0.000000e+00> : vector<256x8xf32>
    %16 = tpu.matmul %14, %15, %cst_12 {dimension_numbers = #tpu.dot_dimension_numbers<[1], [0], [0], [1], [0, 0, 1, 1], [], []>} : vector<256x4xbf16>, vector<4x8xbf16>, vector<256x8xf32> -> vector<256x8xf32>
    %17 = arith.addf %11, %16 : vector<256x8xf32>
    %c0_13 = arith.constant 0 : index
    %c1_14 = arith.constant 1 : index
    %c0_15 = arith.constant 0 : index
    %c0_16 = arith.constant 0 : index
    %18 = vector.load %arg1[%c0_13, %c1_14, %c0_15, %c0_16] : memref<1x18x18x4xbf16, #tpu.memory_space<vmem>>, vector<1x16x16x4xbf16>
    %19 = vector.shape_cast %18 : vector<1x16x16x4xbf16> to vector<16x16x4xbf16>
    %20 = vector.shape_cast %19 : vector<16x16x4xbf16> to vector<256x4xbf16>
    %21 = vector.extract_strided_slice %0 {offsets = [12, 0], sizes = [4, 8], strides = [1, 1]} : vector<36x8xbf16> to vector<4x8xbf16>
    %cst_17 = arith.constant dense<0.000000e+00> : vector<256x8xf32>
    %22 = tpu.matmul %20, %21, %cst_17 {dimension_numbers = #tpu.dot_dimension_numbers<[1], [0], [0], [1], [0, 0, 1, 1], [], []>} : vector<256x4xbf16>, vector<4x8xbf16>, vector<256x8xf32> -> vector<256x8xf32>
    %23 = arith.addf %17, %22 : vector<256x8xf32>
    %c0_18 = arith.constant 0 : index
    %c1_19 = arith.constant 1 : index
    %c1_20 = arith.constant 1 : index
    %c0_21 = arith.constant 0 : index
    %24 = vector.load %arg1[%c0_18, %c1_19, %c1_20, %c0_21] : memref<1x18x18x4xbf16, #tpu.memory_space<vmem>>, vector<1x16x16x4xbf16>
    %25 = vector.shape_cast %24 : vector<1x16x16x4xbf16> to vector<16x16x4xbf16>
    %26 = vector.shape_cast %25 : vector<16x16x4xbf16> to vector<256x4xbf16>
    %27 = vector.extract_strided_slice %0 {offsets = [16, 0], sizes = [4, 8], strides = [1, 1]} : vector<36x8xbf16> to vector<4x8xbf16>
    %cst_22 = arith.constant dense<0.000000e+00> : vector<256x8xf32>
    %28 = tpu.matmul %26, %27, %cst_22 {dimension_numbers = #tpu.dot_dimension_numbers<[1], [0], [0], [1], [0, 0, 1, 1], [], []>} : vector<256x4xbf16>, vector<4x8xbf16>, vector<256x8xf32> -> vector<256x8xf32>
    %29 = arith.addf %23, %28 : vector<256x8xf32>
    %c0_23 = arith.constant 0 : index
    %c1_24 = arith.constant 1 : index
    %c2_25 = arith.constant 2 : index
    %c0_26 = arith.constant 0 : index
    %30 = vector.load %arg1[%c0_23, %c1_24, %c2_25, %c0_26] : memref<1x18x18x4xbf16, #tpu.memory_space<vmem>>, vector<1x16x16x4xbf16>
    %31 = vector.shape_cast %30 : vector<1x16x16x4xbf16> to vector<16x16x4xbf16>
    %32 = vector.shape_cast %31 : vector<16x16x4xbf16> to vector<256x4xbf16>
    %33 = vector.extract_strided_slice %0 {offsets = [20, 0], sizes = [4, 8], strides = [1, 1]} : vector<36x8xbf16> to vector<4x8xbf16>
    %cst_27 = arith.constant dense<0.000000e+00> : vector<256x8xf32>
    %34 = tpu.matmul %32, %33, %cst_27 {dimension_numbers = #tpu.dot_dimension_numbers<[1], [0], [0], [1], [0, 0, 1, 1], [], []>} : vector<256x4xbf16>, vector<4x8xbf16>, vector<256x8xf32> -> vector<256x8xf32>
    %35 = arith.addf %29, %34 : vector<256x8xf32>
    %c0_28 = arith.constant 0 : index
    %c2_29 = arith.constant 2 : index
    %c0_30 = arith.constant 0 : index
    %c0_31 = arith.constant 0 : index
    %36 = vector.load %arg1[%c0_28, %c2_29, %c0_30, %c0_31] : memref<1x18x18x4xbf16, #tpu.memory_space<vmem>>, vector<1x16x16x4xbf16>
    %37 = vector.shape_cast %36 : vector<1x16x16x4xbf16> to vector<16x16x4xbf16>
    %38 = vector.shape_cast %37 : vector<16x16x4xbf16> to vector<256x4xbf16>
    %39 = vector.extract_strided_slice %0 {offsets = [24, 0], sizes = [4, 8], strides = [1, 1]} : vector<36x8xbf16> to vector<4x8xbf16>
    %cst_32 = arith.constant dense<0.000000e+00> : vector<256x8xf32>
    %40 = tpu.matmul %38, %39, %cst_32 {dimension_numbers = #tpu.dot_dimension_numbers<[1], [0], [0], [1], [0, 0, 1, 1], [], []>} : vector<256x4xbf16>, vector<4x8xbf16>, vector<256x8xf32> -> vector<256x8xf32>
    %41 = arith.addf %35, %40 : vector<256x8xf32>
    %c0_33 = arith.constant 0 : index
    %c2_34 = arith.constant 2 : index
    %c1_35 = arith.constant 1 : index
    %c0_36 = arith.constant 0 : index
    %42 = vector.load %arg1[%c0_33, %c2_34, %c1_35, %c0_36] : memref<1x18x18x4xbf16, #tpu.memory_space<vmem>>, vector<1x16x16x4xbf16>
    %43 = vector.shape_cast %42 : vector<1x16x16x4xbf16> to vector<16x16x4xbf16>
    %44 = vector.shape_cast %43 : vector<16x16x4xbf16> to vector<256x4xbf16>
    %45 = vector.extract_strided_slice %0 {offsets = [28, 0], sizes = [4, 8], strides = [1, 1]} : vector<36x8xbf16> to vector<4x8xbf16>
    %cst_37 = arith.constant dense<0.000000e+00> : vector<256x8xf32>
    %46 = tpu.matmul %44, %45, %cst_37 {dimension_numbers = #tpu.dot_dimension_numbers<[1], [0], [0], [1], [0, 0, 1, 1], [], []>} : vector<256x4xbf16>, vector<4x8xbf16>, vector<256x8xf32> -> vector<256x8xf32>
    %47 = arith.addf %41, %46 : vector<256x8xf32>
    %c0_38 = arith.constant 0 : index
    %c2_39 = arith.constant 2 : index
    %c2_40 = arith.constant 2 : index
    %c0_41 = arith.constant 0 : index
    %48 = vector.load %arg1[%c0_38, %c2_39, %c2_40, %c0_41] : memref<1x18x18x4xbf16, #tpu.memory_space<vmem>>, vector<1x16x16x4xbf16>
    %49 = vector.shape_cast %48 : vector<1x16x16x4xbf16> to vector<16x16x4xbf16>
    %50 = vector.shape_cast %49 : vector<16x16x4xbf16> to vector<256x4xbf16>
    %51 = vector.extract_strided_slice %0 {offsets = [32, 0], sizes = [4, 8], strides = [1, 1]} : vector<36x8xbf16> to vector<4x8xbf16>
    %cst_42 = arith.constant dense<0.000000e+00> : vector<256x8xf32>
    %52 = tpu.matmul %50, %51, %cst_42 {dimension_numbers = #tpu.dot_dimension_numbers<[1], [0], [0], [1], [0, 0, 1, 1], [], []>} : vector<256x4xbf16>, vector<4x8xbf16>, vector<256x8xf32> -> vector<256x8xf32>
    %53 = arith.addf %47, %52 : vector<256x8xf32>
    %54 = arith.truncf %53 : vector<256x8xf32> to vector<256x8xbf16>
    %55 = vector.shape_cast %54 : vector<256x8xbf16> to vector<1x256x8xbf16>
    %c0_43 = arith.constant 0 : index
    %c0_44 = arith.constant 0 : index
    %c0_45 = arith.constant 0 : index
    %56 = vector.load %arg4[%c0_43, %c0_44, %c0_45] : memref<1x256x8xbf16, #tpu.memory_space<vmem>>, vector<1x256x8xbf16>
    tpu.vector_store %arg4[%c0_43, %c0_44, %c0_45], %55 {strides = array<i32>} : memref<1x256x8xbf16, #tpu.memory_space<vmem>>, vector<1x256x8xbf16>,
    %cst_46 = arith.constant dense<0.000000e+00> : vector<8xf32>
    %57 = vector.multi_reduction <add>, %53, %cst_46 [0] : vector<256x8xf32> to vector<8xf32>
    %58 = vector.shape_cast %57 : vector<8xf32> to vector<1x8xf32>
    %cst_47 = arith.constant 3.906250e-03 : f32
    %59 = vector.broadcast %cst_47 : f32 to vector<1x8xf32>
    %60 = arith.mulf %58, %59 : vector<1x8xf32>
    %61 = vector.broadcast %60 : vector<1x8xf32> to vector<256x8xf32>
    %62 = arith.subf %53, %61 : vector<256x8xf32>
    %63 = arith.mulf %62, %62 : vector<256x8xf32>
    %cst_48 = arith.constant dense<0.000000e+00> : vector<8xf32>
    %64 = vector.multi_reduction <add>, %63, %cst_48 [0] : vector<256x8xf32> to vector<8xf32>
    %65 = vector.shape_cast %64 : vector<8xf32> to vector<1x8xf32>
    %c0_49 = arith.constant 0 : index
    %c0_50 = arith.constant 0 : index
    %c0_51 = arith.constant 0 : index
    %66 = vector.load %arg5[%c0_49, %c0_50, %c0_51] : memref<1x2x8xf32, #tpu.memory_space<vmem>>, vector<1x1x8xf32>
    %67 = vector.shape_cast %66 : vector<1x1x8xf32> to vector<1x8xf32>
    %68 = vector.shape_cast %58 : vector<1x8xf32> to vector<1x1x8xf32>
    tpu.vector_store %arg5[%c0_49, %c0_50, %c0_51], %68 {strides = array<i32>} : memref<1x2x8xf32, #tpu.memory_space<vmem>>, vector<1x1x8xf32>,
    %c0_52 = arith.constant 0 : index
    %c1_53 = arith.constant 1 : index
    %c0_54 = arith.constant 0 : index
    %69 = vector.load %arg5[%c0_52, %c1_53, %c0_54] : memref<1x2x8xf32, #tpu.memory_space<vmem>>, vector<1x1x8xf32>
    %70 = vector.shape_cast %69 : vector<1x1x8xf32> to vector<1x8xf32>
    %71 = vector.shape_cast %65 : vector<1x8xf32> to vector<1x1x8xf32>
    tpu.vector_store %arg5[%c0_52, %c1_53, %c0_54], %71 {strides = array<i32>} : memref<1x2x8xf32, #tpu.memory_space<vmem>>, vector<1x1x8xf32>,
    %c0_55 = arith.constant 0 : index
    %c1_56 = arith.constant 1 : index
    %c1_57 = arith.constant 1 : index
    %c0_58 = arith.constant 0 : index
    %72 = vector.load %arg1[%c0_55, %c1_56, %c1_57, %c0_58] : memref<1x18x18x4xbf16, #tpu.memory_space<vmem>>, vector<1x16x16x4xbf16>
    %73 = vector.shape_cast %72 : vector<1x16x16x4xbf16> to vector<16x16x4xbf16>
    %74 = vector.shape_cast %73 : vector<16x16x4xbf16> to vector<256x4xbf16>
    %c0_59 = arith.constant 0 : index
    %c0_60 = arith.constant 0 : index
    %75 = vector.load %arg3[%c0_59, %c0_60] : memref<4x8xbf16, #tpu.memory_space<vmem>>, vector<4x8xbf16>
    %cst_61 = arith.constant dense<0.000000e+00> : vector<256x8xf32>
    %76 = tpu.matmul %74, %75, %cst_61 {dimension_numbers = #tpu.dot_dimension_numbers<[1], [0], [0], [1], [0, 0, 1, 1], [], []>} : vector<256x4xbf16>, vector<4x8xbf16>, vector<256x8xf32> -> vector<256x8xf32>
    %77 = arith.truncf %76 : vector<256x8xf32> to vector<256x8xbf16>
    %78 = vector.shape_cast %77 : vector<256x8xbf16> to vector<1x256x8xbf16>
    %c0_62 = arith.constant 0 : index
    %c0_63 = arith.constant 0 : index
    %c0_64 = arith.constant 0 : index
    %79 = vector.load %arg6[%c0_62, %c0_63, %c0_64] : memref<1x256x8xbf16, #tpu.memory_space<vmem>>, vector<1x256x8xbf16>
    tpu.vector_store %arg6[%c0_62, %c0_63, %c0_64], %78 {strides = array<i32>} : memref<1x256x8xbf16, #tpu.memory_space<vmem>>, vector<1x256x8xbf16>,
    %cst_65 = arith.constant dense<0.000000e+00> : vector<8xf32>
    %80 = vector.multi_reduction <add>, %76, %cst_65 [0] : vector<256x8xf32> to vector<8xf32>
    %81 = vector.shape_cast %80 : vector<8xf32> to vector<1x8xf32>
    %cst_66 = arith.constant 3.906250e-03 : f32
    %82 = vector.broadcast %cst_66 : f32 to vector<1x8xf32>
    %83 = arith.mulf %81, %82 : vector<1x8xf32>
    %84 = vector.broadcast %83 : vector<1x8xf32> to vector<256x8xf32>
    %85 = arith.subf %76, %84 : vector<256x8xf32>
    %86 = arith.mulf %85, %85 : vector<256x8xf32>
    %cst_67 = arith.constant dense<0.000000e+00> : vector<8xf32>
    %87 = vector.multi_reduction <add>, %86, %cst_67 [0] : vector<256x8xf32> to vector<8xf32>
    %88 = vector.shape_cast %87 : vector<8xf32> to vector<1x8xf32>
    %c0_68 = arith.constant 0 : index
    %c0_69 = arith.constant 0 : index
    %c0_70 = arith.constant 0 : index
    %89 = vector.load %arg7[%c0_68, %c0_69, %c0_70] : memref<1x2x8xf32, #tpu.memory_space<vmem>>, vector<1x1x8xf32>
    %90 = vector.shape_cast %89 : vector<1x1x8xf32> to vector<1x8xf32>
    %91 = vector.shape_cast %81 : vector<1x8xf32> to vector<1x1x8xf32>
    tpu.vector_store %arg7[%c0_68, %c0_69, %c0_70], %91 {strides = array<i32>} : memref<1x2x8xf32, #tpu.memory_space<vmem>>, vector<1x1x8xf32>,
    %c0_71 = arith.constant 0 : index
    %c1_72 = arith.constant 1 : index
    %c0_73 = arith.constant 0 : index
    %92 = vector.load %arg7[%c0_71, %c1_72, %c0_73] : memref<1x2x8xf32, #tpu.memory_space<vmem>>, vector<1x1x8xf32>
    %93 = vector.shape_cast %92 : vector<1x1x8xf32> to vector<1x8xf32>
    %94 = vector.shape_cast %88 : vector<1x8xf32> to vector<1x1x8xf32>
    tpu.vector_store %arg7[%c0_71, %c1_72, %c0_73], %94 {strides = array<i32>} : memref<1x2x8xf32, #tpu.memory_space<vmem>>, vector<1x1x8xf32>,
    return
  }
  func.func @transform_0(%arg0: i32) -> (i32, i32, i32, i32) {
    %c0_i32 = arith.constant 0 : i32
    %c0_i32_0 = arith.constant 0 : i32
    %c0_i32_1 = arith.constant 0 : i32
    %c0_i32_2 = arith.constant 0 : i32
    return %arg0, %c0_i32, %c0_i32_0, %c0_i32_1 : i32, i32, i32, i32
  }
  func.func @transform_1(%arg0: i32) -> (i32, i32) {
    %c0_i32 = arith.constant 0 : i32
    %c0_i32_0 = arith.constant 0 : i32
    %c0_i32_1 = arith.constant 0 : i32
    return %c0_i32, %c0_i32_0 : i32, i32
  }
  func.func @transform_2(%arg0: i32) -> (i32, i32) {
    %c0_i32 = arith.constant 0 : i32
    %c0_i32_0 = arith.constant 0 : i32
    %c0_i32_1 = arith.constant 0 : i32
    return %c0_i32, %c0_i32_0 : i32, i32
  }
  func.func @transform_3(%arg0: i32) -> (i32, i32, i32) {
    %c0_i32 = arith.constant 0 : i32
    %c0_i32_0 = arith.constant 0 : i32
    %c0_i32_1 = arith.constant 0 : i32
    return %arg0, %c0_i32, %c0_i32_0 : i32, i32, i32
  }
  func.func @transform_4(%arg0: i32) -> (i32, i32, i32) {
    %c0_i32 = arith.constant 0 : i32
    %c0_i32_0 = arith.constant 0 : i32
    %c0_i32_1 = arith.constant 0 : i32
    return %arg0, %c0_i32, %c0_i32_0 : i32, i32, i32
  }
  func.func @transform_5(%arg0: i32) -> (i32, i32, i32) {
    %c0_i32 = arith.constant 0 : i32
    %c0_i32_0 = arith.constant 0 : i32
    %c0_i32_1 = arith.constant 0 : i32
    return %arg0, %c0_i32, %c0_i32_0 : i32, i32, i32
  }
  func.func @transform_6(%arg0: i32) -> (i32, i32, i32) {
    %c0_i32 = arith.constant 0 : i32
    %c0_i32_0 = arith.constant 0 : i32
    %c0_i32_1 = arith.constant 0 : i32
    return %arg0, %c0_i32, %c0_i32_0 : i32, i32, i32
  }
}

module attributes {stable_mosaic.version = 11 : i64} {
  func.func @kernel(%arg0: i32, %arg1: memref<1x256x8xbf16, #tpu.memory_space<vmem>>, %arg2: memref<1x8xf32, #tpu.memory_space<vmem>>, %arg3: memref<1x8xf32, #tpu.memory_space<vmem>>, %arg4: memref<1x256x8xbf16, #tpu.memory_space<vmem>>, %arg5: memref<1x8xf32, #tpu.memory_space<vmem>>, %arg6: memref<1x8xf32, #tpu.memory_space<vmem>>, %arg7: memref<1x256x8xf32, #tpu.memory_space<vmem>>) attributes {dimension_semantics = [#tpu.dimension_semantics<parallel>], iteration_bounds = array<i64: 2>, scalar_prefetch = 0 : i64, scratch_operands = 0 : i64, tpu.core_type = #tpu.core_type<tc>, window_params = [{transform_indices = @transform_0, window_bounds = array<i64: 1, 256, 8>}, {pipeline_mode = #tpu.pipeline_mode<synchronous>, transform_indices = @transform_1, window_bounds = array<i64: 1, 8>}, {pipeline_mode = #tpu.pipeline_mode<synchronous>, transform_indices = @transform_2, window_bounds = array<i64: 1, 8>}, {transform_indices = @transform_3, window_bounds = array<i64: 1, 256, 8>}, {pipeline_mode = #tpu.pipeline_mode<synchronous>, transform_indices = @transform_4, window_bounds = array<i64: 1, 8>}, {pipeline_mode = #tpu.pipeline_mode<synchronous>, transform_indices = @transform_5, window_bounds = array<i64: 1, 8>}, {transform_indices = @transform_6, window_bounds = array<i64: 1, 256, 8>}]} {
    %c0 = arith.constant 0 : index
    %c0_0 = arith.constant 0 : index
    %c0_1 = arith.constant 0 : index
    %0 = vector.load %arg4[%c0, %c0_0, %c0_1] : memref<1x256x8xbf16, #tpu.memory_space<vmem>>, vector<1x256x8xbf16>
    %1 = vector.shape_cast %0 : vector<1x256x8xbf16> to vector<256x8xbf16>
    %2 = arith.extf %1 : vector<256x8xbf16> to vector<256x8xf32>
    %c0_2 = arith.constant 0 : index
    %c0_3 = arith.constant 0 : index
    %3 = vector.load %arg5[%c0_2, %c0_3] : memref<1x8xf32, #tpu.memory_space<vmem>>, vector<1x8xf32>
    %4 = vector.broadcast %3 : vector<1x8xf32> to vector<256x8xf32>
    %5 = arith.mulf %2, %4 : vector<256x8xf32>
    %c0_4 = arith.constant 0 : index
    %c0_5 = arith.constant 0 : index
    %6 = vector.load %arg6[%c0_4, %c0_5] : memref<1x8xf32, #tpu.memory_space<vmem>>, vector<1x8xf32>
    %7 = vector.broadcast %6 : vector<1x8xf32> to vector<256x8xf32>
    %8 = arith.addf %5, %7 : vector<256x8xf32>
    %c0_6 = arith.constant 0 : index
    %c0_7 = arith.constant 0 : index
    %c0_8 = arith.constant 0 : index
    %9 = vector.load %arg1[%c0_6, %c0_7, %c0_8] : memref<1x256x8xbf16, #tpu.memory_space<vmem>>, vector<1x256x8xbf16>
    %10 = vector.shape_cast %9 : vector<1x256x8xbf16> to vector<256x8xbf16>
    %11 = arith.extf %10 : vector<256x8xbf16> to vector<256x8xf32>
    %c0_9 = arith.constant 0 : index
    %c0_10 = arith.constant 0 : index
    %12 = vector.load %arg2[%c0_9, %c0_10] : memref<1x8xf32, #tpu.memory_space<vmem>>, vector<1x8xf32>
    %13 = vector.broadcast %12 : vector<1x8xf32> to vector<256x8xf32>
    %14 = arith.mulf %11, %13 : vector<256x8xf32>
    %c0_11 = arith.constant 0 : index
    %c0_12 = arith.constant 0 : index
    %15 = vector.load %arg3[%c0_11, %c0_12] : memref<1x8xf32, #tpu.memory_space<vmem>>, vector<1x8xf32>
    %16 = vector.broadcast %15 : vector<1x8xf32> to vector<256x8xf32>
    %17 = arith.addf %14, %16 : vector<256x8xf32>
    %18 = arith.addf %17, %8 : vector<256x8xf32>
    %cst = arith.constant 0.000000e+00 : f32
    %19 = vector.broadcast %cst : f32 to vector<256x8xf32>
    %20 = arith.maximumf %18, %19 : vector<256x8xf32>
    %21 = vector.shape_cast %20 : vector<256x8xf32> to vector<1x256x8xf32>
    %c0_13 = arith.constant 0 : index
    %c0_14 = arith.constant 0 : index
    %c0_15 = arith.constant 0 : index
    %22 = vector.load %arg7[%c0_13, %c0_14, %c0_15] : memref<1x256x8xf32, #tpu.memory_space<vmem>>, vector<1x256x8xf32>
    tpu.vector_store %arg7[%c0_13, %c0_14, %c0_15], %21 {strides = array<i32>} : memref<1x256x8xf32, #tpu.memory_space<vmem>>, vector<1x256x8xf32>,
    return
  }
  func.func @transform_0(%arg0: i32) -> (i32, i32, i32) {
    %c0_i32 = arith.constant 0 : i32
    %c0_i32_0 = arith.constant 0 : i32
    %c0_i32_1 = arith.constant 0 : i32
    return %arg0, %c0_i32, %c0_i32_0 : i32, i32, i32
  }
  func.func @transform_1(%arg0: i32) -> (i32, i32) {
    %c0_i32 = arith.constant 0 : i32
    %c0_i32_0 = arith.constant 0 : i32
    %c0_i32_1 = arith.constant 0 : i32
    return %c0_i32, %c0_i32_0 : i32, i32
  }
  func.func @transform_2(%arg0: i32) -> (i32, i32) {
    %c0_i32 = arith.constant 0 : i32
    %c0_i32_0 = arith.constant 0 : i32
    %c0_i32_1 = arith.constant 0 : i32
    return %c0_i32, %c0_i32_0 : i32, i32
  }
  func.func @transform_3(%arg0: i32) -> (i32, i32, i32) {
    %c0_i32 = arith.constant 0 : i32
    %c0_i32_0 = arith.constant 0 : i32
    %c0_i32_1 = arith.constant 0 : i32
    return %arg0, %c0_i32, %c0_i32_0 : i32, i32, i32
  }
  func.func @transform_4(%arg0: i32) -> (i32, i32) {
    %c0_i32 = arith.constant 0 : i32
    %c0_i32_0 = arith.constant 0 : i32
    %c0_i32_1 = arith.constant 0 : i32
    return %c0_i32, %c0_i32_0 : i32, i32
  }
  func.func @transform_5(%arg0: i32) -> (i32, i32) {
    %c0_i32 = arith.constant 0 : i32
    %c0_i32_0 = arith.constant 0 : i32
    %c0_i32_1 = arith.constant 0 : i32
    return %c0_i32, %c0_i32_0 : i32, i32
  }
  func.func @transform_6(%arg0: i32) -> (i32, i32, i32) {
    %c0_i32 = arith.constant 0 : i32
    %c0_i32_0 = arith.constant 0 : i32
    %c0_i32_1 = arith.constant 0 : i32
    return %arg0, %c0_i32, %c0_i32_0 : i32, i32, i32
  }
}

module attributes {stable_mosaic.version = 11 : i64} {
  func.func @kernel(%arg0: i32, %arg1: memref<1x256x8xbf16, #tpu.memory_space<vmem>>, %arg2: memref<1x8xf32, #tpu.memory_space<vmem>>, %arg3: memref<1x8xf32, #tpu.memory_space<vmem>>, %arg4: memref<72x8xbf16, #tpu.memory_space<vmem>>, %arg5: memref<1x256x8xbf16, #tpu.memory_space<vmem>>, %arg6: memref<1x2x8xf32, #tpu.memory_space<vmem>>, %arg7: memref<1x18x18x8xbf16, #tpu.memory_space<vmem>>) attributes {dimension_semantics = [#tpu.dimension_semantics<arbitrary>], iteration_bounds = array<i64: 2>, scalar_prefetch = 0 : i64, scratch_operands = 1 : i64, tpu.core_type = #tpu.core_type<tc>, window_params = [{transform_indices = @transform_0, window_bounds = array<i64: 1, 256, 8>}, {pipeline_mode = #tpu.pipeline_mode<synchronous>, transform_indices = @transform_1, window_bounds = array<i64: 1, 8>}, {pipeline_mode = #tpu.pipeline_mode<synchronous>, transform_indices = @transform_2, window_bounds = array<i64: 1, 8>}, {pipeline_mode = #tpu.pipeline_mode<synchronous>, transform_indices = @transform_3, window_bounds = array<i64: 72, 8>}, {transform_indices = @transform_4, window_bounds = array<i64: 1, 256, 8>}, {transform_indices = @transform_5, window_bounds = array<i64: 1, 2, 8>}]} {
    %c0_i32 = arith.constant 0 : i32
    %0 = arith.cmpi eq, %arg0, %c0_i32 : i32
    %1 = arith.extui %0 : i1 to i32
    %c0_i32_0 = arith.constant 0 : i32
    %2 = arith.cmpi ne, %1, %c0_i32_0 : i32
    scf.if %2 {
      %cst_68 = arith.constant 0.000000e+00 : bf16
      %91 = vector.broadcast %cst_68 : bf16 to vector<1x18x8xbf16>
      %c0_69 = arith.constant 0 : index
      %c0_70 = arith.constant 0 : index
      %c0_71 = arith.constant 0 : index
      %c0_72 = arith.constant 0 : index
      %92 = vector.load %arg7[%c0_69, %c0_70, %c0_71, %c0_72] : memref<1x18x18x8xbf16, #tpu.memory_space<vmem>>, vector<1x1x18x8xbf16>
      %93 = vector.shape_cast %92 : vector<1x1x18x8xbf16> to vector<1x18x8xbf16>
      %94 = vector.shape_cast %91 : vector<1x18x8xbf16> to vector<1x1x18x8xbf16>
      tpu.vector_store %arg7[%c0_69, %c0_70, %c0_71, %c0_72], %94 {strides = array<i32>} : memref<1x18x18x8xbf16, #tpu.memory_space<vmem>>, vector<1x1x18x8xbf16>,
      %cst_73 = arith.constant 0.000000e+00 : bf16
      %95 = vector.broadcast %cst_73 : bf16 to vector<1x18x8xbf16>
      %c0_74 = arith.constant 0 : index
      %c17 = arith.constant 17 : index
      %c0_75 = arith.constant 0 : index
      %c0_76 = arith.constant 0 : index
      %96 = vector.load %arg7[%c0_74, %c17, %c0_75, %c0_76] : memref<1x18x18x8xbf16, #tpu.memory_space<vmem>>, vector<1x1x18x8xbf16>
      %97 = vector.shape_cast %96 : vector<1x1x18x8xbf16> to vector<1x18x8xbf16>
      %98 = vector.shape_cast %95 : vector<1x18x8xbf16> to vector<1x1x18x8xbf16>
      tpu.vector_store %arg7[%c0_74, %c17, %c0_75, %c0_76], %98 {strides = array<i32>} : memref<1x18x18x8xbf16, #tpu.memory_space<vmem>>, vector<1x1x18x8xbf16>,
      %cst_77 = arith.constant 0.000000e+00 : bf16
      %99 = vector.broadcast %cst_77 : bf16 to vector<16x1x8xbf16>
      %c0_78 = arith.constant 0 : index
      %c1_79 = arith.constant 1 : index
      %c0_80 = arith.constant 0 : index
      %c0_81 = arith.constant 0 : index
      %100 = vector.load %arg7[%c0_78, %c1_79, %c0_80, %c0_81] : memref<1x18x18x8xbf16, #tpu.memory_space<vmem>>, vector<1x16x1x8xbf16>
      %101 = vector.shape_cast %100 : vector<1x16x1x8xbf16> to vector<16x1x8xbf16>
      %102 = vector.shape_cast %99 : vector<16x1x8xbf16> to vector<1x16x1x8xbf16>
      tpu.vector_store %arg7[%c0_78, %c1_79, %c0_80, %c0_81], %102 {strides = array<i32>} : memref<1x18x18x8xbf16, #tpu.memory_space<vmem>>, vector<1x16x1x8xbf16>,
      %cst_82 = arith.constant 0.000000e+00 : bf16
      %103 = vector.broadcast %cst_82 : bf16 to vector<16x1x8xbf16>
      %c0_83 = arith.constant 0 : index
      %c1_84 = arith.constant 1 : index
      %c17_85 = arith.constant 17 : index
      %c0_86 = arith.constant 0 : index
      %104 = vector.load %arg7[%c0_83, %c1_84, %c17_85, %c0_86] : memref<1x18x18x8xbf16, #tpu.memory_space<vmem>>, vector<1x16x1x8xbf16>
      %105 = vector.shape_cast %104 : vector<1x16x1x8xbf16> to vector<16x1x8xbf16>
      %106 = vector.shape_cast %103 : vector<16x1x8xbf16> to vector<1x16x1x8xbf16>
      tpu.vector_store %arg7[%c0_83, %c1_84, %c17_85, %c0_86], %106 {strides = array<i32>} : memref<1x18x18x8xbf16, #tpu.memory_space<vmem>>, vector<1x16x1x8xbf16>,
    } else {
    }
    %c0 = arith.constant 0 : index
    %c0_1 = arith.constant 0 : index
    %c0_2 = arith.constant 0 : index
    %3 = vector.load %arg1[%c0, %c0_1, %c0_2] : memref<1x256x8xbf16, #tpu.memory_space<vmem>>, vector<1x256x8xbf16>
    %4 = vector.shape_cast %3 : vector<1x256x8xbf16> to vector<256x8xbf16>
    %5 = arith.extf %4 : vector<256x8xbf16> to vector<256x8xf32>
    %c0_3 = arith.constant 0 : index
    %c0_4 = arith.constant 0 : index
    %6 = vector.load %arg2[%c0_3, %c0_4] : memref<1x8xf32, #tpu.memory_space<vmem>>, vector<1x8xf32>
    %7 = vector.broadcast %6 : vector<1x8xf32> to vector<256x8xf32>
    %8 = arith.mulf %5, %7 : vector<256x8xf32>
    %c0_5 = arith.constant 0 : index
    %c0_6 = arith.constant 0 : index
    %9 = vector.load %arg3[%c0_5, %c0_6] : memref<1x8xf32, #tpu.memory_space<vmem>>, vector<1x8xf32>
    %10 = vector.broadcast %9 : vector<1x8xf32> to vector<256x8xf32>
    %11 = arith.addf %8, %10 : vector<256x8xf32>
    %cst = arith.constant 0.000000e+00 : f32
    %12 = vector.broadcast %cst : f32 to vector<256x8xf32>
    %13 = arith.maximumf %11, %12 : vector<256x8xf32>
    %14 = vector.shape_cast %13 : vector<256x8xf32> to vector<16x16x8xf32>
    %15 = arith.truncf %14 : vector<16x16x8xf32> to vector<16x16x8xbf16>
    %c0_7 = arith.constant 0 : index
    %c1 = arith.constant 1 : index
    %c1_8 = arith.constant 1 : index
    %c0_9 = arith.constant 0 : index
    %16 = vector.load %arg7[%c0_7, %c1, %c1_8, %c0_9] : memref<1x18x18x8xbf16, #tpu.memory_space<vmem>>, vector<1x16x16x8xbf16>
    %17 = vector.shape_cast %16 : vector<1x16x16x8xbf16> to vector<16x16x8xbf16>
    %18 = vector.shape_cast %15 : vector<16x16x8xbf16> to vector<1x16x16x8xbf16>
    tpu.vector_store %arg7[%c0_7, %c1, %c1_8, %c0_9], %18 {strides = array<i32>} : memref<1x18x18x8xbf16, #tpu.memory_space<vmem>>, vector<1x16x16x8xbf16>,
    %c0_10 = arith.constant 0 : index
    %c0_11 = arith.constant 0 : index
    %19 = vector.load %arg4[%c0_10, %c0_11] : memref<72x8xbf16, #tpu.memory_space<vmem>>, vector<72x8xbf16>
    %c0_12 = arith.constant 0 : index
    %c0_13 = arith.constant 0 : index
    %c0_14 = arith.constant 0 : index
    %c0_15 = arith.constant 0 : index
    %20 = vector.load %arg7[%c0_12, %c0_13, %c0_14, %c0_15] : memref<1x18x18x8xbf16, #tpu.memory_space<vmem>>, vector<1x16x16x8xbf16>
    %21 = vector.shape_cast %20 : vector<1x16x16x8xbf16> to vector<16x16x8xbf16>
    %22 = vector.shape_cast %21 : vector<16x16x8xbf16> to vector<256x8xbf16>
    %23 = vector.extract_strided_slice %19 {offsets = [0, 0], sizes = [8, 8], strides = [1, 1]} : vector<72x8xbf16> to vector<8x8xbf16>
    %cst_16 = arith.constant dense<0.000000e+00> : vector<256x8xf32>
    %24 = tpu.matmul %22, %23, %cst_16 {dimension_numbers = #tpu.dot_dimension_numbers<[1], [0], [0], [1], [0, 0, 1, 1], [], []>} : vector<256x8xbf16>, vector<8x8xbf16>, vector<256x8xf32> -> vector<256x8xf32>
    %c0_17 = arith.constant 0 : index
    %c0_18 = arith.constant 0 : index
    %c1_19 = arith.constant 1 : index
    %c0_20 = arith.constant 0 : index
    %25 = vector.load %arg7[%c0_17, %c0_18, %c1_19, %c0_20] : memref<1x18x18x8xbf16, #tpu.memory_space<vmem>>, vector<1x16x16x8xbf16>
    %26 = vector.shape_cast %25 : vector<1x16x16x8xbf16> to vector<16x16x8xbf16>
    %27 = vector.shape_cast %26 : vector<16x16x8xbf16> to vector<256x8xbf16>
    %28 = vector.extract_strided_slice %19 {offsets = [8, 0], sizes = [8, 8], strides = [1, 1]} : vector<72x8xbf16> to vector<8x8xbf16>
    %cst_21 = arith.constant dense<0.000000e+00> : vector<256x8xf32>
    %29 = tpu.matmul %27, %28, %cst_21 {dimension_numbers = #tpu.dot_dimension_numbers<[1], [0], [0], [1], [0, 0, 1, 1], [], []>} : vector<256x8xbf16>, vector<8x8xbf16>, vector<256x8xf32> -> vector<256x8xf32>
    %30 = arith.addf %24, %29 : vector<256x8xf32>
    %c0_22 = arith.constant 0 : index
    %c0_23 = arith.constant 0 : index
    %c2 = arith.constant 2 : index
    %c0_24 = arith.constant 0 : index
    %31 = vector.load %arg7[%c0_22, %c0_23, %c2, %c0_24] : memref<1x18x18x8xbf16, #tpu.memory_space<vmem>>, vector<1x16x16x8xbf16>
    %32 = vector.shape_cast %31 : vector<1x16x16x8xbf16> to vector<16x16x8xbf16>
    %33 = vector.shape_cast %32 : vector<16x16x8xbf16> to vector<256x8xbf16>
    %34 = vector.extract_strided_slice %19 {offsets = [16, 0], sizes = [8, 8], strides = [1, 1]} : vector<72x8xbf16> to vector<8x8xbf16>
    %cst_25 = arith.constant dense<0.000000e+00> : vector<256x8xf32>
    %35 = tpu.matmul %33, %34, %cst_25 {dimension_numbers = #tpu.dot_dimension_numbers<[1], [0], [0], [1], [0, 0, 1, 1], [], []>} : vector<256x8xbf16>, vector<8x8xbf16>, vector<256x8xf32> -> vector<256x8xf32>
    %36 = arith.addf %30, %35 : vector<256x8xf32>
    %c0_26 = arith.constant 0 : index
    %c1_27 = arith.constant 1 : index
    %c0_28 = arith.constant 0 : index
    %c0_29 = arith.constant 0 : index
    %37 = vector.load %arg7[%c0_26, %c1_27, %c0_28, %c0_29] : memref<1x18x18x8xbf16, #tpu.memory_space<vmem>>, vector<1x16x16x8xbf16>
    %38 = vector.shape_cast %37 : vector<1x16x16x8xbf16> to vector<16x16x8xbf16>
    %39 = vector.shape_cast %38 : vector<16x16x8xbf16> to vector<256x8xbf16>
    %40 = vector.extract_strided_slice %19 {offsets = [24, 0], sizes = [8, 8], strides = [1, 1]} : vector<72x8xbf16> to vector<8x8xbf16>
    %cst_30 = arith.constant dense<0.000000e+00> : vector<256x8xf32>
    %41 = tpu.matmul %39, %40, %cst_30 {dimension_numbers = #tpu.dot_dimension_numbers<[1], [0], [0], [1], [0, 0, 1, 1], [], []>} : vector<256x8xbf16>, vector<8x8xbf16>, vector<256x8xf32> -> vector<256x8xf32>
    %42 = arith.addf %36, %41 : vector<256x8xf32>
    %c0_31 = arith.constant 0 : index
    %c1_32 = arith.constant 1 : index
    %c1_33 = arith.constant 1 : index
    %c0_34 = arith.constant 0 : index
    %43 = vector.load %arg7[%c0_31, %c1_32, %c1_33, %c0_34] : memref<1x18x18x8xbf16, #tpu.memory_space<vmem>>, vector<1x16x16x8xbf16>
    %44 = vector.shape_cast %43 : vector<1x16x16x8xbf16> to vector<16x16x8xbf16>
    %45 = vector.shape_cast %44 : vector<16x16x8xbf16> to vector<256x8xbf16>
    %46 = vector.extract_strided_slice %19 {offsets = [32, 0], sizes = [8, 8], strides = [1, 1]} : vector<72x8xbf16> to vector<8x8xbf16>
    %cst_35 = arith.constant dense<0.000000e+00> : vector<256x8xf32>
    %47 = tpu.matmul %45, %46, %cst_35 {dimension_numbers = #tpu.dot_dimension_numbers<[1], [0], [0], [1], [0, 0, 1, 1], [], []>} : vector<256x8xbf16>, vector<8x8xbf16>, vector<256x8xf32> -> vector<256x8xf32>
    %48 = arith.addf %42, %47 : vector<256x8xf32>
    %c0_36 = arith.constant 0 : index
    %c1_37 = arith.constant 1 : index
    %c2_38 = arith.constant 2 : index
    %c0_39 = arith.constant 0 : index
    %49 = vector.load %arg7[%c0_36, %c1_37, %c2_38, %c0_39] : memref<1x18x18x8xbf16, #tpu.memory_space<vmem>>, vector<1x16x16x8xbf16>
    %50 = vector.shape_cast %49 : vector<1x16x16x8xbf16> to vector<16x16x8xbf16>
    %51 = vector.shape_cast %50 : vector<16x16x8xbf16> to vector<256x8xbf16>
    %52 = vector.extract_strided_slice %19 {offsets = [40, 0], sizes = [8, 8], strides = [1, 1]} : vector<72x8xbf16> to vector<8x8xbf16>
    %cst_40 = arith.constant dense<0.000000e+00> : vector<256x8xf32>
    %53 = tpu.matmul %51, %52, %cst_40 {dimension_numbers = #tpu.dot_dimension_numbers<[1], [0], [0], [1], [0, 0, 1, 1], [], []>} : vector<256x8xbf16>, vector<8x8xbf16>, vector<256x8xf32> -> vector<256x8xf32>
    %54 = arith.addf %48, %53 : vector<256x8xf32>
    %c0_41 = arith.constant 0 : index
    %c2_42 = arith.constant 2 : index
    %c0_43 = arith.constant 0 : index
    %c0_44 = arith.constant 0 : index
    %55 = vector.load %arg7[%c0_41, %c2_42, %c0_43, %c0_44] : memref<1x18x18x8xbf16, #tpu.memory_space<vmem>>, vector<1x16x16x8xbf16>
    %56 = vector.shape_cast %55 : vector<1x16x16x8xbf16> to vector<16x16x8xbf16>
    %57 = vector.shape_cast %56 : vector<16x16x8xbf16> to vector<256x8xbf16>
    %58 = vector.extract_strided_slice %19 {offsets = [48, 0], sizes = [8, 8], strides = [1, 1]} : vector<72x8xbf16> to vector<8x8xbf16>
    %cst_45 = arith.constant dense<0.000000e+00> : vector<256x8xf32>
    %59 = tpu.matmul %57, %58, %cst_45 {dimension_numbers = #tpu.dot_dimension_numbers<[1], [0], [0], [1], [0, 0, 1, 1], [], []>} : vector<256x8xbf16>, vector<8x8xbf16>, vector<256x8xf32> -> vector<256x8xf32>
    %60 = arith.addf %54, %59 : vector<256x8xf32>
    %c0_46 = arith.constant 0 : index
    %c2_47 = arith.constant 2 : index
    %c1_48 = arith.constant 1 : index
    %c0_49 = arith.constant 0 : index
    %61 = vector.load %arg7[%c0_46, %c2_47, %c1_48, %c0_49] : memref<1x18x18x8xbf16, #tpu.memory_space<vmem>>, vector<1x16x16x8xbf16>
    %62 = vector.shape_cast %61 : vector<1x16x16x8xbf16> to vector<16x16x8xbf16>
    %63 = vector.shape_cast %62 : vector<16x16x8xbf16> to vector<256x8xbf16>
    %64 = vector.extract_strided_slice %19 {offsets = [56, 0], sizes = [8, 8], strides = [1, 1]} : vector<72x8xbf16> to vector<8x8xbf16>
    %cst_50 = arith.constant dense<0.000000e+00> : vector<256x8xf32>
    %65 = tpu.matmul %63, %64, %cst_50 {dimension_numbers = #tpu.dot_dimension_numbers<[1], [0], [0], [1], [0, 0, 1, 1], [], []>} : vector<256x8xbf16>, vector<8x8xbf16>, vector<256x8xf32> -> vector<256x8xf32>
    %66 = arith.addf %60, %65 : vector<256x8xf32>
    %c0_51 = arith.constant 0 : index
    %c2_52 = arith.constant 2 : index
    %c2_53 = arith.constant 2 : index
    %c0_54 = arith.constant 0 : index
    %67 = vector.load %arg7[%c0_51, %c2_52, %c2_53, %c0_54] : memref<1x18x18x8xbf16, #tpu.memory_space<vmem>>, vector<1x16x16x8xbf16>
    %68 = vector.shape_cast %67 : vector<1x16x16x8xbf16> to vector<16x16x8xbf16>
    %69 = vector.shape_cast %68 : vector<16x16x8xbf16> to vector<256x8xbf16>
    %70 = vector.extract_strided_slice %19 {offsets = [64, 0], sizes = [8, 8], strides = [1, 1]} : vector<72x8xbf16> to vector<8x8xbf16>
    %cst_55 = arith.constant dense<0.000000e+00> : vector<256x8xf32>
    %71 = tpu.matmul %69, %70, %cst_55 {dimension_numbers = #tpu.dot_dimension_numbers<[1], [0], [0], [1], [0, 0, 1, 1], [], []>} : vector<256x8xbf16>, vector<8x8xbf16>, vector<256x8xf32> -> vector<256x8xf32>
    %72 = arith.addf %66, %71 : vector<256x8xf32>
    %73 = arith.truncf %72 : vector<256x8xf32> to vector<256x8xbf16>
    %74 = vector.shape_cast %73 : vector<256x8xbf16> to vector<1x256x8xbf16>
    %c0_56 = arith.constant 0 : index
    %c0_57 = arith.constant 0 : index
    %c0_58 = arith.constant 0 : index
    %75 = vector.load %arg5[%c0_56, %c0_57, %c0_58] : memref<1x256x8xbf16, #tpu.memory_space<vmem>>, vector<1x256x8xbf16>
    tpu.vector_store %arg5[%c0_56, %c0_57, %c0_58], %74 {strides = array<i32>} : memref<1x256x8xbf16, #tpu.memory_space<vmem>>, vector<1x256x8xbf16>,
    %cst_59 = arith.constant dense<0.000000e+00> : vector<8xf32>
    %76 = vector.multi_reduction <add>, %72, %cst_59 [0] : vector<256x8xf32> to vector<8xf32>
    %77 = vector.shape_cast %76 : vector<8xf32> to vector<1x8xf32>
    %cst_60 = arith.constant 3.906250e-03 : f32
    %78 = vector.broadcast %cst_60 : f32 to vector<1x8xf32>
    %79 = arith.mulf %77, %78 : vector<1x8xf32>
    %80 = vector.broadcast %79 : vector<1x8xf32> to vector<256x8xf32>
    %81 = arith.subf %72, %80 : vector<256x8xf32>
    %82 = arith.mulf %81, %81 : vector<256x8xf32>
    %cst_61 = arith.constant dense<0.000000e+00> : vector<8xf32>
    %83 = vector.multi_reduction <add>, %82, %cst_61 [0] : vector<256x8xf32> to vector<8xf32>
    %84 = vector.shape_cast %83 : vector<8xf32> to vector<1x8xf32>
    %c0_62 = arith.constant 0 : index
    %c0_63 = arith.constant 0 : index
    %c0_64 = arith.constant 0 : index
    %85 = vector.load %arg6[%c0_62, %c0_63, %c0_64] : memref<1x2x8xf32, #tpu.memory_space<vmem>>, vector<1x1x8xf32>
    %86 = vector.shape_cast %85 : vector<1x1x8xf32> to vector<1x8xf32>
    %87 = vector.shape_cast %77 : vector<1x8xf32> to vector<1x1x8xf32>
    tpu.vector_store %arg6[%c0_62, %c0_63, %c0_64], %87 {strides = array<i32>} : memref<1x2x8xf32, #tpu.memory_space<vmem>>, vector<1x1x8xf32>,
    %c0_65 = arith.constant 0 : index
    %c1_66 = arith.constant 1 : index
    %c0_67 = arith.constant 0 : index
    %88 = vector.load %arg6[%c0_65, %c1_66, %c0_67] : memref<1x2x8xf32, #tpu.memory_space<vmem>>, vector<1x1x8xf32>
    %89 = vector.shape_cast %88 : vector<1x1x8xf32> to vector<1x8xf32>
    %90 = vector.shape_cast %84 : vector<1x8xf32> to vector<1x1x8xf32>
    tpu.vector_store %arg6[%c0_65, %c1_66, %c0_67], %90 {strides = array<i32>} : memref<1x2x8xf32, #tpu.memory_space<vmem>>, vector<1x1x8xf32>,
    return
  }
  func.func @transform_0(%arg0: i32) -> (i32, i32, i32) {
    %c0_i32 = arith.constant 0 : i32
    %c0_i32_0 = arith.constant 0 : i32
    %c0_i32_1 = arith.constant 0 : i32
    return %arg0, %c0_i32, %c0_i32_0 : i32, i32, i32
  }
  func.func @transform_1(%arg0: i32) -> (i32, i32) {
    %c0_i32 = arith.constant 0 : i32
    %c0_i32_0 = arith.constant 0 : i32
    %c0_i32_1 = arith.constant 0 : i32
    return %c0_i32, %c0_i32_0 : i32, i32
  }
  func.func @transform_2(%arg0: i32) -> (i32, i32) {
    %c0_i32 = arith.constant 0 : i32
    %c0_i32_0 = arith.constant 0 : i32
    %c0_i32_1 = arith.constant 0 : i32
    return %c0_i32, %c0_i32_0 : i32, i32
  }
  func.func @transform_3(%arg0: i32) -> (i32, i32) {
    %c0_i32 = arith.constant 0 : i32
    %c0_i32_0 = arith.constant 0 : i32
    %c0_i32_1 = arith.constant 0 : i32
    return %c0_i32, %c0_i32_0 : i32, i32
  }
  func.func @transform_4(%arg0: i32) -> (i32, i32, i32) {
    %c0_i32 = arith.constant 0 : i32
    %c0_i32_0 = arith.constant 0 : i32
    %c0_i32_1 = arith.constant 0 : i32
    return %arg0, %c0_i32, %c0_i32_0 : i32, i32, i32
  }
  func.func @transform_5(%arg0: i32) -> (i32, i32, i32) {
    %c0_i32 = arith.constant 0 : i32
    %c0_i32_0 = arith.constant 0 : i32
    %c0_i32_1 = arith.constant 0 : i32
    return %arg0, %c0_i32, %c0_i32_0 : i32, i32, i32
  }
}

</mosaic_0001>

<bundles_post_ra>
// kernel: basic_block_forward.5
= control target key start
LH: loop header
LB: loop body
LE: loop exit
PB: predicated region body
PF: predicated region fallthrough
CT: control target
= control target key end

     0   :  { %s949_s21 = smov 0   ;;  %s1223_s0 = inlined_call_operand.vmem [shape: bf16[2,256,8], index: 0, kind: input, shape index: {}]   ;;  %s1224_s1 = inlined_call_operand.vmem [shape: f32[1,8], index: 1, kind: input, shape index: {}]   ;;  %s1225_s2 = inlined_call_operand.vmem [shape: f32[1,8], index: 2, kind: input, shape index: {}]   ;;  %s1226_s3 = inlined_call_operand.vmem [shape: bf16[2,256,8], index: 3, kind: input, shape index: {}]   ;;  %s1227_s4 = inlined_call_operand.vmem [shape: f32[1,8], index: 4, kind: input, shape index: {}]   ;;  %s1228_s5 = inlined_call_operand.vmem [shape: f32[1,8], index: 5, kind: input, shape index: {}]   ;;  %s1229_s6 = inlined_call_operand.vmem [shape: f32[2,256,8], index: 6, kind: output, shape index: {}]  }
   0x1 LB: > { %s720_s22 = sadd.s32 4294967295, %s912_s21   ;;  %p724_p0 = scmp.ge.s32.totalorder %s912_s21, 1  ;;  %s912_s21 = sphi %s949_s21, %s16_s21  }
   0x2   : > { %p222_p1 = scmp.lt.s32.totalorder %s912_s21, 3 }
   0x4   : > { %p223_p2 = pnand %p724_p0, %p222_p1 }
   0x5   : > { %p257_p3 = scmp.lt.s32.totalorder (!%p223_p2), %s720_s22, 1 }
   0x6   : > { %226 = sbr.rel (%p223_p2) target bundleno = 86 (0x56), region = 44 }
   0xb   : > { %s1231_s22 = smov (!%p257_p3, %s720_s22), 1  ;;  %v973_v0 = vld [vmem:[%s1227_s4] ss:$0 sm:$0xff]  ;;  %vm620_vm0 = vcmask 64512  }
   0xc   : > { %s737_s23 = sshll.u32 %s1231_s22, 7  ;;  %v978_v1 = vld [vmem:[%s1224_s1] ss:$0 sm:$0xff]  ;;  %s739_s14 = sshll.u32 %s1231_s22, 8 }
   0xd   : > { %s963_s26 = scalar_lea.vmem %s1223_s0, %s737_s23  ;;  %s968_s29 = scalar_lea.vmem %s1226_s3, %s737_s23  ;;  %v987_v10 = vld [vmem:[%s1228_s5] ss:$0 sm:$0xff] }
   0xe   : > { %v741_v2 = vld [vmem:[%s968_s29] sm:$0xff]   ;;  %v868_v4 = vld [vmem:[%s968_s29 + $0x8] sm:$0xff]   ;;  %v869_v24 = vld [vmem:[%s968_s29 + $0x10] sm:$0xff]   ;;  %s1016_s17 = scalar_lea.vmem %s1229_s6, %s739_s14 }
   0xf   : > { %v805_v3 = vld [vmem:[%s963_s26] sm:$0xff]   ;;  %v742_v5 = vunpack.c.l.bf16 %v741_v2  ;;  %v743_v7 = vunpack.c.h.bf16 %v741_v2  ;;  %v883_v9 = vld [vmem:[%s963_s26 + $0x8] sm:$0xff]   ;;  %v746_v12 = vunpack.c.l.bf16 %v868_v4  ;;  %v747_v14 = vunpack.c.h.bf16 %v868_v4  ;;  %v884_v25 = vld [vmem:[%s963_s26 + $0x10] sm:$0xff]  }
  0x10   : > { %v806_v6 = vunpack.c.l.bf16 %v805_v3  ;;  %v807_v8 = vunpack.c.h.bf16 %v805_v3  ;;  %v992_v11 = vld [vmem:[%s1225_s2] ss:$0 sm:$0xff]  ;;  %v810_v13 = vunpack.c.l.bf16 %v883_v9  ;;  %v811_v15 = vunpack.c.h.bf16 %v883_v9  ;;  %v870_v42 = vld [vmem:[%s968_s29 + $0x18] sm:$0xff]  }
  0x11   : > { %v343_v16 = vmul.f32 %v742_v5, %v973_v0  ;;  %v344_v18 = vmul.f32 %v743_v7, %v973_v0  ;;  %v345_v20 = vmul.f32 %v746_v12, %v973_v0  ;;  %v346_v22 = vmul.f32 %v747_v14, %v973_v0  ;;  %v885_v43 = vld [vmem:[%s963_s26 + $0x18] sm:$0xff]   ;;  %v871_v52 = vld [vmem:[%s968_s29 + $0x20] sm:$0xff]   ;;  %v872_v14 = vld [vmem:[%s968_s29 + $0x28] sm:$0xff]  }
  0x12   : > { %v485_v17 = vmul.f32 %v806_v6, %v978_v1  ;;  %v486_v19 = vmul.f32 %v807_v8, %v978_v1  ;;  %v487_v21 = vmul.f32 %v810_v13, %v978_v1  ;;  %v488_v23 = vmul.f32 %v811_v15, %v978_v1  ;;  %v886_v57 = vld [vmem:[%s963_s26 + $0x20] sm:$0xff]   ;;  %v887_v15 = vld [vmem:[%s963_s26 + $0x28] sm:$0xff]  }
  0x13   : > { %v382_v26 = vadd.f32 %v987_v10, %v343_v16  ;;  %v383_v28 = vadd.f32 %v987_v10, %v344_v18  ;;  %v384_v30 = vadd.f32 %v987_v10, %v345_v20  ;;  %v385_v32 = vadd.f32 %v987_v10, %v346_v22 }
  0x14   : > { %v524_v27 = vadd.f32 %v992_v11, %v485_v17  ;;  %v525_v29 = vadd.f32 %v992_v11, %v486_v19  ;;  %v526_v31 = vadd.f32 %v992_v11, %v487_v21  ;;  %v527_v33 = vadd.f32 %v992_v11, %v488_v23 }
  0x15   : > { %v750_v36 = vunpack.c.l.bf16 %v869_v24  ;;  %v814_v37 = vunpack.c.l.bf16 %v884_v25  ;;  %v751_v40 = vunpack.c.h.bf16 %v869_v24  ;;  %v815_v41 = vunpack.c.h.bf16 %v884_v25 }
  0x16   : > { %v556_v34 = vadd.f32 %v524_v27, %v382_v26  ;;  %v557_v35 = vadd.f32 %v525_v29, %v383_v28  ;;  %v558_v38 = vadd.f32 %v526_v31, %v384_v30  ;;  %v559_v39 = vadd.f32 %v527_v33, %v385_v32  ;;  %v873_v32 = vld [vmem:[%s968_s29 + $0x30] sm:$0xff]  }
  0x17   : > { %v347_v46 = vmul.f32 %v750_v36, %v973_v0  ;;  %v489_v47 = vmul.f32 %v814_v37, %v978_v1  ;;  %v348_v50 = vmul.f32 %v751_v40, %v973_v0  ;;  %v490_v51 = vmul.f32 %v815_v41, %v978_v1  ;;  %v888_v37 = vld [vmem:[%s963_s26 + $0x30] sm:$0xff]  }
  0x18   : > { %v588_v44 = vmax.f32 %v556_v34, 0.0  ;;  %v589_v45 = vmax.f32 %v557_v35, 0.0  ;;  %v590_v48 = vmax.f32 %v558_v38, 0.0  ;;  %v591_v49 = vmax.f32 %v559_v39, 0.0 }
  0x19   : > { %v386_v53 = vadd.f32 %v987_v10, %v347_v46  ;;  %v528_v54 = vadd.f32 %v992_v11, %v489_v47  ;;  %v754_v55 = vunpack.c.l.bf16 %v870_v42  ;;  %v818_v56 = vunpack.c.l.bf16 %v885_v43  ;;  %v874_v46 = vld [vmem:[%s968_s29 + $0x38] sm:$0xff]  }
  0x1a   : > { %621 = vst.msk [vmem:[%s1016_s17] sm:$0xff] %vm620_vm0, %v588_v44  ;;  %622 = vst.msk [vmem:[%s1016_s17 + $0x8] sm:$0xff] %vm620_vm0, %v589_v45  ;;  %v387_v58 = vadd.f32 %v987_v10, %v348_v50  ;;  %v529_v59 = vadd.f32 %v992_v11, %v490_v51  ;;  %v755_v60 = vunpack.c.h.bf16 %v870_v42  ;;  %v819_v61 = vunpack.c.h.bf16 %v885_v43 }
  0x1b   : > { %623 = vst.msk [vmem:[%s1016_s17 + $0x10] sm:$0xff] %vm620_vm0, %v590_v48  ;;  %624 = vst.msk [vmem:[%s1016_s17 + $0x18] sm:$0xff] %vm620_vm0, %v591_v49  ;;  %v560_v62 = vadd.f32 %v528_v54, %v386_v53  ;;  %v349_v63 = vmul.f32 %v754_v55, %v973_v0  ;;  %v491_v2 = vmul.f32 %v818_v56, %v978_v1  ;;  %v758_v3 = vunpack.c.l.bf16 %v871_v52  ;;  %v889_v55 = vld [vmem:[%s963_s26 + $0x38] sm:$0xff]  }
  0x1c   : > { %v561_v4 = vadd.f32 %v529_v59, %v387_v58  ;;  %v350_v5 = vmul.f32 %v755_v60, %v973_v0  ;;  %v492_v6 = vmul.f32 %v819_v61, %v978_v1  ;;  %v822_v7 = vunpack.c.l.bf16 %v886_v57 }
  0x1d   : > { %v592_v8 = vmax.f32 %v560_v62, 0.0  ;;  %v388_v9 = vadd.f32 %v987_v10, %v349_v63  ;;  %v530_v12 = vadd.f32 %v992_v11, %v491_v2  ;;  %v351_v13 = vmul.f32 %v758_v3, %v973_v0 }
  0x1e   : > { %v593_v16 = vmax.f32 %v561_v4, 0.0  ;;  %v389_v17 = vadd.f32 %v987_v10, %v350_v5  ;;  %v531_v18 = vadd.f32 %v992_v11, %v492_v6  ;;  %v493_v19 = vmul.f32 %v822_v7, %v978_v1  ;;  %v875_v6 = vld [vmem:[%s968_s29 + $0x40] sm:$0xff]  }
  0x1f   : > { %625 = vst.msk [vmem:[%s1016_s17 + $0x20] sm:$0xff] %vm620_vm0, %v592_v8  ;;  %v562_v20 = vadd.f32 %v530_v12, %v388_v9  ;;  %v390_v21 = vadd.f32 %v987_v10, %v351_v13  ;;  %v759_v22 = vunpack.c.h.bf16 %v871_v52  ;;  %v823_v23 = vunpack.c.h.bf16 %v886_v57  ;;  %v890_v13 = vld [vmem:[%s963_s26 + $0x40] sm:$0xff]  }
  0x20   : > { %626 = vst.msk [vmem:[%s1016_s17 + $0x28] sm:$0xff] %vm620_vm0, %v593_v16  ;;  %v563_v24 = vadd.f32 %v531_v18, %v389_v17  ;;  %v532_v25 = vadd.f32 %v992_v11, %v493_v19  ;;  %v762_v26 = vunpack.c.l.bf16 %v872_v14  ;;  %v826_v27 = vunpack.c.l.bf16 %v887_v15 }
  0x21   : > { %v594_v28 = vmax.f32 %v562_v20, 0.0  ;;  %v352_v29 = vmul.f32 %v759_v22, %v973_v0  ;;  %v494_v30 = vmul.f32 %v823_v23, %v978_v1  ;;  %v763_v31 = vunpack.c.h.bf16 %v872_v14 }
  0x22   : > { %v595_v33 = vmax.f32 %v563_v24, 0.0  ;;  %v564_v34 = vadd.f32 %v532_v25, %v390_v21  ;;  %v353_v35 = vmul.f32 %v762_v26, %v973_v0  ;;  %v495_v36 = vmul.f32 %v826_v27, %v978_v1  ;;  %v876_v26 = vld [vmem:[%s968_s29 + $0x48] sm:$0xff]  }
  0x23   : > { %627 = vst.msk [vmem:[%s1016_s17 + $0x30] sm:$0xff] %vm620_vm0, %v594_v28  ;;  %v391_v38 = vadd.f32 %v987_v10, %v352_v29  ;;  %v533_v39 = vadd.f32 %v992_v11, %v494_v30  ;;  %v354_v40 = vmul.f32 %v763_v31, %v973_v0  ;;  %v827_v41 = vunpack.c.h.bf16 %v887_v15  ;;  %v891_v27 = vld [vmem:[%s963_s26 + $0x48] sm:$0xff]  }
  0x24   : > { %628 = vst.msk [vmem:[%s1016_s17 + $0x38] sm:$0xff] %vm620_vm0, %v595_v33  ;;  %v596_v42 = vmax.f32 %v564_v34, 0.0  ;;  %v392_v43 = vadd.f32 %v987_v10, %v353_v35  ;;  %v534_v44 = vadd.f32 %v992_v11, %v495_v36  ;;  %v766_v45 = vunpack.c.l.bf16 %v873_v32 }
  0x25   : > { %v565_v47 = vadd.f32 %v533_v39, %v391_v38  ;;  %v393_v48 = vadd.f32 %v987_v10, %v354_v40  ;;  %v496_v49 = vmul.f32 %v827_v41, %v978_v1  ;;  %v830_v50 = vunpack.c.l.bf16 %v888_v37  ;;  %v877_v40 = vld [vmem:[%s968_s29 + $0x50] sm:$0xff]  }
  0x26   : > { %629 = vst.msk [vmem:[%s1016_s17 + $0x40] sm:$0xff] %vm620_vm0, %v596_v42  ;;  %v566_v51 = vadd.f32 %v534_v44, %v392_v43  ;;  %v355_v52 = vmul.f32 %v766_v45, %v973_v0  ;;  %v767_v53 = vunpack.c.h.bf16 %v873_v32  ;;  %v831_v54 = vunpack.c.h.bf16 %v888_v37  ;;  %v892_v45 = vld [vmem:[%s963_s26 + $0x50] sm:$0xff]  }
  0x27   : > { %v597_v56 = vmax.f32 %v565_v47, 0.0  ;;  %v535_v57 = vadd.f32 %v992_v11, %v496_v49  ;;  %v497_v58 = vmul.f32 %v830_v50, %v978_v1  ;;  %v770_v59 = vunpack.c.l.bf16 %v874_v46 }
  0x28   : > { %v598_v60 = vmax.f32 %v566_v51, 0.0  ;;  %v394_v61 = vadd.f32 %v987_v10, %v355_v52  ;;  %v356_v62 = vmul.f32 %v767_v53, %v973_v0  ;;  %v498_v63 = vmul.f32 %v831_v54, %v978_v1 }
  0x29   : > { %630 = vst.msk [vmem:[%s1016_s17 + $0x48] sm:$0xff] %vm620_vm0, %v597_v56  ;;  %v567_v2 = vadd.f32 %v535_v57, %v393_v48  ;;  %v536_v3 = vadd.f32 %v992_v11, %v497_v58  ;;  %v357_v4 = vmul.f32 %v770_v59, %v973_v0  ;;  %v834_v5 = vunpack.c.l.bf16 %v889_v55 }
  0x2a   : > { %631 = vst.msk [vmem:[%s1016_s17 + $0x50] sm:$0xff] %vm620_vm0, %v598_v60  ;;  %v395_v7 = vadd.f32 %v987_v10, %v356_v62  ;;  %v537_v8 = vadd.f32 %v992_v11, %v498_v63  ;;  %v771_v9 = vunpack.c.h.bf16 %v874_v46  ;;  %v835_v12 = vunpack.c.h.bf16 %v889_v55  ;;  %v878_v62 = vld [vmem:[%s968_s29 + $0x58] sm:$0xff]  }
  0x2b   : > { %v599_v14 = vmax.f32 %v567_v2, 0.0  ;;  %v568_v15 = vadd.f32 %v536_v3, %v394_v61  ;;  %v396_v16 = vadd.f32 %v987_v10, %v357_v4  ;;  %v499_v17 = vmul.f32 %v834_v5, %v978_v1  ;;  %v893_v5 = vld [vmem:[%s963_s26 + $0x58] sm:$0xff]  }
  0x2c   : > { %v569_v18 = vadd.f32 %v537_v8, %v395_v7  ;;  %v358_v19 = vmul.f32 %v771_v9, %v973_v0  ;;  %v500_v20 = vmul.f32 %v835_v12, %v978_v1  ;;  %v774_v21 = vunpack.c.l.bf16 %v875_v6 }
  0x2d   : > { %632 = vst.msk [vmem:[%s1016_s17 + $0x58] sm:$0xff] %vm620_vm0, %v599_v14  ;;  %v600_v22 = vmax.f32 %v568_v15, 0.0  ;;  %v538_v23 = vadd.f32 %v992_v11, %v499_v17  ;;  %v838_v24 = vunpack.c.l.bf16 %v890_v13  ;;  %v775_v25 = vunpack.c.h.bf16 %v875_v6 }
  0x2e   : > { %v601_v28 = vmax.f32 %v569_v18, 0.0  ;;  %v397_v29 = vadd.f32 %v987_v10, %v358_v19  ;;  %v539_v30 = vadd.f32 %v992_v11, %v500_v20  ;;  %v359_v31 = vmul.f32 %v774_v21, %v973_v0  ;;  %v879_v20 = vld [vmem:[%s968_s29 + $0x60] sm:$0xff]  }
  0x2f   : > { %633 = vst.msk [vmem:[%s1016_s17 + $0x60] sm:$0xff] %vm620_vm0, %v600_v22  ;;  %v570_v32 = vadd.f32 %v538_v23, %v396_v16  ;;  %v501_v33 = vmul.f32 %v838_v24, %v978_v1  ;;  %v360_v34 = vmul.f32 %v775_v25, %v973_v0  ;;  %v839_v35 = vunpack.c.h.bf16 %v890_v13  ;;  %v894_v25 = vld [vmem:[%s963_s26 + $0x60] sm:$0xff]  }
  0x30   : > { %634 = vst.msk [vmem:[%s1016_s17 + $0x68] sm:$0xff] %vm620_vm0, %v601_v28  ;;  %v571_v36 = vadd.f32 %v539_v30, %v397_v29  ;;  %v398_v37 = vadd.f32 %v987_v10, %v359_v31  ;;  %v778_v38 = vunpack.c.l.bf16 %v876_v26  ;;  %v842_v39 = vunpack.c.l.bf16 %v891_v27 }
  0x31   : > { %v602_v41 = vmax.f32 %v570_v32, 0.0  ;;  %v540_v42 = vadd.f32 %v992_v11, %v501_v33  ;;  %v399_v43 = vadd.f32 %v987_v10, %v360_v34  ;;  %v502_v44 = vmul.f32 %v839_v35, %v978_v1  ;;  %v880_v34 = vld [vmem:[%s968_s29 + $0x68] sm:$0xff]  }
  0x32   : > { %v603_v46 = vmax.f32 %v571_v36, 0.0  ;;  %v361_v47 = vmul.f32 %v778_v38, %v973_v0  ;;  %v503_v48 = vmul.f32 %v842_v39, %v978_v1  ;;  %v779_v49 = vunpack.c.h.bf16 %v876_v26 }
  0x33   : > { %635 = vst.msk [vmem:[%s1016_s17 + $0x70] sm:$0xff] %vm620_vm0, %v602_v41  ;;  %v572_v50 = vadd.f32 %v540_v42, %v398_v37  ;;  %v541_v51 = vadd.f32 %v992_v11, %v502_v44  ;;  %v843_v52 = vunpack.c.h.bf16 %v891_v27  ;;  %v782_v53 = vunpack.c.l.bf16 %v877_v40 }
  0x34   : > { %636 = vst.msk [vmem:[%s1016_s17 + $0x78] sm:$0xff] %vm620_vm0, %v603_v46  ;;  %v400_v54 = vadd.f32 %v987_v10, %v361_v47  ;;  %v542_v55 = vadd.f32 %v992_v11, %v503_v48  ;;  %v362_v56 = vmul.f32 %v779_v49, %v973_v0  ;;  %v846_v57 = vunpack.c.l.bf16 %v892_v45 }
  0x35   : > { %v604_v58 = vmax.f32 %v572_v50, 0.0  ;;  %v573_v59 = vadd.f32 %v541_v51, %v399_v43  ;;  %v504_v60 = vmul.f32 %v843_v52, %v978_v1  ;;  %v363_v61 = vmul.f32 %v782_v53, %v973_v0  ;;  %v895_v43 = vld [vmem:[%s963_s26 + $0x68] sm:$0xff]  }
  0x36   : > { %v574_v63 = vadd.f32 %v542_v55, %v400_v54  ;;  %v401_v2 = vadd.f32 %v987_v10, %v362_v56  ;;  %v505_v3 = vmul.f32 %v846_v57, %v978_v1  ;;  %v783_v4 = vunpack.c.h.bf16 %v877_v40  ;;  %v881_v56 = vld [vmem:[%s968_s29 + $0x70] sm:$0xff]  }
  0x37   : > { %637 = vst.msk [vmem:[%s1016_s17 + $0x80] sm:$0xff] %vm620_vm0, %v604_v58  ;;  %v605_v6 = vmax.f32 %v573_v59, 0.0  ;;  %v543_v7 = vadd.f32 %v992_v11, %v504_v60  ;;  %v402_v8 = vadd.f32 %v987_v10, %v363_v61  ;;  %v847_v9 = vunpack.c.h.bf16 %v892_v45  ;;  %v896_v57 = vld [vmem:[%s963_s26 + $0x70] sm:$0xff]  }
  0x38   : > { %v606_v12 = vmax.f32 %v574_v63, 0.0  ;;  %v544_v13 = vadd.f32 %v992_v11, %v505_v3  ;;  %v364_v14 = vmul.f32 %v783_v4, %v973_v0  ;;  %v786_v15 = vunpack.c.l.bf16 %v878_v62 }
  0x39   : > { %638 = vst.msk [vmem:[%s1016_s17 + $0x88] sm:$0xff] %vm620_vm0, %v605_v6  ;;  %v575_v16 = vadd.f32 %v543_v7, %v401_v2  ;;  %v506_v17 = vmul.f32 %v847_v9, %v978_v1  ;;  %v850_v18 = vunpack.c.l.bf16 %v893_v5  ;;  %v787_v19 = vunpack.c.h.bf16 %v878_v62 }
  0x3a   : > { %639 = vst.msk [vmem:[%s1016_s17 + $0x90] sm:$0xff] %vm620_vm0, %v606_v12  ;;  %v576_v21 = vadd.f32 %v544_v13, %v402_v8  ;;  %v403_v22 = vadd.f32 %v987_v10, %v364_v14  ;;  %v365_v23 = vmul.f32 %v786_v15, %v973_v0  ;;  %v851_v24 = vunpack.c.h.bf16 %v893_v5  ;;  %v882_v14 = vld [vmem:[%s968_s29 + $0x78] sm:$0xff]  }
  0x3b   : > { %v607_v26 = vmax.f32 %v575_v16, 0.0  ;;  %v545_v27 = vadd.f32 %v992_v11, %v506_v17  ;;  %v507_v28 = vmul.f32 %v850_v18, %v978_v1  ;;  %v366_v29 = vmul.f32 %v787_v19, %v973_v0  ;;  %v897_v15 = vld [vmem:[%s963_s26 + $0x78] sm:$0xff]  }
  0x3c   : > { %v608_v30 = vmax.f32 %v576_v21, 0.0  ;;  %v404_v31 = vadd.f32 %v987_v10, %v365_v23  ;;  %v508_v32 = vmul.f32 %v851_v24, %v978_v1  ;;  %v790_v33 = vunpack.c.l.bf16 %v879_v20 }
  0x3d   : > { %640 = vst.msk [vmem:[%s1016_s17 + $0x98] sm:$0xff] %vm620_vm0, %v607_v26  ;;  %v577_v35 = vadd.f32 %v545_v27, %v403_v22  ;;  %v546_v36 = vadd.f32 %v992_v11, %v507_v28  ;;  %v405_v37 = vadd.f32 %v987_v10, %v366_v29  ;;  %v854_v38 = vunpack.c.l.bf16 %v894_v25 }
  0x3e   : > { %641 = vst.msk [vmem:[%s1016_s17 + $0xa0] sm:$0xff] %vm620_vm0, %v608_v30  ;;  %v547_v39 = vadd.f32 %v992_v11, %v508_v32  ;;  %v367_v40 = vmul.f32 %v790_v33, %v973_v0  ;;  %v791_v41 = vunpack.c.h.bf16 %v879_v20  ;;  %v855_v42 = vunpack.c.h.bf16 %v894_v25 }
  0x3f   : > { %v609_v44 = vmax.f32 %v577_v35, 0.0  ;;  %v578_v45 = vadd.f32 %v546_v36, %v404_v31  ;;  %v509_v46 = vmul.f32 %v854_v38, %v978_v1  ;;  %v794_v47 = vunpack.c.l.bf16 %v880_v34 }
  0x40   : > { %v579_v48 = vadd.f32 %v547_v39, %v405_v37  ;;  %v406_v49 = vadd.f32 %v987_v10, %v367_v40  ;;  %v368_v50 = vmul.f32 %v791_v41, %v973_v0  ;;  %v510_v51 = vmul.f32 %v855_v42, %v978_v1 }
  0x41   : > { %642 = vst.msk [vmem:[%s1016_s17 + $0xa8] sm:$0xff] %vm620_vm0, %v609_v44  ;;  %v610_v52 = vmax.f32 %v578_v45, 0.0  ;;  %v548_v53 = vadd.f32 %v992_v11, %v509_v46  ;;  %v369_v54 = vmul.f32 %v794_v47, %v973_v0  ;;  %v858_v55 = vunpack.c.l.bf16 %v895_v43 }
  0x42   : > { %v611_v58 = vmax.f32 %v579_v48, 0.0  ;;  %v407_v59 = vadd.f32 %v987_v10, %v368_v50  ;;  %v549_v60 = vadd.f32 %v992_v11, %v510_v51  ;;  %v795_v61 = vunpack.c.h.bf16 %v880_v34 }
  0x43   : > { %643 = vst.msk [vmem:[%s1016_s17 + $0xb0] sm:$0xff] %vm620_vm0, %v610_v52  ;;  %v580_v62 = vadd.f32 %v548_v53, %v406_v49  ;;  %v408_v63 = vadd.f32 %v987_v10, %v369_v54  ;;  %v511_v2 = vmul.f32 %v858_v55, %v978_v1  ;;  %v859_v3 = vunpack.c.h.bf16 %v895_v43 }
  0x44   : > { %644 = vst.msk [vmem:[%s1016_s17 + $0xb8] sm:$0xff] %vm620_vm0, %v611_v58  ;;  %v581_v4 = vadd.f32 %v549_v60, %v407_v59  ;;  %v370_v5 = vmul.f32 %v795_v61, %v973_v0  ;;  %v798_v6 = vunpack.c.l.bf16 %v881_v56  ;;  %v862_v7 = vunpack.c.l.bf16 %v896_v57 }
  0x45   : > { %v612_v8 = vmax.f32 %v580_v62, 0.0  ;;  %v550_v9 = vadd.f32 %v992_v11, %v511_v2  ;;  %v512_v12 = vmul.f32 %v859_v3, %v978_v1  ;;  %v799_v13 = vunpack.c.h.bf16 %v881_v56 }
  0x46   : > { %v613_v16 = vmax.f32 %v581_v4, 0.0  ;;  %v409_v17 = vadd.f32 %v987_v10, %v370_v5  ;;  %v371_v18 = vmul.f32 %v798_v6, %v973_v0  ;;  %v513_v19 = vmul.f32 %v862_v7, %v978_v1 }
  0x47   : > { %645 = vst.msk [vmem:[%s1016_s17 + $0xc0] sm:$0xff] %vm620_vm0, %v612_v8  ;;  %v582_v20 = vadd.f32 %v550_v9, %v408_v63  ;;  %v551_v21 = vadd.f32 %v992_v11, %v512_v12  ;;  %v372_v22 = vmul.f32 %v799_v13, %v973_v0  ;;  %v863_v23 = vunpack.c.h.bf16 %v896_v57 }
  0x48   : > { %646 = vst.msk [vmem:[%s1016_s17 + $0xc8] sm:$0xff] %vm620_vm0, %v613_v16  ;;  %v410_v24 = vadd.f32 %v987_v10, %v371_v18  ;;  %v552_v25 = vadd.f32 %v992_v11, %v513_v19  ;;  %v802_v26 = vunpack.c.l.bf16 %v882_v14  ;;  %v866_v27 = vunpack.c.l.bf16 %v897_v15 }
  0x49   : > { %v614_v28 = vmax.f32 %v582_v20, 0.0  ;;  %v583_v29 = vadd.f32 %v551_v21, %v409_v17  ;;  %v411_v30 = vadd.f32 %v987_v10, %v372_v22  ;;  %v514_v31 = vmul.f32 %v863_v23, %v978_v1 }
  0x4a   : > { %v584_v32 = vadd.f32 %v552_v25, %v410_v24  ;;  %v373_v33 = vmul.f32 %v802_v26, %v973_v0  ;;  %v515_v34 = vmul.f32 %v866_v27, %v978_v1  ;;  %v803_v35 = vunpack.c.h.bf16 %v882_v14 }
  0x4b   : > { %647 = vst.msk [vmem:[%s1016_s17 + $0xd0] sm:$0xff] %vm620_vm0, %v614_v28  ;;  %v615_v36 = vmax.f32 %v583_v29, 0.0  ;;  %v553_v37 = vadd.f32 %v992_v11, %v514_v31  ;;  %v867_v38 = vunpack.c.h.bf16 %v897_v15 }
  0x4c   : > { %v616_v39 = vmax.f32 %v584_v32, 0.0  ;;  %v412_v40 = vadd.f32 %v987_v10, %v373_v33  ;;  %v554_v41 = vadd.f32 %v992_v11, %v515_v34  ;;  %v374_v42 = vmul.f32 %v803_v35, %v973_v0 }
  0x4d   : > { %648 = vst.msk [vmem:[%s1016_s17 + $0xd8] sm:$0xff] %vm620_vm0, %v615_v36  ;;  %v585_v43 = vadd.f32 %v553_v37, %v411_v30  ;;  %v516_v44 = vmul.f32 %v867_v38, %v978_v1 }
  0x4e   : > { %649 = vst.msk [vmem:[%s1016_s17 + $0xe0] sm:$0xff] %vm620_vm0, %v616_v39  ;;  %v586_v45 = vadd.f32 %v554_v41, %v412_v40  ;;  %v413_v46 = vadd.f32 %v987_v10, %v374_v42 }
  0x4f   : > { %v617_v47 = vmax.f32 %v585_v43, 0.0  ;;  %v555_v48 = vadd.f32 %v992_v11, %v516_v44 }
  0x50   : > { %v618_v49 = vmax.f32 %v586_v45, 0.0 }
  0x51   : > { %650 = vst.msk [vmem:[%s1016_s17 + $0xe8] sm:$0xff] %vm620_vm0, %v617_v47  ;;  %v587_v50 = vadd.f32 %v555_v48, %v413_v46 }
  0x52   : > { %651 = vst.msk [vmem:[%s1016_s17 + $0xf0] sm:$0xff] %vm620_vm0, %v618_v49 }
  0x53   : > { %v619_v0 = vmax.f32 %v587_v50, 0.0 }
  0x55   : > { %652 = vst.msk [vmem:[%s1016_s17 + $0xf8] sm:$0xff] %vm620_vm0, %v619_v0 }
  0x56 PF: > { %s16_s21 = sadd.s32 1, %s912_s21  }
  0x57   : > { %p13_p4 = scmp.ge.s32.totalorder %s16_s21, 4  }
  0x59   :  { %15 = sbr.rel (!%p13_p4) target bundleno = 1 (0x1), region = 77 }

// kernel: basic_block_forward.3
= control target key start
LH: loop header
LB: loop body
LE: loop exit
PB: predicated region body
PF: predicated region fallthrough
CT: control target
= control target key end

     0   :  { %s7832_s21 = smov 0   ;;  %s11056_s0 = inlined_call_operand.vmem [shape: bf16[2,18,18,4], index: 0, kind: input, shape index: {}]   ;;  %s11057_s1 = inlined_call_operand.vmem [shape: bf16[36,8], index: 1, kind: input, shape index: {}]   ;;  %s11058_s2 = inlined_call_operand.vmem [shape: bf16[4,8], index: 2, kind: input, shape index: {}]   ;;  %s11059_s3 = inlined_call_operand.vmem [shape: bf16[2,256,8], index: 3, kind: output, shape index: {0}]   ;;  %s11060_s4 = inlined_call_operand.vmem [shape: f32[2,2,8], index: 4, kind: output, shape index: {1}]   ;;  %s11061_s5 = inlined_call_operand.vmem [shape: bf16[2,256,8], index: 5, kind: output, shape index: {2}]   ;;  %s11062_s6 = inlined_call_operand.vmem [shape: f32[2,2,8], index: 6, kind: output, shape index: {3}]  }
   0x1 LB: > { %s6425_s22 = sadd.s32 4294967295, %s7795_s21   ;;  %p6429_p0 = scmp.ge.s32.totalorder %s7795_s21, 1  ;;  %s7795_s21 = sphi %s7832_s21, %s17_s21  }
   0x2   : > { %p219_p1 = scmp.lt.s32.totalorder %s7795_s21, 3 }
   0x4   : > { %p220_p2 = pnand %p6429_p0, %p219_p1 }
   0x6   : > { %223 = sbr.rel (%p220_p2) target bundleno = 723 (0x2d3), region = 32 }
   0xb   : > { %v286_v0 = vld [vmem:[%s11057_s1] sm:$0xf]  ;;  %vm827_vm0 = vcmask 1041408   ;;  %p262_p3 = scmp.lt.s32.totalorder %s6425_s22, 1  ;;  %v287_v3 = vld [vmem:[%s11057_s1 + $0x4] sm:$0xf] }
   0xc   : > { %7692 = vmatprep.subr.msk.bf16.mxu1 %vm827_vm0, %v286_v0  ;;  %v1121_v1 = vsel %vm827_vm0, %v286_v0, 0  ;;  %v6453_v2 = vcombine.low %v286_v0, %v286_v0  ;;  %v7853_v4 = vld [vmem:[%s11057_s1 + $0x8] sm:$0xf]  ;;  %v6598_v6 = vcombine.low %v287_v3, %v287_v3  ;;  %vm778_vm1 = vcmask 31744  }
   0xd   : > { %7386 = vmatpush3.bf16.msra.mxu1 %v1121_v1  ;;  %s11263_s22 = smov (!%p262_p3, %s6425_s22), 1  ;;  %v6743_v7 = vcombine.low %v7853_v4, %v7853_v4  ;;  %vm339_vm2 = vsmask.f32 3328  ;;  %vm340_vm3 = vsmask.f32 7440  ;;  %v7868_v10 = vsel %vm827_vm0, %v287_v3, 0 }
   0xe   : > { %v777_v5 = vrot.slane %v6453_v2, 2  ;;  %s7701_s29 = smul.u32 216, %s11263_s22  ;;  %v7860_v9 = vrot.slane %v6598_v6, 2  ;;  %v7874_v12 = vsel %vm827_vm0, %v7853_v4, 0  ;;  %vm7920_vm4 = vmor %vm339_vm2, %vm340_vm3  ;;  %vm1332_vm5 = vcmask 1042432   ;;  %s7115_s15 = sshll.u32 %s11263_s22, 7 }
   0xf   : > { %v7870_v11 = vrot.slane %v6743_v7, 2  ;;  %vm1333_vm6 = vcmask 1046532   ;;  %s10255_s18 = scalar_lea.vmem %s11061_s5, %s7115_s15  ;;  %vm4977_vm8 = vcmask 60416   ;;  %vm5010_vm9 = vcmask 64512   ;;  %s10295_s23 = scalar_lea.vmem %s11059_s3, %s7115_s15 }
  0x10   : > { %7691 = vmatprep.subr.msk.bf16.mxu0 %vm827_vm0, %v777_v5  ;;  %v829_v8 = vsel %vm827_vm0, %v777_v5, 0  ;;  %s7865_s8 = scalar_lea.vmem %s11056_s0, %s7701_s29  ;;  %7694 = vmatprep.subr.msk.bf16.mxu1 %vm827_vm0, %v7860_v9  ;;  %vm8175_vm7 = vmor %vm1332_vm5, %vm1333_vm6  ;;  %s6433_s24 = sshll.u32 %s11263_s22, 1  ;;  %vm5214_vm10 = vcmask 57344  }
  0x11   : > { %7352 = vmatpush3.bf16.msra.mxu0 %v829_v8  ;;  %v291_v13 = vld [vmem:[%s7865_s8] sm:$0xf]  ;;  %v7878_v14 = vld [vmem:[%s7865_s8 + $0x4] sm:$0xf]  ;;  %v293_v15 = vld [vmem:[%s7865_s8 + $0xc] sm:$0xf]  ;;  %s10812_s27 = scalar_lea.vmem %s11062_s6, %s6433_s24  ;;  %s10855_s30 = scalar_lea.vmem %s11060_s4, %s6433_s24 }
  0x12   : > { %7693 = vmatprep.subr.msk.bf16.mxu0 %vm827_vm0, %v287_v3  ;;  %v343_v16 = vshrl.u32 %v291_v13, 16  ;;  %v346_v17 = vshll.u32 %v291_v13, 16  ;;  %v356_v18 = vshrl.u32 %v7878_v14, 16  ;;  %v6470_v19 = vcombine.low %v291_v13, %v7878_v14  ;;  %v7887_v20 = vld [vmem:[%s7865_s8 + $0x10] sm:$0xf] }
  0x13   : > { %v11064_v21 = vrot.slane %v7878_v14, 5  ;;  %v367_v22 = vshrl.u32 %v293_v15, 16  ;;  %v370_v23 = vshll.u32 %v293_v15, 16  ;;  %v380_v24 = vshrl.u32 %v7887_v20, 16  ;;  %v295_v25 = vld [vmem:[%s7865_s8 + $0x18] sm:$0xf] }
  0x14   : > { %v345_v26 = vrot.slane %v343_v16, 4  ;;  %v348_v27 = vrot.slane %v346_v17, 5  ;;  %7387 = vmatprep.mubr.msk.bf16.mxu1 %vm778_vm1, %v6470_v19  ;;  %v6471_v28 = vcombine.low %v293_v15, %v7887_v20  ;;  %v11063_v29 = vrot.slane %v7887_v20, 5  ;;  %v7896_v30 = vld [vmem:[%s7865_s8 + $0x1c] sm:$0xf] }
  0x15   : > { %v7900_v31 = vrot.slane %v11064_v21, 4  ;;  %v369_v32 = vrot.slane %v367_v22, 4  ;;  %v372_v33 = vrot.slane %v370_v23, 5  ;;  %v391_v34 = vshrl.u32 %v295_v25, 16  ;;  %v7903_v35 = vld [vmem:[%s7865_s8 + $0x8] sm:$0x1] }
  0x16   : > { %7388 = vmatmul.mubr.msk.bf16.vlgmr.msra.gmra.mxu1 %vm778_vm1, %v6471_v28  ;;  %v7908_v36 = vrot.slane %v11063_v29, 4  ;;  %v394_v37 = vshll.u32 %v295_v25, 16  ;;  %v404_v38 = vshrl.u32 %v7896_v30, 16  ;;  %v6472_v39 = vcombine.low %v295_v25, %v7896_v30  ;;  %v297_v40 = vld [vmem:[%s7865_s8 + $0x24] sm:$0xf] }
  0x17   : > { %v393_v41 = vrot.slane %v391_v34, 4  ;;  %v349_v42 = vor.u32 %v348_v27, %v345_v26  ;;  %v352_v43 = vshll.u32 %v7878_v14, 16  ;;  %v358_v44 = vrot.slane %v356_v18, 4  ;;  %v7915_v45 = vld [vmem:[%s7865_s8 + $0x28] sm:$0xf] }
  0x18   : > { %v396_v46 = vrot.slane %v394_v37, 5  ;;  %7391 = vmatprep.mubr.msk.bf16.mxu1 %vm778_vm1, %v6472_v39  ;;  %v362_v48 = vshll.u32 %v7903_v35, 16  ;;  %v415_v50 = vshrl.u32 %v297_v40, 16  ;;  %v418_v53 = vshll.u32 %v297_v40, 16  ;;  %v7928_v55 = vld [vmem:[%s7865_s8 + $0x14] sm:$0x1] }
  0x19   : > { %v350_v51 = vrot.slane %v349_v42, 4  ;;  %v354_v52 = vrot.slane %v352_v43, 5  ;;  %v428_v54 = vshrl.u32 %v7915_v45, 16  ;;  %v6473_v58 = vcombine.low %v297_v40, %v7915_v45  ;;  %v299_v60 = vld [vmem:[%s7865_s8 + $0x30] sm:$0xf] }
  0x1a   : > { %v364_v56 = vrot.slane %v362_v48, 5  ;;  %v7930_v57 = vrot.slane %v415_v50, 4  ;;  %v373_v59 = vor.u32 %v372_v33, %v369_v32  ;;  %v420_v63 = vrot.slane %v418_v53, 5  ;;  %v7938_v1 = vld [vmem:[%s7865_s8 + $0x34] sm:$0xf] }
  0x1b   : > { %v355_v61 = vsel %vm7920_vm4, %v350_v51, %v354_v52  ;;  %v359_v62 = vor.u32 %v358_v44, %v354_v52  ;;  %v376_v0 = vshll.u32 %v7887_v20, 16  ;;  %v382_v3 = vrot.slane %v380_v24, 4  ;;  %v7945_v16 = vld [vmem:[%s7865_s8 + $0x20] sm:$0x1]  ;;  %v301_v23 = vld [vmem:[%s7865_s8 + $0x3c] sm:$0xf] }
  0x1c   : > { %v374_v2 = vrot.slane %v373_v59, 4  ;;  %v386_v5 = vshll.u32 %v7928_v55, 16  ;;  %v1905_v13 = vsel %vm827_vm0, %v7860_v9, 0  ;;  %v439_v15 = vshrl.u32 %v299_v60, 16  ;;  %v7956_v27 = vld [vmem:[%s7865_s8 + $0x40] sm:$0xf] }
  0x1d   : > { %v360_v7 = vrot.slane %v359_v62, 4  ;;  %v378_v8 = vrot.slane %v376_v0, 5  ;;  %v442_v18 = vshll.u32 %v299_v60, 16  ;;  %v452_v19 = vshrl.u32 %v7938_v1, 16  ;;  %7454 = vmatpush3.bf16.msra.mxu1 %v1905_v13 }
  0x1e   : > { %7392 = vmatmul.mubr.msk.bf16.gmra.mxu1 %vm778_vm1, %v6473_v58  ;;  %v388_v17 = vrot.slane %v386_v5, 5  ;;  %v6474_v22 = vcombine.low %v299_v60, %v7938_v1  ;;  %v441_v9 = vrot.slane %v439_v15, 4  ;;  %v397_v33 = vor.u32 %v396_v46, %v393_v41  ;;  %7696 = vmatprep.subr.msk.bf16.mxu1 %vm827_vm0, %v7870_v11  ;;  %v7966_v41 = vld [vmem:[%s7865_s8 + $0x2c] sm:$0x1]  ;;  %v7984_v15 = vld [vmem:[%s7865_s8 + $0x38] sm:$0x1] }
  0x1f   : > { %v365_v24 = vsel %vm7920_vm4, %v360_v7, %v364_v56  ;;  %v379_v25 = vsel %vm7920_vm4, %v374_v2, %v378_v8  ;;  %v383_v26 = vor.u32 %v382_v3, %v378_v8  ;;  %v444_v32 = vrot.slane %v442_v18, 5  ;;  %v7973_v56 = vld [vmem:[%s7865_s8 + $0x4c] sm:$0xf]  ;;  %v305_v18 = vld [vmem:[%s7865_s8 + $0x54] sm:$0xf] }
  0x20   : > { %v6437_v28 = vcombine.low %v355_v61, %v365_v24  ;;  %7395 = vmatprep.mubr.msk.bf16.mxu1 %vm778_vm1, %v6474_v22  ;;  %v400_v34 = vshll.u32 %v7896_v30, 16  ;;  %v406_v39 = vrot.slane %v404_v38, 4  ;;  %v410_v40 = vshll.u32 %v7945_v16, 16  ;;  %v303_v38 = vld [vmem:[%s7865_s8 + $0x48] sm:$0xf] }
  0x21   : > { %v384_v37 = vrot.slane %v383_v26, 4  ;;  %v463_v42 = vshrl.u32 %v301_v23, 16  ;;  %v398_v43 = vrot.slane %v397_v33, 4  ;;  %v466_v48 = vshll.u32 %v301_v23, 16  ;;  %v7992_v26 = vld [vmem:[%s7865_s8 + $0x58] sm:$0xf] }
  0x22   : > { %7353 = vmatprep.mubr.msk.bf16.mxu0 %vm778_vm1, %v6437_v28  ;;  %v402_v44 = vrot.slane %v400_v34, 5  ;;  %v476_v50 = vshrl.u32 %v7956_v27, 16  ;;  %v412_v51 = vrot.slane %v410_v40, 5  ;;  %v6475_v53 = vcombine.low %v301_v23, %v7956_v27 }
  0x23   : > { %v389_v46 = vsel %vm7920_vm4, %v384_v37, %v388_v17  ;;  %v465_v52 = vrot.slane %v463_v42, 4  ;;  %v468_v61 = vrot.slane %v466_v48, 5  ;;  %v421_v62 = vor.u32 %v420_v63, %v7930_v57 }
  0x24   : > { %v6438_v58 = vcombine.low %v379_v25, %v389_v46  ;;  %v403_v59 = vsel %vm7920_vm4, %v398_v43, %v402_v44  ;;  %v407_v60 = vor.u32 %v406_v39, %v402_v44  ;;  %v424_v0 = vshll.u32 %v7915_v45, 16 }
  0x25   : > { %v430_v2 = vrot.slane %v428_v54, 4  ;;  %v434_v3 = vshll.u32 %v7966_v41, 16  ;;  %v487_v7 = vshrl.u32 %v303_v38, 16  ;;  %v490_v8 = vshll.u32 %v303_v38, 16 }
  0x26   : > { %7354 = vmatmul.mubr.msk.bf16.vlgmr.msra.gmra.mxu0 %vm778_vm1, %v6438_v58  ;;  %v408_v5 = vrot.slane %v407_v60, 4  ;;  %7396 = vmatmul.mubr.msk.bf16.gmra.mxu1 %vm778_vm1, %v6475_v53  ;;  %v500_v13 = vshrl.u32 %v7973_v56, 16  ;;  %v422_v57 = vrot.slane %v421_v62, 4  ;;  %v426_v63 = vrot.slane %v424_v0, 5  ;;  %v8015_v62 = vld [vmem:[%s7865_s8 + $0x64] sm:$0xf] }
  0x27   : > { %7420 = vmatpush3.bf16.msra.mxu0 %v7868_v10  ;;  %v436_v17 = vrot.slane %v434_v3, 5  ;;  %v6476_v54 = vcombine.low %v303_v38, %v7973_v56  ;;  %v489_v23 = vrot.slane %v487_v7, 4  ;;  %v492_v24 = vrot.slane %v490_v8, 5  ;;  %v307_v38 = vld [vmem:[%s7865_s8 + $0x60] sm:$0xf] }
  0x28   : > { %v413_v22 = vsel %vm7920_vm4, %v408_v5, %v412_v51  ;;  %v445_v25 = vor.u32 %v444_v32, %v441_v9  ;;  %7695 = vmatprep.subr.msk.bf16.mxu0 %vm827_vm0, %v7853_v4  ;;  %v427_v10 = vsel %vm7920_vm4, %v422_v57, %v426_v63  ;;  %v431_v33 = vor.u32 %v430_v2, %v426_v63  ;;  %v8007_v51 = vld [vmem:[%s7865_s8 + $0x44] sm:$0x1] }
  0x29   : > { %v6439_v28 = vcombine.low %v403_v59, %v413_v22  ;;  %7399 = vmatprep.mubr.msk.bf16.mxu1 %vm778_vm1, %v6476_v54  ;;  %v448_v34 = vshll.u32 %v7938_v1, 16  ;;  %v454_v9 = vrot.slane %v452_v19, 4  ;;  %v458_v32 = vshll.u32 %v7984_v15, 16  ;;  %v8026_v54 = vld [vmem:[%s7865_s8 + $0x50] sm:$0x1] }
  0x2a   : > { %v446_v37 = vrot.slane %v445_v25, 4  ;;  %v511_v39 = vshrl.u32 %v305_v18, 16  ;;  %v432_v4 = vrot.slane %v431_v33, 4  ;;  %v514_v42 = vshll.u32 %v305_v18, 16  ;;  %v309_v22 = vld [vmem:[%s7865_s8 + $0x6c] sm:$0xf] }
  0x2b   : > { %7357 = vmatprep.mubr.msk.bf16.mxu0 %vm778_vm1, %v6439_v28  ;;  %v450_v40 = vrot.slane %v448_v34, 5  ;;  %v524_v43 = vshrl.u32 %v7992_v26, 16  ;;  %v460_v44 = vrot.slane %v458_v32, 5  ;;  %v6477_v46 = vcombine.low %v305_v18, %v7992_v26  ;;  %v8032_v33 = vld [vmem:[%s7865_s8 + $0x70] sm:$0xf] }
  0x2c   : > { %v513_v48 = vrot.slane %v511_v39, 4  ;;  %v469_v53 = vor.u32 %v468_v61, %v465_v52  ;;  %v437_v19 = vsel %vm7920_vm4, %v432_v4, %v436_v17  ;;  %v516_v60 = vrot.slane %v514_v42, 5  ;;  %v311_v42 = vld [vmem:[%s7865_s8 + $0x78] sm:$0xf] }
  0x2d   : > { %v451_v58 = vsel %vm7920_vm4, %v446_v37, %v450_v40  ;;  %v455_v59 = vor.u32 %v454_v9, %v450_v40  ;;  %v6440_v0 = vcombine.low %v427_v10, %v437_v19  ;;  %v472_v3 = vshll.u32 %v7956_v27, 16  ;;  %v8042_v40 = vld [vmem:[%s7865_s8 + $0x5c] sm:$0x1] }
  0x2e   : > { %7400 = vmatmul.mubr.msk.bf16.gmra.mxu1 %vm778_vm1, %v6477_v46  ;;  %v470_v2 = vrot.slane %v469_v53, 4  ;;  %v478_v52 = vrot.slane %v476_v50, 4  ;;  %v482_v5 = vshll.u32 %v8007_v51, 16  ;;  %v535_v7 = vshrl.u32 %v307_v38, 16 }
  0x2f   : > { %v456_v61 = vrot.slane %v455_v59, 4  ;;  %v538_v8 = vshll.u32 %v307_v38, 16  ;;  %7358 = vmatmul.mubr.msk.bf16.gmra.mxu0 %vm778_vm1, %v6440_v0  ;;  %v474_v57 = vrot.slane %v472_v3, 5  ;;  %v548_v63 = vshrl.u32 %v8015_v62, 16 }
  0x30   : > { %v6478_v17 = vcombine.low %v307_v38, %v8015_v62  ;;  %v493_v18 = vor.u32 %v492_v24, %v489_v23  ;;  %v484_v25 = vrot.slane %v482_v5, 5  ;;  %v537_v28 = vrot.slane %v535_v7, 4 }
  0x31   : > { %v461_v50 = vsel %vm7920_vm4, %v456_v61, %v460_v44  ;;  %v540_v10 = vrot.slane %v538_v8, 5  ;;  %v475_v37 = vsel %vm7920_vm4, %v470_v2, %v474_v57  ;;  %v479_v9 = vor.u32 %v478_v52, %v474_v57  ;;  %v8053_v61 = vld [vmem:[%s7865_s8 + $0x7c] sm:$0xf] }
  0x32   : > { %v6441_v34 = vcombine.low %v451_v58, %v461_v50  ;;  %7403 = vmatprep.mubr.msk.bf16.mxu1 %vm778_vm1, %v6478_v17  ;;  %v494_v32 = vrot.slane %v493_v18, 4  ;;  %v496_v23 = vshll.u32 %v7973_v56, 16  ;;  %v502_v24 = vrot.slane %v500_v13, 4  ;;  %v313_v50 = vld [vmem:[%s7865_s8 + $0x84] sm:$0xf] }
  0x33   : > { %v506_v39 = vshll.u32 %v8026_v54, 16  ;;  %v559_v4 = vshrl.u32 %v309_v22, 16  ;;  %v480_v44 = vrot.slane %v479_v9, 4  ;;  %v562_v46 = vshll.u32 %v309_v22, 16 }
  0x34   : > { %7361 = vmatprep.mubr.msk.bf16.mxu0 %vm778_vm1, %v6441_v34  ;;  %v572_v53 = vshrl.u32 %v8032_v33, 16  ;;  %v6479_v38 = vcombine.low %v309_v22, %v8032_v33  ;;  %v498_v19 = vrot.slane %v496_v23, 5  ;;  %v517_v13 = vor.u32 %v516_v60, %v513_v48  ;;  %v8058_v48 = vld [vmem:[%s7865_s8 + $0x68] sm:$0x1] }
  0x35   : > { %v508_v58 = vrot.slane %v506_v39, 5  ;;  %v561_v59 = vrot.slane %v559_v4, 4  ;;  %v485_v0 = vsel %vm7920_vm4, %v480_v44, %v484_v25  ;;  %v564_v2 = vrot.slane %v562_v46, 5  ;;  %v8068_v39 = vld [vmem:[%s7865_s8 + $0x88] sm:$0xf] }
  0x36   : > { %7404 = vmatmul.mubr.msk.bf16.gmra.mxu1 %vm778_vm1, %v6479_v38  ;;  %v520_v3 = vshll.u32 %v7992_v26, 16  ;;  %v526_v52 = vrot.slane %v524_v43, 4  ;;  %v6442_v5 = vcombine.low %v475_v37, %v485_v0  ;;  %v499_v7 = vsel %vm7920_vm4, %v494_v32, %v498_v19  ;;  %v315_v0 = vld [vmem:[%s7865_s8 + $0x90] sm:$0xf] }
  0x37   : > { %v503_v8 = vor.u32 %v502_v24, %v498_v19  ;;  %v518_v57 = vrot.slane %v517_v13, 4  ;;  %v530_v17 = vshll.u32 %v8042_v40, 16  ;;  %v583_v18 = vshrl.u32 %v311_v42, 16  ;;  %v8076_v13 = vld [vmem:[%s7865_s8 + $0x74] sm:$0x1] }
  0x38   : > { %v522_v60 = vrot.slane %v520_v3, 5  ;;  %v586_v22 = vshll.u32 %v311_v42, 16  ;;  %7362 = vmatmul.mubr.msk.bf16.gmra.mxu0 %vm778_vm1, %v6442_v5  ;;  %v596_v25 = vshrl.u32 %v8053_v61, 16  ;;  %v6480_v34 = vcombine.low %v311_v42, %v8053_v61 }
  0x39   : > { %v504_v43 = vrot.slane %v503_v8, 4  ;;  %v541_v37 = vor.u32 %v540_v10, %v537_v28  ;;  %v532_v23 = vrot.slane %v530_v17, 5  ;;  %v585_v24 = vrot.slane %v583_v18, 4 }
  0x3a   : > { %v523_v9 = vsel %vm7920_vm4, %v518_v57, %v522_v60  ;;  %v527_v32 = vor.u32 %v526_v52, %v522_v60  ;;  %v588_v44 = vrot.slane %v586_v22, 5  ;;  %7407 = vmatprep.mubr.msk.bf16.mxu1 %vm778_vm1, %v6480_v34  ;;  %v544_v42 = vshll.u32 %v8015_v62, 16  ;;  %v8085_v60 = vld [vmem:[%s7865_s8 + $0x94] sm:$0xf] }
  0x3b   : > { %v509_v4 = vsel %vm7920_vm4, %v504_v43, %v508_v58  ;;  %v542_v46 = vrot.slane %v541_v37, 4  ;;  %v550_v38 = vrot.slane %v548_v63, 4  ;;  %v554_v19 = vshll.u32 %v8058_v48, 16 }
  0x3c   : > { %v6443_v28 = vcombine.low %v499_v7, %v509_v4  ;;  %v528_v10 = vrot.slane %v527_v32, 4  ;;  %v546_v3 = vrot.slane %v544_v42, 5  ;;  %v607_v52 = vshrl.u32 %v313_v50, 16  ;;  %v8092_v4 = vld [vmem:[%s7865_s8 + $0x80] sm:$0x1] }
  0x3d   : > { %v610_v5 = vshll.u32 %v313_v50, 16  ;;  %v620_v58 = vshrl.u32 %v8068_v39, 16  ;;  %v556_v7 = vrot.slane %v554_v19, 5  ;;  %v6481_v63 = vcombine.low %v313_v50, %v8068_v39  ;;  %v317_v50 = vld [vmem:[%s7865_s8 + $0x9c] sm:$0xf] }
  0x3e   : > { %7365 = vmatprep.mubr.msk.bf16.mxu0 %vm778_vm1, %v6443_v28  ;;  %v533_v8 = vsel %vm7920_vm4, %v528_v10, %v532_v23  ;;  %v565_v57 = vor.u32 %v564_v2, %v561_v59  ;;  %v547_v18 = vsel %vm7920_vm4, %v542_v46, %v546_v3  ;;  %v551_v22 = vor.u32 %v550_v38, %v546_v3  ;;  %v8100_v19 = vld [vmem:[%s7865_s8 + $0xa0] sm:$0xf] }
  0x3f   : > { %v6444_v17 = vcombine.low %v523_v9, %v533_v8  ;;  %v609_v43 = vrot.slane %v607_v52, 4  ;;  %v612_v34 = vrot.slane %v610_v5, 5  ;;  %7408 = vmatmul.mubr.msk.bf16.gmra.mxu1 %vm778_vm1, %v6481_v63  ;;  %v568_v32 = vshll.u32 %v8032_v33, 16 }
  0x40   : > { %v566_v37 = vrot.slane %v565_v57, 4  ;;  %v574_v23 = vrot.slane %v572_v53, 4  ;;  %v552_v59 = vrot.slane %v551_v22, 4  ;;  %v578_v2 = vshll.u32 %v8076_v13, 16 }
  0x41   : > { %7366 = vmatmul.mubr.msk.bf16.gmra.mxu0 %vm778_vm1, %v6444_v17  ;;  %v631_v9 = vshrl.u32 %v315_v0, 16  ;;  %v634_v46 = vshll.u32 %v315_v0, 16  ;;  %v570_v42 = vrot.slane %v568_v32, 5  ;;  %v644_v28 = vshrl.u32 %v8085_v60, 16  ;;  %v8110_v32 = vld [vmem:[%s7865_s8 + $0x8c] sm:$0x1] }
  0x42   : > { %v6482_v10 = vcombine.low %v315_v0, %v8085_v60  ;;  %v589_v38 = vor.u32 %v588_v44, %v585_v24  ;;  %v557_v53 = vsel %vm7920_vm4, %v552_v59, %v556_v7  ;;  %v580_v3 = vrot.slane %v578_v2, 5  ;;  %v319_v7 = vld [vmem:[%s7865_s8 + $0xa8] sm:$0xf] }
  0x43   : > { %v633_v52 = vrot.slane %v631_v9, 4  ;;  %v636_v5 = vrot.slane %v634_v46, 5  ;;  %v6445_v8 = vcombine.low %v547_v18, %v557_v53  ;;  %v571_v63 = vsel %vm7920_vm4, %v566_v37, %v570_v42 }
  0x44   : > { %v575_v57 = vor.u32 %v574_v23, %v570_v42  ;;  %7411 = vmatprep.mubr.msk.bf16.mxu1 %vm778_vm1, %v6482_v10  ;;  %v590_v17 = vrot.slane %v589_v38, 4  ;;  %v592_v24 = vshll.u32 %v8053_v61, 16  ;;  %v598_v44 = vrot.slane %v596_v25, 4  ;;  %v8117_v25 = vld [vmem:[%s7865_s8 + $0xac] sm:$0xf] }
  0x45   : > { %v602_v0 = vshll.u32 %v8092_v4, 16  ;;  %v655_v22 = vshrl.u32 %v317_v50, 16  ;;  %7369 = vmatprep.mubr.msk.bf16.mxu0 %vm778_vm1, %v6445_v8  ;;  %v658_v59 = vshll.u32 %v317_v50, 16  ;;  %v668_v37 = vshrl.u32 %v8100_v19, 16 }
  0x46   : > { %v576_v18 = vrot.slane %v575_v57, 4  ;;  %v6483_v23 = vcombine.low %v317_v50, %v8100_v19  ;;  %v594_v2 = vrot.slane %v592_v24, 5  ;;  %v613_v42 = vor.u32 %v612_v34, %v609_v43  ;;  %v8126_v43 = vld [vmem:[%s7865_s8 + $0x98] sm:$0x1] }
  0x47   : > { %v604_v9 = vrot.slane %v602_v0, 5  ;;  %v657_v46 = vrot.slane %v655_v22, 4  ;;  %v660_v38 = vrot.slane %v658_v59, 5  ;;  %v616_v53 = vshll.u32 %v8068_v39, 16 }
  0x48   : > { %v581_v10 = vsel %vm7920_vm4, %v576_v18, %v580_v3  ;;  %7412 = vmatmul.mubr.msk.bf16.gmra.mxu1 %vm778_vm1, %v6483_v23  ;;  %v622_v8 = vrot.slane %v620_v58, 4  ;;  %v595_v50 = vsel %vm7920_vm4, %v590_v17, %v594_v2  ;;  %v599_v24 = vor.u32 %v598_v44, %v594_v2  ;;  %v321_v18 = vld [vmem:[%s7865_s8 + $0xb4] sm:$0xf] }
  0x49   : > { %v6446_v57 = vcombine.low %v571_v63, %v581_v10  ;;  %v614_v0 = vrot.slane %v613_v42, 4  ;;  %v618_v34 = vrot.slane %v616_v53, 5  ;;  %v626_v22 = vshll.u32 %v8110_v32, 16  ;;  %v8134_v10 = vld [vmem:[%s7865_s8 + $0xb8] sm:$0xf] }
  0x4a   : > { %v679_v29 = vshrl.u32 %v319_v7, 16  ;;  %v682_v3 = vshll.u32 %v319_v7, 16  ;;  %v600_v59 = vrot.slane %v599_v24, 4  ;;  %v692_v58 = vshrl.u32 %v8117_v25, 16 }
  0x4b   : > { %7370 = vmatmul.mubr.msk.bf16.gmra.mxu0 %vm778_vm1, %v6446_v57  ;;  %v6484_v63 = vcombine.low %v319_v7, %v8117_v25  ;;  %v637_v23 = vor.u32 %v636_v5, %v633_v52  ;;  %v619_v17 = vsel %vm7920_vm4, %v614_v0, %v618_v34  ;;  %v623_v44 = vor.u32 %v622_v8, %v618_v34  ;;  %v7728_v0 = vld [vmem:[%s7865_s8 + $0xc] sm:$0xff]  }
  0x4c   : > { %v628_v2 = vrot.slane %v626_v22, 5  ;;  %v681_v42 = vrot.slane %v679_v29, 4  ;;  %v605_v53 = vsel %vm7920_vm4, %v600_v59, %v604_v9  ;;  %v684_v57 = vrot.slane %v682_v3, 5 }
  0x4d   : > { %7415 = vmatprep.mubr.msk.bf16.mxu1 %vm778_vm1, %v6484_v63  ;;  %v638_v7 = vrot.slane %v637_v23, 4  ;;  %v640_v52 = vshll.u32 %v8085_v60, 16  ;;  %v6447_v5 = vcombine.low %v595_v50, %v605_v53  ;;  %v624_v24 = vrot.slane %v623_v44, 4  ;;  %v8150_v50 = vld [vmem:[%s7865_s8 + $0xa4] sm:$0x1] }
  0x4e   : > { %v646_v6 = vrot.slane %v644_v28, 4  ;;  %v650_v21 = vshll.u32 %v8126_v43, 16  ;;  %v703_v34 = vshrl.u32 %v321_v18, 16  ;;  %v706_v29 = vshll.u32 %v321_v18, 16 }
  0x4f   : > { %v642_v8 = vrot.slane %v640_v52, 5  ;;  %v716_v22 = vshrl.u32 %v8134_v10, 16  ;;  %7373 = vmatprep.mubr.msk.bf16.mxu0 %vm778_vm1, %v6447_v5  ;;  %v629_v9 = vsel %vm7920_vm4, %v624_v24, %v628_v2  ;;  %v6485_v59 = vcombine.low %v321_v18, %v8134_v10  ;;  %v8155_v52 = vld [vmem:[%s7865_s8 + $0xb0] sm:$0x1] }
  0x50   : > { %v652_v3 = vrot.slane %v650_v21, 5  ;;  %v661_v28 = vor.u32 %v660_v38, %v657_v46  ;;  %v6448_v63 = vcombine.low %v619_v17, %v629_v9  ;;  %v705_v53 = vrot.slane %v703_v34, 4 }
  0x51   : > { %v643_v23 = vsel %vm7920_vm4, %v638_v7, %v642_v8  ;;  %v647_v44 = vor.u32 %v646_v6, %v642_v8  ;;  %v708_v49 = vrot.slane %v706_v29, 5  ;;  %7416 = vmatmul.mubr.msk.bf16.gmra.mxu1 %vm778_vm1, %v6485_v59  ;;  %v664_v21 = vshll.u32 %v8100_v19, 16  ;;  %v8165_v8 = vld [vmem:[%s7865_s8 + $0xbc] sm:$0x1] }
  0x52   : > { %v662_v5 = vrot.slane %v661_v28, 4  ;;  %v670_v2 = vrot.slane %v668_v37, 4  ;;  %v674_v38 = vshll.u32 %v8150_v50, 16  ;;  %7455 = vmatprep.mubr.msk.bf16.mxu1 %vm778_vm1, %v7728_v0  ;;  %v685_v6 = vor.u32 %v684_v57, %v681_v42  ;;  %v1284_v0 = vld [vmem:[%s7865_s8] sm:$0xe] }
  0x53   : > { %7374 = vmatmul.mubr.msk.bf16.gmra.mxu0 %vm778_vm1, %v6448_v63  ;;  %v648_v46 = vrot.slane %v647_v44, 4  ;;  %v688_v18 = vshll.u32 %v8117_v25, 16  ;;  %v666_v17 = vrot.slane %v664_v21, 5  ;;  %v694_v7 = vrot.slane %v692_v58, 4  ;;  %v7729_v58 = vld [vmem:[%s7865_s8 + $0x18] sm:$0xff]  }
  0x54   : > { %v698_v24 = vshll.u32 %v8155_v52, 16  ;;  %v709_v37 = vor.u32 %v708_v49, %v705_v53  ;;  %v676_v29 = vrot.slane %v674_v38, 5  ;;  %v686_v9 = vrot.slane %v685_v6, 4  ;;  %v1285_v49 = vld [vmem:[%s7865_s8 + $0xc] sm:$0xe] }
  0x55   : > { %v653_v34 = vsel %vm7920_vm4, %v648_v46, %v652_v3  ;;  %v690_v59 = vrot.slane %v688_v18, 5  ;;  %v667_v57 = vsel %vm7920_vm4, %v662_v5, %v666_v17  ;;  %v671_v28 = vor.u32 %v670_v2, %v666_v17  ;;  %v7730_v46 = vld [vmem:[%s7865_s8 + $0x24] sm:$0xff]  }
  0x56   : > { %v6449_v42 = vcombine.low %v643_v23, %v653_v34  ;;  %v700_v63 = vrot.slane %v698_v24, 5  ;;  %v710_v21 = vrot.slane %v709_v37, 4  ;;  %v712_v23 = vshll.u32 %v8134_v10, 16 }
  0x57   : > { %v691_v3 = vsel %vm7920_vm4, %v686_v9, %v690_v59  ;;  %v695_v53 = vor.u32 %v694_v7, %v690_v59  ;;  %v672_v5 = vrot.slane %v671_v28, 4  ;;  %v718_v2 = vrot.slane %v716_v22, 4 }
  0x58   : > { %7377 = vmatprep.mubr.msk.bf16.mxu0 %vm778_vm1, %v6449_v42  ;;  %v722_v38 = vshll.u32 %v8165_v8, 16  ;;  %v6502_v6 = vrot.slane %v1284_v0, 9  ;;  %v714_v17 = vrot.slane %v712_v23, 5  ;;  %v11084_v24 = vrot.slane %v7903_v35, 5  ;;  %v1286_v0 = vld [vmem:[%s7865_s8 + $0x18] sm:$0xe] }
  0x59   : > { %v696_v18 = vrot.slane %v695_v53, 4  ;;  %v6503_v37 = vrot.slane %v1285_v49, 9  ;;  %v677_v34 = vsel %vm7920_vm4, %v672_v5, %v676_v29  ;;  %7456 = vmatmul.mubr.msk.bf16.vlgmr.msra.gmra.mxu1 %vm778_vm1, %v7729_v58  ;;  %v11085_v9 = vrot.slane %v7878_v14, 5  ;;  %v1287_v58 = vld [vmem:[%s7865_s8 + $0x24] sm:$0xe]  ;;  %v7731_v23 = vld [vmem:[%s7865_s8 + $0x30] sm:$0xff]  }
  0x5a   : > { %v8191_v7 = vsel %vm8175_vm7, %v7900_v31, %v11084_v24  ;;  %v724_v22 = vrot.slane %v722_v38, 5  ;;  %v11086_v35 = vrot.slane %v7928_v55, 5  ;;  %v6450_v29 = vcombine.low %v667_v57, %v677_v34  ;;  %7459 = vmatprep.mubr.msk.bf16.mxu1 %vm778_vm1, %v7730_v46 }
  0x5b   : > { %v8200_v59 = vsel %vm8175_vm7, %v6502_v6, %v11085_v9  ;;  %v701_v42 = vsel %vm7920_vm4, %v696_v18, %v700_v63  ;;  %v715_v14 = vsel %vm7920_vm4, %v710_v21, %v714_v17  ;;  %v719_v28 = vor.u32 %v718_v2, %v714_v17  ;;  %v1288_v63 = vld [vmem:[%s7865_s8 + $0x30] sm:$0xe]  ;;  %v1289_v6 = vld [vmem:[%s7865_s8 + $0x3c] sm:$0xe] }
  0x5c   : > { %v8207_v31 = vsel %vm8175_vm7, %v7908_v36, %v11086_v35  ;;  %v6451_v49 = vcombine.low %v691_v3, %v701_v42  ;;  %v6518_v55 = vcombine.low %v8200_v59, %v8191_v7  ;;  %v11087_v53 = vrot.slane %v7887_v20, 5  ;;  %7378 = vmatmul.mubr.msk.bf16.gmra.mxu0 %vm778_vm1, %v6450_v29  ;;  %v7733_v17 = vld [vmem:[%s7865_s8 + $0x3c] sm:$0xff]   ;;  %v1290_v35 = vld [vmem:[%s7865_s8 + $0x48] sm:$0xe] }
  0x5d   : > { %v3101_v57 = vsel %vm827_vm0, %v7870_v11, 0  ;;  %v720_v21 = vrot.slane %v719_v28, 4  ;;  %v6504_v46 = vrot.slane %v1286_v0, 9  ;;  %v1351_v20 = vrot.slane %v7896_v30, 5 }
  0x5e   : > { %v8222_v36 = vsel %vm8175_vm7, %v6503_v37, %v11087_v53  ;;  %7522 = vmatpush3.bf16.msra.mxu1 %v3101_v57  ;;  %7381 = vmatprep.mubr.msk.bf16.mxu0 %vm778_vm1, %v6451_v49  ;;  %v1354_v5 = vrot.slane %v7945_v16, 5  ;;  %v6505_v2 = vrot.slane %v1287_v58, 9  ;;  %v1358_v11 = vrot.slane %v7915_v45, 5 }
  0x5f   : > { %v6519_v3 = vcombine.low %v8222_v36, %v8207_v31  ;;  %v1361_v38 = vrot.slane %v7966_v41, 5  ;;  %v725_v18 = vsel %vm7920_vm4, %v720_v21, %v724_v22  ;;  %v8242_v24 = vsel %vm8175_vm7, %v6504_v46, %v1351_v20  ;;  %v1292_v21 = vld [vmem:[%s7865_s8 + $0x60] sm:$0xe] }
  0x60   : > { %v1353_v30 = vrot.slane %v1351_v20, 4  ;;  %v6506_v7 = vrot.slane %v1288_v63, 9  ;;  %v6452_v37 = vcombine.low %v715_v14, %v725_v18  ;;  %v8246_v16 = vsel %vm8175_vm7, %v6505_v2, %v1358_v11  ;;  %v7736_v31 = vld [vmem:[%s7865_s8 + $0x60] sm:$0xff]  }
  0x61   : > { %v1360_v45 = vrot.slane %v1358_v11, 4  ;;  %v1365_v41 = vrot.slane %v7938_v1, 5  ;;  %v1368_v22 = vrot.slane %v7984_v15, 5  ;;  %v6507_v9 = vrot.slane %v1289_v6, 9  ;;  %7460 = vmatmul.mubr.msk.bf16.gmra.mxu1 %vm778_vm1, %v7731_v23  ;;  %v1291_v15 = vld [vmem:[%s7865_s8 + $0x54] sm:$0xe] }
  0x62   : > { %v8251_v34 = vsel %vm8175_vm7, %v1353_v30, %v1354_v5  ;;  %v1372_v59 = vrot.slane %v7956_v27, 5  ;;  %7463 = vmatprep.mubr.msk.bf16.mxu1 %vm778_vm1, %v7733_v17  ;;  %v1375_v58 = vrot.slane %v8007_v51, 5  ;;  %v6508_v53 = vrot.slane %v1290_v35, 9  ;;  %v1293_v5 = vld [vmem:[%s7865_s8 + $0x6c] sm:$0xe]  ;;  %v7735_v6 = vld [vmem:[%s7865_s8 + $0x54] sm:$0xff]  }
  0x63   : > { %v6520_v0 = vcombine.low %v8242_v24, %v8251_v34  ;;  %v8261_v29 = vsel %vm8175_vm7, %v1360_v45, %v1361_v38  ;;  %v8265_v1 = vsel %vm8175_vm7, %v6506_v7, %v1365_v41  ;;  %v1367_v42 = vrot.slane %v1365_v41, 4  ;;  %v1294_v41 = vld [vmem:[%s7865_s8 + $0x78] sm:$0xe] }
  0x64   : > { %v6521_v27 = vcombine.low %v8246_v16, %v8261_v29  ;;  %v8273_v14 = vsel %vm8175_vm7, %v6507_v9, %v1372_v59  ;;  %v1374_v28 = vrot.slane %v1372_v59, 4  ;;  %v1379_v57 = vrot.slane %v7973_v56, 5  ;;  %7382 = vmatmul.mubr.msk.bf16.gmra.mxu0 %vm778_vm1, %v6452_v37  ;;  %v7734_v56 = vld [vmem:[%s7865_s8 + $0x48] sm:$0xff]   ;;  %v1295_v59 = vld [vmem:[%s7865_s8 + $0x84] sm:$0xe] }
  0x65   : > { %v8278_v49 = vsel %vm8175_vm7, %v1367_v42, %v1368_v22  ;;  %v1382_v63 = vrot.slane %v8026_v54, 5  ;;  %v6509_v51 = vrot.slane %v1291_v15, 9  ;;  %v1386_v20 = vrot.slane %v7992_v26, 5  ;;  %7421 = vmatprep.mubr.msk.bf16.mxu0 %vm778_vm1, %v6518_v55 }
  0x66   : > { %v6522_v23 = vcombine.low %v8265_v1, %v8278_v49  ;;  %v8288_v46 = vsel %vm8175_vm7, %v1374_v28, %v1375_v58  ;;  %v8298_v2 = vsel %vm8175_vm7, %v6508_v53, %v1379_v57  ;;  %v1381_v11 = vrot.slane %v1379_v57, 4  ;;  %v1296_v57 = vld [vmem:[%s7865_s8 + $0x90] sm:$0xe] }
  0x67   : > { %v6523_v54 = vcombine.low %v8273_v14, %v8288_v46  ;;  %v1389_v38 = vrot.slane %v8042_v40, 5  ;;  %v8304_v26 = vsel %vm8175_vm7, %v6509_v51, %v1386_v20  ;;  %v1388_v18 = vrot.slane %v1386_v20, 4  ;;  %v1297_v20 = vld [vmem:[%s7865_s8 + $0x9c] sm:$0xe] }
  0x68   : > { %v6510_v17 = vrot.slane %v1292_v21, 9  ;;  %v1393_v55 = vrot.slane %v8015_v62, 5  ;;  %v8309_v30 = vsel %vm8175_vm7, %v1381_v11, %v1382_v63  ;;  %v1396_v7 = vrot.slane %v8058_v48, 5  ;;  %v8361_v11 = vld [vmem:[%s7865_s8 + $0x10] sm:$0xf] }
  0x69   : > { %v6511_v37 = vrot.slane %v1293_v5, 9  ;;  %v1400_v45 = vrot.slane %v8032_v33, 5  ;;  %v6524_v40 = vcombine.low %v8298_v2, %v8309_v30  ;;  %v8318_v22 = vsel %vm8175_vm7, %v1388_v18, %v1389_v38  ;;  %7464 = vmatmul.mubr.msk.bf16.gmra.mxu1 %vm778_vm1, %v7734_v56 }
  0x6a   : > { %v8322_v62 = vsel %vm8175_vm7, %v6510_v17, %v1393_v55  ;;  %v1395_v9 = vrot.slane %v1393_v55, 4  ;;  %v6525_v33 = vcombine.low %v8304_v26, %v8318_v22  ;;  %v1403_v42 = vrot.slane %v8076_v13, 5  ;;  %7467 = vmatprep.mubr.msk.bf16.mxu1 %vm778_vm1, %v7735_v6  ;;  %v8380_v6 = vld [vmem:[%s11057_s1 + $0xc] sm:$0xf] }
  0x6b   : > { %v8330_v48 = vsel %vm8175_vm7, %v6511_v37, %v1400_v45  ;;  %v1402_v35 = vrot.slane %v1400_v45, 4  ;;  %v6512_v28 = vrot.slane %v1294_v41, 9  ;;  %v1407_v58 = vrot.slane %v8053_v61, 5  ;;  %v6695_v17 = vld [vmem:[%s7865_s8 + $0xc] sm:$0xe] }
  0x6c   : > { %v8336_v15 = vsel %vm8175_vm7, %v1395_v9, %v1396_v7  ;;  %v1410_v53 = vrot.slane %v8092_v4, 5  ;;  %v6513_v21 = vrot.slane %v1295_v59, 9  ;;  %v1414_v51 = vrot.slane %v8068_v39, 5  ;;  %7422 = vmatmul.mubr.msk.bf16.vlgmr.msra.gmra.mxu0 %vm778_vm1, %v6519_v3  ;;  %v8364_v39 = vld [vmem:[%s7865_s8 + $0x14] sm:$0x1] }
  0x6d   : > { %v6526_v63 = vcombine.low %v8322_v62, %v8336_v15  ;;  %v8345_v13 = vsel %vm8175_vm7, %v1402_v35, %v1403_v42  ;;  %v8357_v4 = vsel %vm8175_vm7, %v6512_v28, %v1407_v58  ;;  %v1409_v5 = vrot.slane %v1407_v58, 4  ;;  %7488 = vmatpush3.bf16.msra.mxu0 %v7874_v12  ;;  %7425 = vmatprep.mubr.msk.bf16.mxu0 %vm778_vm1, %v6520_v0  ;;  %v7737_v12 = vld [vmem:[%s7865_s8 + $0x6c] sm:$0xff]   ;;  %v1298_v37 = vld [vmem:[%s7865_s8 + $0xa8] sm:$0xe]  ;;  %v8411_v59 = vld [vmem:[%s7865_s8 + $0x1c] sm:$0xf] }
  0x6e   : > { %v6527_v61 = vcombine.low %v8330_v48, %v8345_v13  ;;  %v1417_v56 = vrot.slane %v8110_v32, 5  ;;  %v8374_v36 = vsel %vm8175_vm7, %v6513_v21, %v1414_v51  ;;  %v1416_v3 = vrot.slane %v1414_v51, 4  ;;  %7697 = vmatprep.subr.msk.bf16.mxu0 %vm827_vm0, %v8380_v6 }
  0x6f   : > { %v6514_v32 = vrot.slane %v1296_v57, 9  ;;  %v1421_v38 = vrot.slane %v8085_v60, 5  ;;  %v8385_v24 = vsel %vm8175_vm7, %v1409_v5, %v1410_v53  ;;  %v1424_v34 = vrot.slane %v8126_v43, 5  ;;  %v6696_v53 = vld [vmem:[%s7865_s8 + $0x18] sm:$0xe] }
  0x70   : > { %v6515_v0 = vrot.slane %v1297_v20, 9  ;;  %v1428_v18 = vrot.slane %v8100_v19, 5  ;;  %v6528_v60 = vcombine.low %v8357_v4, %v8385_v24  ;;  %v8396_v55 = vsel %vm8175_vm7, %v1416_v3, %v1417_v56  ;;  %v8430_v20 = vld [vmem:[%s7865_s8 + $0x20] sm:$0x1]  ;;  %v1299_v5 = vld [vmem:[%s7865_s8 + $0xb4] sm:$0xe] }
  0x71   : > { %v8400_v7 = vsel %vm8175_vm7, %v6514_v32, %v1421_v38  ;;  %v1423_v43 = vrot.slane %v1421_v38, 4  ;;  %v6529_v19 = vcombine.low %v8374_v36, %v8396_v55  ;;  %v1431_v9 = vrot.slane %v8150_v50, 5  ;;  %7468 = vmatmul.mubr.msk.bf16.gmra.mxu1 %vm778_vm1, %v7736_v31  ;;  %v8441_v38 = vld [vmem:[%s7865_s8 + $0x28] sm:$0xf]  ;;  %v6627_v24 = vld [vmem:[%s7865_s8 + $0x3c] sm:$0xf] }
  0x72   : > { %v8407_v45 = vsel %vm8175_vm7, %v6515_v0, %v1428_v18  ;;  %v1430_v41 = vrot.slane %v1428_v18, 4  ;;  %v6711_v42 = vrot.slane %v6695_v17, 9  ;;  %v2890_v28 = vrot.slane %v8361_v11, 5  ;;  %7471 = vmatprep.mubr.msk.bf16.mxu1 %vm778_vm1, %v7737_v12  ;;  %v8453_v18 = vld [vmem:[%s7865_s8 + $0x2c] sm:$0x1] }
  0x73   : > { %v8416_v35 = vsel %vm8175_vm7, %v1423_v43, %v1424_v34  ;;  %v2893_v58 = vrot.slane %v8364_v39, 5  ;;  %v6516_v21 = vrot.slane %v1298_v37, 9  ;;  %v1435_v51 = vrot.slane %v8117_v25, 5  ;;  %v6697_v43 = vld [vmem:[%s7865_s8 + $0x24] sm:$0xe] }
  0x74   : > { %v6530_v50 = vcombine.low %v8400_v7, %v8416_v35  ;;  %v8426_v57 = vsel %vm8175_vm7, %v1430_v41, %v1431_v9  ;;  %v8437_v31 = vsel %vm8175_vm7, %v6711_v42, %v2890_v28  ;;  %v2892_v3 = vrot.slane %v2890_v28, 4  ;;  %7426 = vmatmul.mubr.msk.bf16.gmra.mxu0 %vm778_vm1, %v6521_v27  ;;  %v7739_v37 = vld [vmem:[%s7865_s8 + $0x84] sm:$0xff]   ;;  %v6615_v9 = vld [vmem:[%s7865_s8 + $0xc] sm:$0xf] }
  0x75   : > { %v1438_v32 = vrot.slane %v8155_v52, 5  ;;  %v8449_v25 = vsel %vm8175_vm7, %v6516_v21, %v1435_v51  ;;  %v1437_v12 = vrot.slane %v1435_v51, 4  ;;  %v6712_v34 = vrot.slane %v6696_v53, 9  ;;  %7429 = vmatprep.mubr.msk.bf16.mxu0 %vm778_vm1, %v6522_v23  ;;  %v7738_v52 = vld [vmem:[%s7865_s8 + $0x78] sm:$0xff]  }
  0x76   : > { %v2897_v0 = vrot.slane %v8411_v59, 5  ;;  %v8462_v16 = vsel %vm8175_vm7, %v2892_v3, %v2893_v58  ;;  %v2900_v29 = vrot.slane %v8430_v20, 5  ;;  %v6517_v27 = vrot.slane %v1299_v5, 9 }
  0x77   : > { %v1442_v17 = vrot.slane %v8134_v10, 5  ;;  %v6727_v41 = vcombine.low %v8437_v31, %v8462_v16  ;;  %v8472_v1 = vsel %vm8175_vm7, %v1437_v12, %v1438_v32  ;;  %v1445_v58 = vrot.slane %v8165_v8, 5 }
  0x78   : > { %v8476_v49 = vsel %vm8175_vm7, %v6712_v34, %v2897_v0  ;;  %v2899_v23 = vrot.slane %v2897_v0, 4  ;;  %v6713_v21 = vrot.slane %v6697_v43, 9  ;;  %v2904_v51 = vrot.slane %v8441_v38, 5  ;;  %v8500_v34 = vld [vmem:[%s7865_s8 + $0x34] sm:$0xf] }
  0x79   : > { %v8483_v42 = vsel %vm8175_vm7, %v6517_v27, %v1442_v17  ;;  %v1444_v28 = vrot.slane %v1442_v17, 4  ;;  %v2907_v5 = vrot.slane %v8453_v18, 5  ;;  %7472 = vmatmul.mubr.msk.bf16.gmra.mxu1 %vm778_vm1, %v7738_v52  ;;  %v2149_v8 = vshrl.u32 %v6615_v9, 16  ;;  %v6698_v0 = vld [vmem:[%s7865_s8 + $0x30] sm:$0xe] }
  0x7a   : > { %v8488_v53 = vsel %vm8175_vm7, %v2899_v23, %v2900_v29  ;;  %v2152_v12 = vshll.u32 %v6615_v9, 16  ;;  %7475 = vmatprep.mubr.msk.bf16.mxu1 %vm778_vm1, %v7739_v37  ;;  %v8508_v52 = vsel %vm8175_vm7, %v6713_v21, %v2904_v51  ;;  %v2906_v27 = vrot.slane %v2904_v51, 4 }
  0x7b   : > { %v6728_v3 = vcombine.low %v8476_v49, %v8488_v53  ;;  %v8497_v32 = vsel %vm8175_vm7, %v1444_v28, %v1445_v58  ;;  %v2158_v17 = vshll.u32 %v8361_v11, 16  ;;  %v2151_v43 = vrot.slane %v2149_v8, 4  ;;  %v8514_v58 = vld [vmem:[%s7865_s8 + $0x38] sm:$0x1] }
  0x7c   : > { %v2154_v23 = vrot.slane %v2152_v12, 5  ;;  %v2162_v9 = vshrl.u32 %v8361_v11, 16  ;;  %v2168_v28 = vshll.u32 %v8364_v39, 16  ;;  %7430 = vmatmul.mubr.msk.bf16.gmra.mxu0 %vm778_vm1, %v6523_v54  ;;  %v8522_v37 = vsel %vm8175_vm7, %v2906_v27, %v2907_v5  ;;  %v6618_v12 = vld [vmem:[%s7865_s8 + $0x18] sm:$0xf]  ;;  %v7740_v11 = vld [vmem:[%s7865_s8 + $0x90] sm:$0xff]  }
  0x7d   : > { %v2160_v21 = vrot.slane %v2158_v17, 5  ;;  %v6714_v51 = vrot.slane %v6698_v0, 9  ;;  %v2911_v8 = vrot.slane %v8500_v34, 5  ;;  %7433 = vmatprep.mubr.msk.bf16.mxu0 %vm778_vm1, %v6524_v40  ;;  %v6729_v14 = vcombine.low %v8508_v52, %v8522_v37  ;;  %v7741_v5 = vld [vmem:[%s7865_s8 + $0x9c] sm:$0xff]  }
  0x7e   : > { %v2155_v46 = vor.u32 %v2154_v23, %v2151_v43  ;;  %v2164_v54 = vrot.slane %v2162_v9, 4  ;;  %v2170_v39 = vrot.slane %v2168_v28, 5  ;;  %v2914_v17 = vrot.slane %v8514_v58, 5 }
  0x7f   : > { %v8536_v0 = vsel %vm8175_vm7, %v6714_v51, %v2911_v8  ;;  %v2913_v27 = vrot.slane %v2911_v8, 4  ;;  %v6888_v2 = vcombine.low %v8380_v6, %v8380_v6  ;;  %v2173_v29 = vshrl.u32 %v6618_v12, 16  ;;  %v6699_v8 = vld [vmem:[%s7865_s8 + $0x3c] sm:$0xe] }
  0x80   : > { %v2156_v30 = vrot.slane %v2155_v46, 4  ;;  %v2165_v40 = vor.u32 %v2164_v54, %v2160_v21  ;;  %v2176_v43 = vshll.u32 %v6618_v12, 16  ;;  %v2182_v28 = vshll.u32 %v8411_v59, 16 }
  0x81   : > { %v8543_v23 = vsel %vm8175_vm7, %v2913_v27, %v2914_v17  ;;  %v4136_v9 = vrot.slane %v6888_v2, 2  ;;  %v2186_v51 = vshrl.u32 %v8411_v59, 16  ;;  %7476 = vmatmul.mubr.msk.bf16.gmra.mxu1 %vm778_vm1, %v7740_v11  ;;  %v2175_v54 = vrot.slane %v2173_v29, 4  ;;  %v8554_v27 = vld [vmem:[%s7865_s8 + $0x40] sm:$0xf] }
  0x82   : > { %v2161_v10 = vsel %vm7920_vm4, %v2156_v30, %v2160_v21  ;;  %v2166_v46 = vrot.slane %v2165_v40, 4  ;;  %v8557_v17 = vld [vmem:[%s7865_s8 + $0x44] sm:$0x1]  ;;  %7479 = vmatprep.mubr.msk.bf16.mxu1 %vm778_vm1, %v7741_v5  ;;  %v2178_v59 = vrot.slane %v2176_v43, 5  ;;  %v2184_v2 = vrot.slane %v2182_v28, 5  ;;  %v7743_v5 = vld [vmem:[%s7865_s8 + $0xb4] sm:$0xff]  }
  0x83   : > { %v2188_v56 = vrot.slane %v2186_v51, 4  ;;  %v2192_v11 = vshll.u32 %v8430_v20, 16  ;;  %7698 = vmatprep.subr.msk.bf16.mxu1 %vm827_vm0, %v4136_v9  ;;  %v6621_v21 = vld [vmem:[%s7865_s8 + $0x24] sm:$0xf]  ;;  %v8567_v29 = vsel %vm827_vm0, %v8380_v6, 0  ;;  %v8570_v40 = vsel %vm827_vm0, %v4136_v9, 0 }
  0x84   : > { %v2171_v30 = vsel %vm7920_vm4, %v2166_v46, %v2170_v39  ;;  %v6715_v12 = vrot.slane %v6699_v8, 9  ;;  %7434 = vmatmul.mubr.msk.bf16.gmra.mxu0 %vm778_vm1, %v6525_v33  ;;  %v7742_v20 = vld [vmem:[%s7865_s8 + $0xa8] sm:$0xff]   ;;  %v2179_v28 = vor.u32 %v2178_v59, %v2175_v54  ;;  %v2918_v6 = vrot.slane %v8554_v27, 5 }
  0x85   : > { %v8578_v43 = vcombine.low %v2161_v10, %v2171_v30  ;;  %v2189_v39 = vor.u32 %v2188_v56, %v2184_v2  ;;  %v2194_v51 = vrot.slane %v2192_v11, 5  ;;  %7437 = vmatprep.mubr.msk.bf16.mxu0 %vm778_vm1, %v6526_v63  ;;  %v2921_v26 = vrot.slane %v8557_v17, 5  ;;  %v8589_v46 = vld [vmem:[%s7865_s8 + $0x4c] sm:$0xf]  ;;  %v6700_v59 = vld [vmem:[%s7865_s8 + $0x48] sm:$0xe] }
  0x86   : > { %v2197_v22 = vshrl.u32 %v6621_v21, 16  ;;  %v2200_v33 = vshll.u32 %v6621_v21, 16  ;;  %v2180_v9 = vrot.slane %v2179_v28, 4  ;;  %v2206_v8 = vshll.u32 %v8441_v38, 16 }
  0x87   : > { %v2190_v10 = vrot.slane %v2189_v39, 4  ;;  %v2210_v56 = vshrl.u32 %v8441_v38, 16  ;;  %v8593_v62 = vsel %vm8175_vm7, %v6715_v12, %v2918_v6  ;;  %v2920_v15 = vrot.slane %v2918_v6, 4  ;;  %v8601_v39 = vld [vmem:[%s7865_s8 + $0x50] sm:$0x1] }
  0x88   : > { %v2199_v63 = vrot.slane %v2197_v22, 4  ;;  %v2202_v54 = vrot.slane %v2200_v33, 5  ;;  %v2185_v11 = vsel %vm7920_vm4, %v2180_v9, %v2184_v2  ;;  %v2208_v30 = vrot.slane %v2206_v8, 5  ;;  %v6624_v38 = vld [vmem:[%s7865_s8 + $0x30] sm:$0xf] }
  0x89   : > { %v2195_v21 = vsel %vm7920_vm4, %v2190_v10, %v2194_v51  ;;  %v2212_v28 = vrot.slane %v2210_v56, 4  ;;  %7480 = vmatmul.mubr.msk.bf16.gmra.mxu1 %vm778_vm1, %v7742_v20  ;;  %v8609_v6 = vsel %vm8175_vm7, %v2920_v15, %v2921_v26  ;;  %v2216_v2 = vshll.u32 %v8453_v18, 16  ;;  %v8618_v15 = vld [vmem:[%s7865_s8 + $0x58] sm:$0xf] }
  0x8a   : > { %v8605_v12 = vcombine.low %v2185_v11, %v2195_v21  ;;  %v2203_v22 = vor.u32 %v2202_v54, %v2199_v63  ;;  %7483 = vmatprep.mubr.msk.bf16.mxu1 %vm778_vm1, %v7743_v5  ;;  %v6731_v51 = vcombine.low %v8593_v62, %v8609_v6  ;;  %v6716_v9 = vrot.slane %v6700_v59, 9  ;;  %v8629_v59 = vld [vmem:[%s7865_s8 + $0x5c] sm:$0x1]  ;;  %v6701_v11 = vld [vmem:[%s7865_s8 + $0x54] sm:$0xe]  ;;  %v7744_v21 = vld [vmem:[%s7865_s8 + $0xc0] sm:$0xff]  }
  0x8b   : > { %v2213_v33 = vor.u32 %v2212_v28, %v2208_v30  ;;  %v2925_v20 = vrot.slane %v8589_v46, 5  ;;  %v2218_v8 = vrot.slane %v2216_v2, 5  ;;  %v2928_v26 = vrot.slane %v8601_v39, 5 }
  0x8c   : > { %v2204_v10 = vrot.slane %v2203_v22, 4  ;;  %v2221_v56 = vshrl.u32 %v6624_v38, 16  ;;  %7438 = vmatmul.mubr.msk.bf16.gmra.mxu0 %vm778_vm1, %v6527_v61  ;;  %v2224_v54 = vshll.u32 %v6624_v38, 16  ;;  %v2230_v61 = vshll.u32 %v8500_v34, 16 }
  0x8d   : > { %v2214_v18 = vrot.slane %v2213_v33, 4  ;;  %v8626_v5 = vsel %vm8175_vm7, %v6716_v9, %v2925_v20  ;;  %v2927_v63 = vrot.slane %v2925_v20, 4  ;;  %7441 = vmatprep.mubr.msk.bf16.mxu0 %vm778_vm1, %v6528_v60  ;;  %v2234_v28 = vshrl.u32 %v8500_v34, 16 }
  0x8e   : > { %v2209_v48 = vsel %vm7920_vm4, %v2204_v10, %v2208_v30  ;;  %v2223_v13 = vrot.slane %v2221_v56, 4  ;;  %v2226_v2 = vrot.slane %v2224_v54, 5  ;;  %v2240_v4 = vshll.u32 %v8514_v58, 16 }
  0x8f   : > { %v2219_v38 = vsel %vm7920_vm4, %v2214_v18, %v2218_v8  ;;  %v8645_v22 = vsel %vm8175_vm7, %v2927_v63, %v2928_v26  ;;  %v2232_v33 = vrot.slane %v2230_v61, 5  ;;  %v2236_v9 = vrot.slane %v2234_v28, 4  ;;  %v8657_v63 = vld [vmem:[%s7865_s8 + $0x64] sm:$0xf] }
  0x90   : > { %v8649_v60 = vcombine.low %v2209_v48, %v2219_v38  ;;  %v6732_v30 = vcombine.low %v8626_v5, %v8645_v22  ;;  %v2227_v34 = vor.u32 %v2226_v2, %v2223_v13  ;;  %v2242_v20 = vrot.slane %v2240_v4, 5  ;;  %v8669_v13 = vld [vmem:[%s7865_s8 + $0x68] sm:$0x1]  ;;  %v6702_v4 = vld [vmem:[%s7865_s8 + $0x60] sm:$0xe] }
  0x91   : > { %v6717_v10 = vrot.slane %v6701_v11, 9  ;;  %v2932_v8 = vrot.slane %v8618_v15, 5  ;;  %7484 = vmatmul.mubr.msk.bf16.gmra.mxu1 %vm778_vm1, %v7744_v21  ;;  %v2237_v26 = vor.u32 %v2236_v9, %v2232_v33  ;;  %v2935_v58 = vrot.slane %v8629_v59, 5  ;;  %v6630_v9 = vld [vmem:[%s7865_s8 + $0x48] sm:$0xf] }
  0x92   : > { %v2245_v56 = vshrl.u32 %v6627_v24, 16  ;;  %v2248_v18 = vshll.u32 %v6627_v24, 16  ;;  %7523 = vmatprep.mubr.msk.bf16.mxu1 %vm778_vm1, %v6727_v41  ;;  %v2228_v54 = vrot.slane %v2227_v34, 4  ;;  %v2254_v48 = vshll.u32 %v8554_v27, 16 }
  0x93   : > { %v8665_v11 = vsel %vm8175_vm7, %v6717_v10, %v2932_v8  ;;  %v2934_v21 = vrot.slane %v2932_v8, 4  ;;  %v2238_v61 = vrot.slane %v2237_v26, 4  ;;  %v2258_v2 = vshrl.u32 %v8554_v27, 16  ;;  %v6703_v8 = vld [vmem:[%s7865_s8 + $0x6c] sm:$0xe] }
  0x94   : > { %v2247_v28 = vrot.slane %v2245_v56, 4  ;;  %v2250_v38 = vrot.slane %v2248_v18, 5  ;;  %7442 = vmatmul.mubr.msk.bf16.gmra.mxu0 %vm778_vm1, %v6529_v19  ;;  %v2233_v31 = vsel %vm7920_vm4, %v2228_v54, %v2232_v33  ;;  %v2256_v41 = vrot.slane %v2254_v48, 5  ;;  %v8712_v48 = vld [vmem:[%s7865_s8 + $0x74] sm:$0x1] }
  0x95   : > { %v8681_v16 = vsel %vm8175_vm7, %v2934_v21, %v2935_v58  ;;  %v2264_v24 = vshll.u32 %v8557_v17, 16  ;;  %7445 = vmatprep.mubr.msk.bf16.mxu0 %vm778_vm1, %v6530_v50  ;;  %v2243_v36 = vsel %vm7920_vm4, %v2238_v61, %v2242_v20  ;;  %v2260_v27 = vrot.slane %v2258_v2, 4  ;;  %v8699_v58 = vld [vmem:[%s7865_s8 + $0x70] sm:$0xf]  ;;  %v8704_v20 = vld [vmem:[%s11058_s2] sm:$0x3] }
  0x96   : > { %v6733_v55 = vcombine.low %v8665_v11, %v8681_v16  ;;  %v2251_v19 = vor.u32 %v2250_v38, %v2247_v28  ;;  %v8693_v33 = vcombine.low %v2233_v31, %v2243_v36  ;;  %v6718_v17 = vrot.slane %v6702_v4, 9  ;;  %v6633_v31 = vld [vmem:[%s7865_s8 + $0x54] sm:$0xf] }
  0x97   : > { %v2266_v34 = vrot.slane %v2264_v24, 5  ;;  %v2939_v10 = vrot.slane %v8657_v63, 5  ;;  %v2261_v7 = vor.u32 %v2260_v27, %v2256_v41  ;;  %v2942_v35 = vrot.slane %v8669_v13, 5 }
  0x98   : > { %v2252_v26 = vrot.slane %v2251_v19, 4  ;;  %v2269_v50 = vshrl.u32 %v6630_v9, 16  ;;  %v2272_v54 = vshll.u32 %v6630_v9, 16  ;;  %v2278_v21 = vshll.u32 %v8589_v46, 16 }
  0x99   : > { %v8708_v56 = vsel %vm8175_vm7, %v6718_v17, %v2939_v10  ;;  %v2941_v18 = vrot.slane %v2939_v10, 4  ;;  %7524 = vmatmul.mubr.msk.bf16.vlgmr.msra.gmra.mxu1 %vm778_vm1, %v6728_v3  ;;  %v2262_v28 = vrot.slane %v2261_v7, 4  ;;  %v2282_v2 = vshrl.u32 %v8589_v46, 16  ;;  %v8759_v7 = vld [vmem:[%s7865_s8 + $0x80] sm:$0x1] }
  0x9a   : > { %v2257_v61 = vsel %vm7920_vm4, %v2252_v26, %v2256_v41  ;;  %v2271_v38 = vrot.slane %v2269_v50, 4  ;;  %7527 = vmatprep.mubr.msk.bf16.mxu1 %vm778_vm1, %v6729_v14  ;;  %7590 = vmatpush3.bf16.msra.mxu1 %v8570_v40  ;;  %v2274_v49 = vrot.slane %v2272_v54, 5  ;;  %v2280_v53 = vrot.slane %v2278_v21, 5  ;;  %v6636_v54 = vld [vmem:[%s7865_s8 + $0x60] sm:$0xf] }
  0x9b   : > { %v8728_v4 = vsel %vm8175_vm7, %v2941_v18, %v2942_v35  ;;  %v2288_v3 = vshll.u32 %v8601_v39, 16  ;;  %v2267_v46 = vsel %vm7920_vm4, %v2262_v28, %v2266_v34  ;;  %v2284_v37 = vrot.slane %v2282_v2, 4  ;;  %7700 = vmatprep.subr.msk.bf16.mxu1 %vm827_vm0, %v8704_v20  ;;  %v8751_v34 = vld [vmem:[%s7865_s8 + $0x7c] sm:$0xf] }
  0x9c   : > { %v6734_v52 = vcombine.low %v8708_v56, %v8728_v4  ;;  %v6719_v14 = vrot.slane %v6703_v8, 9  ;;  %v11088_v40 = vcombine.low %v8407_v45, %v8426_v57  ;;  %v8742_v39 = vcombine.low %v2257_v61, %v2267_v46  ;;  %v6705_v46 = vld [vmem:[%s7865_s8 + $0x84] sm:$0xe] }
  0x9d   : > { %v2275_v41 = vor.u32 %v2274_v49, %v2271_v38  ;;  %v2290_v24 = vrot.slane %v2288_v3, 5  ;;  %v2946_v9 = vrot.slane %v8699_v58, 5  ;;  %v11089_v36 = vcombine.low %v8449_v25, %v8472_v1  ;;  %v6704_v25 = vld [vmem:[%s7865_s8 + $0x78] sm:$0xe] }
  0x9e   : > { %7446 = vmatmul.mubr.msk.bf16.gmra.mxu0 %vm778_vm1, %v11088_v40  ;;  %v2285_v19 = vor.u32 %v2284_v37, %v2280_v53  ;;  %v2949_v27 = vrot.slane %v8712_v48, 5  ;;  %v2293_v45 = vshrl.u32 %v6633_v31, 16  ;;  %v2296_v57 = vshll.u32 %v6633_v31, 16 }
  0x9f   : > { %7449 = vmatprep.mubr.msk.bf16.mxu0 %vm778_vm1, %v11089_v36  ;;  %v2276_v17 = vrot.slane %v2275_v41, 4  ;;  %v8755_v10 = vsel %vm8175_vm7, %v6719_v14, %v2946_v9  ;;  %v2948_v8 = vrot.slane %v2946_v9, 4  ;;  %v2302_v26 = vshll.u32 %v8618_v15, 16 }
  0xa0   : > { %v2286_v1 = vrot.slane %v2285_v19, 4  ;;  %v2295_v35 = vrot.slane %v2293_v45, 4  ;;  %v2298_v50 = vrot.slane %v2296_v57, 5  ;;  %v2306_v18 = vshrl.u32 %v8618_v15, 16 }
  0xa1   : > { %v2281_v21 = vsel %vm7920_vm4, %v2276_v17, %v2280_v53  ;;  %v8768_v61 = vsel %vm8175_vm7, %v2948_v8, %v2949_v27  ;;  %v2304_v28 = vrot.slane %v2302_v26, 5  ;;  %v2312_v38 = vshll.u32 %v8629_v59, 16 }
  0xa2   : > { %v11090_v2 = vcombine.low %v8536_v0, %v8543_v23  ;;  %v2291_v15 = vsel %vm7920_vm4, %v2286_v1, %v2290_v24  ;;  %v6735_v49 = vcombine.low %v8755_v10, %v8768_v61  ;;  %v2299_v53 = vor.u32 %v2298_v50, %v2295_v35  ;;  %v8789_v24 = vld [vmem:[%s7865_s8 + $0x88] sm:$0xf] }
  0xa3   : > { %v2308_v3 = vrot.slane %v2306_v18, 4  ;;  %v8783_v59 = vcombine.low %v2281_v21, %v2291_v15  ;;  %v2314_v31 = vrot.slane %v2312_v38, 5  ;;  %v6720_v0 = vrot.slane %v6704_v25, 9  ;;  %v8827_v15 = vld [vmem:[%s7865_s8 + $0x94] sm:$0xf] }
  0xa4   : > { %7528 = vmatmul.mubr.msk.bf16.gmra.mxu1 %vm778_vm1, %v11090_v2  ;;  %v2953_v23 = vrot.slane %v8751_v34, 5  ;;  %v2300_v37 = vrot.slane %v2299_v53, 4  ;;  %v2956_v40 = vrot.slane %v8759_v7, 5  ;;  %v2317_v41 = vshrl.u32 %v6636_v54, 16  ;;  %v6706_v53 = vld [vmem:[%s7865_s8 + $0x90] sm:$0xe] }
  0xa5   : > { %7531 = vmatprep.mubr.msk.bf16.mxu1 %vm778_vm1, %v6731_v51  ;;  %v2309_v14 = vor.u32 %v2308_v3, %v2304_v28  ;;  %v11091_v62 = vcombine.low %v8483_v42, %v8497_v32  ;;  %v2320_v9 = vshll.u32 %v6636_v54, 16  ;;  %v2326_v36 = vshll.u32 %v8657_v63, 16  ;;  %v8806_v32 = vld [vmem:[%s7865_s8 + $0x8c] sm:$0x1] }
  0xa6   : > { %v8797_v6 = vsel %vm8175_vm7, %v6720_v0, %v2953_v23  ;;  %v2955_v51 = vrot.slane %v2953_v23, 4  ;;  %v2305_v19 = vsel %vm7920_vm4, %v2300_v37, %v2304_v28  ;;  %v2319_v45 = vrot.slane %v2317_v41, 4  ;;  %v8845_v0 = vld [vmem:[%s11057_s1 + $0x10] sm:$0x3]  ;;  %v6642_v41 = vld [vmem:[%s7865_s8 + $0x78] sm:$0xf] }
  0xa7   : > { %7450 = vmatmul.mubr.msk.bf16.gmra.mxu0 %vm778_vm1, %v11091_v62  ;;  %v2310_v27 = vrot.slane %v2309_v14, 4  ;;  %v2330_v42 = vshrl.u32 %v8657_v63, 16  ;;  %v2322_v17 = vrot.slane %v2320_v9, 5  ;;  %v2328_v8 = vrot.slane %v2326_v36, 5 }
  0xa8   : > { %7489 = vmatprep.mubr.msk.bf16.mxu0 %vm778_vm1, %v8578_v43  ;;  %v8810_v57 = vsel %vm8175_vm7, %v2955_v51, %v2956_v40  ;;  %v2336_v26 = vshll.u32 %v8669_v13, 16  ;;  %v6639_v43 = vld [vmem:[%s7865_s8 + $0x6c] sm:$0xf]  ;;  %v6721_v35 = vrot.slane %v6705_v46, 9  ;;  %v2960_v21 = vrot.slane %v8789_v24, 5 }
  0xa9   : > { %v2315_v25 = vsel %vm7920_vm4, %v2310_v27, %v2314_v31  ;;  %v6736_v1 = vcombine.low %v8797_v6, %v8810_v57  ;;  %v2332_v63 = vrot.slane %v2330_v42, 4  ;;  %v2323_v18 = vor.u32 %v2322_v17, %v2319_v45  ;;  %v8840_v31 = vld [vmem:[%s7865_s8 + $0x98] sm:$0x1]  ;;  %v8872_v42 = vld [vmem:[%s7865_s8 + $0xa0] sm:$0xf] }
  0xaa   : > { %v8818_v50 = vcombine.low %v2305_v19, %v2315_v25  ;;  %v2338_v54 = vrot.slane %v2336_v26, 5  ;;  %v2963_v28 = vrot.slane %v8806_v32, 5  ;;  %v2341_v38 = vshrl.u32 %v6639_v43, 16  ;;  %v6707_v25 = vld [vmem:[%s7865_s8 + $0x9c] sm:$0xe] }
  0xab   : > { %v2333_v13 = vor.u32 %v2332_v63, %v2328_v8  ;;  %v2344_v2 = vshll.u32 %v6639_v43, 16  ;;  %v2324_v3 = vrot.slane %v2323_v18, 4  ;;  %v8836_v5 = vsel %vm8175_vm7, %v6721_v35, %v2960_v21 }
  0xac   : > { %7532 = vmatmul.mubr.msk.bf16.gmra.mxu1 %vm778_vm1, %v6732_v30  ;;  %v2962_v22 = vrot.slane %v2960_v21, 4  ;;  %v2350_v30 = vshll.u32 %v8699_v58, 16  ;;  %v2343_v11 = vrot.slane %v2341_v38, 4  ;;  %v2360_v40 = vshll.u32 %v8712_v48, 16  ;;  %v8888_v21 = vld [vmem:[%s7865_s8 + $0xa4] sm:$0x1] }
  0xad   : > { %7535 = vmatprep.mubr.msk.bf16.mxu1 %vm778_vm1, %v6733_v55  ;;  %v2334_v23 = vrot.slane %v2333_v13, 4  ;;  %v2346_v16 = vrot.slane %v2344_v2, 5  ;;  %v2354_v55 = vshrl.u32 %v8699_v58, 16  ;;  %v2329_v46 = vsel %vm7920_vm4, %v2324_v3, %v2328_v8 }
  0xae   : > { %v8854_v37 = vsel %vm8175_vm7, %v2962_v22, %v2963_v28  ;;  %v2352_v14 = vrot.slane %v2350_v30, 5  ;;  %v2362_v36 = vrot.slane %v2360_v40, 5  ;;  %v6722_v48 = vrot.slane %v6706_v53, 9  ;;  %v6645_v28 = vld [vmem:[%s7865_s8 + $0x84] sm:$0xf] }
  0xaf   : > { %7490 = vmatmul.mubr.msk.bf16.vlgmr.msra.gmra.mxu0 %vm778_vm1, %v8605_v12  ;;  %v2339_v12 = vsel %vm7920_vm4, %v2334_v23, %v2338_v54  ;;  %v6737_v58 = vcombine.low %v8836_v5, %v8854_v37  ;;  %v2347_v62 = vor.u32 %v2346_v16, %v2343_v11  ;;  %v2356_v51 = vrot.slane %v2354_v55, 4  ;;  %v8913_v11 = vld [vmem:[%s7865_s8 + $0xac] sm:$0xf]  ;;  %v6708_v16 = vld [vmem:[%s7865_s8 + $0xa8] sm:$0xe] }
  0xb0   : > { %7556 = vmatpush3.bf16.msra.mxu0 %v8567_v29  ;;  %7493 = vmatprep.mubr.msk.bf16.mxu0 %vm778_vm1, %v8649_v60  ;;  %v8865_v9 = vcombine.low %v2329_v46, %v2339_v12  ;;  %v2967_v19 = vrot.slane %v8827_v15, 5  ;;  %v2970_v27 = vrot.slane %v8840_v31, 5  ;;  %v2365_v45 = vshrl.u32 %v6642_v41, 16 }
  0xb1   : > { %7699 = vmatprep.subr.msk.bf16.mxu0 %vm827_vm0, %v8845_v0  ;;  %v2348_v29 = vrot.slane %v2347_v62, 4  ;;  %v2357_v60 = vor.u32 %v2356_v51, %v2352_v14  ;;  %v2368_v26 = vshll.u32 %v6642_v41, 16  ;;  %v2374_v43 = vshll.u32 %v8751_v34, 16 }
  0xb2   : > { %v8876_v17 = vsel %vm8175_vm7, %v6722_v48, %v2967_v19  ;;  %v2969_v8 = vrot.slane %v2967_v19, 4  ;;  %v2367_v18 = vrot.slane %v2365_v45, 4  ;;  %v2378_v54 = vshrl.u32 %v8751_v34, 16  ;;  %v8926_v19 = vld [vmem:[%s7865_s8 + $0xb0] sm:$0x1] }
  0xb3   : > { %v2353_v63 = vsel %vm7920_vm4, %v2348_v29, %v2352_v14  ;;  %v2358_v35 = vrot.slane %v2357_v60, 4  ;;  %v2370_v56 = vrot.slane %v2368_v26, 5  ;;  %v2376_v4 = vrot.slane %v2374_v43, 5  ;;  %v6648_v29 = vld [vmem:[%s7865_s8 + $0x90] sm:$0xf] }
  0xb4   : > { %7536 = vmatmul.mubr.msk.bf16.gmra.mxu1 %vm778_vm1, %v6734_v52  ;;  %v8896_v13 = vsel %vm8175_vm7, %v2969_v8, %v2970_v27  ;;  %v2384_v52 = vshll.u32 %v8759_v7, 16  ;;  %v2380_v10 = vrot.slane %v2378_v54, 4  ;;  %v6723_v61 = vrot.slane %v6707_v25, 9  ;;  %v6709_v54 = vld [vmem:[%s7865_s8 + $0xb4] sm:$0xe] }
  0xb5   : > { %7539 = vmatprep.mubr.msk.bf16.mxu1 %vm778_vm1, %v6735_v49  ;;  %v2363_v34 = vsel %vm7920_vm4, %v2358_v35, %v2362_v36  ;;  %v6738_v38 = vcombine.low %v8876_v17, %v8896_v13  ;;  %v2371_v2 = vor.u32 %v2370_v56, %v2367_v18  ;;  %v2974_v7 = vrot.slane %v8872_v42, 5  ;;  %v8954_v18 = vld [vmem:[%s7865_s8 + $0xbc] sm:$0x1]  ;;  %v8982_v17 = vld [vmem:[%s7865_s8 + $0xc4] sm:$0xf] }
  0xb6   : > { %v8906_v49 = vcombine.low %v2353_v63, %v2363_v34  ;;  %v2386_v53 = vrot.slane %v2384_v52, 5  ;;  %v2381_v3 = vor.u32 %v2380_v10, %v2376_v4  ;;  %v2977_v22 = vrot.slane %v8888_v21, 5  ;;  %v8944_v63 = vld [vmem:[%s7865_s8 + $0xb8] sm:$0xf] }
  0xb7   : > { %7494 = vmatmul.mubr.msk.bf16.gmra.mxu0 %vm778_vm1, %v8693_v33  ;;  %v2389_v30 = vshrl.u32 %v6645_v28, 16  ;;  %v2392_v23 = vshll.u32 %v6645_v28, 16  ;;  %v2372_v33 = vrot.slane %v2371_v2, 4  ;;  %v2975_v55 = vsel %vm8175_vm7, %v6723_v61, %v2974_v7  ;;  %v6651_v28 = vld [vmem:[%s7865_s8 + $0x9c] sm:$0xf] }
  0xb8   : > { %7497 = vmatprep.mubr.msk.bf16.mxu0 %vm778_vm1, %v8742_v39  ;;  %v2976_v46 = vrot.slane %v2974_v7, 4  ;;  %v2398_v14 = vshll.u32 %v8789_v24, 16  ;;  %v2382_v40 = vrot.slane %v2381_v3, 4  ;;  %v2402_v12 = vshrl.u32 %v8789_v24, 16 }
  0xb9   : > { %v2391_v41 = vrot.slane %v2389_v30, 4  ;;  %v2394_v39 = vrot.slane %v2392_v23, 5  ;;  %v2377_v62 = vsel %vm7920_vm4, %v2372_v33, %v2376_v4  ;;  %v2408_v48 = vshll.u32 %v8806_v32, 16 }
  0xba   : > { %v2978_v51 = vsel %vm8175_vm7, %v2976_v46, %v2977_v22  ;;  %v2400_v36 = vrot.slane %v2398_v14, 5  ;;  %v2387_v24 = vsel %vm7920_vm4, %v2382_v40, %v2386_v53  ;;  %v2404_v45 = vrot.slane %v2402_v12, 4 }
  0xbb   : > { %v6739_v60 = vcombine.low %v2975_v55, %v2978_v51  ;;  %v2395_v27 = vor.u32 %v2394_v39, %v2391_v41  ;;  %v8939_v32 = vcombine.low %v2377_v62, %v2387_v24  ;;  %v2410_v8 = vrot.slane %v2408_v48, 5  ;;  %v6710_v62 = vld [vmem:[%s7865_s8 + $0xc0] sm:$0xe]  ;;  %v8994_v24 = vld [vmem:[%s7865_s8 + $0xc8] sm:$0x1] }
  0xbc   : > { %7540 = vmatmul.mubr.msk.bf16.gmra.mxu1 %vm778_vm1, %v6736_v1  ;;  %v6724_v26 = vrot.slane %v6708_v16, 9  ;;  %v2981_v6 = vrot.slane %v8913_v11, 5  ;;  %v2405_v1 = vor.u32 %v2404_v45, %v2400_v36  ;;  %v2984_v43 = vrot.slane %v8926_v19, 5 }
  0xbd   : > { %7543 = vmatprep.mubr.msk.bf16.mxu1 %vm778_vm1, %v6737_v58  ;;  %v2396_v57 = vrot.slane %v2395_v27, 4  ;;  %v2413_v25 = vshrl.u32 %v6648_v29, 16  ;;  %v2416_v58 = vshll.u32 %v6648_v29, 16  ;;  %v2422_v35 = vshll.u32 %v8827_v15, 16 }
  0xbe   : > { %v8950_v5 = vsel %vm8175_vm7, %v6724_v26, %v2981_v6  ;;  %v2983_v37 = vrot.slane %v2981_v6, 4  ;;  %v2406_v4 = vrot.slane %v2405_v1, 4  ;;  %v2432_v2 = vshll.u32 %v8840_v31, 16 }
  0xbf   : > { %7498 = vmatmul.mubr.msk.bf16.gmra.mxu0 %vm778_vm1, %v8783_v59  ;;  %v2401_v56 = vsel %vm7920_vm4, %v2396_v57, %v2400_v36  ;;  %v2415_v52 = vrot.slane %v2413_v25, 4  ;;  %v2426_v59 = vshrl.u32 %v8827_v15, 16  ;;  %v2418_v10 = vrot.slane %v2416_v58, 5 }
  0xc0   : > { %7501 = vmatprep.mubr.msk.bf16.mxu0 %vm778_vm1, %v8818_v50  ;;  %v2985_v34 = vsel %vm8175_vm7, %v2983_v37, %v2984_v43  ;;  %v2424_v61 = vrot.slane %v2422_v35, 5  ;;  %v2411_v53 = vsel %vm7920_vm4, %v2406_v4, %v2410_v8  ;;  %v6725_v3 = vrot.slane %v6709_v54, 9  ;;  %v6824_v35 = vld [vmem:[%s7865_s8 + $0x18] sm:$0xf] }
  0xc1   : > { %v6740_v50 = vcombine.low %v8950_v5, %v2985_v34  ;;  %v2428_v7 = vrot.slane %v2426_v59, 4  ;;  %v8969_v22 = vcombine.low %v2401_v56, %v2411_v53  ;;  %v2419_v30 = vor.u32 %v2418_v10, %v2415_v52 }
  0xc2   : > { %v2434_v15 = vrot.slane %v2432_v2, 5  ;;  %v2988_v23 = vrot.slane %v8944_v63, 5  ;;  %v2991_v16 = vrot.slane %v8954_v18, 5  ;;  %v2437_v33 = vshrl.u32 %v6651_v28, 16 }
  0xc3   : > { %v2429_v31 = vor.u32 %v2428_v7, %v2424_v61  ;;  %v2440_v55 = vshll.u32 %v6651_v28, 16  ;;  %v2420_v46 = vrot.slane %v2419_v30, 4  ;;  %v2446_v41 = vshll.u32 %v8872_v42, 16  ;;  %v6826_v7 = vld [vmem:[%s7865_s8 + $0x20] sm:$0x1] }
  0xc4   : > { %7544 = vmatmul.mubr.msk.bf16.gmra.mxu1 %vm778_vm1, %v6738_v38  ;;  %v2989_v14 = vsel %vm8175_vm7, %v6725_v3, %v2988_v23  ;;  %v2990_v40 = vrot.slane %v2988_v23, 4  ;;  %v2439_v38 = vrot.slane %v2437_v33, 4  ;;  %v2450_v12 = vshrl.u32 %v8872_v42, 16  ;;  %v6657_v30 = vld [vmem:[%s7865_s8 + $0xb4] sm:$0xf] }
  0xc5   : > { %7547 = vmatprep.mubr.msk.bf16.mxu1 %vm778_vm1, %v6739_v60  ;;  %v2430_v13 = vrot.slane %v2429_v31, 4  ;;  %v2442_v39 = vrot.slane %v2440_v55, 5  ;;  %v2425_v51 = vsel %vm7920_vm4, %v2420_v46, %v2424_v61  ;;  %v2448_v48 = vrot.slane %v2446_v41, 5  ;;  %v6654_v60 = vld [vmem:[%s7865_s8 + $0xa8] sm:$0xf] }
  0xc6   : > { %v2992_v36 = vsel %vm8175_vm7, %v2990_v40, %v2991_v16  ;;  %v2456_v29 = vshll.u32 %v8888_v21, 16  ;;  %v2452_v45 = vrot.slane %v2450_v12, 4  ;;  %v6726_v6 = vrot.slane %v6710_v62, 9  ;;  %v6825_v61 = vld [vmem:[%s7865_s8 + $0x1c] sm:$0xf] }
  0xc7   : > { %7502 = vmatmul.mubr.msk.bf16.gmra.mxu0 %vm778_vm1, %v8865_v9  ;;  %v2435_v42 = vsel %vm7920_vm4, %v2430_v13, %v2434_v15  ;;  %v6741_v9 = vcombine.low %v2989_v14, %v2992_v36  ;;  %v2443_v27 = vor.u32 %v2442_v39, %v2439_v38  ;;  %v2995_v57 = vrot.slane %v8982_v17, 5  ;;  %v6827_v36 = vld [vmem:[%s7865_s8 + $0x24] sm:$0xf] }
  0xc8   : > { %7505 = vmatprep.mubr.msk.bf16.mxu0 %vm778_vm1, %v8906_v49  ;;  %v9001_v8 = vcombine.low %v2425_v51, %v2435_v42  ;;  %v2458_v26 = vrot.slane %v2456_v29, 5  ;;  %v2453_v1 = vor.u32 %v2452_v45, %v2448_v48  ;;  %v2998_v43 = vrot.slane %v8994_v24, 5 }
  0xc9   : > { %v2444_v21 = vrot.slane %v2443_v27, 4  ;;  %v2461_v25 = vshrl.u32 %v6654_v60, 16  ;;  %v2996_v49 = vsel %vm8175_vm7, %v6726_v6, %v2995_v57  ;;  %v2997_v5 = vrot.slane %v2995_v57, 4  ;;  %v9036_v6 = vld [vmem:[%s7865_s8 + $0x28] sm:$0xf] }
  0xca   : > { %v2464_v37 = vshll.u32 %v6654_v60, 16  ;;  %v2470_v58 = vshll.u32 %v8913_v11, 16  ;;  %v2454_v56 = vrot.slane %v2453_v1, 4  ;;  %v2474_v52 = vshrl.u32 %v8913_v11, 16 }
  0xcb   : > { %v2449_v54 = vsel %vm7920_vm4, %v2444_v21, %v2448_v48  ;;  %v2463_v4 = vrot.slane %v2461_v25, 4  ;;  %v2999_v59 = vsel %vm8175_vm7, %v2997_v5, %v2998_v43  ;;  %v2480_v10 = vshll.u32 %v8926_v19, 16 }
  0xcc   : > { %7548 = vmatmul.mubr.msk.bf16.gmra.mxu1 %vm778_vm1, %v6740_v50  ;;  %v2466_v28 = vrot.slane %v2464_v37, 5  ;;  %v2472_v34 = vrot.slane %v2470_v58, 5  ;;  %v2459_v2 = vsel %vm7920_vm4, %v2454_v56, %v2458_v26  ;;  %v6742_v53 = vcombine.low %v2996_v49, %v2999_v59  ;;  %v9043_v37 = vld [vmem:[%s7865_s8 + $0x2c] sm:$0x1] }
  0xcd   : > { %7551 = vmatprep.mubr.msk.bf16.mxu1 %vm778_vm1, %v6741_v9  ;;  %v2476_v50 = vrot.slane %v2474_v52, 4  ;;  %v3702_v3 = vshrl.u32 %v6824_v35, 16  ;;  %v6675_v11 = vcombine.low %v2449_v54, %v2459_v2  ;;  %v2482_v23 = vrot.slane %v2480_v10, 5 }
  0xce   : > { %v2467_v15 = vor.u32 %v2466_v28, %v2463_v4  ;;  %v3705_v31 = vshll.u32 %v6824_v35, 16  ;;  %v3711_v33 = vshll.u32 %v6825_v61, 16  ;;  %v3715_v55 = vshrl.u32 %v6825_v61, 16  ;;  %v6660_v28 = vld [vmem:[%s7865_s8 + $0xc0] sm:$0xf] }
  0xcf   : > { %7506 = vmatmul.mubr.msk.bf16.gmra.mxu0 %vm778_vm1, %v8939_v32  ;;  %v2477_v19 = vor.u32 %v2476_v50, %v2472_v34  ;;  %v3704_v16 = vrot.slane %v3702_v3, 4  ;;  %v3721_v40 = vshll.u32 %v6826_v7, 16  ;;  %v2485_v41 = vshrl.u32 %v6657_v30, 16 }
  0xd0   : > { %7509 = vmatprep.mubr.msk.bf16.mxu0 %vm778_vm1, %v8969_v22  ;;  %v2468_v46 = vrot.slane %v2467_v15, 4  ;;  %v3707_v14 = vrot.slane %v3705_v31, 5  ;;  %v3713_v38 = vrot.slane %v3711_v33, 5  ;;  %v3717_v39 = vrot.slane %v3715_v55, 4 }
  0xd1   : > { %v2478_v13 = vrot.slane %v2477_v19, 4  ;;  %v2488_v32 = vshll.u32 %v6657_v30, 16  ;;  %v3723_v51 = vrot.slane %v3721_v40, 5  ;;  %v2487_v22 = vrot.slane %v2485_v41, 4  ;;  %v6831_v40 = vld [vmem:[%s7865_s8 + $0x34] sm:$0xf] }
  0xd2   : > { %v2473_v12 = vsel %vm7920_vm4, %v2468_v46, %v2472_v34  ;;  %v3708_v62 = vor.u32 %v3707_v14, %v3704_v16  ;;  %v3718_v29 = vor.u32 %v3717_v39, %v3713_v38  ;;  %v2494_v42 = vshll.u32 %v8944_v63, 16  ;;  %v6830_v14 = vld [vmem:[%s7865_s8 + $0x30] sm:$0xf] }
  0xd3   : > { %v2483_v48 = vsel %vm7920_vm4, %v2478_v13, %v2482_v23  ;;  %v2490_v60 = vrot.slane %v2488_v32, 5  ;;  %v2498_v45 = vshrl.u32 %v8944_v63, 16  ;;  %v2504_v26 = vshll.u32 %v8954_v18, 16 }
  0xd4   : > { %7552 = vmatmul.mubr.msk.bf16.gmra.mxu1 %vm778_vm1, %v6742_v53  ;;  %v6676_v9 = vcombine.low %v2473_v12, %v2483_v48  ;;  %v3709_v27 = vrot.slane %v3708_v62, 4  ;;  %v3719_v57 = vrot.slane %v3718_v29, 4  ;;  %v2496_v1 = vrot.slane %v2494_v42, 5 }
  0xd5   : > { %v2491_v21 = vor.u32 %v2490_v60, %v2487_v22  ;;  %v3726_v43 = vshrl.u32 %v6827_v36, 16  ;;  %v2500_v49 = vrot.slane %v2498_v45, 4  ;;  %v2506_v5 = vrot.slane %v2504_v26, 5 }
  0xd6   : > { %v3714_v25 = vsel %vm7920_vm4, %v3709_v27, %v3713_v38  ;;  %v3729_v63 = vshll.u32 %v6827_v36, 16  ;;  %v3724_v18 = vsel %vm7920_vm4, %v3719_v57, %v3723_v51  ;;  %v9048_v58 = vpop.f32.mrf.mxu1  ;;  %v3739_v59 = vshrl.u32 %v9036_v6, 16  ;;  %v6832_v36 = vld [vmem:[%s7865_s8 + $0x38] sm:$0x1]  ;;  %v6833_v57 = vld [vmem:[%s7865_s8 + $0x3c] sm:$0xf] }
  0xd7   : > { %7510 = vmatmul.mubr.msk.bf16.gmra.mxu0 %vm778_vm1, %v9001_v8  ;;  %v2492_v35 = vrot.slane %v2491_v21, 4  ;;  %v3728_v54 = vrot.slane %v3726_v43, 4  ;;  %v3735_v8 = vshll.u32 %v9036_v6, 16  ;;  %v6872_v56 = vcombine.low %v3714_v25, %v3724_v18  ;;  %v6834_v25 = vld [vmem:[%s7865_s8 + $0x40] sm:$0xf] }
  0xd8   : > { %7513 = vmatprep.mubr.msk.bf16.mxu0 %vm778_vm1, %v6675_v11  ;;  %v2501_v4 = vor.u32 %v2500_v49, %v2496_v1  ;;  %v3731_v52 = vrot.slane %v3729_v63, 5  ;;  %v3745_v61 = vshll.u32 %v9043_v37, 16  ;;  %v9057_v53 = vpop.f32.mrf.mxu1  ;;  %v3741_v3 = vrot.slane %v3739_v59, 4 }
  0xd9   : > { %v2497_v34 = vsel %vm7920_vm4, %v2492_v35, %v2496_v1  ;;  %v3737_v10 = vrot.slane %v3735_v8, 5  ;;  %7591 = vmatprep.mubr.msk.bf16.mxu1 %vm778_vm1, %v6872_v56  ;;  %v2509_v15 = vshrl.u32 %v6660_v28, 16  ;;  %v2512_v23 = vshll.u32 %v6660_v28, 16  ;;  %v9089_v56 = vld [vmem:[%s7865_s8 + $0x44] sm:$0x1] }
  0xda   : > { %v2502_v50 = vrot.slane %v2501_v4, 4  ;;  %v3732_v7 = vor.u32 %v3731_v52, %v3728_v54  ;;  %v3747_v11 = vrot.slane %v3745_v61, 5  ;;  %v2518_v31 = vshll.u32 %v8982_v17, 16  ;;  %v9062_v19 = vpop.f32.mrf.mxu1  ;;  %v7746_v61 = vld [vmem:[%s7865_s8 + $0x18] sm:$0xff]  }
  0xdb   : > { %v3742_v55 = vor.u32 %v3741_v3, %v3737_v10  ;;  %v2522_v46 = vshrl.u32 %v8982_v17, 16  ;;  %v2511_v13 = vrot.slane %v2509_v15, 4  ;;  %v2514_v38 = vrot.slane %v2512_v23, 5 }
  0xdc   : > { %v2507_v16 = vsel %vm7920_vm4, %v2502_v50, %v2506_v5  ;;  %v3733_v33 = vrot.slane %v3732_v7, 4  ;;  %v2520_v39 = vrot.slane %v2518_v31, 5  ;;  %v9069_v32 = vpop.f32.mrf.mxu1  ;;  %v2528_v22 = vshll.u32 %v8994_v24, 16 }
  0xdd   : > { %v6677_v41 = vcombine.low %v2497_v34, %v2507_v16  ;;  %v3743_v62 = vrot.slane %v3742_v55, 4  ;;  %v2524_v51 = vrot.slane %v2522_v46, 4  ;;  %v2515_v17 = vor.u32 %v2514_v38, %v2511_v13  ;;  %v6836_v46 = vld [vmem:[%s7865_s8 + $0x48] sm:$0xf] }
  0xde   : > { %v3738_v12 = vsel %vm7920_vm4, %v3733_v33, %v3737_v10  ;;  %v3750_v48 = vshrl.u32 %v6830_v14, 16  ;;  %v3753_v29 = vshll.u32 %v6830_v14, 16  ;;  %v3759_v60 = vshll.u32 %v6831_v40, 16  ;;  %v9077_v42 = vpop.f32.mrf.mxu1 }
  0xdf   : > { %7514 = vmatmul.mubr.msk.bf16.gmra.mxu0 %vm778_vm1, %v6676_v9  ;;  %v3748_v9 = vsel %vm7920_vm4, %v3743_v62, %v3747_v11  ;;  %v2525_v27 = vor.u32 %v2524_v51, %v2520_v39  ;;  %v2530_v45 = vrot.slane %v2528_v22, 5  ;;  %v3763_v26 = vshrl.u32 %v6831_v40, 16 }
  0xe0   : > { %7517 = vmatprep.mubr.msk.bf16.mxu0 %vm778_vm1, %v6677_v41  ;;  %v6873_v21 = vcombine.low %v3738_v12, %v3748_v9  ;;  %v2516_v24 = vrot.slane %v2515_v17, 4  ;;  %v3752_v1 = vrot.slane %v3750_v48, 4  ;;  %v3755_v43 = vrot.slane %v3753_v29, 5  ;;  %v9083_v49 = vpop.f32.mrf.mxu1 }
  0xe1   : > { %v2526_v5 = vrot.slane %v2525_v27, 4  ;;  %v3761_v63 = vrot.slane %v3759_v60, 5  ;;  %v3765_v18 = vrot.slane %v3763_v26, 4  ;;  %v3769_v35 = vshll.u32 %v6832_v36, 16  ;;  %v6838_v36 = vld [vmem:[%s7865_s8 + $0x50] sm:$0x1] }
  0xe2   : > { %7592 = vmatmul.mubr.msk.bf16.vlgmr.msra.gmra.mxu1 %vm778_vm1, %v6873_v21  ;;  %v2521_v54 = vsel %vm7920_vm4, %v2516_v24, %v2520_v39  ;;  %v3756_v8 = vor.u32 %v3755_v43, %v3752_v1  ;;  %v3774_v4 = vshrl.u32 %v6833_v57, 16  ;;  %v3777_v52 = vshll.u32 %v6833_v57, 16  ;;  %v9091_v59 = vpop.f32.mrf.mxu1  ;;  %v6837_v39 = vld [vmem:[%s7865_s8 + $0x4c] sm:$0xf]  ;;  %v6839_v21 = vld [vmem:[%s7865_s8 + $0x54] sm:$0xf] }
  0xe3   : > { %v2531_v28 = vsel %vm7920_vm4, %v2526_v5, %v2530_v45  ;;  %v3766_v34 = vor.u32 %v3765_v18, %v3761_v63  ;;  %v3771_v10 = vrot.slane %v3769_v35, 5  ;;  %v3783_v50 = vshll.u32 %v6834_v25, 16 }
  0xe4   : > { %v6678_v7 = vcombine.low %v2521_v54, %v2531_v28  ;;  %v3757_v3 = vrot.slane %v3756_v8, 4  ;;  %v3776_v11 = vrot.slane %v3774_v4, 4  ;;  %v3779_v15 = vrot.slane %v3777_v52, 5  ;;  %v9096_v23 = vpop.f32.mrf.mxu1  ;;  %v7748_v4 = vld [vmem:[%s7865_s8 + $0x30] sm:$0xff]  }
  0xe5   : > { %v3767_v31 = vrot.slane %v3766_v34, 4  ;;  %v3785_v16 = vrot.slane %v3783_v50, 5  ;;  %v3787_v33 = vshrl.u32 %v6834_v25, 16  ;;  %v3793_v55 = vshll.u32 %v9089_v56, 16 }
  0xe6   : > { %v3762_v14 = vsel %vm7920_vm4, %v3757_v3, %v3761_v63  ;;  %v3780_v40 = vor.u32 %v3779_v15, %v3776_v11  ;;  %v7355_v13 = vpop.f32.mrf.mxu0  ;;  %v4654_v38 = vsel %vm827_vm0, %v8845_v0, 0  ;;  %v9107_v12 = vpop.f32.mrf.mxu1  ;;  %v5747_v0 = vsel %vm827_vm0, %v8704_v20, 0  ;;  %v7747_v20 = vld [vmem:[%s7865_s8 + $0x24] sm:$0xff]   ;;  %v6840_v63 = vld [vmem:[%s7865_s8 + $0x58] sm:$0xf] }
  0xe7   : > { %7518 = vmatmul.mubr.msk.bf16.gmra.mxu0 %vm778_vm1, %v6678_v7  ;;  %v3772_v62 = vsel %vm7920_vm4, %v3767_v31, %v3771_v10  ;;  %v3789_v51 = vrot.slane %v3787_v33, 4  ;;  %v3795_v22 = vrot.slane %v3793_v55, 5  ;;  %v9113_v17 = vadd.f32 %v9048_v58, %v7355_v13  ;;  %7658 = vmatpush3.bf16.msra.mxu1 %v5747_v0  ;;  %v9136_v10 = vld [vmem:[%s7865_s8 + $0x5c] sm:$0x1]  ;;  %v6842_v31 = vld [vmem:[%s7865_s8 + $0x60] sm:$0xf] }
  0xe8   : > { %7557 = vmatprep.mubr.msk.bf16.mxu0 %vm778_vm1, %v7746_v61  ;;  %v6874_v48 = vcombine.low %v3762_v14, %v3772_v62  ;;  %v3781_v29 = vrot.slane %v3780_v40, 4  ;;  %v865_v60 = vpop.f32.mrf.mxu0  ;;  %v3798_v9 = vshrl.u32 %v6836_v46, 16  ;;  %v9118_v27 = vpop.f32.mrf.mxu1  ;;  %v3801_v57 = vshll.u32 %v6836_v46, 16 }
  0xe9   : > { %v3790_v45 = vor.u32 %v3789_v51, %v3785_v16  ;;  %v9121_v26 = vadd.f32 %v9057_v53, %v865_v60  ;;  %v3807_v58 = vshll.u32 %v6837_v39, 16  ;;  %v3811_v25 = vshrl.u32 %v6837_v39, 16 }
  0xea   : > { %7595 = vmatprep.mubr.msk.bf16.mxu1 %vm778_vm1, %v6874_v48  ;;  %v3786_v24 = vsel %vm7920_vm4, %v3781_v29, %v3785_v16  ;;  %v7356_v1 = vpop.f32.mrf.mxu0  ;;  %v3800_v43 = vrot.slane %v3798_v9, 4  ;;  %v3817_v5 = vshll.u32 %v6838_v36, 16  ;;  %v9129_v18 = vpop.f32.mrf.mxu1  ;;  %v3803_v54 = vrot.slane %v3801_v57, 5  ;;  %v6843_v48 = vld [vmem:[%s7865_s8 + $0x64] sm:$0xf] }
  0xeb   : > { %v3791_v53 = vrot.slane %v3790_v45, 4  ;;  %v9132_v35 = vadd.f32 %v9062_v19, %v7356_v1  ;;  %v3809_v8 = vrot.slane %v3807_v58, 5  ;;  %v3813_v28 = vrot.slane %v3811_v25, 4  ;;  %v6844_v57 = vld [vmem:[%s7865_s8 + $0x68] sm:$0x1] }
  0xec   : > { %v868_v52 = vpop.f32.mrf.mxu0  ;;  %v3819_v34 = vrot.slane %v3817_v5, 5  ;;  %v3822_v61 = vshrl.u32 %v6839_v21, 16  ;;  %v3825_v50 = vshll.u32 %v6839_v21, 16  ;;  %v9138_v7 = vpop.f32.mrf.mxu1  ;;  %v3804_v19 = vor.u32 %v3803_v54, %v3800_v43  ;;  %v6845_v25 = vld [vmem:[%s7865_s8 + $0x6c] sm:$0xf] }
  0xed   : > { %v3796_v3 = vsel %vm7920_vm4, %v3791_v53, %v3795_v22  ;;  %v9143_v11 = vadd.f32 %v9069_v32, %v868_v52  ;;  %v3831_v15 = vshll.u32 %v6840_v63, 16  ;;  %v3814_v33 = vor.u32 %v3813_v28, %v3809_v8 }
  0xee   : > { %v6875_v16 = vcombine.low %v3786_v24, %v3796_v3  ;;  %v3824_v55 = vrot.slane %v3822_v61, 4  ;;  %v3827_v46 = vrot.slane %v3825_v50, 5  ;;  %v9147_v14 = vpop.f32.mrf.mxu1  ;;  %v3805_v40 = vrot.slane %v3804_v19, 4  ;;  %v7749_v24 = vld [vmem:[%s7865_s8 + $0x3c] sm:$0xff]   ;;  %v6846_v50 = vld [vmem:[%s7865_s8 + $0x70] sm:$0xf] }
  0xef   : > { %7558 = vmatmul.mubr.msk.bf16.vlgmr.msra.gmra.mxu0 %vm778_vm1, %v7747_v20  ;;  %v3833_v13 = vrot.slane %v3831_v15, 5  ;;  %v3835_v32 = vshrl.u32 %v6840_v63, 16  ;;  %v3841_v39 = vshll.u32 %v9136_v10, 16  ;;  %v3815_v62 = vrot.slane %v3814_v33, 4  ;;  %v7359_v36 = vpop.f32.mrf.mxu0 }
  0xf0   : > { %7624 = vmatpush3.bf16.msra.mxu0 %v4654_v38  ;;  %7561 = vmatprep.mubr.msk.bf16.mxu0 %vm778_vm1, %v7748_v4  ;;  %v3828_v51 = vor.u32 %v3827_v46, %v3824_v55  ;;  %v3846_v29 = vshrl.u32 %v6842_v31, 16  ;;  %v9154_v38 = vpop.f32.mrf.mxu1  ;;  %v3810_v60 = vsel %vm7920_vm4, %v3805_v40, %v3809_v8  ;;  %v9159_v45 = vadd.f32 %v9077_v42, %v7359_v36  ;;  %v7750_v8 = vld [vmem:[%s7865_s8 + $0x48] sm:$0xff]   ;;  %v9183_v40 = vld [vmem:[%s7865_s8 + $0x74] sm:$0x1] }
  0xf1   : > { %7596 = vmatmul.mubr.msk.bf16.gmra.mxu1 %vm778_vm1, %v6875_v16  ;;  %v3837_v0 = vrot.slane %v3835_v32, 4  ;;  %v3843_v9 = vrot.slane %v3841_v39, 5  ;;  %v3820_v58 = vsel %vm7920_vm4, %v3815_v62, %v3819_v34  ;;  %v881_v20 = vpop.f32.mrf.mxu0  ;;  %v3849_v43 = vshll.u32 %v6842_v31, 16 }
  0xf2   : > { %v3829_v21 = vrot.slane %v3828_v51, 4  ;;  %v3848_v1 = vrot.slane %v3846_v29, 4  ;;  %v9166_v5 = vpop.f32.mrf.mxu1  ;;  %v6876_v63 = vcombine.low %v3810_v60, %v3820_v58  ;;  %v9169_v54 = vadd.f32 %v9083_v49, %v881_v20  ;;  %v6849_v20 = vld [vmem:[%s7865_s8 + $0x7c] sm:$0xf] }
  0xf3   : > { %v3838_v53 = vor.u32 %v3837_v0, %v3833_v13  ;;  %v3855_v42 = vshll.u32 %v6843_v48, 16  ;;  %v7360_v52 = vpop.f32.mrf.mxu0  ;;  %v3851_v28 = vrot.slane %v3849_v43, 5  ;;  %v3859_v34 = vshrl.u32 %v6843_v48, 16  ;;  %v6848_v0 = vld [vmem:[%s7865_s8 + $0x78] sm:$0xf] }
  0xf4   : > { %v3834_v4 = vsel %vm7920_vm4, %v3829_v21, %v3833_v13  ;;  %v3865_v61 = vshll.u32 %v6844_v57, 16  ;;  %v9175_v3 = vpop.f32.mrf.mxu1  ;;  %7599 = vmatprep.mubr.msk.bf16.mxu1 %vm778_vm1, %v6876_v63  ;;  %v9179_v15 = vadd.f32 %v9091_v59, %v7360_v52  ;;  %v3870_v31 = vshrl.u32 %v6845_v25, 16 }
  0xf5   : > { %v3839_v19 = vrot.slane %v3838_v53, 4  ;;  %v3857_v49 = vrot.slane %v3855_v42, 5  ;;  %v884_v16 = vpop.f32.mrf.mxu0  ;;  %v3852_v33 = vor.u32 %v3851_v28, %v3848_v1  ;;  %v3861_v55 = vrot.slane %v3859_v34, 4  ;;  %v7751_v53 = vld [vmem:[%s7865_s8 + $0x54] sm:$0xff]  }
  0xf6   : > { %v3867_v46 = vrot.slane %v3865_v61, 5  ;;  %v3873_v13 = vshll.u32 %v6845_v25, 16  ;;  %v9185_v32 = vpop.f32.mrf.mxu1  ;;  %v9190_v59 = vadd.f32 %v9096_v23, %v884_v16  ;;  %v3872_v62 = vrot.slane %v3870_v31, 4  ;;  %v7752_v61 = vld [vmem:[%s7865_s8 + $0x60] sm:$0xff]  }
  0xf7   : > { %7562 = vmatmul.mubr.msk.bf16.gmra.mxu0 %vm778_vm1, %v7749_v24  ;;  %v3844_v39 = vsel %vm7920_vm4, %v3839_v19, %v3843_v9  ;;  %v3879_v51 = vshll.u32 %v6846_v50, 16  ;;  %v3853_v48 = vrot.slane %v3852_v33, 4  ;;  %v3862_v29 = vor.u32 %v3861_v55, %v3857_v49  ;;  %v6850_v31 = vld [vmem:[%s7865_s8 + $0x80] sm:$0x1]  ;;  %v6851_v16 = vld [vmem:[%s7865_s8 + $0x84] sm:$0xf] }
  0xf8   : > { %7565 = vmatprep.mubr.msk.bf16.mxu0 %vm778_vm1, %v7750_v8  ;;  %v6877_v36 = vcombine.low %v3834_v4, %v3844_v39  ;;  %v3875_v60 = vrot.slane %v3873_v13, 5  ;;  %v9194_v57 = vpop.f32.mrf.mxu1  ;;  %v3883_v21 = vshrl.u32 %v6846_v50, 16  ;;  %v3889_v9 = vshll.u32 %v9183_v40, 16  ;;  %v7363_v24 = vpop.f32.mrf.mxu0 }
  0xf9   : > { %v3881_v58 = vrot.slane %v3879_v51, 5  ;;  %v3858_v1 = vsel %vm7920_vm4, %v3853_v48, %v3857_v49  ;;  %v3863_v43 = vrot.slane %v3862_v29, 4  ;;  %v9203_v63 = vadd.f32 %v9107_v12, %v7363_v24 }
  0xfa   : > { %7600 = vmatmul.mubr.msk.bf16.gmra.mxu1 %vm778_vm1, %v6877_v36  ;;  %v3876_v25 = vor.u32 %v3875_v60, %v3872_v62  ;;  %v9206_v42 = vpop.f32.mrf.mxu1  ;;  %v3885_v8 = vrot.slane %v3883_v21, 4  ;;  %v3891_v4 = vrot.slane %v3889_v9, 5  ;;  %v897_v52 = vpop.f32.mrf.mxu0  ;;  %v3894_v28 = vshrl.u32 %v6848_v0, 16  ;;  %v6852_v36 = vld [vmem:[%s7865_s8 + $0x88] sm:$0xf] }
  0xfb   : > { %v3897_v34 = vshll.u32 %v6848_v0, 16  ;;  %v3868_v50 = vsel %vm7920_vm4, %v3863_v43, %v3867_v46  ;;  %v9212_v49 = vadd.f32 %v9118_v27, %v897_v52  ;;  %v3903_v12 = vshll.u32 %v6849_v20, 16 }
  0xfc   : > { %v3877_v19 = vrot.slane %v3876_v25, 4  ;;  %v9216_v33 = vpop.f32.mrf.mxu1  ;;  %v6878_v55 = vcombine.low %v3858_v1, %v3868_v50  ;;  %v3886_v13 = vor.u32 %v3885_v8, %v3881_v58  ;;  %v7364_v39 = vpop.f32.mrf.mxu0  ;;  %v3896_v62 = vrot.slane %v3894_v28, 4 }
  0xfd   : > { %v3899_v51 = vrot.slane %v3897_v34, 5  ;;  %v9223_v27 = vadd.f32 %v9129_v18, %v7364_v39  ;;  %v3905_v46 = vrot.slane %v3903_v12, 5  ;;  %v3907_v29 = vshrl.u32 %v6849_v20, 16  ;;  %v6853_v18 = vld [vmem:[%s7865_s8 + $0x8c] sm:$0x1] }
  0xfe   : > { %v3882_v48 = vsel %vm7920_vm4, %v3877_v19, %v3881_v58  ;;  %7603 = vmatprep.mubr.msk.bf16.mxu1 %vm778_vm1, %v6878_v55  ;;  %v3887_v60 = vrot.slane %v3886_v13, 4  ;;  %v900_v0 = vpop.f32.mrf.mxu0  ;;  %v3913_v9 = vshll.u32 %v6850_v31, 16  ;;  %v3918_v24 = vshrl.u32 %v6851_v16, 16  ;;  %v7753_v12 = vld [vmem:[%s7865_s8 + $0x6c] sm:$0xff]   ;;  %v6855_v55 = vld [vmem:[%s7865_s8 + $0x94] sm:$0xf] }
  0xff   : > { %7566 = vmatmul.mubr.msk.bf16.gmra.mxu0 %vm778_vm1, %v7751_v53  ;;  %v3900_v21 = vor.u32 %v3899_v51, %v3896_v62  ;;  %v9228_v1 = vadd.f32 %v9138_v7, %v900_v0  ;;  %v3909_v58 = vrot.slane %v3907_v29, 4  ;;  %v3921_v43 = vshll.u32 %v6851_v16, 16  ;;  %v9231_v20 = vpop.f32.mrf.mxu1  ;;  %v7754_v29 = vld [vmem:[%s7865_s8 + $0x78] sm:$0xff]  }
 0x100   : > { %7569 = vmatprep.mubr.msk.bf16.mxu0 %vm778_vm1, %v7752_v61  ;;  %v3927_v25 = vshll.u32 %v6852_v36, 16  ;;  %v3892_v53 = vsel %vm7920_vm4, %v3887_v60, %v3891_v4  ;;  %v3915_v52 = vrot.slane %v3913_v9, 5  ;;  %v3920_v28 = vrot.slane %v3918_v24, 4  ;;  %v6854_v61 = vld [vmem:[%s7865_s8 + $0x90] sm:$0xf] }
 0x101   : > { %v3901_v8 = vrot.slane %v3900_v21, 4  ;;  %v7367_v34 = vpop.f32.mrf.mxu0  ;;  %v6879_v50 = vcombine.low %v3882_v48, %v3892_v53  ;;  %v3910_v7 = vor.u32 %v3909_v58, %v3905_v46  ;;  %v3923_v19 = vrot.slane %v3921_v43, 5  ;;  %v9238_v13 = vpop.f32.mrf.mxu1  ;;  %v6856_v58 = vld [vmem:[%s7865_s8 + $0x98] sm:$0x1] }
 0x102   : > { %v3929_v31 = vrot.slane %v3927_v25, 5  ;;  %v3931_v39 = vshrl.u32 %v6852_v36, 16  ;;  %v3937_v4 = vshll.u32 %v6853_v18, 16  ;;  %v9243_v62 = vadd.f32 %v9147_v14, %v7367_v34 }
 0x103   : > { %v3906_v16 = vsel %vm7920_vm4, %v3901_v8, %v3905_v46  ;;  %v913_v51 = vpop.f32.mrf.mxu0  ;;  %7604 = vmatmul.mubr.msk.bf16.gmra.mxu1 %vm778_vm1, %v6879_v50  ;;  %v3911_v48 = vrot.slane %v3910_v7, 4  ;;  %v3924_v60 = vor.u32 %v3923_v19, %v3920_v28  ;;  %v3942_v21 = vshrl.u32 %v6854_v61, 16  ;;  %v9250_v9 = vpop.f32.mrf.mxu1  ;;  %v6857_v8 = vld [vmem:[%s7865_s8 + $0x9c] sm:$0xf] }
 0x104   : > { %v9248_v0 = vadd.f32 %v9154_v38, %v913_v51  ;;  %v3933_v24 = vrot.slane %v3931_v39, 4  ;;  %v3939_v46 = vrot.slane %v3937_v4, 5  ;;  %v3945_v14 = vshll.u32 %v6854_v61, 16 }
 0x105   : > { %v7368_v36 = vpop.f32.mrf.mxu0  ;;  %v3951_v18 = vshll.u32 %v6855_v55, 16  ;;  %v3916_v43 = vsel %vm7920_vm4, %v3911_v48, %v3915_v52  ;;  %v3925_v25 = vrot.slane %v3924_v60, 4  ;;  %v3944_v38 = vrot.slane %v3942_v21, 4  ;;  %v9260_v28 = vpop.f32.mrf.mxu1  ;;  %v6858_v52 = vld [vmem:[%s7865_s8 + $0xa0] sm:$0xf] }
 0x106   : > { %v9257_v53 = vadd.f32 %v9166_v5, %v7368_v36  ;;  %v6880_v34 = vcombine.low %v3906_v16, %v3916_v43  ;;  %v3934_v50 = vor.u32 %v3933_v24, %v3929_v31  ;;  %v3947_v19 = vrot.slane %v3945_v14, 5 }
 0x107   : > { %7570 = vmatmul.mubr.msk.bf16.gmra.mxu0 %vm778_vm1, %v7753_v12  ;;  %v916_v7 = vpop.f32.mrf.mxu0  ;;  %v3953_v61 = vrot.slane %v3951_v18, 5  ;;  %v3930_v12 = vsel %vm7920_vm4, %v3925_v25, %v3929_v31  ;;  %v3955_v39 = vshrl.u32 %v6855_v55, 16  ;;  %v3961_v4 = vshll.u32 %v6856_v58, 16  ;;  %v6859_v31 = vld [vmem:[%s7865_s8 + $0xa4] sm:$0x1] }
 0x108   : > { %7573 = vmatprep.mubr.msk.bf16.mxu0 %vm778_vm1, %v7754_v29  ;;  %v9267_v5 = vadd.f32 %v9175_v3, %v916_v7  ;;  %v9269_v51 = vpop.f32.mrf.mxu1  ;;  %7607 = vmatprep.mubr.msk.bf16.mxu1 %vm778_vm1, %v6880_v34  ;;  %v3935_v16 = vrot.slane %v3934_v50, 4  ;;  %v3948_v48 = vor.u32 %v3947_v19, %v3944_v38  ;;  %v3966_v60 = vshrl.u32 %v6857_v8, 16  ;;  %v7755_v29 = vld [vmem:[%s7865_s8 + $0x84] sm:$0xff]   ;;  %v7756_v50 = vld [vmem:[%s7865_s8 + $0x90] sm:$0xff]  }
 0x109   : > { %v3969_v21 = vshll.u32 %v6857_v8, 16  ;;  %v3957_v24 = vrot.slane %v3955_v39, 4  ;;  %v3963_v36 = vrot.slane %v3961_v4, 5  ;;  %v3975_v14 = vshll.u32 %v6858_v52, 16  ;;  %v6860_v38 = vld [vmem:[%s7865_s8 + $0xa8] sm:$0xf] }
 0x10a   : > { %v3979_v3 = vshrl.u32 %v6858_v52, 16  ;;  %v9274_v18 = vpop.f32.mrf.mxu1  ;;  %v3940_v55 = vsel %vm7920_vm4, %v3935_v16, %v3939_v46  ;;  %v3949_v58 = vrot.slane %v3948_v48, 4  ;;  %v3968_v43 = vrot.slane %v3966_v60, 4  ;;  %v6861_v4 = vld [vmem:[%s7865_s8 + $0xac] sm:$0xf] }
 0x10b   : > { %v3971_v25 = vrot.slane %v3969_v21, 5  ;;  %v7371_v34 = vpop.f32.mrf.mxu0  ;;  %v6881_v7 = vcombine.low %v3930_v12, %v3940_v55  ;;  %v3958_v8 = vor.u32 %v3957_v24, %v3953_v61  ;;  %v3977_v19 = vrot.slane %v3975_v14, 5 }
 0x10c   : > { %v3981_v39 = vrot.slane %v3979_v3, 4  ;;  %v9281_v23 = vpop.f32.mrf.mxu1  ;;  %v3954_v52 = vsel %vm7920_vm4, %v3949_v58, %v3953_v61  ;;  %v3985_v41 = vshll.u32 %v6859_v31, 16  ;;  %v9286_v46 = vadd.f32 %v9185_v32, %v7371_v34  ;;  %v6862_v32 = vld [vmem:[%s7865_s8 + $0xb0] sm:$0x1] }
 0x10d   : > { %v3972_v22 = vor.u32 %v3971_v25, %v3968_v43  ;;  %v929_v16 = vpop.f32.mrf.mxu0  ;;  %7608 = vmatmul.mubr.msk.bf16.gmra.mxu1 %vm778_vm1, %v6881_v7  ;;  %v3959_v48 = vrot.slane %v3958_v8, 4  ;;  %v3990_v21 = vshrl.u32 %v6860_v38, 16  ;;  %v3993_v3 = vshll.u32 %v6860_v38, 16  ;;  %v6863_v25 = vld [vmem:[%s7865_s8 + $0xb4] sm:$0xf] }
 0x10e   : > { %v3982_v12 = vor.u32 %v3981_v39, %v3977_v19  ;;  %v9291_v60 = vadd.f32 %v9194_v57, %v929_v16  ;;  %v9293_v24 = vpop.f32.mrf.mxu1  ;;  %v3987_v14 = vrot.slane %v3985_v41, 5  ;;  %v3999_v55 = vshll.u32 %v6861_v4, 16  ;;  %v6865_v16 = vld [vmem:[%s7865_s8 + $0xbc] sm:$0x1] }
 0x10f   : > { %7574 = vmatmul.mubr.msk.bf16.gmra.mxu0 %vm778_vm1, %v7755_v29  ;;  %v3973_v61 = vrot.slane %v3972_v22, 4  ;;  %v7372_v31 = vpop.f32.mrf.mxu0  ;;  %v3964_v58 = vsel %vm7920_vm4, %v3959_v48, %v3963_v36  ;;  %v3992_v43 = vrot.slane %v3990_v21, 4  ;;  %v3995_v38 = vrot.slane %v3993_v3, 5  ;;  %v7757_v48 = vld [vmem:[%s7865_s8 + $0x9c] sm:$0xff]   ;;  %v7758_v3 = vld [vmem:[%s7865_s8 + $0xa8] sm:$0xff]  }
 0x110   : > { %7577 = vmatprep.mubr.msk.bf16.mxu0 %vm778_vm1, %v7756_v50  ;;  %v3983_v29 = vrot.slane %v3982_v12, 4  ;;  %v9300_v57 = vadd.f32 %v9206_v42, %v7372_v31  ;;  %v6882_v22 = vcombine.low %v3954_v52, %v3964_v58  ;;  %v4001_v7 = vrot.slane %v3999_v55, 5  ;;  %v6864_v50 = vld [vmem:[%s7865_s8 + $0xb8] sm:$0xf] }
 0x111   : > { %v3978_v41 = vsel %vm7920_vm4, %v3973_v61, %v3977_v19  ;;  %v932_v34 = vpop.f32.mrf.mxu0  ;;  %v4003_v39 = vshrl.u32 %v6861_v4, 16  ;;  %v4009_v42 = vshll.u32 %v6862_v32, 16  ;;  %v9313_v12 = vpop.f32.mrf.mxu1  ;;  %v3996_v52 = vor.u32 %v3995_v38, %v3992_v43 }
 0x112   : > { %v3988_v8 = vsel %vm7920_vm4, %v3983_v29, %v3987_v14  ;;  %v9309_v36 = vadd.f32 %v9216_v33, %v932_v34  ;;  %7611 = vmatprep.mubr.msk.bf16.mxu1 %vm778_vm1, %v6882_v22  ;;  %v4014_v21 = vshrl.u32 %v6863_v25, 16  ;;  %v4017_v61 = vshll.u32 %v6863_v25, 16  ;;  %v6866_v22 = vld [vmem:[%s7865_s8 + $0xc0] sm:$0xf] }
 0x113   : > { %v6883_v19 = vcombine.low %v3978_v41, %v3988_v8  ;;  %v7375_v31 = vpop.f32.mrf.mxu0  ;;  %v4005_v55 = vrot.slane %v4003_v39, 4  ;;  %v4011_v14 = vrot.slane %v4009_v42, 5  ;;  %v4023_v33 = vshll.u32 %v6864_v50, 16  ;;  %v9317_v4 = vpop.f32.mrf.mxu1 }
 0x114   : > { %v4027_v58 = vshrl.u32 %v6864_v50, 16  ;;  %v3997_v32 = vrot.slane %v3996_v52, 4  ;;  %v4016_v29 = vrot.slane %v4014_v21, 4  ;;  %v4019_v34 = vrot.slane %v4017_v61, 5  ;;  %v6867_v50 = vld [vmem:[%s7865_s8 + $0xc4] sm:$0xf] }
 0x115   : > { %v4033_v30 = vshll.u32 %v6865_v16, 16  ;;  %v945_v2 = vpop.f32.mrf.mxu0  ;;  %7612 = vmatmul.mubr.msk.bf16.gmra.mxu1 %vm778_vm1, %v6883_v19  ;;  %v4006_v43 = vor.u32 %v4005_v55, %v4001_v7  ;;  %v4025_v25 = vrot.slane %v4023_v33, 5  ;;  %v9322_v38 = vadd.f32 %v9231_v20, %v7375_v31  ;;  %v9326_v8 = vpop.f32.mrf.mxu1  ;;  %v6868_v61 = vld [vmem:[%s7865_s8 + $0xc8] sm:$0x1] }
 0x116   : > { %v4029_v41 = vrot.slane %v4027_v58, 4  ;;  %v4002_v39 = vsel %vm7920_vm4, %v3997_v32, %v4001_v7  ;;  %v4020_v42 = vor.u32 %v4019_v34, %v4016_v29  ;;  %v9331_v19 = vadd.f32 %v9238_v13, %v945_v2  ;;  %v6869_v58 = vld [vmem:[%s7865_s8 + $0xcc] sm:$0xf]  ;;  %v6870_v34 = vld [vmem:[%s7865_s8 + $0xd0] sm:$0xf] }
 0x117   : > { %7578 = vmatmul.mubr.msk.bf16.gmra.mxu0 %vm778_vm1, %v7757_v48  ;;  %v4035_v16 = vrot.slane %v4033_v30, 5  ;;  %v7376_v52 = vpop.f32.mrf.mxu0  ;;  %v4007_v21 = vrot.slane %v4006_v43, 4  ;;  %v4038_v31 = vshrl.u32 %v6866_v22, 16  ;;  %v9338_v55 = vpop.f32.mrf.mxu1  ;;  %v4041_v30 = vshll.u32 %v6866_v22, 16  ;;  %v7759_v43 = vld [vmem:[%s7865_s8 + $0xb4] sm:$0xff]  }
 0x118   : > { %11092 = vst [vmem:[#allocation2_spill] sm:$0xff] %v9331_v19  ;;  %7581 = vmatprep.mubr.msk.bf16.mxu0 %vm778_vm1, %v7758_v3  ;;  %v4030_v20 = vor.u32 %v4029_v41, %v4025_v25  ;;  %v9335_v48 = vadd.f32 %v9250_v9, %v7376_v52  ;;  %v4021_v7 = vrot.slane %v4020_v42, 4  ;;  %v4047_v2 = vshll.u32 %v6867_v50, 16 }
 0x119   : > { %v948_v33 = vpop.f32.mrf.mxu0  ;;  %v4051_v13 = vshrl.u32 %v6867_v50, 16  ;;  %v4012_v3 = vsel %vm7920_vm4, %v4007_v21, %v4011_v14  ;;  %v4040_v9 = vrot.slane %v4038_v31, 4  ;;  %v9348_v41 = vpop.f32.mrf.mxu1  ;;  %v4043_v52 = vrot.slane %v4041_v30, 5 }
 0x11a   : > { %11093 = vst [vmem:[#allocation3_spill] sm:$0xff] %v9335_v48  ;;  %v4031_v32 = vrot.slane %v4030_v20, 4  ;;  %v9344_v29 = vadd.f32 %v9260_v28, %v948_v33  ;;  %11095 = vst [vmem:[#allocation5_spill] sm:$0xff] %v9348_v41  ;;  %v6884_v42 = vcombine.low %v4002_v39, %v4012_v3  ;;  %v4026_v22 = vsel %vm7920_vm4, %v4021_v7, %v4025_v25  ;;  %v7760_v48 = vld [vmem:[%s7865_s8 + $0xc0] sm:$0xff]   ;;  %v6871_v28 = vld [vmem:[%s7865_s8 + $0xd4] sm:$0x1] }
 0x11b   : > { %v4049_v50 = vrot.slane %v4047_v2, 5  ;;  %v4053_v14 = vrot.slane %v4051_v13, 4  ;;  %v4057_v21 = vshll.u32 %v6868_v61, 16  ;;  %v4062_v20 = vshrl.u32 %v6869_v58, 16  ;;  %v9356_v31 = vpop.f32.mrf.mxu1 }
 0x11c   : > { %11094 = vst [vmem:[#allocation4_spill] sm:$0xff] %v9344_v29  ;;  %v4036_v19 = vsel %vm7920_vm4, %v4031_v32, %v4035_v16  ;;  %11096 = vst [vmem:[#allocation6_spill] sm:$0xff] %v9356_v31  ;;  %7615 = vmatprep.mubr.msk.bf16.mxu1 %vm778_vm1, %v6884_v42  ;;  %v4044_v39 = vor.u32 %v4043_v52, %v4040_v9  ;;  %v4065_v3 = vshll.u32 %v6869_v58, 16  ;;  %v4071_v41 = vshll.u32 %v6870_v34, 16  ;;  %v7379_v25 = vpop.f32.mrf.mxu0  ;;  %v7001_v16 = vld [vmem:[%s7865_s8 + $0xc] sm:$0xf] }
 0x11d   : > { %v6885_v33 = vcombine.low %v4026_v22, %v4036_v19  ;;  %v4054_v7 = vor.u32 %v4053_v14, %v4049_v50  ;;  %v4059_v30 = vrot.slane %v4057_v21, 5  ;;  %v4064_v2 = vrot.slane %v4062_v20, 4  ;;  %v9361_v61 = vpop.f32.mrf.mxu1  ;;  %v7002_v52 = vld [vmem:[%s7865_s8 + $0x10] sm:$0xf] }
 0x11e   : > { %v4075_v29 = vshrl.u32 %v6870_v34, 16  ;;  %11097 = vst [vmem:[#allocation7_spill] sm:$0xff] %v9361_v61  ;;  %v4045_v13 = vrot.slane %v4044_v39, 4  ;;  %v4067_v32 = vrot.slane %v4065_v3, 5  ;;  %v4073_v42 = vrot.slane %v4071_v41, 5  ;;  %v961_v9 = vpop.f32.mrf.mxu0 }
 0x11f   : > { %7582 = vmatmul.mubr.msk.bf16.gmra.mxu0 %vm778_vm1, %v7759_v43  ;;  %7616 = vmatmul.mubr.msk.bf16.gmra.mxu1 %vm778_vm1, %v6885_v33  ;;  %v4081_v19 = vshll.u32 %v6871_v28, 16  ;;  %v4055_v58 = vrot.slane %v4054_v7, 4  ;;  %v9366_v34 = vadd.f32 %v9269_v51, %v7379_v25  ;;  %v9369_v43 = vadd.f32 %v9274_v18, %v961_v9  ;;  %v9372_v14 = vpop.f32.mrf.mxu1  ;;  %v7003_v18 = vld [vmem:[%s7865_s8 + $0x14] sm:$0x1]  ;;  %v7004_v3 = vld [vmem:[%s7865_s8 + $0x18] sm:$0xf] }
 0x120   : > { %7585 = vmatprep.mubr.msk.bf16.mxu0 %vm778_vm1, %v7760_v48  ;;  %v4077_v22 = vrot.slane %v4075_v29, 4  ;;  %11098 = vst [vmem:[#allocation8_spill] sm:$0xff] %v9372_v14  ;;  %v4050_v41 = vsel %vm7920_vm4, %v4045_v13, %v4049_v50  ;;  %v4068_v21 = vor.u32 %v4067_v32, %v4064_v2  ;;  %v7380_v20 = vpop.f32.mrf.mxu0  ;;  %v5266_v48 = vshrl.u32 %v7001_v16, 16  ;;  %v7761_v25 = vld [vmem:[%s7865_s8 + $0xcc] sm:$0xff]  }
 0x121   : > { %v4083_v28 = vrot.slane %v4081_v19, 5  ;;  %v4060_v29 = vsel %vm7920_vm4, %v4055_v58, %v4059_v30  ;;  %v9379_v51 = vadd.f32 %v9281_v23, %v7380_v20  ;;  %v5269_v39 = vshll.u32 %v7001_v16, 16  ;;  %v9384_v7 = vpop.f32.mrf.mxu1  ;;  %v7005_v23 = vld [vmem:[%s7865_s8 + $0x1c] sm:$0xf] }
 0x122   : > { %v4078_v33 = vor.u32 %v4077_v22, %v4073_v42  ;;  %11099 = vst [vmem:[#allocation9_spill] sm:$0xff] %v9384_v7  ;;  %v6886_v9 = vcombine.low %v4050_v41, %v4060_v29  ;;  %v4069_v50 = vrot.slane %v4068_v21, 4  ;;  %v964_v2 = vpop.f32.mrf.mxu0  ;;  %v5268_v13 = vrot.slane %v5266_v48, 4 }
 0x123   : > { %v5275_v32 = vshll.u32 %v7002_v52, 16  ;;  %v9387_v30 = vadd.f32 %v9293_v24, %v964_v2  ;;  %v5271_v58 = vrot.slane %v5269_v39, 5  ;;  %v5279_v22 = vshrl.u32 %v7002_v52, 16  ;;  %v9390_v20 = vpop.f32.mrf.mxu1  ;;  %v7006_v39 = vld [vmem:[%s7865_s8 + $0x20] sm:$0x1] }
 0x124   : > { %v4079_v19 = vrot.slane %v4078_v33, 4  ;;  %11100 = vst [vmem:[#allocation10_spill] sm:$0xff] %v9390_v20  ;;  %7619 = vmatprep.mubr.msk.bf16.mxu1 %vm778_vm1, %v6886_v9  ;;  %v4074_v16 = vsel %vm7920_vm4, %v4069_v50, %v4073_v42  ;;  %v5285_v21 = vshll.u32 %v7003_v18, 16  ;;  %v5290_v29 = vshrl.u32 %v7004_v3, 16  ;;  %v7383_v48 = vpop.f32.mrf.mxu0 }
 0x125   : > { %v5277_v41 = vrot.slane %v5275_v32, 5  ;;  %v5272_v24 = vor.u32 %v5271_v58, %v5268_v13  ;;  %v5281_v2 = vrot.slane %v5279_v22, 4  ;;  %v5293_v52 = vshll.u32 %v7004_v3, 16  ;;  %v9399_v20 = vpop.f32.mrf.mxu1 }
 0x126   : > { %v4084_v33 = vsel %vm7920_vm4, %v4079_v19, %v4083_v28  ;;  %11101 = vst [vmem:[#allocation11_spill] sm:$0xff] %v9399_v20  ;;  %v5287_v7 = vrot.slane %v5285_v21, 5  ;;  %v5292_v14 = vrot.slane %v5290_v29, 4  ;;  %v5299_v42 = vshll.u32 %v7005_v23, 16  ;;  %v977_v50 = vpop.f32.mrf.mxu0  ;;  %v7007_v28 = vld [vmem:[%s7865_s8 + $0x24] sm:$0xf] }
 0x127   : > { %7586 = vmatmul.mubr.msk.bf16.gmra.mxu0 %vm778_vm1, %v7761_v25  ;;  %v6887_v9 = vcombine.low %v4074_v16, %v4084_v33  ;;  %v5273_v18 = vrot.slane %v5272_v24, 4  ;;  %v5282_v32 = vor.u32 %v5281_v2, %v5277_v41  ;;  %v5295_v61 = vrot.slane %v5293_v52, 5  ;;  %v9402_v19 = vpop.f32.mrf.mxu1  ;;  %v7008_v33 = vld [vmem:[%s7865_s8 + $0x28] sm:$0xf] }
 0x128   : > { %v5303_v31 = vshrl.u32 %v7005_v23, 16  ;;  %11102 = vst [vmem:[#allocation12_spill] sm:$0xff] %v9402_v19  ;;  %v5301_v3 = vrot.slane %v5299_v42, 5  ;;  %v5309_v25 = vshll.u32 %v7006_v39, 16  ;;  %v9406_v13 = vadd.f32 %v9313_v12, %v7383_v48  ;;  %v7384_v22 = vpop.f32.mrf.mxu0  ;;  %v7009_v48 = vld [vmem:[%s7865_s8 + $0x2c] sm:$0x1] }
 0x129   : > { %7620 = vmatmul.mubr.msk.bf16.gmra.mxu1 %vm778_vm1, %v6887_v9  ;;  %v9409_v58 = vadd.f32 %v9317_v4, %v977_v50  ;;  %v5278_v16 = vsel %vm7920_vm4, %v5273_v18, %v5277_v41  ;;  %v5283_v23 = vrot.slane %v5282_v32, 4  ;;  %v5296_v21 = vor.u32 %v5295_v61, %v5292_v14  ;;  %v9414_v24 = vpop.f32.mrf.mxu1 }
 0x12a   : > { %v5305_v29 = vrot.slane %v5303_v31, 4  ;;  %11103 = vst [vmem:[#allocation13_spill] sm:$0xff] %v9414_v24  ;;  %v5311_v2 = vrot.slane %v5309_v25, 5  ;;  %v9417_v39 = vadd.f32 %v9326_v8, %v7384_v22  ;;  %v980_v12 = vpop.f32.mrf.mxu0  ;;  %v5314_v52 = vshrl.u32 %v7007_v28, 16  ;;  %v6905_v31 = vld [vmem:[%s7865_s8 + $0x18] sm:$0xe] }
 0x12b   : > { %v5317_v4 = vshll.u32 %v7007_v28, 16  ;;  %v5288_v9 = vsel %vm7920_vm4, %v5283_v23, %v5287_v7  ;;  %v5297_v41 = vrot.slane %v5296_v21, 4  ;;  %v9423_v61 = vadd.f32 %v9338_v55, %v980_v12  ;;  %v9426_v14 = vpop.f32.mrf.mxu1  ;;  %v7010_v55 = vld [vmem:[%s7865_s8 + $0x30] sm:$0xf]  ;;  %v7012_v24 = vld [vmem:[%s7865_s8 + $0x38] sm:$0x1] }
 0x12c   : > { %v5306_v42 = vor.u32 %v5305_v29, %v5301_v3  ;;  %11105 = vst [vmem:[#allocation15_spill] sm:$0xff] %v9426_v14  ;;  %v7049_v50 = vcombine.low %v5278_v16, %v5288_v9  ;;  %v5316_v8 = vrot.slane %v5314_v52, 4  ;;  %v5323_v32 = vshll.u32 %v7008_v33, 16  ;;  %v7423_v25 = vpop.f32.mrf.mxu0  ;;  %v7762_v52 = vld [vmem:[%s7865_s8 + $0x1c] sm:$0xf] }
 0x12d   : > { %11104 = vst [vmem:[#allocation14_spill] sm:$0xff] %v9423_v61  ;;  %v5319_v18 = vrot.slane %v5317_v4, 5  ;;  %v5302_v28 = vsel %vm7920_vm4, %v5297_v41, %v5301_v3  ;;  %v5327_v7 = vshrl.u32 %v7008_v33, 16  ;;  %v5333_v23 = vshll.u32 %v7009_v48, 16  ;;  %v9431_v21 = vpop.f32.mrf.mxu1  ;;  %v7011_v9 = vld [vmem:[%s7865_s8 + $0x34] sm:$0xf] }
 0x12e   : > { %v5307_v22 = vrot.slane %v5306_v42, 4  ;;  %11106 = vst [vmem:[#allocation16_spill] sm:$0xff] %v9431_v21  ;;  %7659 = vmatprep.mubr.msk.bf16.mxu1 %vm778_vm1, %v7049_v50  ;;  %v5325_v16 = vrot.slane %v5323_v32, 5  ;;  %v6921_v12 = vrot.slane %v6905_v31, 9  ;;  %v4447_v4 = vrot.slane %v7762_v52, 5  ;;  %v1580_v14 = vpop.f32.mrf.mxu0 }
 0x12f   : > { %v5320_v29 = vor.u32 %v5319_v18, %v5316_v8  ;;  %v5329_v41 = vrot.slane %v5327_v7, 4  ;;  %v5335_v42 = vrot.slane %v5333_v23, 5  ;;  %v7763_v33 = vld [vmem:[%s7865_s8 + $0x20] sm:$0x1]  ;;  %v9440_v19 = vpop.f32.mrf.mxu1  ;;  %v5338_v52 = vshrl.u32 %v7010_v55, 16 }
 0x130   : > { %v5312_v3 = vsel %vm7920_vm4, %v5307_v22, %v5311_v2  ;;  %v4450_v48 = vrot.slane %v7763_v33, 5  ;;  %11107 = vst [vmem:[#allocation17_spill] sm:$0xff] %v9440_v19  ;;  %v4448_v31 = vsel %vm8175_vm7, %v6921_v12, %v4447_v4  ;;  %v4449_v8 = vrot.slane %v4447_v4, 4  ;;  %v7424_v18 = vpop.f32.mrf.mxu0 }
 0x131   : > { %v7050_v21 = vcombine.low %v5302_v28, %v5312_v3  ;;  %v5321_v50 = vrot.slane %v5320_v29, 4  ;;  %v5330_v32 = vor.u32 %v5329_v41, %v5325_v16  ;;  %v5341_v20 = vshll.u32 %v7010_v55, 16  ;;  %v9444_v2 = vpop.f32.mrf.mxu1  ;;  %v6906_v29 = vld [vmem:[%s7865_s8 + $0x24] sm:$0xe] }
 0x132   : > { %v5347_v61 = vshll.u32 %v7011_v9, 16  ;;  %11108 = vst [vmem:[#allocation18_spill] sm:$0xff] %v9444_v2  ;;  %v4451_v28 = vsel %vm8175_vm7, %v4449_v8, %v4450_v48  ;;  %v5351_v7 = vshrl.u32 %v7011_v9, 16  ;;  %v5357_v23 = vshll.u32 %v7012_v24, 16  ;;  %v1583_v12 = vpop.f32.mrf.mxu0 }
 0x133   : > { %7660 = vmatmul.mubr.msk.bf16.vlgmr.msra.gmra.mxu1 %vm778_vm1, %v7050_v21  ;;  %v5326_v22 = vsel %vm7920_vm4, %v5321_v50, %v5325_v16  ;;  %v5331_v4 = vrot.slane %v5330_v32, 4  ;;  %v6937_v3 = vcombine.low %v4448_v31, %v4451_v28  ;;  %v5340_v41 = vrot.slane %v5338_v52, 4  ;;  %v9452_v33 = vpop.f32.mrf.mxu1  ;;  %v7013_v31 = vld [vmem:[%s7865_s8 + $0x3c] sm:$0xf]  ;;  %v7015_v28 = vld [vmem:[%s7865_s8 + $0x44] sm:$0x1] }
 0x134   : > { %v5343_v55 = vrot.slane %v5341_v20, 5  ;;  %11109 = vst [vmem:[#allocation19_spill] sm:$0xff] %v9452_v33  ;;  %v5349_v2 = vrot.slane %v5347_v61, 5  ;;  %v5353_v21 = vrot.slane %v5351_v7, 4  ;;  %v5359_v19 = vrot.slane %v5357_v23, 5  ;;  %v9457_v48 = vpop.f32.mrf.mxu0 }
 0x135   : > { %v9455_v16 = vadd.f32 %v7423_v25, %v9113_v17  ;;  %v5336_v24 = vsel %vm7920_vm4, %v5331_v4, %v5335_v42  ;;  %7625 = vmatprep.mubr.msk.bf16.mxu0 %vm778_vm1, %v6937_v3  ;;  %v6922_v20 = vrot.slane %v6906_v29, 9  ;;  %v11110_v50 = vrot.slane %v9036_v6, 5  ;;  %v9465_v8 = vpop.f32.mrf.mxu1  ;;  %v7014_v42 = vld [vmem:[%s7865_s8 + $0x40] sm:$0xf]  ;;  %v7020_v33 = vld [vmem:[%s7865_s8 + $0x58] sm:$0xf] }
 0x136   : > { %v5344_v9 = vor.u32 %v5343_v55, %v5340_v41  ;;  %11111 = vst [vmem:[#allocation20_spill] sm:$0xff] %v9465_v8  ;;  %v7051_v32 = vcombine.low %v5326_v22, %v5336_v24  ;;  %v5354_v52 = vor.u32 %v5353_v21, %v5349_v2  ;;  %v9468_v17 = vadd.f32 %v1580_v14, %v9121_v26  ;;  %v9475_v7 = vpop.f32.mrf.mxu0 }
 0x137   : > { %v4456_v61 = vrot.slane %v11110_v50, 4  ;;  %v9471_v25 = vadd.f32 %v7424_v18, %v9132_v35  ;;  %v11112_v29 = vmov %v11110_v50  ;;  %v11113_v22 = vrot.slane %v9043_v37, 5  ;;  %v6907_v35 = vld [vmem:[%s7865_s8 + $0x30] sm:$0xe]  ;;  %v9489_v18 = vpop.f32.mrf.mxu1 }
 0x138   : > { %v5345_v23 = vrot.slane %v5344_v9, 4  ;;  %v4455_v4 = vsel %vm8175_vm7, %v6922_v20, %v11112_v29  ;;  %v9486_v14 = vadd.f32 %v1583_v12, %v9143_v11  ;;  %11114 = vst [vmem:[#allocation21_spill] sm:$0xff] %v9489_v18  ;;  %7663 = vmatprep.mubr.msk.bf16.mxu1 %vm778_vm1, %v7051_v32  ;;  %v5355_v3 = vrot.slane %v5354_v52, 4  ;;  %v9492_v21 = vpop.f32.mrf.mxu0  ;;  %v7016_v11 = vld [vmem:[%s7865_s8 + $0x48] sm:$0xf] }
 0x139   : > { %v4458_v26 = vsel %vm8175_vm7, %v4456_v61, %v11113_v22  ;;  %v5362_v41 = vshrl.u32 %v7013_v31, 16  ;;  %v5365_v55 = vshll.u32 %v7013_v31, 16  ;;  %v5371_v24 = vshll.u32 %v7014_v42, 16  ;;  %v9497_v12 = vpop.f32.mrf.mxu1  ;;  %v7017_v52 = vld [vmem:[%s7865_s8 + $0x4c] sm:$0xf] }
 0x13a   : > { %v6938_v6 = vcombine.low %v4455_v4, %v4458_v26  ;;  %v5350_v37 = vsel %vm7920_vm4, %v5345_v23, %v5349_v2  ;;  %v5375_v9 = vshrl.u32 %v7014_v42, 16  ;;  %v5381_v20 = vshll.u32 %v7015_v28, 16  ;;  %11115 = vst [vmem:[#allocation22_spill] sm:$0xff] %v9497_v12  ;;  %v1599_v29 = vpop.f32.mrf.mxu0  ;;  %v7764_v26 = vld [vmem:[%s7865_s8 + $0x34] sm:$0xf] }
 0x13b   : > { %v5360_v50 = vsel %vm7920_vm4, %v5355_v3, %v5359_v19  ;;  %v5364_v61 = vrot.slane %v5362_v41, 4  ;;  %v5367_v31 = vrot.slane %v5365_v55, 5  ;;  %v6923_v32 = vrot.slane %v6907_v35, 9  ;;  %v9503_v4 = vpop.f32.mrf.mxu1  ;;  %v7765_v18 = vld [vmem:[%s7865_s8 + $0x38] sm:$0x1] }
 0x13c   : > { %7626 = vmatmul.mubr.msk.bf16.vlgmr.msra.gmra.mxu0 %vm778_vm1, %v6938_v6  ;;  %v7052_v2 = vcombine.low %v5350_v37, %v5360_v50  ;;  %v5373_v23 = vrot.slane %v5371_v24, 5  ;;  %v5377_v42 = vrot.slane %v5375_v9, 4  ;;  %v5383_v28 = vrot.slane %v5381_v20, 5  ;;  %11116 = vst [vmem:[#allocation23_spill] sm:$0xff] %v9503_v4  ;;  %v9507_v3 = vpop.f32.mrf.mxu0  ;;  %v7018_v6 = vld [vmem:[%s7865_s8 + $0x50] sm:$0x1] }
 0x13d   : > { %v5368_v22 = vor.u32 %v5367_v31, %v5364_v61  ;;  %v4461_v12 = vrot.slane %v7764_v26, 5  ;;  %v4464_v8 = vrot.slane %v7765_v18, 5  ;;  %v5386_v19 = vshrl.u32 %v7016_v11, 16  ;;  %v9511_v24 = vpop.f32.mrf.mxu1 }
 0x13e   : > { %7664 = vmatmul.mubr.msk.bf16.gmra.mxu1 %vm778_vm1, %v7052_v2  ;;  %v5378_v35 = vor.u32 %v5377_v42, %v5373_v23  ;;  %v5389_v41 = vshll.u32 %v7016_v11, 16  ;;  %v5395_v55 = vshll.u32 %v7017_v52, 16  ;;  %v5399_v37 = vshrl.u32 %v7017_v52, 16  ;;  %11117 = vst [vmem:[#allocation24_spill] sm:$0xff] %v9511_v24  ;;  %v9515_v18 = vpop.f32.mrf.mxu0  ;;  %v6908_v42 = vld [vmem:[%s7865_s8 + $0x3c] sm:$0xe] }
 0x13f   : > { %v5369_v9 = vrot.slane %v5368_v22, 4  ;;  %v4462_v20 = vsel %vm8175_vm7, %v6923_v32, %v4461_v12  ;;  %v4463_v50 = vrot.slane %v4461_v12, 4  ;;  %v5388_v61 = vrot.slane %v5386_v19, 4  ;;  %v9518_v11 = vpop.f32.mrf.mxu1 }
 0x140   : > { %v5379_v31 = vrot.slane %v5378_v35, 4  ;;  %v5391_v26 = vrot.slane %v5389_v41, 5  ;;  %v5397_v2 = vrot.slane %v5395_v55, 5  ;;  %v5401_v4 = vrot.slane %v5399_v37, 4  ;;  %11118 = vst [vmem:[#allocation25_spill] sm:$0xff] %v9518_v11  ;;  %v9528_v19 = vpop.f32.mrf.mxu0 }
 0x141   : > { %v5374_v52 = vsel %vm7920_vm4, %v5369_v9, %v5373_v23  ;;  %v4465_v32 = vsel %vm8175_vm7, %v4463_v50, %v4464_v8  ;;  %v5405_v12 = vshll.u32 %v7018_v6, 16  ;;  %v9526_v22 = vadd.f32 %v9457_v48, %v9159_v45  ;;  %v7019_v11 = vld [vmem:[%s7865_s8 + $0x54] sm:$0xf]  ;;  %v9533_v24 = vpop.f32.mrf.mxu1  ;;  %v7766_v6 = vld [vmem:[%s7865_s8 + $0x40] sm:$0xf] }
 0x142   : > { %v5384_v35 = vsel %vm7920_vm4, %v5379_v31, %v5383_v28  ;;  %v6939_v41 = vcombine.low %v4462_v20, %v4465_v32  ;;  %v5392_v55 = vor.u32 %v5391_v26, %v5388_v61  ;;  %v5402_v37 = vor.u32 %v5401_v4, %v5397_v2  ;;  %11119 = vst [vmem:[#allocation26_spill] sm:$0xff] %v9533_v24  ;;  %v9537_v45 = vpop.f32.mrf.mxu0 }
 0x143   : > { %v7053_v23 = vcombine.low %v5374_v52, %v5384_v35  ;;  %v5407_v9 = vrot.slane %v5405_v12, 5  ;;  %v6924_v8 = vrot.slane %v6908_v42, 9  ;;  %v4468_v50 = vrot.slane %v7766_v6, 5  ;;  %v9548_v61 = vpop.f32.mrf.mxu1  ;;  %v7021_v52 = vld [vmem:[%s7865_s8 + $0x5c] sm:$0x1] }
 0x144   : > { %7629 = vmatprep.mubr.msk.bf16.mxu0 %vm778_vm1, %v6939_v41  ;;  %v5393_v48 = vrot.slane %v5392_v55, 4  ;;  %v5403_v28 = vrot.slane %v5402_v37, 4  ;;  %v9542_v4 = vadd.f32 %v9475_v7, %v9169_v54  ;;  %v9546_v20 = vadd.f32 %v9492_v21, %v9179_v15  ;;  %11120 = vst [vmem:[#allocation27_spill] sm:$0xff] %v9548_v61  ;;  %v9557_v54 = vpop.f32.mrf.mxu0  ;;  %v6909_v35 = vld [vmem:[%s7865_s8 + $0x48] sm:$0xe] }
 0x145   : > { %7667 = vmatprep.mubr.msk.bf16.mxu1 %vm778_vm1, %v7053_v23  ;;  %v4469_v31 = vsel %vm8175_vm7, %v6924_v8, %v4468_v50  ;;  %v4470_v26 = vrot.slane %v4468_v50, 4  ;;  %v9554_v42 = vadd.f32 %v1599_v29, %v9190_v59  ;;  %v5410_v32 = vshrl.u32 %v7019_v11, 16  ;;  %v9564_v41 = vpop.f32.mrf.mxu1 }
 0x146   : > { %v5398_v15 = vsel %vm7920_vm4, %v5393_v48, %v5397_v2  ;;  %v5408_v7 = vsel %vm7920_vm4, %v5403_v28, %v5407_v9  ;;  %v5413_v21 = vshll.u32 %v7019_v11, 16  ;;  %v5419_v12 = vshll.u32 %v7020_v33, 16  ;;  %11122 = vst [vmem:[#allocation29_spill] sm:$0xff] %v9564_v41  ;;  %v7022_v2 = vld [vmem:[%s7865_s8 + $0x60] sm:$0xf]  ;;  %v9571_v8 = vpop.f32.mrf.mxu0 }
 0x147   : > { %11121 = vst [vmem:[#allocation28_spill] sm:$0xff] %v9554_v42  ;;  %v7054_v55 = vcombine.low %v5398_v15, %v5408_v7  ;;  %v11123_v59 = vrot.slane %v9089_v56, 5  ;;  %v5412_v37 = vrot.slane %v5410_v32, 4  ;;  %v5423_v23 = vshrl.u32 %v7020_v33, 16  ;;  %v7023_v48 = vld [vmem:[%s7865_s8 + $0x64] sm:$0xf]  ;;  %v9574_v28 = vpop.f32.mrf.mxu1 }
 0x148   : > { %v5415_v9 = vrot.slane %v5413_v21, 5  ;;  %v5421_v11 = vrot.slane %v5419_v12, 5  ;;  %v5429_v50 = vshll.u32 %v7021_v52, 16  ;;  %11124 = vst [vmem:[#allocation30_spill] sm:$0xff] %v9574_v28  ;;  %v6925_v15 = vrot.slane %v6909_v35, 9  ;;  %v9579_v33 = vpop.f32.mrf.mxu0 }
 0x149   : > { %v4472_v29 = vsel %vm8175_vm7, %v4470_v26, %v11123_v59  ;;  %7668 = vmatmul.mubr.msk.bf16.gmra.mxu1 %vm778_vm1, %v7054_v55  ;;  %v5425_v56 = vrot.slane %v5423_v23, 4  ;;  %v7767_v7 = vld [vmem:[%s7865_s8 + $0x4c] sm:$0xf]  ;;  %v7768_v59 = vld [vmem:[%s7865_s8 + $0x50] sm:$0x1]  ;;  %v5434_v52 = vshrl.u32 %v7022_v2, 16  ;;  %v9583_v41 = vpop.f32.mrf.mxu1 }
 0x14a   : > { %v6940_v6 = vcombine.low %v4469_v31, %v4472_v29  ;;  %v4475_v26 = vrot.slane %v7767_v7, 5  ;;  %v4478_v32 = vrot.slane %v7768_v59, 5  ;;  %v5416_v31 = vor.u32 %v5415_v9, %v5412_v37  ;;  %v7024_v12 = vld [vmem:[%s7865_s8 + $0x68] sm:$0x1]  ;;  %11125 = vst [vmem:[#allocation31_spill] sm:$0xff] %v9583_v41  ;;  %v9587_v7 = vpop.f32.mrf.mxu0 }
 0x14b   : > { %v5431_v21 = vrot.slane %v5429_v50, 5  ;;  %v5437_v29 = vshll.u32 %v7022_v2, 16  ;;  %v5426_v28 = vor.u32 %v5425_v56, %v5421_v11  ;;  %v5443_v23 = vshll.u32 %v7023_v48, 16  ;;  %v6910_v37 = vld [vmem:[%s7865_s8 + $0x54] sm:$0xe]  ;;  %v9590_v9 = vpop.f32.mrf.mxu1 }
 0x14c   : > { %7630 = vmatmul.mubr.msk.bf16.gmra.mxu0 %vm778_vm1, %v6940_v6  ;;  %v4476_v35 = vsel %vm8175_vm7, %v6925_v15, %v4475_v26  ;;  %v4477_v55 = vrot.slane %v4475_v26, 4  ;;  %v5417_v59 = vrot.slane %v5416_v31, 4  ;;  %v5436_v61 = vrot.slane %v5434_v52, 4  ;;  %11126 = vst [vmem:[#allocation32_spill] sm:$0xff] %v9590_v9  ;;  %v9594_v42 = vpop.f32.mrf.mxu0 }
 0x14d   : > { %v5439_v6 = vrot.slane %v5437_v29, 5  ;;  %v5447_v24 = vshrl.u32 %v7023_v48, 16  ;;  %v5427_v50 = vrot.slane %v5426_v28, 4  ;;  %v5445_v56 = vrot.slane %v5443_v23, 5  ;;  %v7025_v48 = vld [vmem:[%s7865_s8 + $0x6c] sm:$0xf]  ;;  %v9599_v29 = vpop.f32.mrf.mxu1 }
 0x14e   : > { %v4479_v2 = vsel %vm8175_vm7, %v4477_v55, %v4478_v32  ;;  %v5453_v41 = vshll.u32 %v7024_v12, 16  ;;  %v5422_v15 = vsel %vm7920_vm4, %v5417_v59, %v5421_v11  ;;  %11127 = vst [vmem:[#allocation33_spill] sm:$0xff] %v9599_v29  ;;  %v9605_v12 = vadd.f32 %v9507_v3, %v9203_v63  ;;  %v9607_v23 = vpop.f32.mrf.mxu0 }
 0x14f   : > { %v6941_v26 = vcombine.low %v4476_v35, %v4479_v2  ;;  %v5440_v31 = vor.u32 %v5439_v6, %v5436_v61  ;;  %v5449_v52 = vrot.slane %v5447_v24, 4  ;;  %v5432_v28 = vsel %vm7920_vm4, %v5427_v50, %v5431_v21  ;;  %v7769_v35 = vld [vmem:[%s7865_s8 + $0x58] sm:$0xf]  ;;  %v7026_v6 = vld [vmem:[%s7865_s8 + $0x70] sm:$0xf]  ;;  %v9612_v2 = vpop.f32.mrf.mxu1 }
 0x150   : > { %v5455_v32 = vrot.slane %v5453_v41, 5  ;;  %v6926_v55 = vrot.slane %v6910_v37, 9  ;;  %v7055_v11 = vcombine.low %v5422_v15, %v5432_v28  ;;  %v4482_v59 = vrot.slane %v7769_v35, 5  ;;  %11128 = vst [vmem:[#allocation34_spill] sm:$0xff] %v9612_v2  ;;  %v7027_v21 = vld [vmem:[%s7865_s8 + $0x74] sm:$0x1]  ;;  %v9628_v15 = vpop.f32.mrf.mxu0 }
 0x151   : > { %7633 = vmatprep.mubr.msk.bf16.mxu0 %vm778_vm1, %v6941_v26  ;;  %v5441_v24 = vrot.slane %v5440_v31, 4  ;;  %v5450_v61 = vor.u32 %v5449_v52, %v5445_v56  ;;  %v9616_v41 = vadd.f32 %v9515_v18, %v9212_v49  ;;  %v9620_v63 = vadd.f32 %v9528_v19, %v9223_v27  ;;  %v6911_v50 = vld [vmem:[%s7865_s8 + $0x60] sm:$0xe]  ;;  %v9635_v26 = vpop.f32.mrf.mxu1 }
 0x152   : > { %v9624_v3 = vadd.f32 %v9537_v45, %v9228_v1  ;;  %v5458_v37 = vshrl.u32 %v7025_v48, 16  ;;  %7671 = vmatprep.mubr.msk.bf16.mxu1 %vm778_vm1, %v7055_v11  ;;  %v4483_v27 = vsel %vm8175_vm7, %v6926_v55, %v4482_v59  ;;  %v4484_v19 = vrot.slane %v4482_v59, 4  ;;  %11131 = vst [vmem:[#allocation37_spill] sm:$0xff] %v9635_v26  ;;  %v9637_v28 = vpop.f32.mrf.mxu0  ;;  %v7029_v59 = vld [vmem:[%s7865_s8 + $0x7c] sm:$0xf] }
 0x153   : > { %11129 = vst [vmem:[#allocation35_spill] sm:$0xff] %v9620_v63  ;;  %v5446_v49 = vsel %vm7920_vm4, %v5441_v24, %v5445_v56  ;;  %v5451_v18 = vrot.slane %v5450_v61, 4  ;;  %v5461_v45 = vshll.u32 %v7025_v48, 16  ;;  %v5467_v31 = vshll.u32 %v7026_v6, 16  ;;  %v7028_v61 = vld [vmem:[%s7865_s8 + $0x78] sm:$0xf] }
 0x154   : > { %11130 = vst [vmem:[#allocation36_spill] sm:$0xff] %v9624_v3  ;;  %v5460_v1 = vrot.slane %v5458_v37, 4  ;;  %v5471_v52 = vshrl.u32 %v7026_v6, 16  ;;  %v11132_v35 = vrot.slane %v9136_v10, 5  ;;  %v5477_v55 = vshll.u32 %v7027_v21, 16  ;;  %v9647_v37 = vpop.f32.mrf.mxu1  ;;  %v9649_v29 = vpop.f32.mrf.mxu0 }
 0x155   : > { %v5456_v11 = vsel %vm7920_vm4, %v5451_v18, %v5455_v32  ;;  %v6927_v24 = vrot.slane %v6911_v50, 9  ;;  %11133 = vst [vmem:[#allocation38_spill] sm:$0xff] %v9647_v37  ;;  %v5463_v26 = vrot.slane %v5461_v45, 5  ;;  %v5469_v2 = vrot.slane %v5467_v31, 5  ;;  %v7770_v10 = vld [vmem:[%s7865_s8 + $0x64] sm:$0xf] }
 0x156   : > { %v4486_v56 = vsel %vm8175_vm7, %v4484_v19, %v11132_v35  ;;  %v7056_v48 = vcombine.low %v5446_v49, %v5456_v11  ;;  %v5473_v32 = vrot.slane %v5471_v52, 4  ;;  %v5479_v18 = vrot.slane %v5477_v55, 5  ;;  %v7771_v3 = vld [vmem:[%s7865_s8 + $0x68] sm:$0x1]  ;;  %v9653_v19 = vpop.f32.mrf.mxu1  ;;  %v7030_v50 = vld [vmem:[%s7865_s8 + $0x80] sm:$0x1]  ;;  %v9658_v31 = vpop.f32.mrf.mxu0 }
 0x157   : > { %v6942_v6 = vcombine.low %v4483_v27, %v4486_v56  ;;  %v4489_v9 = vrot.slane %v7770_v10, 5  ;;  %v4492_v63 = vrot.slane %v7771_v3, 5  ;;  %11134 = vst [vmem:[#allocation39_spill] sm:$0xff] %v9653_v19  ;;  %v5464_v21 = vor.u32 %v5463_v26, %v5460_v1  ;;  %v6912_v26 = vld [vmem:[%s7865_s8 + $0x6c] sm:$0xe] }
 0x158   : > { %7672 = vmatmul.mubr.msk.bf16.gmra.mxu1 %vm778_vm1, %v7056_v48  ;;  %v5482_v49 = vshrl.u32 %v7028_v61, 16  ;;  %v5485_v27 = vshll.u32 %v7028_v61, 16  ;;  %v5491_v45 = vshll.u32 %v7029_v59, 16  ;;  %v5474_v52 = vor.u32 %v5473_v32, %v5469_v2  ;;  %v9662_v56 = vpop.f32.mrf.mxu1  ;;  %v9665_v1 = vpop.f32.mrf.mxu0 }
 0x159   : > { %7634 = vmatmul.mubr.msk.bf16.gmra.mxu0 %vm778_vm1, %v6942_v6  ;;  %v4490_v11 = vsel %vm8175_vm7, %v6927_v24, %v4489_v9  ;;  %v4491_v35 = vrot.slane %v4489_v9, 4  ;;  %v5495_v3 = vshrl.u32 %v7029_v59, 16  ;;  %11135 = vst [vmem:[#allocation40_spill] sm:$0xff] %v9662_v56  ;;  %v5465_v55 = vrot.slane %v5464_v21, 4 }
 0x15a   : > { %v5484_v48 = vrot.slane %v5482_v49, 4  ;;  %v5487_v6 = vrot.slane %v5485_v27, 5  ;;  %v5493_v10 = vrot.slane %v5491_v45, 5  ;;  %v5475_v61 = vrot.slane %v5474_v52, 4  ;;  %v9669_v24 = vpop.f32.mrf.mxu1  ;;  %v7031_v27 = vld [vmem:[%s7865_s8 + $0x84] sm:$0xf]  ;;  %v9678_v45 = vpop.f32.mrf.mxu0 }
 0x15b   : > { %v4493_v19 = vsel %vm8175_vm7, %v4491_v35, %v4492_v63  ;;  %v5497_v32 = vrot.slane %v5495_v3, 4  ;;  %v5501_v37 = vshll.u32 %v7030_v50, 16  ;;  %11136 = vst [vmem:[#allocation41_spill] sm:$0xff] %v9669_v24  ;;  %v5470_v9 = vsel %vm7920_vm4, %v5465_v55, %v5469_v2  ;;  %v7032_v55 = vld [vmem:[%s7865_s8 + $0x88] sm:$0xf] }
 0x15c   : > { %v6943_v59 = vcombine.low %v4490_v11, %v4493_v19  ;;  %v5488_v21 = vor.u32 %v5487_v6, %v5484_v48  ;;  %v9675_v49 = vadd.f32 %v9557_v54, %v9243_v62  ;;  %v5480_v63 = vsel %vm7920_vm4, %v5475_v61, %v5479_v18  ;;  %v9682_v3 = vpop.f32.mrf.mxu1  ;;  %v7772_v11 = vld [vmem:[%s7865_s8 + $0x70] sm:$0xf] }
 0x15d   : > { %v5498_v50 = vor.u32 %v5497_v32, %v5493_v10  ;;  %v5503_v52 = vrot.slane %v5501_v37, 5  ;;  %v6928_v35 = vrot.slane %v6912_v26, 9  ;;  %11137 = vst [vmem:[#allocation42_spill] sm:$0xff] %v9682_v3  ;;  %v7057_v2 = vcombine.low %v5470_v9, %v5480_v63  ;;  %v7033_v26 = vld [vmem:[%s7865_s8 + $0x8c] sm:$0x1] }
 0x15e   : > { %7637 = vmatprep.mubr.msk.bf16.mxu0 %vm778_vm1, %v6943_v59  ;;  %v5489_v19 = vrot.slane %v5488_v21, 4  ;;  %v4496_v62 = vrot.slane %v7772_v11, 5  ;;  %v9688_v54 = vadd.f32 %v9571_v8, %v9248_v0  ;;  %v9691_v48 = vpop.f32.mrf.mxu0  ;;  %v9695_v37 = vadd.f32 %v9579_v33, %v9257_v53  ;;  %v9702_v32 = vpop.f32.mrf.mxu1  ;;  %v6913_v9 = vld [vmem:[%s7865_s8 + $0x78] sm:$0xe]  ;;  %v7034_v11 = vld [vmem:[%s7865_s8 + $0x90] sm:$0xf] }
 0x15f   : > { %v5499_v18 = vrot.slane %v5498_v50, 4  ;;  %v9699_v6 = vadd.f32 %v9587_v7, %v9267_v5  ;;  %v5506_v61 = vshrl.u32 %v7031_v27, 16  ;;  %11138 = vst [vmem:[#allocation43_spill] sm:$0xff] %v9702_v32  ;;  %7675 = vmatprep.mubr.msk.bf16.mxu1 %vm778_vm1, %v7057_v2  ;;  %v5509_v33 = vshll.u32 %v7031_v27, 16 }
 0x160   : > { %v5494_v0 = vsel %vm7920_vm4, %v5489_v19, %v5493_v10  ;;  %v4497_v8 = vsel %vm8175_vm7, %v6928_v35, %v4496_v62  ;;  %v4498_v53 = vrot.slane %v4496_v62, 4  ;;  %v9710_v59 = vpop.f32.mrf.mxu0  ;;  %v5515_v21 = vshll.u32 %v7032_v55, 16  ;;  %v9714_v50 = vpop.f32.mrf.mxu1  ;;  %v7035_v62 = vld [vmem:[%s7865_s8 + $0x94] sm:$0xf] }
 0x161   : > { %v5504_v5 = vsel %vm7920_vm4, %v5499_v18, %v5503_v52  ;;  %v5508_v7 = vrot.slane %v5506_v61, 4  ;;  %v5519_v63 = vshrl.u32 %v7032_v55, 16  ;;  %11139 = vst [vmem:[#allocation44_spill] sm:$0xff] %v9714_v50  ;;  %v11140_v10 = vrot.slane %v9183_v40, 5 }
 0x162   : > { %v7058_v2 = vcombine.low %v5494_v0, %v5504_v5  ;;  %v5511_v27 = vrot.slane %v5509_v33, 5  ;;  %v5525_v19 = vshll.u32 %v7033_v26, 16  ;;  %v9722_v32 = vpop.f32.mrf.mxu0  ;;  %v5517_v18 = vrot.slane %v5515_v21, 5  ;;  %v7773_v5 = vld [vmem:[%s7865_s8 + $0x7c] sm:$0xf] }
 0x163   : > { %v4500_v35 = vsel %vm8175_vm7, %v4498_v53, %v11140_v10  ;;  %v5521_v55 = vrot.slane %v5519_v63, 4  ;;  %v6929_v61 = vrot.slane %v6913_v9, 9  ;;  %v4503_v53 = vrot.slane %v7773_v5, 5  ;;  %v7774_v10 = vld [vmem:[%s7865_s8 + $0x80] sm:$0x1] }
 0x164   : > { %v6944_v52 = vcombine.low %v4497_v8, %v4500_v35  ;;  %v9724_v50 = vpop.f32.mrf.mxu1  ;;  %7676 = vmatmul.mubr.msk.bf16.gmra.mxu1 %vm778_vm1, %v7058_v2  ;;  %v5512_v40 = vor.u32 %v5511_v27, %v5508_v7  ;;  %v5527_v0 = vrot.slane %v5525_v19, 5  ;;  %v4506_v33 = vrot.slane %v7774_v10, 5  ;;  %v9729_v26 = vpop.f32.mrf.mxu0  ;;  %v7036_v8 = vld [vmem:[%s7865_s8 + $0x98] sm:$0x1] }
 0x165   : > { %11141 = vst [vmem:[#allocation45_spill] sm:$0xff] %v9724_v50  ;;  %v5522_v3 = vor.u32 %v5521_v55, %v5517_v18  ;;  %v5530_v21 = vshrl.u32 %v7034_v11, 16  ;;  %v5533_v63 = vshll.u32 %v7034_v11, 16  ;;  %v5539_v9 = vshll.u32 %v7035_v62, 16  ;;  %v6914_v55 = vld [vmem:[%s7865_s8 + $0x84] sm:$0xe] }
 0x166   : > { %7638 = vmatmul.mubr.msk.bf16.gmra.mxu0 %vm778_vm1, %v6944_v52  ;;  %v9733_v35 = vpop.f32.mrf.mxu1  ;;  %v5513_v50 = vrot.slane %v5512_v40, 4  ;;  %v4504_v7 = vsel %vm8175_vm7, %v6929_v61, %v4503_v53  ;;  %v4505_v2 = vrot.slane %v4503_v53, 4  ;;  %v5543_v27 = vshrl.u32 %v7035_v62, 16 }
 0x167   : > { %11142 = vst [vmem:[#allocation46_spill] sm:$0xff] %v9733_v35  ;;  %v9737_v19 = vpop.f32.mrf.mxu0  ;;  %v5523_v5 = vrot.slane %v5522_v3, 4  ;;  %v5532_v10 = vrot.slane %v5530_v21, 4  ;;  %v5535_v52 = vrot.slane %v5533_v63, 5  ;;  %v5541_v24 = vrot.slane %v5539_v9, 5 }
 0x168   : > { %v9740_v56 = vpop.f32.mrf.mxu1  ;;  %v5518_v11 = vsel %vm7920_vm4, %v5513_v50, %v5517_v18  ;;  %v4507_v40 = vsel %vm8175_vm7, %v4505_v2, %v4506_v33  ;;  %v5545_v35 = vrot.slane %v5543_v27, 4  ;;  %v5549_v61 = vshll.u32 %v7036_v8, 16  ;;  %v7037_v50 = vld [vmem:[%s7865_s8 + $0x9c] sm:$0xf] }
 0x169   : > { %11143 = vst [vmem:[#allocation47_spill] sm:$0xff] %v9740_v56  ;;  %v9746_v62 = vpop.f32.mrf.mxu0  ;;  %v5528_v3 = vsel %vm7920_vm4, %v5523_v5, %v5527_v0  ;;  %v6945_v53 = vcombine.low %v4504_v7, %v4507_v40  ;;  %v5536_v21 = vor.u32 %v5535_v52, %v5532_v10  ;;  %v9752_v63 = vadd.f32 %v9594_v42, %v9286_v46  ;;  %v7775_v7 = vld [vmem:[%s7865_s8 + $0x88] sm:$0xf]  ;;  %v7776_v10 = vld [vmem:[%s7865_s8 + $0x8c] sm:$0x1] }
 0x16a   : > { %v9755_v18 = vpop.f32.mrf.mxu1  ;;  %v7059_v33 = vcombine.low %v5518_v11, %v5528_v3  ;;  %v5546_v9 = vor.u32 %v5545_v35, %v5541_v24  ;;  %v5551_v2 = vrot.slane %v5549_v61, 5  ;;  %v6930_v8 = vrot.slane %v6914_v55, 9  ;;  %v7038_v42 = vld [vmem:[%s7865_s8 + $0xa0] sm:$0xf]  ;;  %v7039_v61 = vld [vmem:[%s7865_s8 + $0xa4] sm:$0x1] }
 0x16b   : > { %11144 = vst [vmem:[#allocation48_spill] sm:$0xff] %v9752_v63  ;;  %11145 = vst [vmem:[#allocation49_spill] sm:$0xff] %v9755_v18  ;;  %v9757_v27 = vpop.f32.mrf.mxu0  ;;  %7641 = vmatprep.mubr.msk.bf16.mxu0 %vm778_vm1, %v6945_v53  ;;  %v5537_v0 = vrot.slane %v5536_v21, 4  ;;  %v4510_v5 = vrot.slane %v7775_v7, 5  ;;  %v4513_v52 = vrot.slane %v7776_v10, 5  ;;  %v9764_v46 = vadd.f32 %v9607_v23, %v9291_v60 }
 0x16c   : > { %v9767_v11 = vpop.f32.mrf.mxu1  ;;  %7679 = vmatprep.mubr.msk.bf16.mxu1 %vm778_vm1, %v7059_v33  ;;  %v5547_v35 = vrot.slane %v5546_v9, 4  ;;  %v9772_v55 = vadd.f32 %v9628_v15, %v9300_v57  ;;  %v9776_v40 = vadd.f32 %v9637_v28, %v9309_v36  ;;  %v5554_v3 = vshrl.u32 %v7037_v50, 16  ;;  %v6915_v57 = vld [vmem:[%s7865_s8 + $0x90] sm:$0xe]  ;;  %v7777_v56 = vld [vmem:[%s7865_s8 + $0x94] sm:$0xf] }
 0x16d   : > { %11146 = vst [vmem:[#allocation50_spill] sm:$0xff] %v9764_v46  ;;  %11147 = vst [vmem:[#allocation51_spill] sm:$0xff] %v9767_v11  ;;  %v9779_v53 = vpop.f32.mrf.mxu0  ;;  %v5542_v60 = vsel %vm7920_vm4, %v5537_v0, %v5541_v24  ;;  %v4511_v23 = vsel %vm8175_vm7, %v6930_v8, %v4510_v5  ;;  %v4512_v21 = vrot.slane %v4510_v5, 4  ;;  %v5557_v33 = vshll.u32 %v7037_v50, 16  ;;  %v7040_v50 = vld [vmem:[%s7865_s8 + $0xa8] sm:$0xf] }
 0x16e   : > { %11148 = vst [vmem:[#allocation52_spill] sm:$0xff] %v9772_v55  ;;  %11149 = vst [vmem:[#allocation53_spill] sm:$0xff] %v9776_v40  ;;  %v9786_v15 = vpop.f32.mrf.mxu1  ;;  %v5552_v36 = vsel %vm7920_vm4, %v5547_v35, %v5551_v2  ;;  %v5556_v28 = vrot.slane %v5554_v3, 4  ;;  %v5563_v9 = vshll.u32 %v7038_v42, 16  ;;  %v5567_v7 = vshrl.u32 %v7038_v42, 16 }
 0x16f   : > { %11150 = vst [vmem:[#allocation54_spill] sm:$0xff] %v9786_v15  ;;  %v9790_v10 = vpop.f32.mrf.mxu0  ;;  %v7060_v11 = vcombine.low %v5542_v60, %v5552_v36  ;;  %v4514_v24 = vsel %vm8175_vm7, %v4512_v21, %v4513_v52  ;;  %v5559_v8 = vrot.slane %v5557_v33, 5  ;;  %v5573_v0 = vshll.u32 %v7039_v61, 16  ;;  %v7041_v5 = vld [vmem:[%s7865_s8 + $0xac] sm:$0xf] }
 0x170   : > { %v9796_v18 = vpop.f32.mrf.mxu1  ;;  %v6946_v15 = vcombine.low %v4511_v23, %v4514_v24  ;;  %v5565_v2 = vrot.slane %v5563_v9, 5  ;;  %v5569_v35 = vrot.slane %v5567_v7, 4  ;;  %v6931_v3 = vrot.slane %v6915_v57, 9  ;;  %v7778_v21 = vld [vmem:[%s7865_s8 + $0x98] sm:$0x1] }
 0x171   : > { %11151 = vst [vmem:[#allocation55_spill] sm:$0xff] %v9796_v18  ;;  %v9798_v42 = vpop.f32.mrf.mxu0  ;;  %7680 = vmatmul.mubr.msk.bf16.gmra.mxu1 %vm778_vm1, %v7060_v11  ;;  %v5560_v60 = vor.u32 %v5559_v8, %v5556_v28  ;;  %v5575_v36 = vrot.slane %v5573_v0, 5  ;;  %v4517_v52 = vrot.slane %v7777_v56, 5  ;;  %v4520_v33 = vrot.slane %v7778_v21, 5  ;;  %v7042_v23 = vld [vmem:[%s7865_s8 + $0xb0] sm:$0x1] }
 0x172   : > { %v9803_v61 = vpop.f32.mrf.mxu1  ;;  %7642 = vmatmul.mubr.msk.bf16.gmra.mxu0 %vm778_vm1, %v6946_v15  ;;  %v5570_v18 = vor.u32 %v5569_v35, %v5565_v2  ;;  %v5578_v9 = vshrl.u32 %v7040_v50, 16  ;;  %v5581_v7 = vshll.u32 %v7040_v50, 16  ;;  %v5587_v57 = vshll.u32 %v7041_v5, 16  ;;  %v6916_v35 = vld [vmem:[%s7865_s8 + $0x9c] sm:$0xe] }
 0x173   : > { %11152 = vst [vmem:[#allocation56_spill] sm:$0xff] %v9803_v61  ;;  %v9807_v24 = vpop.f32.mrf.mxu0  ;;  %v5561_v40 = vrot.slane %v5560_v60, 4  ;;  %v4518_v11 = vsel %vm8175_vm7, %v6931_v3, %v4517_v52  ;;  %v4519_v28 = vrot.slane %v4517_v52, 4  ;;  %v5591_v56 = vshrl.u32 %v7041_v5, 16 }
 0x174   : > { %v9811_v8 = vpop.f32.mrf.mxu1  ;;  %v5571_v0 = vrot.slane %v5570_v18, 4  ;;  %v5580_v21 = vrot.slane %v5578_v9, 4  ;;  %v5583_v15 = vrot.slane %v5581_v7, 5  ;;  %v5589_v61 = vrot.slane %v5587_v57, 5 }
 0x175   : > { %11153 = vst [vmem:[#allocation57_spill] sm:$0xff] %v9811_v8  ;;  %v9814_v55 = vpop.f32.mrf.mxu0  ;;  %v5566_v50 = vsel %vm7920_vm4, %v5561_v40, %v5565_v2  ;;  %v4521_v60 = vsel %vm8175_vm7, %v4519_v28, %v4520_v33  ;;  %v5593_v46 = vrot.slane %v5591_v56, 4  ;;  %v5597_v3 = vshll.u32 %v7042_v23, 16  ;;  %v7043_v40 = vld [vmem:[%s7865_s8 + $0xb4] sm:$0xf] }
 0x176   : > { %v9820_v5 = vpop.f32.mrf.mxu1  ;;  %v5576_v18 = vsel %vm7920_vm4, %v5571_v0, %v5575_v36  ;;  %v6947_v52 = vcombine.low %v4518_v11, %v4521_v60  ;;  %v5584_v9 = vor.u32 %v5583_v15, %v5580_v21  ;;  %v9826_v7 = vadd.f32 %v9649_v29, %v9322_v38  ;;  %v7779_v11 = vld [vmem:[%s7865_s8 + $0xa0] sm:$0xf]  ;;  %v7780_v21 = vld [vmem:[%s7865_s8 + $0xa4] sm:$0x1]  ;;  %v7044_v60 = vld [vmem:[%s7865_s8 + $0xb8] sm:$0xf] }
 0x177   : > { %11154 = vst [vmem:[#allocation58_spill] sm:$0xff] %v9820_v5  ;;  %v9829_v2 = vpop.f32.mrf.mxu0  ;;  %v7061_v33 = vcombine.low %v5566_v50, %v5576_v18  ;;  %v5594_v57 = vor.u32 %v5593_v46, %v5589_v61  ;;  %v5599_v28 = vrot.slane %v5597_v3, 5  ;;  %v6932_v23 = vrot.slane %v6916_v35, 9  ;;  %v11157_v38 = vld [vmem:[#allocation2_spill] sm:$0xff]  ;;  %v11159_v35 = vld [vmem:[#allocation3_spill] sm:$0xff]  ;;  %v11161_v18 = vld [vmem:[#allocation4_spill] sm:$0xff] }
 0x178   : > { %11155 = vst [vmem:[#allocation59_spill] sm:$0xff] %v9826_v7  ;;  %v9831_v56 = vpop.f32.mrf.mxu1  ;;  %7645 = vmatprep.mubr.msk.bf16.mxu0 %vm778_vm1, %v6947_v52  ;;  %v5585_v36 = vrot.slane %v5584_v9, 4  ;;  %v4524_v0 = vrot.slane %v7779_v11, 5  ;;  %v4527_v15 = vrot.slane %v7780_v21, 5  ;;  %v9838_v29 = vadd.f32 %v9658_v31, %v11157_v38  ;;  %v7045_v9 = vld [vmem:[%s7865_s8 + $0xbc] sm:$0x1] }
 0x179   : > { %11156 = vst [vmem:[#allocation60_spill] sm:$0xff] %v9831_v56  ;;  %v9841_v50 = vpop.f32.mrf.mxu0  ;;  %7683 = vmatprep.mubr.msk.bf16.mxu1 %vm778_vm1, %v7061_v33  ;;  %v5595_v46 = vrot.slane %v5594_v57, 4  ;;  %v9846_v3 = vadd.f32 %v9665_v1, %v11159_v35  ;;  %v9850_v52 = vadd.f32 %v9678_v45, %v11161_v18  ;;  %v5602_v11 = vshrl.u32 %v7043_v40, 16  ;;  %v6917_v1 = vld [vmem:[%s7865_s8 + $0xa8] sm:$0xe] }
 0x17a   : > { %11158 = vst [vmem:[#allocation2_spill] sm:$0xff] %v9838_v29  ;;  %v9853_v21 = vpop.f32.mrf.mxu1  ;;  %v5590_v31 = vsel %vm7920_vm4, %v5585_v36, %v5589_v61  ;;  %v4525_v33 = vsel %vm8175_vm7, %v6932_v23, %v4524_v0  ;;  %v4526_v57 = vrot.slane %v4524_v0, 4  ;;  %v5605_v38 = vshll.u32 %v7043_v40, 16  ;;  %v7046_v40 = vld [vmem:[%s7865_s8 + $0xc0] sm:$0xf] }
 0x17b   : > { %11160 = vst [vmem:[#allocation3_spill] sm:$0xff] %v9846_v3  ;;  %11162 = vst [vmem:[#allocation4_spill] sm:$0xff] %v9850_v52  ;;  %v9860_v35 = vpop.f32.mrf.mxu0  ;;  %v5600_v45 = vsel %vm7920_vm4, %v5595_v46, %v5599_v28  ;;  %v5604_v18 = vrot.slane %v5602_v11, 4  ;;  %v5611_v56 = vshll.u32 %v7044_v60, 16  ;;  %v5615_v5 = vshrl.u32 %v7044_v60, 16 }
 0x17c   : > { %11163 = vst [vmem:[#allocation61_spill] sm:$0xff] %v9853_v21  ;;  %v9864_v21 = vpop.f32.mrf.mxu1  ;;  %v7062_v8 = vcombine.low %v5590_v31, %v5600_v45  ;;  %v4528_v61 = vsel %vm8175_vm7, %v4526_v57, %v4527_v15  ;;  %v5607_v23 = vrot.slane %v5605_v38, 5  ;;  %v5621_v36 = vshll.u32 %v7045_v9, 16  ;;  %v7047_v0 = vld [vmem:[%s7865_s8 + $0xc4] sm:$0xf] }
 0x17d   : > { %11164 = vst [vmem:[#allocation62_spill] sm:$0xff] %v9864_v21  ;;  %v9870_v52 = vpop.f32.mrf.mxu0  ;;  %v6948_v3 = vcombine.low %v4525_v33, %v4528_v61  ;;  %v5613_v28 = vrot.slane %v5611_v56, 5  ;;  %v5617_v46 = vrot.slane %v5615_v5, 4  ;;  %v6933_v11 = vrot.slane %v6917_v1, 9  ;;  %v7781_v21 = vld [vmem:[%s7865_s8 + $0xac] sm:$0xf] }
 0x17e   : > { %v9872_v60 = vpop.f32.mrf.mxu1  ;;  %7684 = vmatmul.mubr.msk.bf16.gmra.mxu1 %vm778_vm1, %v7062_v8  ;;  %v5608_v31 = vor.u32 %v5607_v23, %v5604_v18  ;;  %v5623_v45 = vrot.slane %v5621_v36, 5  ;;  %v4531_v15 = vrot.slane %v7781_v21, 5  ;;  %v7782_v57 = vld [vmem:[%s7865_s8 + $0xb0] sm:$0x1]  ;;  %v7048_v33 = vld [vmem:[%s7865_s8 + $0xc8] sm:$0x1] }
 0x17f   : > { %11165 = vst [vmem:[#allocation63_spill] sm:$0xff] %v9872_v60  ;;  %v4534_v38 = vrot.slane %v7782_v57, 5  ;;  %v9877_v9 = vpop.f32.mrf.mxu0  ;;  %7646 = vmatmul.mubr.msk.bf16.gmra.mxu0 %vm778_vm1, %v6948_v3  ;;  %v5618_v29 = vor.u32 %v5617_v46, %v5613_v28  ;;  %v5626_v56 = vshrl.u32 %v7046_v40, 16  ;;  %v5629_v5 = vshll.u32 %v7046_v40, 16  ;;  %v6918_v46 = vld [vmem:[%s7865_s8 + $0xb4] sm:$0xe] }
 0x180   : > { %v5635_v1 = vshll.u32 %v7047_v0, 16  ;;  %v9881_v61 = vpop.f32.mrf.mxu1  ;;  %v5609_v60 = vrot.slane %v5608_v31, 4  ;;  %v4532_v8 = vsel %vm8175_vm7, %v6933_v11, %v4531_v15  ;;  %v4533_v18 = vrot.slane %v4531_v15, 4 }
 0x181   : > { %11166 = vst [vmem:[#allocation64_spill] sm:$0xff] %v9881_v61  ;;  %v5639_v21 = vshrl.u32 %v7047_v0, 16  ;;  %v9885_v23 = vpop.f32.mrf.mxu0  ;;  %v5619_v36 = vrot.slane %v5618_v29, 4  ;;  %v5628_v57 = vrot.slane %v5626_v56, 4  ;;  %v5631_v3 = vrot.slane %v5629_v5, 5 }
 0x182   : > { %v5637_v7 = vrot.slane %v5635_v1, 5  ;;  %v9888_v63 = vpop.f32.mrf.mxu1  ;;  %v5614_v40 = vsel %vm7920_vm4, %v5609_v60, %v5613_v28  ;;  %v4535_v31 = vsel %vm8175_vm7, %v4533_v18, %v4534_v38  ;;  %v5645_v11 = vshll.u32 %v7048_v33, 16  ;;  %v6919_v28 = vld [vmem:[%s7865_s8 + $0xc0] sm:$0xe] }
 0x183   : > { %11167 = vst [vmem:[#allocation65_spill] sm:$0xff] %v9888_v63  ;;  %v5641_v61 = vrot.slane %v5639_v21, 4  ;;  %v9894_v0 = vpop.f32.mrf.mxu0  ;;  %v5624_v29 = vsel %vm7920_vm4, %v5619_v36, %v5623_v45  ;;  %v6949_v15 = vcombine.low %v4532_v8, %v4535_v31  ;;  %v5632_v56 = vor.u32 %v5631_v3, %v5628_v57  ;;  %v7783_v45 = vld [vmem:[%s7865_s8 + $0xb8] sm:$0xf]  ;;  %v7784_v36 = vld [vmem:[%s7865_s8 + $0xbc] sm:$0x1] }
 0x184   : > { %v9900_v5 = vadd.f32 %v9691_v48, %v9366_v34  ;;  %v9903_v60 = vpop.f32.mrf.mxu1  ;;  %v7063_v38 = vcombine.low %v5614_v40, %v5624_v29  ;;  %v5647_v18 = vrot.slane %v5645_v11, 5  ;;  %v6934_v33 = vrot.slane %v6918_v46, 9  ;;  %v6920_v48 = vld [vmem:[%s7865_s8 + $0xcc] sm:$0xe] }
 0x185   : > { %v5642_v1 = vor.u32 %v5641_v61, %v5637_v7  ;;  %v9905_v21 = vpop.f32.mrf.mxu0  ;;  %7649 = vmatprep.mubr.msk.bf16.mxu0 %vm778_vm1, %v6949_v15  ;;  %v5633_v63 = vrot.slane %v5632_v56, 4  ;;  %v4538_v8 = vrot.slane %v7783_v45, 5  ;;  %v4541_v57 = vrot.slane %v7784_v36, 5  ;;  %v7785_v15 = vld [vmem:[%s7865_s8 + $0xc4] sm:$0xf] }
 0x186   : > { %v9912_v34 = vadd.f32 %v9710_v59, %v9369_v43  ;;  %v9915_v3 = vpop.f32.mrf.mxu1  ;;  %7687 = vmatprep.mubr.msk.bf16.mxu1 %vm778_vm1, %v7063_v38  ;;  %v9920_v46 = vadd.f32 %v9722_v32, %v9379_v51  ;;  %v9924_v40 = vadd.f32 %v9729_v26, %v9387_v30  ;;  %v6935_v31 = vrot.slane %v6919_v28, 9  ;;  %v7786_v32 = vld [vmem:[%s7865_s8 + $0xc8] sm:$0x1] }
 0x187   : > { %v5643_v61 = vrot.slane %v5642_v1, 4  ;;  %v9926_v11 = vpop.f32.mrf.mxu0  ;;  %v5638_v43 = vsel %vm7920_vm4, %v5633_v63, %v5637_v7  ;;  %v4539_v59 = vsel %vm8175_vm7, %v6934_v33, %v4538_v8  ;;  %v4540_v29 = vrot.slane %v4538_v8, 4 }
 0x188   : > { %v4545_v56 = vrot.slane %v7785_v15, 5  ;;  %v9933_v51 = vpop.f32.mrf.mxu1  ;;  %v4548_v26 = vrot.slane %v7786_v32, 5  ;;  %v9940_v28 = vadd.f32 %v9737_v19, %v9406_v13  ;;  %v6936_v63 = vrot.slane %v6920_v48, 9  ;;  %v11170_v32 = vld [vmem:[#allocation6_spill] sm:$0xff] }
 0x189   : > { %v5648_v30 = vsel %vm7920_vm4, %v5643_v61, %v5647_v18  ;;  %v2713_v7 = vpop.f32.mrf.mxu0  ;;  %v4542_v1 = vsel %vm8175_vm7, %v4540_v29, %v4541_v57  ;;  %v7787_v18 = vld [vmem:[%s7865_s8 + $0xd0] sm:$0xf]  ;;  %v7788_v61 = vld [vmem:[%s7865_s8 + $0xd4] sm:$0x1]  ;;  %v9952_v13 = vadd.f32 %v9746_v62, %v9409_v58  ;;  %v9959_v48 = vadd.f32 %v9757_v27, %v9417_v39 }
 0x18a   : > { %v7064_v38 = vcombine.low %v5638_v43, %v5648_v30  ;;  %v4546_v33 = vsel %vm8175_vm7, %v6935_v31, %v4545_v56  ;;  %v4547_v45 = vrot.slane %v4545_v56, 4  ;;  %v9946_v8 = vpop.f32.mrf.mxu1  ;;  %v6950_v47 = vcombine.low %v4539_v59, %v4542_v1  ;;  %v11168_v31 = vld [vmem:[#allocation14_spill] sm:$0xff]  ;;  %v11169_v59 = vld [vmem:[#allocation5_spill] sm:$0xff] }
 0x18b   : > { %v4552_v36 = vrot.slane %v7787_v18, 5  ;;  %v4555_v15 = vrot.slane %v7788_v61, 5  ;;  %v7504_v19 = vpop.f32.mrf.mxu0  ;;  %v9963_v43 = vadd.f32 %v9779_v53, %v11168_v31  ;;  %v2070_v29 = vadd.f32 %v11169_v59, %v9455_v16  ;;  %v11171_v53 = vld [vmem:[#allocation7_spill] sm:$0xff]  ;;  %v11172_v16 = vld [vmem:[#allocation8_spill] sm:$0xff] }
 0x18c   : > { %7688 = vmatmul.mubr.msk.bf16.gmra.mxu1 %vm778_vm1, %v7064_v38  ;;  %v4549_v57 = vsel %vm8175_vm7, %v4547_v45, %v4548_v26  ;;  %v9967_v56 = vpop.f32.mrf.mxu1  ;;  %7650 = vmatmul.mubr.msk.bf16.gmra.mxu0 %vm778_vm1, %v6950_v47  ;;  %v2068_v39 = vadd.f32 %v11170_v32, %v9468_v17  ;;  %v2071_v38 = vadd.f32 %v11171_v53, %v9471_v25  ;;  %v11173_v45 = vld [vmem:[#allocation9_spill] sm:$0xff]  ;;  %v11175_v25 = vld [vmem:[#allocation11_spill] sm:$0xff] }
 0x18d   : > { %v6951_v58 = vcombine.low %v4546_v33, %v4549_v57  ;;  %v4553_v62 = vsel %vm8175_vm7, %v6936_v63, %v4552_v36  ;;  %v4554_v30 = vrot.slane %v4552_v36, 4  ;;  %v2716_v27 = vpop.f32.mrf.mxu0  ;;  %v9975_v26 = vadd.f32 %v9790_v10, %v2070_v29  ;;  %v11174_v10 = vld [vmem:[#allocation10_spill] sm:$0xff]  ;;  %v11177_v29 = vld [vmem:[#allocation12_spill] sm:$0xff]  ;;  %v11180_v32 = vld [vmem:[#allocation35_spill] sm:$0xff] }
 0x18e   : > { %v2069_v1 = vadd.f32 %v11172_v16, %v9486_v14  ;;  %v2074_v33 = vadd.f32 %v11173_v45, %v9526_v22  ;;  %v9983_v47 = vpop.f32.mrf.mxu1  ;;  %v2792_v63 = vadd.f32 %v9798_v42, %v2068_v39  ;;  %v2072_v18 = vadd.f32 %v11174_v10, %v9542_v4  ;;  %v11183_v53 = vld [vmem:[#allocation17_spill] sm:$0xff] }
 0x18f   : > { %7653 = vmatprep.mubr.msk.bf16.mxu0 %vm778_vm1, %v6951_v58  ;;  %v4556_v17 = vsel %vm8175_vm7, %v4554_v30, %v4555_v15  ;;  %v2075_v36 = vadd.f32 %v11175_v25, %v9546_v20  ;;  %v7507_v61 = vpop.f32.mrf.mxu0  ;;  %v2795_v57 = vadd.f32 %v9807_v24, %v2071_v38  ;;  %v11176_v15 = vld [vmem:[#allocation28_spill] sm:$0xff]  ;;  %v11178_v58 = vld [vmem:[#allocation13_spill] sm:$0xff] }
 0x190   : > { %v6952_v14 = vcombine.low %v4553_v62, %v4556_v17  ;;  %v2793_v22 = vadd.f32 %v9814_v55, %v2069_v1  ;;  %v2798_v31 = vadd.f32 %v9829_v2, %v2074_v33  ;;  %v9996_v59 = vpop.f32.mrf.mxu1  ;;  %v2796_v44 = vadd.f32 %v9841_v50, %v2072_v18  ;;  %v11179_v62 = vld [vmem:[#allocation15_spill] sm:$0xff]  ;;  %v11181_v55 = vld [vmem:[#allocation16_spill] sm:$0xff]  ;;  %v11184_v50 = vld [vmem:[#allocation18_spill] sm:$0xff] }
 0x191   : > { %v2799_v42 = vadd.f32 %v9860_v35, %v2075_v36  ;;  %v2073_v4 = vadd.f32 %v11177_v29, %v11176_v15  ;;  %v2078_v20 = vadd.f32 %v11178_v58, %v9605_v12  ;;  %v2729_v30 = vpop.f32.mrf.mxu0  ;;  %v2076_v24 = vadd.f32 %v11179_v62, %v9616_v41  ;;  %v11182_v2 = vld [vmem:[#allocation36_spill] sm:$0xff]  ;;  %v11185_v12 = vld [vmem:[#allocation19_spill] sm:$0xff] }
 0x192   : > { %v2079_v39 = vadd.f32 %v11181_v55, %v11180_v32  ;;  %v2077_v38 = vadd.f32 %v11183_v53, %v11182_v2  ;;  %v2082_v16 = vadd.f32 %v11184_v50, %v9675_v49  ;;  %v10012_v35 = vpop.f32.mrf.mxu1  ;;  %v2080_v33 = vadd.f32 %v11185_v12, %v9688_v54  ;;  %v11186_v41 = vld [vmem:[#allocation20_spill] sm:$0xff]  ;;  %v11187_v54 = vld [vmem:[#allocation21_spill] sm:$0xff]  ;;  %v11191_v62 = vld [vmem:[#allocation23_spill] sm:$0xff] }
 0x193   : > { %v2797_v1 = vadd.f32 %v9870_v52, %v2073_v4  ;;  %v2802_v45 = vadd.f32 %v9877_v9, %v2078_v20  ;;  %v2083_v17 = vadd.f32 %v11186_v41, %v9695_v37  ;;  %v7508_v10 = vpop.f32.mrf.mxu0  ;;  %v2800_v18 = vadd.f32 %v9885_v23, %v2076_v24  ;;  %v11188_v4 = vld [vmem:[#allocation48_spill] sm:$0xff]  ;;  %v11189_v37 = vld [vmem:[#allocation22_spill] sm:$0xff]  ;;  %v11195_v55 = vld [vmem:[#allocation25_spill] sm:$0xff] }
 0x194   : > { %v2803_v25 = vadd.f32 %v9894_v0, %v2079_v39  ;;  %v2801_v36 = vadd.f32 %v9905_v21, %v2077_v38  ;;  %v2806_v49 = vadd.f32 %v9926_v11, %v2082_v16  ;;  %v10024_v15 = vpop.f32.mrf.mxu1  ;;  %7654 = vmatmul.mubr.msk.bf16.gmra.mxu0 %vm778_vm1, %v6952_v14  ;;  %v2804_v52 = vadd.f32 %v2713_v7, %v2080_v33  ;;  %v11190_v23 = vld [vmem:[#allocation50_spill] sm:$0xff]  ;;  %v11192_v24 = vld [vmem:[#allocation52_spill] sm:$0xff]  ;;  %v11194_v11 = vld [vmem:[#allocation53_spill] sm:$0xff] }
 0x195   : > { %v2807_v9 = vadd.f32 %v7504_v19, %v2083_v17  ;;  %v2081_v29 = vadd.f32 %v11187_v54, %v9699_v6  ;;  %v2086_v58 = vadd.f32 %v11189_v37, %v11188_v4  ;;  %v2732_v20 = vpop.f32.mrf.mxu0  ;;  %v2084_v0 = vadd.f32 %v11191_v62, %v11190_v23  ;;  %v11193_v21 = vld [vmem:[#allocation24_spill] sm:$0xff]  ;;  %v11196_v2 = vld [vmem:[#allocation59_spill] sm:$0xff]  ;;  %v11197_v14 = vld [vmem:[#allocation26_spill] sm:$0xff] }
 0x196   : > { %v2087_v32 = vadd.f32 %v11193_v21, %v11192_v24  ;;  %v2085_v39 = vadd.f32 %v11195_v55, %v11194_v11  ;;  %v2090_v7 = vadd.f32 %v11197_v14, %v11196_v2  ;;  %v11198_v6 = vld [vmem:[#allocation2_spill] sm:$0xff]  ;;  %v11199_v50 = vld [vmem:[#allocation27_spill] sm:$0xff]  ;;  %v10041_v54 = vpop.f32.mrf.mxu1  ;;  %v11201_v62 = vld [vmem:[#allocation29_spill] sm:$0xff] }
 0x197   : > { %v2805_v19 = vadd.f32 %v2716_v27, %v2081_v29  ;;  %v2810_v53 = vadd.f32 %v7507_v61, %v2086_v58  ;;  %v7511_v38 = vpop.f32.mrf.mxu0  ;;  %v2088_v16 = vadd.f32 %v11199_v50, %v11198_v6  ;;  %v2808_v12 = vadd.f32 %v2729_v30, %v2084_v0  ;;  %v11200_v23 = vld [vmem:[#allocation3_spill] sm:$0xff]  ;;  %v11202_v21 = vld [vmem:[#allocation4_spill] sm:$0xff]  ;;  %v11203_v11 = vld [vmem:[#allocation30_spill] sm:$0xff] }
 0x198   : > { %v2811_v33 = vadd.f32 %v7508_v10, %v2087_v32  ;;  %v2809_v41 = vadd.f32 %v2732_v20, %v2085_v39  ;;  %v2814_v17 = vadd.f32 %v7511_v38, %v2090_v7  ;;  %v2091_v24 = vadd.f32 %v11201_v62, %v11200_v23  ;;  %v11204_v27 = vld [vmem:[#allocation31_spill] sm:$0xff]  ;;  %v11205_v58 = vld [vmem:[#allocation32_spill] sm:$0xff]  ;;  %v11207_v0 = vld [vmem:[#allocation41_spill] sm:$0xff]  ;;  %v7554_v7 = vpop.f32.mrf.mxu1 }
 0x199   : > { %v2745_v4 = vpop.f32.mrf.mxu0  ;;  %v2089_v55 = vadd.f32 %v11203_v11, %v11202_v21  ;;  %v2094_v61 = vadd.f32 %v11204_v27, %v9900_v5  ;;  %v2092_v30 = vadd.f32 %v11205_v58, %v9912_v34  ;;  %v11206_v10 = vld [vmem:[#allocation40_spill] sm:$0xff]  ;;  %v3266_v32 = vadd.f32 %v11207_v0, %v9975_v26  ;;  %v11208_v39 = vld [vmem:[#allocation42_spill] sm:$0xff]  ;;  %v11209_v38 = vld [vmem:[#allocation43_spill] sm:$0xff] }
 0x19a   : > { %v2812_v37 = vadd.f32 %v2745_v4, %v2088_v16  ;;  %v2097_v20 = vadd.f32 %v11206_v10, %v9963_v43  ;;  %v10056_v2 = vadd.f32 %v11208_v39, %v2792_v63  ;;  %v10059_v6 = vadd.f32 %v11209_v38, %v2795_v57  ;;  %v11210_v50 = vld [vmem:[#allocation44_spill] sm:$0xff]  ;;  %v11211_v16 = vld [vmem:[#allocation45_spill] sm:$0xff]  ;;  %v11212_v23 = vld [vmem:[#allocation46_spill] sm:$0xff] }
 0x19b   : > { %v7512_v29 = vpop.f32.mrf.mxu0  ;;  %v10062_v5 = vadd.f32 %v11210_v50, %v2793_v22  ;;  %v10065_v4 = vadd.f32 %v11211_v16, %v2798_v31  ;;  %v10068_v43 = vadd.f32 %v11212_v23, %v2796_v44  ;;  %v11213_v62 = vld [vmem:[#allocation47_spill] sm:$0xff]  ;;  %v11214_v63 = vld [vmem:[#allocation49_spill] sm:$0xff]  ;;  %v11216_v27 = vld [vmem:[#allocation54_spill] sm:$0xff]  ;;  %v3252_v16 = vpop.f32.mrf.mxu1 }
 0x19c   : > { %v2815_v14 = vadd.f32 %v7512_v29, %v2091_v24  ;;  %v10071_v26 = vadd.f32 %v11213_v62, %v2799_v42  ;;  %v10074_v21 = vadd.f32 %v11214_v63, %v2797_v1  ;;  %v11215_v24 = vld [vmem:[#allocation51_spill] sm:$0xff]  ;;  %v10080_v22 = vadd.f32 %v11216_v27, %v2800_v18  ;;  %v11218_v58 = vld [vmem:[#allocation56_spill] sm:$0xff]  ;;  %v11219_v0 = vld [vmem:[#allocation57_spill] sm:$0xff] }
 0x19d   : > { %v2748_v34 = vpop.f32.mrf.mxu0  ;;  %v10077_v11 = vadd.f32 %v11215_v24, %v2802_v45  ;;  %v11217_v29 = vld [vmem:[#allocation55_spill] sm:$0xff]  ;;  %v10086_v10 = vadd.f32 %v11218_v58, %v2801_v36  ;;  %v10089_v42 = vadd.f32 %v11219_v0, %v2806_v49  ;;  %v11220_v39 = vld [vmem:[#allocation58_spill] sm:$0xff]  ;;  %v11221_v38 = vld [vmem:[#allocation60_spill] sm:$0xff] }
 0x19e   : > { %v2813_v57 = vadd.f32 %v2748_v34, %v2089_v55  ;;  %v10083_v31 = vadd.f32 %v11217_v29, %v2803_v25  ;;  %v10092_v1 = vadd.f32 %v11220_v39, %v2804_v52  ;;  %v10095_v45 = vadd.f32 %v11221_v38, %v2807_v9  ;;  %v11222_v55 = vld [vmem:[#allocation61_spill] sm:$0xff]  ;;  %v11223_v25 = vld [vmem:[#allocation62_spill] sm:$0xff]  ;;  %v11224_v36 = vld [vmem:[#allocation63_spill] sm:$0xff] }
 0x19f   : > { %v7515_v44 = vpop.f32.mrf.mxu0  ;;  %v10098_v50 = vadd.f32 %v11222_v55, %v2805_v19  ;;  %v10101_v34 = vadd.f32 %v11223_v25, %v2810_v53  ;;  %v10104_v23 = vadd.f32 %v11224_v36, %v2808_v12  ;;  %v11225_v62 = vld [vmem:[#allocation64_spill] sm:$0xff]  ;;  %v11226_v52 = vld [vmem:[#allocation65_spill] sm:$0xff]  ;;  %v10113_v9 = vadd.f32 %v9903_v60, %v2814_v17  ;;  %v11228_v60 = vld [vmem:[#allocation34_spill] sm:$0xff] }
 0x1a0   : > { %v2818_v18 = vadd.f32 %v7515_v44, %v2094_v61  ;;  %v10107_v49 = vadd.f32 %v11225_v62, %v2811_v33  ;;  %v10110_v24 = vadd.f32 %v11226_v52, %v2809_v41  ;;  %v10116_v19 = vadd.f32 %v9915_v3, %v2812_v37  ;;  %v11227_v12 = vld [vmem:[#allocation33_spill] sm:$0xff] }
 0x1a1   : > { %v2761_v63 = vpop.f32.mrf.mxu0  ;;  %v10119_v61 = vadd.f32 %v9933_v51, %v2815_v14  ;;  %v2095_v27 = vadd.f32 %v11227_v12, %v9920_v46  ;;  %v10124_v33 = vadd.f32 %v9946_v8, %v2813_v57  ;;  %v2093_v17 = vadd.f32 %v11228_v60, %v9924_v40  ;;  %v11229_v8 = vld [vmem:[#allocation37_spill] sm:$0xff]  ;;  %v11230_v40 = vld [vmem:[#allocation38_spill] sm:$0xff] }
 0x1a2   : > { %v2816_v53 = vadd.f32 %v2761_v63, %v2092_v30  ;;  %v10127_v29 = vadd.f32 %v9967_v56, %v2818_v18  ;;  %v7593_v3 = vpop.f32.mrf.mxu1  ;;  %v2098_v57 = vadd.f32 %v11229_v8, %v9940_v28  ;;  %v2096_v39 = vadd.f32 %v11230_v40, %v9952_v13  ;;  %v11231_v18 = vld [vmem:[#allocation39_spill] sm:$0xff] }
 0x1a3   : > { %v7516_v41 = vpop.f32.mrf.mxu0  ;;  %v2099_v25 = vadd.f32 %v11231_v18, %v9959_v48 }
 0x1a4   : > { %v2819_v58 = vadd.f32 %v7516_v41, %v2095_v27  ;;  %v10132_v37 = vadd.f32 %v9983_v47, %v2816_v53  ;;  %v4222_v14 = vpop.f32.mrf.mxu1 }
 0x1a5   : > { %v2764_v51 = vpop.f32.mrf.mxu0 }
 0x1a6   : > { %v2817_v30 = vadd.f32 %v2764_v51, %v2093_v17  ;;  %v10135_v46 = vadd.f32 %v9996_v59, %v2819_v58  ;;  %v7594_v47 = vpop.f32.mrf.mxu1 }
 0x1a7   : > { %v7519_v56 = vpop.f32.mrf.mxu0 }
 0x1a8   : > { %v10140_v44 = vadd.f32 %v10012_v35, %v2817_v30  ;;  %v2822_v0 = vadd.f32 %v7519_v56, %v2098_v57  ;;  %v4225_v35 = vpop.f32.mrf.mxu1 }
 0x1a9   : > { %v2777_v38 = vpop.f32.mrf.mxu0 }
 0x1aa   : > { %v2820_v55 = vadd.f32 %v2777_v38, %v2096_v39  ;;  %v10147_v59 = vadd.f32 %v10024_v15, %v2822_v0 }
 0x1ab   : > { %v7520_v36 = vpop.f32.mrf.mxu0 }
 0x1ac   : > { %v2823_v62 = vadd.f32 %v7520_v36, %v2099_v25  ;;  %v10150_v28 = vadd.f32 %v10041_v54, %v2820_v55 }
 0x1ad   : > { %v2780_v63 = vpop.f32.mrf.mxu0 }
 0x1ae   : > { %v2821_v52 = vadd.f32 %v2780_v63, %v2097_v20  ;;  %v10152_v53 = vadd.f32 %v7554_v7, %v2823_v62 }
 0x1af   : > { %v7559_v13 = vpop.f32.mrf.mxu0 }
 0x1b0   : > { %v3623_v12 = vadd.f32 %v7559_v13, %v3266_v32  ;;  %v10154_v27 = vadd.f32 %v3252_v16, %v2821_v52 }
 0x1b1   : > { %v7597_v41 = vpop.f32.mrf.mxu1  ;;  %v3494_v58 = vpop.f32.mrf.mxu0 }
 0x1b2   : > { %v3621_v48 = vadd.f32 %v3494_v58, %v10056_v2  ;;  %v10157_v15 = vadd.f32 %v7593_v3, %v3623_v12 }
 0x1b3   : > { %v4238_v60 = vpop.f32.mrf.mxu1  ;;  %v7560_v17 = vpop.f32.mrf.mxu0 }
 0x1b4   : > { %v3624_v54 = vadd.f32 %v7560_v17, %v10059_v6  ;;  %v10160_v51 = vadd.f32 %v4222_v14, %v3621_v48 }
 0x1b5   : > { %v7598_v30 = vpop.f32.mrf.mxu1  ;;  %v3497_v20 = vpop.f32.mrf.mxu0 }
 0x1b6   : > { %v3622_v7 = vadd.f32 %v3497_v20, %v10062_v5  ;;  %v10163_v8 = vadd.f32 %v7594_v47, %v3624_v54 }
 0x1b7   : > { %v4241_v32 = vpop.f32.mrf.mxu1  ;;  %v7563_v16 = vpop.f32.mrf.mxu0 }
 0x1b8   : > { %v3627_v57 = vadd.f32 %v7563_v16, %v10065_v4  ;;  %v10166_v56 = vadd.f32 %v4225_v35, %v3622_v7 }
 0x1b9   : > { %v3510_v2 = vpop.f32.mrf.mxu0 }
 0x1ba   : > { %v3625_v3 = vadd.f32 %v3510_v2, %v10068_v43  ;;  %v10169_v0 = vadd.f32 %v7597_v41, %v3627_v57  ;;  %v7601_v6 = vpop.f32.mrf.mxu1 }
 0x1bb   : > { %v7564_v14 = vpop.f32.mrf.mxu0 }
 0x1bc   : > { %v3628_v40 = vadd.f32 %v7564_v14, %v10071_v26  ;;  %v10172_v39 = vadd.f32 %v4238_v60, %v3625_v3  ;;  %v4254_v5 = vpop.f32.mrf.mxu1 }
 0x1bd   : > { %v3513_v38 = vpop.f32.mrf.mxu0 }
 0x1be   : > { %v3626_v47 = vadd.f32 %v3513_v38, %v10074_v21  ;;  %v10175_v55 = vadd.f32 %v7598_v30, %v3628_v40  ;;  %v7602_v4 = vpop.f32.mrf.mxu1 }
 0x1bf   : > { %v7567_v18 = vpop.f32.mrf.mxu0 }
 0x1c0   : > { %v3631_v25 = vadd.f32 %v7567_v18, %v10077_v11  ;;  %v10178_v36 = vadd.f32 %v4241_v32, %v3626_v47  ;;  %v4257_v43 = vpop.f32.mrf.mxu1 }
 0x1c1   : > { %v3526_v62 = vpop.f32.mrf.mxu0 }
 0x1c2   : > { %v3629_v35 = vadd.f32 %v3526_v62, %v10080_v22  ;;  %v10181_v63 = vadd.f32 %v7601_v6, %v3631_v25 }
 0x1c3   : > { %v7568_v26 = vpop.f32.mrf.mxu0  ;;  %v7605_v21 = vpop.f32.mrf.mxu1 }
 0x1c4   : > { %v3632_v52 = vadd.f32 %v7568_v26, %v10083_v31  ;;  %v10184_v13 = vadd.f32 %v4254_v5, %v3629_v35 }
 0x1c5   : > { %v3529_v12 = vpop.f32.mrf.mxu0  ;;  %v4270_v11 = vpop.f32.mrf.mxu1 }
 0x1c6   : > { %v3630_v41 = vadd.f32 %v3529_v12, %v10086_v10  ;;  %v10187_v58 = vadd.f32 %v7602_v4, %v3632_v52 }
 0x1c7   : > { %v7571_v48 = vpop.f32.mrf.mxu0  ;;  %v7606_v22 = vpop.f32.mrf.mxu1 }
 0x1c8   : > { %v3635_v60 = vadd.f32 %v7571_v48, %v10089_v42  ;;  %v10190_v17 = vadd.f32 %v4257_v43, %v3630_v41 }
 0x1c9   : > { %v3542_v54 = vpop.f32.mrf.mxu0  ;;  %v4273_v31 = vpop.f32.mrf.mxu1 }
 0x1ca   : > { %v3633_v30 = vadd.f32 %v3542_v54, %v10092_v1  ;;  %v10193_v20 = vadd.f32 %v7605_v21, %v3635_v60 }
 0x1cb   : > { %v7572_v7 = vpop.f32.mrf.mxu0 }
 0x1cc   : > { %v3636_v32 = vadd.f32 %v7572_v7, %v10095_v45  ;;  %v10196_v16 = vadd.f32 %v4270_v11, %v3633_v30 }
 0x1cd   : > { %v3545_v10 = vpop.f32.mrf.mxu0  ;;  %v7609_v42 = vpop.f32.mrf.mxu1 }
 0x1ce   : > { %v3634_v57 = vadd.f32 %v3545_v10, %v10098_v50  ;;  %v10199_v2 = vadd.f32 %v7606_v22, %v3636_v32 }
 0x1cf   : > { %v7575_v3 = vpop.f32.mrf.mxu0  ;;  %v4286_v1 = vpop.f32.mrf.mxu1 }
 0x1d0   : > { %v3639_v6 = vadd.f32 %v7575_v3, %v10101_v34  ;;  %v10202_v14 = vadd.f32 %v4273_v31, %v3634_v57 }
 0x1d1   : > { %v3558_v40 = vpop.f32.mrf.mxu0  ;;  %v7610_v45 = vpop.f32.mrf.mxu1 }
 0x1d2   : > { %v3637_v5 = vadd.f32 %v3558_v40, %v10104_v23  ;;  %v10205_v38 = vadd.f32 %v7609_v42, %v3639_v6 }
 0x1d3   : > { %v7576_v47 = vpop.f32.mrf.mxu0  ;;  %v4289_v50 = vpop.f32.mrf.mxu1 }
 0x1d4   : > { %v3640_v4 = vadd.f32 %v7576_v47, %v10107_v49  ;;  %v10208_v18 = vadd.f32 %v4286_v1, %v3637_v5 }
 0x1d5   : > { %v3561_v25 = vpop.f32.mrf.mxu0  ;;  %v7613_v34 = vpop.f32.mrf.mxu1 }
 0x1d6   : > { %v3638_v43 = vadd.f32 %v3561_v25, %v10110_v24  ;;  %v10211_v62 = vadd.f32 %v7610_v45, %v3640_v4 }
 0x1d7   : > { %v7579_v35 = vpop.f32.mrf.mxu0  ;;  %v4302_v23 = vpop.f32.mrf.mxu1 }
 0x1d8   : > { %v3643_v26 = vadd.f32 %v7579_v35, %v10113_v9  ;;  %v10214_v52 = vadd.f32 %v4289_v50, %v3638_v43 }
 0x1d9   : > { %v3574_v21 = vpop.f32.mrf.mxu0  ;;  %v7614_v49 = vpop.f32.mrf.mxu1 }
 0x1da   : > { %v3641_v12 = vadd.f32 %v3574_v21, %v10116_v19  ;;  %v10217_v41 = vadd.f32 %v7613_v34, %v3643_v26 }
 0x1db   : > { %v7580_v11 = vpop.f32.mrf.mxu0  ;;  %v4305_v24 = vpop.f32.mrf.mxu1 }
 0x1dc   : > { %v3644_v48 = vadd.f32 %v7580_v11, %v10119_v61  ;;  %v10220_v60 = vadd.f32 %v4302_v23, %v3641_v12 }
 0x1dd   : > { %v3577_v22 = vpop.f32.mrf.mxu0 }
 0x1de   : > { %v3642_v54 = vadd.f32 %v3577_v22, %v10124_v33  ;;  %v10223_v30 = vadd.f32 %v7614_v49, %v3644_v48 }
 0x1df   : > { %v7583_v9 = vpop.f32.mrf.mxu0  ;;  %v7617_v31 = vpop.f32.mrf.mxu1 }
 0x1e0   : > { %v3647_v7 = vadd.f32 %v7583_v9, %v10127_v29  ;;  %v10226_v32 = vadd.f32 %v4305_v24, %v3642_v54 }
 0x1e1   : > { %v3590_v19 = vpop.f32.mrf.mxu0  ;;  %v4318_v10 = vpop.f32.mrf.mxu1 }
 0x1e2   : > { %v3645_v57 = vadd.f32 %v3590_v19, %v10132_v37  ;;  %v10229_v42 = vadd.f32 %v7617_v31, %v3647_v7 }
 0x1e3   : > { %v7584_v61 = vpop.f32.mrf.mxu0  ;;  %v7618_v3 = vpop.f32.mrf.mxu1 }
 0x1e4   : > { %v3648_v6 = vadd.f32 %v7584_v61, %v10135_v46  ;;  %v10232_v1 = vadd.f32 %v4318_v10, %v3645_v57 }
 0x1e5   : > { %v3593_v33 = vpop.f32.mrf.mxu0  ;;  %v4321_v40 = vpop.f32.mrf.mxu1 }
 0x1e6   : > { %v3646_v5 = vadd.f32 %v3593_v33, %v10140_v44  ;;  %v10235_v45 = vadd.f32 %v7618_v3, %v3648_v6 }
 0x1e7   : > { %v7587_v29 = vpop.f32.mrf.mxu0 }
 0x1e8   : > { %v3651_v47 = vadd.f32 %v7587_v29, %v10147_v59  ;;  %v10238_v4 = vadd.f32 %v4321_v40, %v3646_v5 }
 0x1e9   : > { %v3606_v37 = vpop.f32.mrf.mxu0  ;;  %v7621_v50 = vpop.f32.mrf.mxu1 }
 0x1ea   : > { %v3649_v25 = vadd.f32 %v3606_v37, %v10150_v28  ;;  %v10241_v46 = vadd.f32 %v7621_v50, %v3651_v47 }
 0x1eb   : > { %v7588_v43 = vpop.f32.mrf.mxu0  ;;  %v4334_v34 = vpop.f32.mrf.mxu1 }
 0x1ec   : > { %v3652_v35 = vadd.f32 %v7588_v43, %v10152_v53  ;;  %v10244_v44 = vadd.f32 %v4334_v34, %v3649_v25 }
 0x1ed   : > { %v3609_v26 = vpop.f32.mrf.mxu0  ;;  %v7622_v23 = vpop.f32.mrf.mxu1 }
 0x1ee   : > { %v3650_v21 = vadd.f32 %v3609_v26, %v10154_v27  ;;  %v10247_v12 = vadd.f32 %v7622_v23, %v3652_v35 }
 0x1ef   : > { %v4337_v59 = vpop.f32.mrf.mxu1 }
 0x1f0   : > { %v10250_v49 = vadd.f32 %v4337_v59, %v3650_v21 }
 0x1f3   : > { %v10257_v28 = vpop.f32.mrf.mxu1 }
 0x1f4   : > { %v7151_v53 = vpack.c.bf16 %v10257_v28, %v10257_v28  ;;  %v6073_v9 = vsel %vm5010_vm9, %v10257_v28, 0.0 }
 0x1f5   : > { %v10261_v27 = vpop.f32.mrf.mxu1 }
 0x1f6   : > { %6040 = vst.msk [vmem:[%s10255_s18 + $0x8] sm:$0xf] %vm4977_vm8, %v7151_v53  ;;  %v7149_v11 = vpack.c.bf16 %v10261_v27, %v10261_v27  ;;  %v6070_v24 = vsel %vm5010_vm9, %v10261_v27, 0.0 }
 0x1f7   : > { %v10267_v48 = vpop.f32.mrf.mxu1 }
 0x1f8   : > { %6038 = vst.msk [vmem:[%s10255_s18] sm:$0xf] %vm4977_vm8, %v7149_v11  ;;  %v7152_v22 = vpack.c.bf16 %v10267_v48, %v10267_v48  ;;  %v6075_v57 = vsel %vm5010_vm9, %v10267_v48, 0.0 }
 0x1f9   : > { %v10275_v54 = vpop.f32.mrf.mxu1 }
 0x1fa   : > { %6041 = vst.msk [vmem:[%s10255_s18 + $0xc] sm:$0xf] %vm4977_vm8, %v7152_v22  ;;  %v7150_v31 = vpack.c.bf16 %v10275_v54, %v10275_v54  ;;  %v6071_v7 = vsel %vm5010_vm9, %v10275_v54, 0.0 }
 0x1fb   : > { %v6072_v19 = vadd.f32 %v6071_v7, %v6070_v24 }
 0x1fc   : > { %v7627_v10 = vpop.f32.mrf.mxu0  ;;  %6039 = vst.msk [vmem:[%s10255_s18 + $0x4] sm:$0xf] %vm4977_vm8, %v7150_v31 }
 0x1fd   : > { %v10290_v61 = vadd.f32 %v7627_v10, %v10157_v15  ;;  %v6074_v3 = vadd.f32 %v6073_v9, %v6072_v19 }
 0x1fe   : > { %v4690_v6 = vpop.f32.mrf.mxu0  ;;  %v10297_v33 = vpop.f32.mrf.mxu1 }
 0x1ff   : > { %v7119_v40 = vpack.c.bf16 %v10290_v61, %v10290_v61  ;;  %v10302_v5 = vadd.f32 %v4690_v6, %v10160_v51  ;;  %v7155_v15 = vpack.c.bf16 %v10297_v33, %v10297_v33  ;;  %v6076_v29 = vadd.f32 %v6075_v57, %v6074_v3 }
 0x200   : > { %v7628_v47 = vpop.f32.mrf.mxu0  ;;  %v10308_v37 = vpop.f32.mrf.mxu1  ;;  %v6081_v24 = vsel %vm5010_vm9, %v10297_v33, 0.0  ;;  %v5014_v19 = vsel %vm5010_vm9, %v10290_v61, 0.0 }
 0x201   : > { %4980 = vst.msk [vmem:[%s10295_s23 + $0x8] sm:$0xf] %vm4977_vm8, %v7119_v40  ;;  %v7117_v50 = vpack.c.bf16 %v10302_v5, %v10302_v5  ;;  %v10313_v25 = vadd.f32 %v7628_v47, %v10163_v8  ;;  %6044 = vst.msk [vmem:[%s10255_s18 + $0x18] sm:$0xf] %vm4977_vm8, %v7155_v15  ;;  %v7153_v51 = vpack.c.bf16 %v10308_v37, %v10308_v37  ;;  %v6077_v43 = vsel %vm5010_vm9, %v10308_v37, 0.0 }
 0x202   : > { %v4693_v34 = vpop.f32.mrf.mxu0  ;;  %v6078_v35 = vadd.f32 %v6077_v43, %v6076_v29  ;;  %v10323_v26 = vpop.f32.mrf.mxu1  ;;  %v5011_v59 = vsel %vm5010_vm9, %v10302_v5, 0.0 }
 0x203   : > { %4978 = vst.msk [vmem:[%s10295_s23] sm:$0xf] %vm4977_vm8, %v7117_v50  ;;  %v7120_v8 = vpack.c.bf16 %v10313_v25, %v10313_v25  ;;  %v10328_v23 = vadd.f32 %v4693_v34, %v10166_v56  ;;  %6042 = vst.msk [vmem:[%s10255_s18 + $0x10] sm:$0xf] %vm4977_vm8, %v7153_v51  ;;  %v7156_v21 = vpack.c.bf16 %v10323_v26, %v10323_v26  ;;  %v6083_v10 = vsel %vm5010_vm9, %v10323_v26, 0.0 }
 0x204   : > { %v10338_v53 = vpop.f32.mrf.mxu1  ;;  %v5016_v47 = vsel %vm5010_vm9, %v10313_v25, 0.0 }
 0x205   : > { %4981 = vst.msk [vmem:[%s10295_s23 + $0xc] sm:$0xf] %vm4977_vm8, %v7120_v8  ;;  %v7118_v11 = vpack.c.bf16 %v10328_v23, %v10328_v23  ;;  %v5012_v56 = vsel %vm5010_vm9, %v10328_v23, 0.0  ;;  %6045 = vst.msk [vmem:[%s10255_s18 + $0x1c] sm:$0xf] %vm4977_vm8, %v7156_v21  ;;  %v7154_v22 = vpack.c.bf16 %v10338_v53, %v10338_v53  ;;  %v6079_v9 = vsel %vm5010_vm9, %v10338_v53, 0.0 }
 0x206   : > { %v5013_v31 = vadd.f32 %v5012_v56, %v5011_v59  ;;  %v6080_v7 = vadd.f32 %v6079_v9, %v6078_v35 }
 0x207   : > { %4979 = vst.msk [vmem:[%s10295_s23 + $0x4] sm:$0xf] %vm4977_vm8, %v7118_v11  ;;  %6043 = vst.msk [vmem:[%s10255_s18 + $0x14] sm:$0xf] %vm4977_vm8, %v7154_v22 }
 0x208   : > { %v6082_v57 = vadd.f32 %v6081_v24, %v6080_v7  ;;  %v5015_v3 = vadd.f32 %v5014_v19, %v5013_v31 }
 0x209   : > { %v10360_v6 = vpop.f32.mrf.mxu1 }
 0x20a   : > { %v7159_v40 = vpack.c.bf16 %v10360_v6, %v10360_v6  ;;  %v6084_v29 = vadd.f32 %v6083_v10, %v6082_v57  ;;  %v5017_v8 = vadd.f32 %v5016_v47, %v5015_v3  ;;  %v6089_v3 = vsel %vm5010_vm9, %v10360_v6, 0.0 }
 0x20b   : > { %v10369_v51 = vpop.f32.mrf.mxu1 }
 0x20c   : > { %v7631_v15 = vpop.f32.mrf.mxu0  ;;  %6048 = vst.msk [vmem:[%s10255_s18 + $0x28] sm:$0xf] %vm4977_vm8, %v7159_v40  ;;  %v7157_v43 = vpack.c.bf16 %v10369_v51, %v10369_v51  ;;  %v6085_v34 = vsel %vm5010_vm9, %v10369_v51, 0.0 }
 0x20d   : > { %v10367_v50 = vadd.f32 %v7631_v15, %v10169_v0  ;;  %v6086_v59 = vadd.f32 %v6085_v34, %v6084_v29  ;;  %v10382_v11 = vpop.f32.mrf.mxu1 }
 0x20e   : > { %v4706_v35 = vpop.f32.mrf.mxu0  ;;  %6046 = vst.msk [vmem:[%s10255_s18 + $0x20] sm:$0xf] %vm4977_vm8, %v7157_v43  ;;  %v7160_v56 = vpack.c.bf16 %v10382_v11, %v10382_v11 }
 0x20f   : > { %v7123_v21 = vpack.c.bf16 %v10367_v50, %v10367_v50  ;;  %v10380_v0 = vadd.f32 %v4706_v35, %v10172_v39  ;;  %v10397_v31 = vpop.f32.mrf.mxu1  ;;  %v5022_v35 = vsel %vm5010_vm9, %v10367_v50, 0.0 }
 0x210   : > { %v7632_v24 = vpop.f32.mrf.mxu0  ;;  %6049 = vst.msk [vmem:[%s10255_s18 + $0x2c] sm:$0xf] %vm4977_vm8, %v7160_v56  ;;  %v7158_v19 = vpack.c.bf16 %v10397_v31, %v10397_v31  ;;  %v6087_v10 = vsel %vm5010_vm9, %v10397_v31, 0.0 }
 0x211   : > { %4984 = vst.msk [vmem:[%s10295_s23 + $0x18] sm:$0xf] %vm4977_vm8, %v7123_v21  ;;  %v7121_v22 = vpack.c.bf16 %v10380_v0, %v10380_v0  ;;  %v5018_v39 = vsel %vm5010_vm9, %v10380_v0, 0.0  ;;  %v10395_v9 = vadd.f32 %v7632_v24, %v10175_v55  ;;  %v6088_v40 = vadd.f32 %v6087_v10, %v6086_v59 }
 0x212   : > { %v5019_v7 = vadd.f32 %v5018_v39, %v5017_v8  ;;  %v4709_v57 = vpop.f32.mrf.mxu0  ;;  %6047 = vst.msk [vmem:[%s10255_s18 + $0x24] sm:$0xf] %vm4977_vm8, %v7158_v19 }
 0x213   : > { %4982 = vst.msk [vmem:[%s10295_s23 + $0x10] sm:$0xf] %vm4977_vm8, %v7121_v22  ;;  %v7124_v55 = vpack.c.bf16 %v10395_v9, %v10395_v9  ;;  %v10412_v15 = vadd.f32 %v4709_v57, %v10178_v36  ;;  %v6090_v43 = vadd.f32 %v6089_v3, %v6088_v40  ;;  %v6091_v36 = vsel %vm5010_vm9, %v10382_v11, 0.0 }
 0x214   : > { %v5024_v39 = vsel %vm5010_vm9, %v10395_v9, 0.0 }
 0x215   : > { %4985 = vst.msk [vmem:[%s10295_s23 + $0x1c] sm:$0xf] %vm4977_vm8, %v7124_v55  ;;  %v7122_v29 = vpack.c.bf16 %v10412_v15, %v10412_v15  ;;  %v5020_v47 = vsel %vm5010_vm9, %v10412_v15, 0.0  ;;  %v6092_v22 = vadd.f32 %v6091_v36, %v6090_v43 }
 0x216   : > { %v5021_v34 = vadd.f32 %v5020_v47, %v5019_v7 }
 0x217   : > { %4983 = vst.msk [vmem:[%s10295_s23 + $0x14] sm:$0xf] %vm4977_vm8, %v7122_v29 }
 0x218   : > { %v5023_v8 = vadd.f32 %v5022_v35, %v5021_v34  ;;  %v10428_v21 = vpop.f32.mrf.mxu1 }
 0x219   : > { %v7635_v59 = vpop.f32.mrf.mxu0  ;;  %v7163_v56 = vpack.c.bf16 %v10428_v21, %v10428_v21 }
 0x21a   : > { %v10433_v24 = vadd.f32 %v7635_v59, %v10181_v63  ;;  %v10437_v7 = vpop.f32.mrf.mxu1  ;;  %v5025_v3 = vadd.f32 %v5024_v39, %v5023_v8 }
 0x21b   : > { %v4722_v19 = vpop.f32.mrf.mxu0  ;;  %6052 = vst.msk [vmem:[%s10255_s18 + $0x38] sm:$0xf] %vm4977_vm8, %v7163_v56  ;;  %v7161_v57 = vpack.c.bf16 %v10437_v7, %v10437_v7  ;;  %v6093_v63 = vsel %vm5010_vm9, %v10437_v7, 0.0 }
 0x21c   : > { %v7127_v10 = vpack.c.bf16 %v10433_v24, %v10433_v24  ;;  %v10448_v55 = vadd.f32 %v4722_v19, %v10184_v13  ;;  %v10450_v40 = vpop.f32.mrf.mxu1  ;;  %v6094_v47 = vadd.f32 %v6093_v63, %v6092_v22  ;;  %v6097_v22 = vsel %vm5010_vm9, %v10428_v21, 0.0 }
 0x21d   : > { %v7636_v29 = vpop.f32.mrf.mxu0  ;;  %6050 = vst.msk [vmem:[%s10255_s18 + $0x30] sm:$0xf] %vm4977_vm8, %v7161_v57  ;;  %v7164_v43 = vpack.c.bf16 %v10450_v40, %v10450_v40  ;;  %v6099_v57 = vsel %vm5010_vm9, %v10450_v40, 0.0 }
 0x21e   : > { %4988 = vst.msk [vmem:[%s10295_s23 + $0x28] sm:$0xf] %vm4977_vm8, %v7127_v10  ;;  %v10459_v34 = vadd.f32 %v7636_v29, %v10187_v58  ;;  %v7125_v13 = vpack.c.bf16 %v10448_v55, %v10448_v55  ;;  %v5026_v35 = vsel %vm5010_vm9, %v10448_v55, 0.0  ;;  %v10465_v36 = vpop.f32.mrf.mxu1 }
 0x21f   : > { %v4725_v8 = vpop.f32.mrf.mxu0  ;;  %v5027_v59 = vadd.f32 %v5026_v35, %v5025_v3  ;;  %6053 = vst.msk [vmem:[%s10255_s18 + $0x3c] sm:$0xf] %vm4977_vm8, %v7164_v43  ;;  %v7162_v58 = vpack.c.bf16 %v10465_v36, %v10465_v36  ;;  %v6095_v39 = vsel %vm5010_vm9, %v10465_v36, 0.0 }
 0x220   : > { %11232 = vst [vmem:[#allocation14_spill] sm:$0xff] %v10459_v34  ;;  %v7128_v56 = vpack.c.bf16 %v10459_v34, %v10459_v34  ;;  %4986 = vst.msk [vmem:[%s10295_s23 + $0x20] sm:$0xf] %vm4977_vm8, %v7125_v13  ;;  %v10480_v19 = vadd.f32 %v4725_v8, %v10190_v17  ;;  %v6096_v10 = vadd.f32 %v6095_v39, %v6094_v47  ;;  %v5030_v17 = vsel %vm5010_vm9, %v10433_v24, 0.0 }
 0x221   : > { %6051 = vst.msk [vmem:[%s10255_s18 + $0x34] sm:$0xf] %vm4977_vm8, %v7162_v58  ;;  %v5032_v58 = vsel %vm5010_vm9, %v10459_v34, 0.0 }
 0x222   : > { %4989 = vst.msk [vmem:[%s10295_s23 + $0x2c] sm:$0xf] %vm4977_vm8, %v7128_v56  ;;  %v7126_v63 = vpack.c.bf16 %v10480_v19, %v10480_v19  ;;  %v5028_v3 = vsel %vm5010_vm9, %v10480_v19, 0.0  ;;  %v6098_v29 = vadd.f32 %v6097_v22, %v6096_v10 }
 0x223   : > { %v5029_v43 = vadd.f32 %v5028_v3, %v5027_v59 }
 0x224   : > { %4987 = vst.msk [vmem:[%s10295_s23 + $0x24] sm:$0xf] %vm4977_vm8, %v7126_v63  ;;  %v10496_v13 = vpop.f32.mrf.mxu1  ;;  %v6100_v56 = vadd.f32 %v6099_v57, %v6098_v29 }
 0x225   : > { %v5031_v47 = vadd.f32 %v5030_v17, %v5029_v43  ;;  %v7167_v35 = vpack.c.bf16 %v10496_v13, %v10496_v13 }
 0x226   : > { %v7639_v8 = vpop.f32.mrf.mxu0  ;;  %v10505_v22 = vpop.f32.mrf.mxu1 }
 0x227   : > { %v10503_v59 = vadd.f32 %v7639_v8, %v10193_v20  ;;  %6056 = vst.msk [vmem:[%s10255_s18 + $0x48] sm:$0xf] %vm4977_vm8, %v7167_v35  ;;  %v7165_v39 = vpack.c.bf16 %v10505_v22, %v10505_v22  ;;  %v6101_v10 = vsel %vm5010_vm9, %v10505_v22, 0.0  ;;  %v5033_v57 = vadd.f32 %v5032_v58, %v5031_v47 }
 0x228   : > { %v4738_v63 = vpop.f32.mrf.mxu0  ;;  %v6102_v29 = vadd.f32 %v6101_v10, %v6100_v56  ;;  %v10518_v43 = vpop.f32.mrf.mxu1  ;;  %v6105_v58 = vsel %vm5010_vm9, %v10496_v13, 0.0 }
 0x229   : > { %11233 = vst [vmem:[#allocation5_spill] sm:$0xff] %v10503_v59  ;;  %v7131_v3 = vpack.c.bf16 %v10503_v59, %v10503_v59  ;;  %v10516_v20 = vadd.f32 %v4738_v63, %v10196_v16  ;;  %6054 = vst.msk [vmem:[%s10255_s18 + $0x40] sm:$0xf] %vm4977_vm8, %v7165_v39  ;;  %v7168_v17 = vpack.c.bf16 %v10518_v43, %v10518_v43 }
 0x22a   : > { %v7640_v35 = vpop.f32.mrf.mxu0  ;;  %v10533_v56 = vpop.f32.mrf.mxu1 }
 0x22b   : > { %11234 = vst [vmem:[#allocation6_spill] sm:$0xff] %v10516_v20  ;;  %4992 = vst.msk [vmem:[%s10295_s23 + $0x38] sm:$0xf] %vm4977_vm8, %v7131_v3  ;;  %v7129_v47 = vpack.c.bf16 %v10516_v20, %v10516_v20  ;;  %v5034_v16 = vsel %vm5010_vm9, %v10516_v20, 0.0  ;;  %v10531_v8 = vadd.f32 %v7640_v35, %v10199_v2  ;;  %v7166_v10 = vpack.c.bf16 %v10533_v56, %v10533_v56 }
 0x22c   : > { %v5035_v39 = vadd.f32 %v5034_v16, %v5033_v57  ;;  %6057 = vst.msk [vmem:[%s10255_s18 + $0x4c] sm:$0xf] %vm4977_vm8, %v7168_v17  ;;  %v6103_v63 = vsel %vm5010_vm9, %v10533_v56, 0.0  ;;  %v4741_v3 = vpop.f32.mrf.mxu0  ;;  %v6107_v57 = vsel %vm5010_vm9, %v10518_v43, 0.0 }
 0x22d   : > { %11235 = vst [vmem:[#allocation7_spill] sm:$0xff] %v10531_v8  ;;  %4990 = vst.msk [vmem:[%s10295_s23 + $0x30] sm:$0xf] %vm4977_vm8, %v7129_v47  ;;  %v7132_v2 = vpack.c.bf16 %v10531_v8, %v10531_v8  ;;  %v6104_v35 = vadd.f32 %v6103_v63, %v6102_v29  ;;  %v10548_v20 = vadd.f32 %v4741_v3, %v10202_v14  ;;  %v5038_v14 = vsel %vm5010_vm9, %v10503_v59, 0.0 }
 0x22e   : > { %6055 = vst.msk [vmem:[%s10255_s18 + $0x44] sm:$0xf] %vm4977_vm8, %v7166_v10 }
 0x22f   : > { %11236 = vst [vmem:[#allocation8_spill] sm:$0xff] %v10548_v20  ;;  %4993 = vst.msk [vmem:[%s10295_s23 + $0x3c] sm:$0xf] %vm4977_vm8, %v7132_v2  ;;  %v6106_v17 = vadd.f32 %v6105_v58, %v6104_v35  ;;  %v7130_v16 = vpack.c.bf16 %v10548_v20, %v10548_v20  ;;  %v5036_v47 = vsel %vm5010_vm9, %v10548_v20, 0.0  ;;  %v5040_v2 = vsel %vm5010_vm9, %v10531_v8, 0.0 }
 0x230   : > { %v5037_v34 = vadd.f32 %v5036_v47, %v5035_v39 }
 0x231   : > { %4991 = vst.msk [vmem:[%s10295_s23 + $0x34] sm:$0xf] %vm4977_vm8, %v7130_v16  ;;  %v10564_v10 = vpop.f32.mrf.mxu1  ;;  %v6108_v63 = vadd.f32 %v6107_v57, %v6106_v17 }
 0x232   : > { %v5039_v29 = vadd.f32 %v5038_v14, %v5037_v34  ;;  %v7171_v58 = vpack.c.bf16 %v10564_v10, %v10564_v10  ;;  %v7643_v3 = vpop.f32.mrf.mxu0 }
 0x233   : > { %v10571_v39 = vadd.f32 %v7643_v3, %v10205_v38  ;;  %v10573_v35 = vpop.f32.mrf.mxu1 }
 0x234   : > { %6060 = vst.msk [vmem:[%s10255_s18 + $0x58] sm:$0xf] %vm4977_vm8, %v7171_v58  ;;  %v7169_v34 = vpack.c.bf16 %v10573_v35, %v10573_v35  ;;  %v6109_v57 = vsel %vm5010_vm9, %v10573_v35, 0.0  ;;  %v4754_v17 = vpop.f32.mrf.mxu0  ;;  %v5041_v16 = vadd.f32 %v5040_v2, %v5039_v29 }
 0x235   : > { %11237 = vst [vmem:[#allocation9_spill] sm:$0xff] %v10571_v39  ;;  %v7135_v47 = vpack.c.bf16 %v10571_v39, %v10571_v39  ;;  %v6110_v14 = vadd.f32 %v6109_v57, %v6108_v63  ;;  %v10584_v38 = vadd.f32 %v4754_v17, %v10208_v18  ;;  %v10586_v3 = vpop.f32.mrf.mxu1 }
 0x236   : > { %6058 = vst.msk [vmem:[%s10255_s18 + $0x50] sm:$0xf] %vm4977_vm8, %v7169_v34  ;;  %v7172_v58 = vpack.c.bf16 %v10586_v3, %v10586_v3  ;;  %v7644_v8 = vpop.f32.mrf.mxu0  ;;  %v6113_v34 = vsel %vm5010_vm9, %v10564_v10, 0.0 }
 0x237   : > { %11238 = vst [vmem:[#allocation10_spill] sm:$0xff] %v10584_v38  ;;  %4996 = vst.msk [vmem:[%s10295_s23 + $0x48] sm:$0xf] %vm4977_vm8, %v7135_v47  ;;  %v7133_v29 = vpack.c.bf16 %v10584_v38, %v10584_v38  ;;  %v5042_v18 = vsel %vm5010_vm9, %v10584_v38, 0.0  ;;  %v10599_v63 = vadd.f32 %v7644_v8, %v10211_v62  ;;  %v10601_v2 = vpop.f32.mrf.mxu1 }
 0x238   : > { %v5043_v57 = vadd.f32 %v5042_v18, %v5041_v16  ;;  %6061 = vst.msk [vmem:[%s10255_s18 + $0x5c] sm:$0xf] %vm4977_vm8, %v7172_v58  ;;  %v7170_v17 = vpack.c.bf16 %v10601_v2, %v10601_v2  ;;  %v6111_v47 = vsel %vm5010_vm9, %v10601_v2, 0.0  ;;  %v4757_v59 = vpop.f32.mrf.mxu0  ;;  %v6115_v16 = vsel %vm5010_vm9, %v10586_v3, 0.0 }
 0x239   : > { %11239 = vst [vmem:[#allocation11_spill] sm:$0xff] %v10599_v63  ;;  %4994 = vst.msk [vmem:[%s10295_s23 + $0x40] sm:$0xf] %vm4977_vm8, %v7133_v29  ;;  %v7136_v62 = vpack.c.bf16 %v10599_v63, %v10599_v63  ;;  %v6112_v8 = vadd.f32 %v6111_v47, %v6110_v14  ;;  %v10616_v38 = vadd.f32 %v4757_v59, %v10214_v52  ;;  %v5046_v52 = vsel %vm5010_vm9, %v10571_v39, 0.0 }
 0x23a   : > { %6059 = vst.msk [vmem:[%s10255_s18 + $0x54] sm:$0xf] %vm4977_vm8, %v7170_v17 }
 0x23b   : > { %11240 = vst [vmem:[#allocation28_spill] sm:$0xff] %v10616_v38  ;;  %4997 = vst.msk [vmem:[%s10295_s23 + $0x4c] sm:$0xf] %vm4977_vm8, %v7136_v62  ;;  %v6114_v58 = vadd.f32 %v6113_v34, %v6112_v8  ;;  %v7134_v18 = vpack.c.bf16 %v10616_v38, %v10616_v38  ;;  %v5044_v29 = vsel %vm5010_vm9, %v10616_v38, 0.0  ;;  %v5048_v62 = vsel %vm5010_vm9, %v10599_v63, 0.0 }
 0x23c   : > { %v5045_v20 = vadd.f32 %v5044_v29, %v5043_v57 }
 0x23d   : > { %4995 = vst.msk [vmem:[%s10295_s23 + $0x44] sm:$0xf] %vm4977_vm8, %v7134_v18  ;;  %v6116_v17 = vadd.f32 %v6115_v16, %v6114_v58 }
 0x23e   : > { %v5047_v59 = vadd.f32 %v5046_v52, %v5045_v20  ;;  %v10632_v14 = vpop.f32.mrf.mxu1 }
 0x23f   : > { %v7175_v34 = vpack.c.bf16 %v10632_v14, %v10632_v14  ;;  %v7647_v47 = vpop.f32.mrf.mxu0 }
 0x240   : > { %v10639_v57 = vadd.f32 %v7647_v47, %v10217_v41  ;;  %v10641_v8 = vpop.f32.mrf.mxu1  ;;  %v5049_v18 = vadd.f32 %v5048_v62, %v5047_v59 }
 0x241   : > { %6064 = vst.msk [vmem:[%s10255_s18 + $0x68] sm:$0xf] %vm4977_vm8, %v7175_v34  ;;  %v7173_v20 = vpack.c.bf16 %v10641_v8, %v10641_v8  ;;  %v6117_v16 = vsel %vm5010_vm9, %v10641_v8, 0.0  ;;  %v4770_v58 = vpop.f32.mrf.mxu0 }
 0x242   : > { %11241 = vst [vmem:[#allocation12_spill] sm:$0xff] %v10639_v57  ;;  %v7139_v29 = vpack.c.bf16 %v10639_v57, %v10639_v57  ;;  %v6118_v52 = vadd.f32 %v6117_v16, %v6116_v17  ;;  %v10652_v41 = vadd.f32 %v4770_v58, %v10220_v60  ;;  %v10654_v47 = vpop.f32.mrf.mxu1 }
 0x243   : > { %6062 = vst.msk [vmem:[%s10255_s18 + $0x60] sm:$0xf] %vm4977_vm8, %v7173_v20  ;;  %v7176_v34 = vpack.c.bf16 %v10654_v47, %v10654_v47  ;;  %v7648_v63 = vpop.f32.mrf.mxu0  ;;  %v6121_v20 = vsel %vm5010_vm9, %v10632_v14, 0.0 }
 0x244   : > { %11242 = vst [vmem:[#allocation13_spill] sm:$0xff] %v10652_v41  ;;  %5000 = vst.msk [vmem:[%s10295_s23 + $0x58] sm:$0xf] %vm4977_vm8, %v7139_v29  ;;  %v7137_v59 = vpack.c.bf16 %v10652_v41, %v10652_v41  ;;  %v5050_v60 = vsel %vm5010_vm9, %v10652_v41, 0.0  ;;  %v10667_v17 = vadd.f32 %v7648_v63, %v10223_v30  ;;  %v10669_v62 = vpop.f32.mrf.mxu1 }
 0x245   : > { %v5051_v16 = vadd.f32 %v5050_v60, %v5049_v18  ;;  %6065 = vst.msk [vmem:[%s10255_s18 + $0x6c] sm:$0xf] %vm4977_vm8, %v7176_v34  ;;  %v7174_v58 = vpack.c.bf16 %v10669_v62, %v10669_v62  ;;  %v6119_v29 = vsel %vm5010_vm9, %v10669_v62, 0.0  ;;  %v4773_v39 = vpop.f32.mrf.mxu0  ;;  %v6123_v18 = vsel %vm5010_vm9, %v10654_v47, 0.0 }
 0x246   : > { %11243 = vst [vmem:[#allocation15_spill] sm:$0xff] %v10667_v17  ;;  %4998 = vst.msk [vmem:[%s10295_s23 + $0x50] sm:$0xf] %vm4977_vm8, %v7137_v59  ;;  %v7140_v30 = vpack.c.bf16 %v10667_v17, %v10667_v17  ;;  %v6120_v63 = vadd.f32 %v6119_v29, %v6118_v52  ;;  %v10684_v41 = vadd.f32 %v4773_v39, %v10226_v32  ;;  %v5054_v32 = vsel %vm5010_vm9, %v10639_v57, 0.0 }
 0x247   : > { %6063 = vst.msk [vmem:[%s10255_s18 + $0x64] sm:$0xf] %vm4977_vm8, %v7174_v58 }
 0x248   : > { %11244 = vst [vmem:[#allocation35_spill] sm:$0xff] %v10684_v41  ;;  %5001 = vst.msk [vmem:[%s10295_s23 + $0x5c] sm:$0xf] %vm4977_vm8, %v7140_v30  ;;  %v6122_v34 = vadd.f32 %v6121_v20, %v6120_v63  ;;  %v7138_v60 = vpack.c.bf16 %v10684_v41, %v10684_v41  ;;  %v5052_v59 = vsel %vm5010_vm9, %v10684_v41, 0.0  ;;  %v5056_v30 = vsel %vm5010_vm9, %v10667_v17, 0.0 }
 0x249   : > { %v5053_v38 = vadd.f32 %v5052_v59, %v5051_v16 }
 0x24a   : > { %4999 = vst.msk [vmem:[%s10295_s23 + $0x54] sm:$0xf] %vm4977_vm8, %v7138_v60  ;;  %v6124_v58 = vadd.f32 %v6123_v18, %v6122_v34 }
 0x24b   : > { %v5055_v39 = vadd.f32 %v5054_v32, %v5053_v38 }
 0x24c   : > { %v10700_v52 = vpop.f32.mrf.mxu1  ;;  %v7651_v29 = vpop.f32.mrf.mxu0 }
 0x24d   : > { %11245 = vst [vmem:[#allocation16_spill] sm:$0xff] %v10700_v52  ;;  %v7179_v20 = vpack.c.bf16 %v10700_v52, %v10700_v52  ;;  %v10707_v16 = vadd.f32 %v7651_v29, %v10229_v42  ;;  %v5057_v60 = vadd.f32 %v5056_v30, %v5055_v39 }
 0x24e   : > { %v10709_v63 = vpop.f32.mrf.mxu1  ;;  %v4786_v34 = vpop.f32.mrf.mxu0 }
 0x24f   : > { %6068 = vst.msk [vmem:[%s10255_s18 + $0x78] sm:$0xf] %vm4977_vm8, %v7179_v20  ;;  %v7177_v38 = vpack.c.bf16 %v10709_v63, %v10709_v63  ;;  %v6125_v18 = vsel %vm5010_vm9, %v10709_v63, 0.0  ;;  %v7143_v59 = vpack.c.bf16 %v10707_v16, %v10707_v16  ;;  %v10720_v42 = vadd.f32 %v4786_v34, %v10232_v1 }
 0x250   : > { %v6126_v32 = vadd.f32 %v6125_v18, %v6124_v58  ;;  %v10722_v29 = vpop.f32.mrf.mxu1  ;;  %v7652_v17 = vpop.f32.mrf.mxu0 }
 0x251   : > { %11246 = vst [vmem:[#allocation36_spill] sm:$0xff] %v10722_v29  ;;  %6066 = vst.msk [vmem:[%s10255_s18 + $0x70] sm:$0xf] %vm4977_vm8, %v7177_v38  ;;  %v7180_v20 = vpack.c.bf16 %v10722_v29, %v10722_v29  ;;  %v7141_v39 = vpack.c.bf16 %v10720_v42, %v10720_v42  ;;  %v5058_v58 = vsel %vm5010_vm9, %v10720_v42, 0.0  ;;  %v10735_v1 = vadd.f32 %v7652_v17, %v10235_v45 }
 0x252   : > { %5004 = vst.msk [vmem:[%s10295_s23 + $0x68] sm:$0xf] %vm4977_vm8, %v7143_v59  ;;  %v10737_v30 = vpop.f32.mrf.mxu1  ;;  %v6129_v38 = vsel %vm5010_vm9, %v10700_v52, 0.0  ;;  %v5059_v18 = vadd.f32 %v5058_v58, %v5057_v60  ;;  %v4789_v57 = vpop.f32.mrf.mxu0  ;;  %v6131_v60 = vsel %vm5010_vm9, %v10722_v29, 0.0 }
 0x253   : > { %6069 = vst.msk [vmem:[%s10255_s18 + $0x7c] sm:$0xf] %vm4977_vm8, %v7180_v20  ;;  %v7178_v34 = vpack.c.bf16 %v10737_v30, %v10737_v30  ;;  %v6127_v59 = vsel %vm5010_vm9, %v10737_v30, 0.0  ;;  %5002 = vst.msk [vmem:[%s10295_s23 + $0x60] sm:$0xf] %vm4977_vm8, %v7141_v39  ;;  %v7144_v45 = vpack.c.bf16 %v10735_v1, %v10735_v1  ;;  %v10752_v41 = vadd.f32 %v4789_v57, %v10238_v4 }
 0x254   : > { %v6128_v17 = vadd.f32 %v6127_v59, %v6126_v32  ;;  %v7655_v20 = vpop.f32.mrf.mxu0 }
 0x255   : > { %6067 = vst.msk [vmem:[%s10255_s18 + $0x74] sm:$0xf] %vm4977_vm8, %v7178_v34  ;;  %5005 = vst.msk [vmem:[%s10295_s23 + $0x6c] sm:$0xf] %vm4977_vm8, %v7144_v45  ;;  %v7142_v39 = vpack.c.bf16 %v10752_v41, %v10752_v41  ;;  %v5060_v52 = vsel %vm5010_vm9, %v10752_v41, 0.0  ;;  %v10765_v32 = vadd.f32 %v7655_v20, %v10241_v46  ;;  %v5062_v34 = vsel %vm5010_vm9, %v10707_v16, 0.0 }
 0x256   : > { %v6130_v58 = vadd.f32 %v6129_v38, %v6128_v17  ;;  %v5061_v4 = vadd.f32 %v5060_v52, %v5059_v18  ;;  %v4802_v57 = vpop.f32.mrf.mxu0  ;;  %v5064_v46 = vsel %vm5010_vm9, %v10735_v1, 0.0 }
 0x257   : > { %5003 = vst.msk [vmem:[%s10295_s23 + $0x64] sm:$0xf] %vm4977_vm8, %v7142_v39  ;;  %v7147_v38 = vpack.c.bf16 %v10765_v32, %v10765_v32  ;;  %v10774_v45 = vadd.f32 %v4802_v57, %v10244_v44 }
 0x258   : > { %v6132_v59 = vadd.f32 %v6131_v60, %v6130_v58  ;;  %v5063_v17 = vadd.f32 %v5062_v34, %v5061_v4  ;;  %v7656_v29 = vpop.f32.mrf.mxu0 }
 0x259   : > { %5008 = vst.msk [vmem:[%s10295_s23 + $0x78] sm:$0xf] %vm4977_vm8, %v7147_v38  ;;  %v7145_v18 = vpack.c.bf16 %v10774_v45, %v10774_v45  ;;  %v10783_v60 = vadd.f32 %v7656_v29, %v10247_v12  ;;  %v5066_v39 = vsel %vm5010_vm9, %v10774_v45, 0.0 }
 0x25a   : > { %v6133_v52 = vrot.slane %v6132_v59, 4  ;;  %v5065_v20 = vadd.f32 %v5064_v46, %v5063_v17  ;;  %v4805_v44 = vpop.f32.mrf.mxu0  ;;  %v5070_v46 = vsel %vm5010_vm9, %v10765_v32, 0.0 }
 0x25b   : > { %5006 = vst.msk [vmem:[%s10295_s23 + $0x70] sm:$0xf] %vm4977_vm8, %v7145_v18  ;;  %v7148_v4 = vpack.c.bf16 %v10783_v60, %v10783_v60  ;;  %v10792_v57 = vadd.f32 %v4805_v44, %v10250_v49  ;;  %v5072_v18 = vsel %vm5010_vm9, %v10783_v60, 0.0 }
 0x25c   : > { %v6134_v58 = vadd.f32 %v6133_v52, %v6132_v59  ;;  %v5067_v34 = vadd.f32 %v5066_v39, %v5065_v20 }
 0x25d   : > { %5009 = vst.msk [vmem:[%s10295_s23 + $0x7c] sm:$0xf] %vm4977_vm8, %v7148_v4  ;;  %v7146_v12 = vpack.c.bf16 %v10792_v57, %v10792_v57  ;;  %v5068_v29 = vsel %vm5010_vm9, %v10792_v57, 0.0 }
 0x25e   : > { %v6135_v38 = vrot.slane %v6134_v58, 2  ;;  %v5069_v59 = vadd.f32 %v5068_v29, %v5067_v34 }
 0x25f   : > { %5007 = vst.msk [vmem:[%s10295_s23 + $0x74] sm:$0xf] %vm4977_vm8, %v7146_v12 }
 0x260   : > { %v6136_v17 = vadd.f32 %v6135_v38, %v6134_v58  ;;  %v5071_v49 = vadd.f32 %v5070_v46, %v5069_v59 }
 0x262   : > { %v6137_v52 = vrot.slane %v6136_v17, 1  ;;  %v5073_v20 = vadd.f32 %v5072_v18, %v5071_v49 }
 0x264   : > { %v6138_v44 = vadd.f32 %v6137_v52, %v6136_v17  ;;  %v5074_v18 = vrot.slane %v5073_v20, 4 }
 0x266   : > { %6273 = vst.msk [vmem:[%s10812_s27] sm:$0x1] %vm5214_vm10, %v6138_v44  ;;  %v10816_v58 = vmul.f32 0.00390625, %v6138_v44 }
 0x268   : > { %v6140_v39 = vsub.f32 %v10261_v27, %v10816_v58  ;;  %v6141_v4 = vsub.f32 %v10275_v54, %v10816_v58  ;;  %v6142_v34 = vsub.f32 %v10257_v28, %v10816_v58  ;;  %v6143_v38 = vsub.f32 %v10267_v48, %v10816_v58 }
 0x269   : > { %v6144_v59 = vsub.f32 %v10308_v37, %v10816_v58  ;;  %v6145_v46 = vsub.f32 %v10338_v53, %v10816_v58  ;;  %v6146_v28 = vsub.f32 %v10297_v33, %v10816_v58  ;;  %v6147_v37 = vsub.f32 %v10323_v26, %v10816_v58 }
 0x26a   : > { %v6172_v12 = vmul.f32 %v6140_v39, %v6140_v39  ;;  %v6173_v29 = vmul.f32 %v6141_v4, %v6141_v4  ;;  %v6174_v17 = vmul.f32 %v6142_v34, %v6142_v34  ;;  %v6175_v49 = vmul.f32 %v6143_v38, %v6143_v38 }
 0x26b   : > { %v6176_v48 = vmul.f32 %v6144_v59, %v6144_v59  ;;  %v6177_v4 = vmul.f32 %v6145_v46, %v6145_v46  ;;  %v5075_v38 = vadd.f32 %v5074_v18, %v5073_v20  ;;  %v6149_v33 = vsub.f32 %v10397_v31, %v10816_v58 }
 0x26c   : > { %v6204_v27 = vsel %vm5010_vm9, %v6172_v12, 0.0  ;;  %v6205_v54 = vsel %vm5010_vm9, %v6173_v29, 0.0  ;;  %v6207_v44 = vsel %vm5010_vm9, %v6174_v17, 0.0  ;;  %v6209_v53 = vsel %vm5010_vm9, %v6175_v49, 0.0 }
 0x26d   : > { %v6206_v52 = vadd.f32 %v6205_v54, %v6204_v27  ;;  %v6148_v12 = vsub.f32 %v10369_v51, %v10816_v58  ;;  %v6178_v29 = vmul.f32 %v6146_v28, %v6146_v28  ;;  %v6211_v27 = vsel %vm5010_vm9, %v6176_v48, 0.0 }
 0x26e   : > { %v6179_v59 = vmul.f32 %v6147_v37, %v6147_v37  ;;  %v6213_v17 = vsel %vm5010_vm9, %v6177_v4, 0.0  ;;  %v5076_v46 = vrot.slane %v5075_v38, 2  ;;  %v6150_v49 = vsub.f32 %v10360_v6, %v10816_v58 }
 0x26f   : > { %v6208_v39 = vadd.f32 %v6207_v44, %v6206_v52  ;;  %v6180_v20 = vmul.f32 %v6148_v12, %v6148_v12  ;;  %v6215_v52 = vsel %vm5010_vm9, %v6178_v29, 0.0  ;;  %v6151_v28 = vsub.f32 %v10382_v11, %v10816_v58 }
 0x270   : > { %v5077_v18 = vadd.f32 %v5076_v46, %v5075_v38  ;;  %v6181_v48 = vmul.f32 %v6149_v33, %v6149_v33  ;;  %v6217_v44 = vsel %vm5010_vm9, %v6179_v59, 0.0  ;;  %v6152_v6 = vsub.f32 %v10437_v7, %v10816_v58 }
 0x271   : > { %v6210_v34 = vadd.f32 %v6209_v53, %v6208_v39  ;;  %v6182_v37 = vmul.f32 %v6150_v49, %v6150_v49  ;;  %v6219_v4 = vsel %vm5010_vm9, %v6180_v20, 0.0  ;;  %v6183_v38 = vmul.f32 %v6151_v28, %v6151_v28 }
 0x272   : > { %v5078_v39 = vrot.slane %v5077_v18, 1  ;;  %v6221_v12 = vsel %vm5010_vm9, %v6181_v48, 0.0  ;;  %v6155_v59 = vsub.f32 %v10450_v40, %v10816_v58  ;;  %v6158_v40 = vsub.f32 %v10496_v13, %v10816_v58 }
 0x273   : > { %v6212_v54 = vadd.f32 %v6211_v27, %v6210_v34  ;;  %v6153_v34 = vsub.f32 %v10465_v36, %v10816_v58  ;;  %v6154_v27 = vsub.f32 %v10428_v21, %v10816_v58  ;;  %v6223_v7 = vsel %vm5010_vm9, %v6182_v37, 0.0 }
 0x274   : > { %v5079_v11 = vadd.f32 %v5078_v39, %v5077_v18  ;;  %v6156_v36 = vsub.f32 %v10505_v22, %v10816_v58  ;;  %v6187_v18 = vmul.f32 %v6155_v59, %v6155_v59 }
 0x275   : > { %v6214_v26 = vadd.f32 %v6213_v17, %v6212_v54  ;;  %v6184_v54 = vmul.f32 %v6152_v6, %v6152_v6  ;;  %v6185_v17 = vmul.f32 %v6153_v34, %v6153_v34  ;;  %v6186_v49 = vmul.f32 %v6154_v27, %v6154_v27 }
 0x276   : > { %5215 = vst.msk [vmem:[%s10855_s30] sm:$0x1] %vm5214_vm10, %v5079_v11  ;;  %v6188_v48 = vmul.f32 %v6156_v36, %v6156_v36  ;;  %v6190_v34 = vmul.f32 %v6158_v40, %v6158_v40 }
 0x277   : > { %v6216_v51 = vadd.f32 %v6215_v52, %v6214_v26  ;;  %v6225_v26 = vsel %vm5010_vm9, %v6183_v38, 0.0  ;;  %v6227_v20 = vsel %vm5010_vm9, %v6184_v54, 0.0  ;;  %v10874_v52 = vmul.f32 0.00390625, %v5079_v11 }
 0x278   : > { %v6229_v28 = vsel %vm5010_vm9, %v6185_v17, 0.0  ;;  %v6231_v22 = vsel %vm5010_vm9, %v6186_v49, 0.0  ;;  %v6239_v59 = vsel %vm5010_vm9, %v6190_v34, 0.0 }
 0x279   : > { %v6218_v31 = vadd.f32 %v6217_v44, %v6216_v51  ;;  %v6157_v51 = vsub.f32 %v10533_v56, %v10816_v58  ;;  %v10888_v39 = vsub.f32 %v10752_v41, %v10874_v52  ;;  %v10892_v56 = vsub.f32 %v10735_v1, %v10874_v52 }
 0x27a   : > { %v10896_v13 = vsub.f32 %v10774_v45, %v10874_v52  ;;  %v10900_v37 = vsub.f32 %v10792_v57, %v10874_v52  ;;  %v6159_v41 = vsub.f32 %v10518_v43, %v10816_v58  ;;  %v6233_v1 = vsel %vm5010_vm9, %v6187_v18, 0.0 }
 0x27b   : > { %v6220_v53 = vadd.f32 %v6219_v4, %v6218_v31  ;;  %v10884_v31 = vsub.f32 %v10720_v42, %v10874_v52  ;;  %v10904_v42 = vsub.f32 %v10765_v32, %v10874_v52  ;;  %v6189_v4 = vmul.f32 %v6157_v51, %v6157_v51 }
 0x27c   : > { %v5081_v11 = vsub.f32 %v10302_v5, %v10874_v52  ;;  %v5082_v57 = vsub.f32 %v10328_v23, %v10874_v52  ;;  %v6160_v32 = vsub.f32 %v10573_v35, %v10816_v58  ;;  %v6235_v43 = vsel %vm5010_vm9, %v6188_v48, 0.0 }
 0x27d   : > { %v6222_v29 = vadd.f32 %v6221_v12, %v6220_v53  ;;  %v10911_v53 = vsub.f32 %v10783_v60, %v10874_v52  ;;  %v5083_v12 = vsub.f32 %v10290_v61, %v10874_v52  ;;  %v6161_v60 = vsub.f32 %v10601_v2, %v10816_v58 }
 0x27e   : > { %v6237_v27 = vsel %vm5010_vm9, %v6189_v4, 0.0  ;;  %v5084_v23 = vsub.f32 %v10313_v25, %v10874_v52  ;;  %v5113_v54 = vmul.f32 %v5081_v11, %v5081_v11  ;;  %v6162_v35 = vsub.f32 %v10564_v10, %v10816_v58 }
 0x27f   : > { %v6224_v33 = vadd.f32 %v6223_v7, %v6222_v29  ;;  %v6191_v29 = vmul.f32 %v6159_v41, %v6159_v41  ;;  %v5114_v7 = vmul.f32 %v5082_v57, %v5082_v57  ;;  %v5085_v61 = vsub.f32 %v10380_v0, %v10874_v52 }
 0x280   : > { %v5115_v2 = vmul.f32 %v5083_v12, %v5083_v12  ;;  %v6193_v36 = vmul.f32 %v6161_v60, %v6161_v60  ;;  %v5086_v25 = vsub.f32 %v10412_v15, %v10874_v52  ;;  %v5145_v10 = vsel %vm5010_vm9, %v5113_v54, 0.0 }
 0x281   : > { %v6226_v46 = vadd.f32 %v6225_v26, %v6224_v33  ;;  %v6192_v33 = vmul.f32 %v6160_v32, %v6160_v32  ;;  %v6163_v26 = vsub.f32 %v10586_v3, %v10816_v58  ;;  %v6164_v51 = vsub.f32 %v10641_v8, %v10816_v58 }
 0x282   : > { %v6194_v0 = vmul.f32 %v6162_v35, %v6162_v35  ;;  %v5087_v40 = vsub.f32 %v10367_v50, %v10874_v52  ;;  %v5117_v48 = vmul.f32 %v5085_v61, %v5085_v61  ;;  %v5148_v15 = vsel %vm5010_vm9, %v5115_v2, 0.0 }
 0x283   : > { %v6228_v21 = vadd.f32 %v6227_v20, %v6226_v46  ;;  %v6241_v46 = vsel %vm5010_vm9, %v6191_v29, 0.0  ;;  %v5116_v20 = vmul.f32 %v5084_v23, %v5084_v23  ;;  %v6243_v18 = vsel %vm5010_vm9, %v6192_v33, 0.0 }
 0x284   : > { %v5088_v8 = vsub.f32 %v10395_v9, %v10874_v52  ;;  %v6166_v50 = vsub.f32 %v10632_v14, %v10816_v58  ;;  %v6196_v11 = vmul.f32 %v6164_v51, %v6164_v51  ;;  %v6247_v57 = vsel %vm5010_vm9, %v6194_v0, 0.0 }
 0x285   : > { %v6230_v44 = vadd.f32 %v6229_v28, %v6228_v21  ;;  %v5146_v21 = vsel %vm5010_vm9, %v5114_v7, 0.0  ;;  %v6167_v9 = vsub.f32 %v10654_v47, %v10816_v58  ;;  %v5090_v14 = vsub.f32 %v10480_v19, %v10874_v52 }
 0x286   : > { %v5147_v28 = vadd.f32 %v5146_v21, %v5145_v10  ;;  %v6198_v54 = vmul.f32 %v6166_v50, %v6166_v50  ;;  %v6251_v7 = vsel %vm5010_vm9, %v6196_v11, 0.0  ;;  %v5091_v47 = vsub.f32 %v10433_v24, %v10874_v52 }
 0x287   : > { %v6232_v6 = vadd.f32 %v6231_v22, %v6230_v44  ;;  %v6165_v44 = vsub.f32 %v10669_v62, %v10816_v58  ;;  %v6195_v22 = vmul.f32 %v6163_v26, %v6163_v26  ;;  %v5089_v62 = vsub.f32 %v10448_v55, %v10874_v52 }
 0x288   : > { %v5149_v41 = vadd.f32 %v5148_v15, %v5147_v28  ;;  %v6168_v55 = vsub.f32 %v10709_v63, %v10816_v58  ;;  %v6169_v19 = vsub.f32 %v10737_v30, %v10816_v58  ;;  %v6199_v61 = vmul.f32 %v6167_v9, %v6167_v9  ;;  %v11247_v63 = vld [vmem:[#allocation14_spill] sm:$0xff] }
 0x289   : > { %v6234_v45 = vadd.f32 %v6233_v1, %v6232_v6  ;;  %v6245_v6 = vsel %vm5010_vm9, %v6193_v36, 0.0  ;;  %v5118_v1 = vmul.f32 %v5086_v25, %v5086_v25  ;;  %v6197_v12 = vmul.f32 %v6165_v44, %v6165_v44  ;;  %v11249_v30 = vld [vmem:[#allocation6_spill] sm:$0xff] }
 0x28a   : > { %v6249_v60 = vsel %vm5010_vm9, %v6195_v22, 0.0  ;;  %v5122_v25 = vmul.f32 %v5090_v14, %v5090_v14  ;;  %v6200_v10 = vmul.f32 %v6168_v55, %v6168_v55  ;;  %v6255_v21 = vsel %vm5010_vm9, %v6198_v54, 0.0  ;;  %v11254_v54 = vld [vmem:[#allocation10_spill] sm:$0xff] }
 0x28b   : > { %v6236_v38 = vadd.f32 %v6235_v43, %v6234_v45  ;;  %v5150_v45 = vsel %vm5010_vm9, %v5116_v20, 0.0  ;;  %v5119_v43 = vmul.f32 %v5087_v40, %v5087_v40  ;;  %v5154_v23 = vsel %vm5010_vm9, %v5118_v1, 0.0  ;;  %v11248_v20 = vld [vmem:[#allocation16_spill] sm:$0xff] }
 0x28c   : > { %v5151_v32 = vadd.f32 %v5150_v45, %v5149_v41  ;;  %v6253_v2 = vsel %vm5010_vm9, %v6197_v12, 0.0  ;;  %v6170_v24 = vsub.f32 %v11248_v20, %v10816_v58  ;;  %v5123_v28 = vmul.f32 %v5091_v47, %v5091_v47  ;;  %v11250_v40 = vld [vmem:[#allocation36_spill] sm:$0xff] }
 0x28d   : > { %v6238_v5 = vadd.f32 %v6237_v27, %v6236_v38  ;;  %v5152_v38 = vsel %vm5010_vm9, %v5117_v48, 0.0  ;;  %v6171_v48 = vsub.f32 %v11250_v40, %v10816_v58  ;;  %v6201_v15 = vmul.f32 %v6169_v19, %v6169_v19  ;;  %v11251_v41 = vld [vmem:[#allocation8_spill] sm:$0xff] }
 0x28e   : > { %v5153_v29 = vadd.f32 %v5152_v38, %v5151_v32  ;;  %v6257_v44 = vsel %vm5010_vm9, %v6199_v61, 0.0  ;;  %v5162_v1 = vsel %vm5010_vm9, %v5122_v25, 0.0  ;;  %v6202_v45 = vmul.f32 %v6170_v24, %v6170_v24  ;;  %v11252_v32 = vld [vmem:[#allocation5_spill] sm:$0xff]  ;;  %v11255_v19 = vld [vmem:[#allocation28_spill] sm:$0xff] }
 0x28f   : > { %v6240_v17 = vadd.f32 %v6239_v59, %v6238_v5  ;;  %v5120_v5 = vmul.f32 %v5088_v8, %v5088_v8  ;;  %v5121_v59 = vmul.f32 %v5089_v62, %v5089_v62  ;;  %v6259_v50 = vsel %vm5010_vm9, %v6200_v10, 0.0 }
 0x290   : > { %v5155_v35 = vadd.f32 %v5154_v23, %v5153_v29  ;;  %v5164_v62 = vsel %vm5010_vm9, %v5123_v28, 0.0  ;;  %v6261_v38 = vsel %vm5010_vm9, %v6201_v15, 0.0  ;;  %v5098_v61 = vsub.f32 %v11255_v19, %v10874_v52 }
 0x291   : > { %v6242_v49 = vadd.f32 %v6241_v46, %v6240_v17  ;;  %v5156_v17 = vsel %vm5010_vm9, %v5119_v43, 0.0  ;;  %v5092_v46 = vsub.f32 %v11247_v63, %v10874_v52  ;;  %v6203_v43 = vmul.f32 %v6171_v48, %v6171_v48 }
 0x292   : > { %v5157_v26 = vadd.f32 %v5156_v17, %v5155_v35 }
 0x293   : > { %v6244_v3 = vadd.f32 %v6243_v18, %v6242_v49  ;;  %v5158_v49 = vsel %vm5010_vm9, %v5120_v5, 0.0  ;;  %v5093_v18 = vsub.f32 %v11249_v30, %v10874_v52  ;;  %v5124_v8 = vmul.f32 %v5092_v46, %v5092_v46  ;;  %v11256_v46 = vld [vmem:[#allocation9_spill] sm:$0xff] }
 0x294   : > { %v5159_v51 = vadd.f32 %v5158_v49, %v5157_v26  ;;  %v6263_v5 = vsel %vm5010_vm9, %v6202_v45, 0.0  ;;  %v6265_v47 = vsel %vm5010_vm9, %v6203_v43, 0.0  ;;  %v5099_v25 = vsub.f32 %v11256_v46, %v10874_v52 }
 0x295   : > { %v6246_v4 = vadd.f32 %v6245_v6, %v6244_v3  ;;  %v5160_v3 = vsel %vm5010_vm9, %v5121_v59, 0.0  ;;  %v5125_v58 = vmul.f32 %v5093_v18, %v5093_v18  ;;  %v5166_v14 = vsel %vm5010_vm9, %v5124_v8, 0.0 }
 0x296   : > { %v5161_v22 = vadd.f32 %v5160_v3, %v5159_v51  ;;  %v11258_v3 = vld [vmem:[#allocation13_spill] sm:$0xff]  ;;  %v5131_v48 = vmul.f32 %v5099_v25, %v5099_v25  ;;  %v5143_v25 = vmul.f32 %v10904_v42, %v10904_v42 }
 0x297   : > { %v6248_v34 = vadd.f32 %v6247_v57, %v6246_v4  ;;  %v5094_v4 = vsub.f32 %v11251_v41, %v10874_v52  ;;  %v5101_v40 = vsub.f32 %v11258_v3, %v10874_v52 }
 0x298   : > { %v5163_v11 = vadd.f32 %v5162_v1, %v5161_v22 }
 0x299   : > { %v6250_v27 = vadd.f32 %v6249_v60, %v6248_v34  ;;  %v5095_v34 = vsub.f32 %v11252_v32, %v10874_v52  ;;  %v11253_v60 = vld [vmem:[#allocation7_spill] sm:$0xff]  ;;  %v5180_v32 = vsel %vm5010_vm9, %v5131_v48, 0.0 }
 0x29a   : > { %v5165_v9 = vadd.f32 %v5164_v62, %v5163_v11  ;;  %v5096_v29 = vsub.f32 %v11253_v60, %v10874_v52  ;;  %v11261_v62 = vld [vmem:[#allocation15_spill] sm:$0xff] }
 0x29b   : > { %v6252_v33 = vadd.f32 %v6251_v7, %v6250_v27  ;;  %v5126_v27 = vmul.f32 %v5094_v4, %v5094_v4  ;;  %v5097_v7 = vsub.f32 %v11254_v54, %v10874_v52  ;;  %v5127_v35 = vmul.f32 %v5095_v34, %v5095_v34 }
 0x29c   : > { %v5167_v23 = vadd.f32 %v5166_v14, %v5165_v9  ;;  %v5104_v43 = vsub.f32 %v11261_v62, %v10874_v52  ;;  %v5137_v54 = vmul.f32 %v10884_v31, %v10884_v31  ;;  %v5141_v31 = vmul.f32 %v10896_v13, %v10896_v13 }
 0x29d   : > { %v6254_v36 = vadd.f32 %v6253_v2, %v6252_v33  ;;  %v5168_v33 = vsel %vm5010_vm9, %v5125_v58, 0.0  ;;  %v5128_v2 = vmul.f32 %v5096_v29, %v5096_v29  ;;  %v5170_v26 = vsel %vm5010_vm9, %v5126_v27, 0.0 }
 0x29e   : > { %v5169_v59 = vadd.f32 %v5168_v33, %v5167_v23  ;;  %v5129_v49 = vmul.f32 %v5097_v7, %v5097_v7  ;;  %v5172_v20 = vsel %vm5010_vm9, %v5127_v35, 0.0  ;;  %v5136_v14 = vmul.f32 %v5104_v43, %v5104_v43 }
 0x29f   : > { %v6256_v0 = vadd.f32 %v6255_v21, %v6254_v36  ;;  %v11257_v21 = vld [vmem:[#allocation11_spill] sm:$0xff]  ;;  %v5174_v30 = vsel %vm5010_vm9, %v5128_v2, 0.0  ;;  %v5138_v33 = vmul.f32 %v10888_v39, %v10888_v39  ;;  %v5192_v19 = vsel %vm5010_vm9, %v5137_v54, 0.0 }
 0x2a0   : > { %v5171_v36 = vadd.f32 %v5170_v26, %v5169_v59  ;;  %v5100_v51 = vsub.f32 %v11257_v21, %v10874_v52  ;;  %v5176_v15 = vsel %vm5010_vm9, %v5129_v49, 0.0  ;;  %v5140_v2 = vmul.f32 %v10892_v56, %v10892_v56 }
 0x2a1   : > { %v6258_v6 = vadd.f32 %v6257_v44, %v6256_v0  ;;  %v5130_v0 = vmul.f32 %v5098_v61, %v5098_v61  ;;  %v5142_v39 = vmul.f32 %v10900_v37, %v10900_v37  ;;  %v5200_v56 = vsel %vm5010_vm9, %v5141_v31, 0.0 }
 0x2a2   : > { %v5173_v24 = vadd.f32 %v5172_v20, %v5171_v36  ;;  %v5132_v4 = vmul.f32 %v5100_v51, %v5100_v51  ;;  %v5144_v20 = vmul.f32 %v10911_v53, %v10911_v53 }
 0x2a3   : > { %v6260_v57 = vadd.f32 %v6259_v50, %v6258_v6  ;;  %v11259_v6 = vld [vmem:[#allocation35_spill] sm:$0xff]  ;;  %v5178_v8 = vsel %vm5010_vm9, %v5130_v0, 0.0  ;;  %v11260_v50 = vld [vmem:[#allocation12_spill] sm:$0xff]  ;;  %v5202_v13 = vsel %vm5010_vm9, %v5142_v39, 0.0 }
 0x2a4   : > { %v5175_v18 = vadd.f32 %v5174_v30, %v5173_v24  ;;  %v5102_v41 = vsub.f32 %v11259_v6, %v10874_v52  ;;  %v5103_v11 = vsub.f32 %v11260_v50, %v10874_v52  ;;  %v5182_v9 = vsel %vm5010_vm9, %v5132_v4, 0.0 }
 0x2a5   : > { %v6262_v12 = vadd.f32 %v6261_v38, %v6260_v57  ;;  %v5133_v57 = vmul.f32 %v5101_v40, %v5101_v40  ;;  %v5206_v37 = vsel %vm5010_vm9, %v5144_v20, 0.0 }
 0x2a6   : > { %v5177_v44 = vadd.f32 %v5176_v15, %v5175_v18  ;;  %v5134_v38 = vmul.f32 %v5102_v41, %v5102_v41  ;;  %v5135_v60 = vmul.f32 %v5103_v11, %v5103_v11 }
 0x2a7   : > { %v6264_v55 = vadd.f32 %v6263_v5, %v6262_v12  ;;  %v5184_v29 = vsel %vm5010_vm9, %v5133_v57, 0.0 }
 0x2a8   : > { %v5179_v1 = vadd.f32 %v5178_v8, %v5177_v44  ;;  %v5186_v5 = vsel %vm5010_vm9, %v5134_v38, 0.0  ;;  %v5188_v7 = vsel %vm5010_vm9, %v5135_v60, 0.0 }
 0x2a9   : > { %v6266_v17 = vadd.f32 %v6265_v47, %v6264_v55  ;;  %v5107_v55 = vsub.f32 %v10707_v16, %v10874_v52  ;;  %v5190_v47 = vsel %vm5010_vm9, %v5136_v14, 0.0  ;;  %v5194_v16 = vsel %vm5010_vm9, %v5138_v33, 0.0 }
 0x2aa   : > { %v5181_v34 = vadd.f32 %v5180_v32, %v5179_v1 }
 0x2ab   : > { %v6267_v63 = vrot.slane %v6266_v17, 4 }
 0x2ac   : > { %v5183_v12 = vadd.f32 %v5182_v9, %v5181_v34 }
 0x2ad   : > { %v6268_v10 = vadd.f32 %v6267_v63, %v6266_v17  ;;  %v5139_v17 = vmul.f32 %v5107_v55, %v5107_v55  ;;  %v5198_v63 = vsel %vm5010_vm9, %v5140_v2, 0.0 }
 0x2ae   : > { %v5185_v27 = vadd.f32 %v5184_v29, %v5183_v12 }
 0x2af   : > { %v6269_v28 = vrot.slane %v6268_v10, 2  ;;  %v5196_v26 = vsel %vm5010_vm9, %v5139_v17, 0.0 }
 0x2b0   : > { %v5187_v23 = vadd.f32 %v5186_v5, %v5185_v27 }
 0x2b1   : > { %v6270_v22 = vadd.f32 %v6269_v28, %v6268_v10  ;;  %v5204_v10 = vsel %vm5010_vm9, %v5143_v25, 0.0 }
 0x2b2   : > { %v5189_v35 = vadd.f32 %v5188_v7, %v5187_v23 }
 0x2b3   : > { %v6271_v45 = vrot.slane %v6270_v22, 1 }
 0x2b4   : > { %v5191_v59 = vadd.f32 %v5190_v47, %v5189_v35 }
 0x2b5   : > { %v6272_v58 = vadd.f32 %v6271_v45, %v6270_v22 }
 0x2b6   : > { %v5193_v61 = vadd.f32 %v5192_v19, %v5191_v59 }
 0x2b7   : > { %6274 = vst.msk [vmem:[%s10812_s27 + $0x1] sm:$0x1] %vm5214_vm10, %v6272_v58 }
 0x2b8   : > { %v5195_v52 = vadd.f32 %v5194_v16, %v5193_v61 }
 0x2ba   : > { %v5197_v36 = vadd.f32 %v5196_v26, %v5195_v52 }
 0x2bc   : > { %v5199_v46 = vadd.f32 %v5198_v63, %v5197_v36 }
 0x2be   : > { %v5201_v49 = vadd.f32 %v5200_v56, %v5199_v46 }
 0x2c0   : > { %v5203_v24 = vadd.f32 %v5202_v13, %v5201_v49 }
 0x2c2   : > { %v5205_v21 = vadd.f32 %v5204_v10, %v5203_v24 }
 0x2c4   : > { %v5207_v51 = vadd.f32 %v5206_v37, %v5205_v21 }
 0x2c6   : > { %v5208_v0 = vrot.slane %v5207_v51, 4 }
 0x2c8   : > { %v5209_v30 = vadd.f32 %v5208_v0, %v5207_v51 }
 0x2ca   : > { %v5210_v18 = vrot.slane %v5209_v30, 2 }
 0x2cc   : > { %v5211_v42 = vadd.f32 %v5210_v18, %v5209_v30 }
 0x2ce   : > { %v5212_v28 = vrot.slane %v5211_v42, 1 }
 0x2d0   : > { %v5213_v3 = vadd.f32 %v5212_v28, %v5211_v42 }
 0x2d2   : > { %5216 = vst.msk [vmem:[%s10855_s30 + $0x1] sm:$0x1] %vm5214_vm10, %v5213_v3 }
 0x2d3 PF: > { %s17_s21 = sadd.s32 1, %s7795_s21  }
 0x2d4   : > { %p14_p4 = scmp.ge.s32.totalorder %s17_s21, 4  }
 0x2d6   :  { %16 = sbr.rel (!%p14_p4) target bundleno = 1 (0x1), region = 100 }

// kernel: basic_block_forward.4
= control target key start
LH: loop header
LB: loop body
LE: loop exit
PB: predicated region body
PF: predicated region fallthrough
CT: control target
= control target key end

     0   :  { %s7207_s18 = smov 0   ;;  %s10215_s0 = inlined_call_operand.vmem [shape: bf16[2,256,8], index: 0, kind: input, shape index: {}]   ;;  %s10216_s1 = inlined_call_operand.vmem [shape: f32[1,8], index: 1, kind: input, shape index: {}]   ;;  %s10217_s2 = inlined_call_operand.vmem [shape: f32[1,8], index: 2, kind: input, shape index: {}]   ;;  %s10218_s3 = inlined_call_operand.vmem [shape: bf16[72,8], index: 3, kind: input, shape index: {}]   ;;  %s10219_s4 = inlined_call_operand.vmem [shape: bf16[2,256,8], index: 4, kind: output, shape index: {0}]   ;;  %s10220_s5 = inlined_call_operand.vmem [shape: f32[2,2,8], index: 5, kind: output, shape index: {1}]  }
   0x1 LB: > { %s6066_s19 = sadd.s32 4294967295, %s7174_s18   ;;  %p6070_p0 = scmp.ge.s32.totalorder %s7174_s18, 1  ;;  %s7174_s18 = sphi %s7207_s18, %s16_s18  }
   0x2   : > { %p190_p1 = scmp.lt.s32.totalorder %s7174_s18, 3 }
   0x4   : > { %p191_p2 = pnand %p6070_p0, %p190_p1 }
   0x6   : > { %194 = sbr.rel (%p191_p2) target bundleno = 794 (0x31a), region = 36 }
   0xb   : > { %p222_p3 = scmp.lt.s32.totalorder %s6066_s19, 1  ;;  %p6076_p4 = scmp.ne.s32.totalorder %s6066_s19, 0 }
   0xd   : > { %s223_s20 = scalar_select %p222_p3, %s6066_s19, 1 }
   0xe   : > { %240 = sbr.rel (%p6076_p4) target bundleno = 50 (0x32), region = 40 }
   0xf   : > { %s6481_s21 = sshll.u32 %s223_s20, 7  ;;  %s6075_s22 = sshll.u32 %s223_s20, 1 }
  0x10   : > { %s7218_s25 = scalar_lea.vmem %s10215_s0, %s6481_s21  ;;  %s7223_s28 = scalar_lea.vmem %s10219_s4, %s6481_s21 }
  0x11   : > { %s7228_s6 = scalar_lea.vmem %s10220_s5, %s6075_s22 }
  0x13   : > { %vm241_vm0 = vcmask 60416   ;;  %vm244_vm1 = vcmask 57344   ;;  %vm252_vm2 = vsmask.f32 256  ;;  %v7176_v0 = vmov 0  }
  0x14   : > { %242 = vst.msk [vmem:[#allocation2] sm:$0xf] %vm241_vm0, %v7176_v0  ;;  %243 = vst.msk [vmem:[#allocation2 + $0x4] sm:$0xf] %vm241_vm0, %v7176_v0  ;;  %vm302_vm4 = vsmask.f32 7938 }
  0x15   : > { %247 = vst.msk [vmem:[#allocation2 + $0xcc] sm:$0xf] %vm241_vm0, %v7176_v0  ;;  %248 = vst.msk [vmem:[#allocation2 + $0xd0] sm:$0xf] %vm241_vm0, %v7176_v0  ;;  %v254_v2 = vld [vmem:[#allocation2 + $0xc] sm:$0x1] }
  0x16   : > { %245 = vst.msk [vmem:[#allocation2 + $0x8] sm:$0x1] %vm244_vm1, %v7176_v0  ;;  %vm7232_vm3 = vmand %vm244_vm1, %vm252_vm2  ;;  %v257_v3 = vld [vmem:[#allocation2 + $0x18] sm:$0x1]  ;;  %v260_v6 = vld [vmem:[#allocation2 + $0x24] sm:$0x1] }
  0x17   : > { %249 = vst.msk [vmem:[#allocation2 + $0xd4] sm:$0x1] %vm244_vm1, %v7176_v0  ;;  %v255_v4 = vsel %vm7232_vm3, 0, %v254_v2  ;;  %v258_v5 = vsel %vm7232_vm3, 0, %v257_v3  ;;  %v263_v7 = vld [vmem:[#allocation2 + $0x30] sm:$0x1]  ;;  %vm7259_vm5 = vmand %vm244_vm1, %vm302_vm4 }
  0x18   : > { %256 = vst [vmem:[#allocation2 + $0xc] sm:$0x1] %v255_v4  ;;  %259 = vst [vmem:[#allocation2 + $0x18] sm:$0x1] %v258_v5  ;;  %v261_v8 = vsel %vm7232_vm3, 0, %v260_v6  ;;  %v264_v9 = vsel %vm7232_vm3, 0, %v263_v7 }
  0x19   : > { %v266_v10 = vld [vmem:[#allocation2 + $0x3c] sm:$0x1]  ;;  %v269_v11 = vld [vmem:[#allocation2 + $0x48] sm:$0x1]  ;;  %262 = vst [vmem:[#allocation2 + $0x24] sm:$0x1] %v261_v8 }
  0x1a   : > { %265 = vst [vmem:[#allocation2 + $0x30] sm:$0x1] %v264_v9  ;;  %v267_v12 = vsel %vm7232_vm3, 0, %v266_v10  ;;  %v270_v13 = vsel %vm7232_vm3, 0, %v269_v11  ;;  %v272_v14 = vld [vmem:[#allocation2 + $0x54] sm:$0x1] }
  0x1b   : > { %v275_v15 = vld [vmem:[#allocation2 + $0x60] sm:$0x1]  ;;  %268 = vst [vmem:[#allocation2 + $0x3c] sm:$0x1] %v267_v12  ;;  %271 = vst [vmem:[#allocation2 + $0x48] sm:$0x1] %v270_v13 }
  0x1c   : > { %v273_v16 = vsel %vm7232_vm3, 0, %v272_v14  ;;  %v276_v17 = vsel %vm7232_vm3, 0, %v275_v15  ;;  %v278_v18 = vld [vmem:[#allocation2 + $0x6c] sm:$0x1]  ;;  %v281_v19 = vld [vmem:[#allocation2 + $0x78] sm:$0x1] }
  0x1d   : > { %274 = vst [vmem:[#allocation2 + $0x54] sm:$0x1] %v273_v16  ;;  %277 = vst [vmem:[#allocation2 + $0x60] sm:$0x1] %v276_v17  ;;  %v279_v20 = vsel %vm7232_vm3, 0, %v278_v18  ;;  %v282_v21 = vsel %vm7232_vm3, 0, %v281_v19 }
  0x1e   : > { %v284_v22 = vld [vmem:[#allocation2 + $0x84] sm:$0x1]  ;;  %v287_v23 = vld [vmem:[#allocation2 + $0x90] sm:$0x1]  ;;  %280 = vst [vmem:[#allocation2 + $0x6c] sm:$0x1] %v279_v20 }
  0x1f   : > { %283 = vst [vmem:[#allocation2 + $0x78] sm:$0x1] %v282_v21  ;;  %v285_v25 = vsel %vm7232_vm3, 0, %v284_v22  ;;  %v288_v26 = vsel %vm7232_vm3, 0, %v287_v23  ;;  %v290_v27 = vld [vmem:[#allocation2 + $0x9c] sm:$0x1] }
  0x20   : > { %v293_v28 = vld [vmem:[#allocation2 + $0xa8] sm:$0x1]  ;;  %286 = vst [vmem:[#allocation2 + $0x84] sm:$0x1] %v285_v25  ;;  %289 = vst [vmem:[#allocation2 + $0x90] sm:$0x1] %v288_v26 }
  0x21   : > { %v291_v29 = vsel %vm7232_vm3, 0, %v290_v27  ;;  %v294_v30 = vsel %vm7232_vm3, 0, %v293_v28  ;;  %v296_v31 = vld [vmem:[#allocation2 + $0xb4] sm:$0x1]  ;;  %v299_v32 = vld [vmem:[#allocation2 + $0xc0] sm:$0x1] }
  0x22   : > { %292 = vst [vmem:[#allocation2 + $0x9c] sm:$0x1] %v291_v29  ;;  %295 = vst [vmem:[#allocation2 + $0xa8] sm:$0x1] %v294_v30  ;;  %v297_v33 = vsel %vm7232_vm3, 0, %v296_v31  ;;  %v300_v34 = vsel %vm7232_vm3, 0, %v299_v32 }
  0x23   : > { %v304_v35 = vld [vmem:[#allocation2 + $0x14] sm:$0x1]  ;;  %v307_v36 = vld [vmem:[#allocation2 + $0x20] sm:$0x1]  ;;  %298 = vst [vmem:[#allocation2 + $0xb4] sm:$0x1] %v297_v33 }
  0x24   : > { %301 = vst [vmem:[#allocation2 + $0xc0] sm:$0x1] %v300_v34  ;;  %v305_v37 = vsel %vm7259_vm5, 0, %v304_v35  ;;  %v308_v38 = vsel %vm7259_vm5, 0, %v307_v36  ;;  %v310_v39 = vld [vmem:[#allocation2 + $0x2c] sm:$0x1] }
  0x25   : > { %v313_v40 = vld [vmem:[#allocation2 + $0x38] sm:$0x1]  ;;  %306 = vst [vmem:[#allocation2 + $0x14] sm:$0x1] %v305_v37  ;;  %309 = vst [vmem:[#allocation2 + $0x20] sm:$0x1] %v308_v38 }
  0x26   : > { %v311_v41 = vsel %vm7259_vm5, 0, %v310_v39  ;;  %v314_v42 = vsel %vm7259_vm5, 0, %v313_v40  ;;  %v316_v43 = vld [vmem:[#allocation2 + $0x44] sm:$0x1]  ;;  %v319_v44 = vld [vmem:[#allocation2 + $0x50] sm:$0x1] }
  0x27   : > { %312 = vst [vmem:[#allocation2 + $0x2c] sm:$0x1] %v311_v41  ;;  %315 = vst [vmem:[#allocation2 + $0x38] sm:$0x1] %v314_v42  ;;  %v317_v45 = vsel %vm7259_vm5, 0, %v316_v43  ;;  %v320_v46 = vsel %vm7259_vm5, 0, %v319_v44 }
  0x28   : > { %v322_v47 = vld [vmem:[#allocation2 + $0x5c] sm:$0x1]  ;;  %v325_v48 = vld [vmem:[#allocation2 + $0x68] sm:$0x1]  ;;  %318 = vst [vmem:[#allocation2 + $0x44] sm:$0x1] %v317_v45 }
  0x29   : > { %321 = vst [vmem:[#allocation2 + $0x50] sm:$0x1] %v320_v46  ;;  %v323_v49 = vsel %vm7259_vm5, 0, %v322_v47  ;;  %v326_v50 = vsel %vm7259_vm5, 0, %v325_v48  ;;  %v328_v51 = vld [vmem:[#allocation2 + $0x74] sm:$0x1] }
  0x2a   : > { %v331_v52 = vld [vmem:[#allocation2 + $0x80] sm:$0x1]  ;;  %324 = vst [vmem:[#allocation2 + $0x5c] sm:$0x1] %v323_v49  ;;  %327 = vst [vmem:[#allocation2 + $0x68] sm:$0x1] %v326_v50 }
  0x2b   : > { %v329_v53 = vsel %vm7259_vm5, 0, %v328_v51  ;;  %v332_v54 = vsel %vm7259_vm5, 0, %v331_v52  ;;  %v334_v55 = vld [vmem:[#allocation2 + $0x8c] sm:$0x1]  ;;  %v337_v56 = vld [vmem:[#allocation2 + $0x98] sm:$0x1] }
  0x2c   : > { %330 = vst [vmem:[#allocation2 + $0x74] sm:$0x1] %v329_v53  ;;  %333 = vst [vmem:[#allocation2 + $0x80] sm:$0x1] %v332_v54  ;;  %v335_v57 = vsel %vm7259_vm5, 0, %v334_v55  ;;  %v338_v58 = vsel %vm7259_vm5, 0, %v337_v56 }
  0x2d   : > { %v340_v59 = vld [vmem:[#allocation2 + $0xa4] sm:$0x1]  ;;  %v343_v60 = vld [vmem:[#allocation2 + $0xb0] sm:$0x1]  ;;  %336 = vst [vmem:[#allocation2 + $0x8c] sm:$0x1] %v335_v57 }
  0x2e   : > { %339 = vst [vmem:[#allocation2 + $0x98] sm:$0x1] %v338_v58  ;;  %v341_v61 = vsel %vm7259_vm5, 0, %v340_v59  ;;  %v344_v62 = vsel %vm7259_vm5, 0, %v343_v60  ;;  %v346_v63 = vld [vmem:[#allocation2 + $0xbc] sm:$0x1] }
  0x2f   : > { %v349_v0 = vld [vmem:[#allocation2 + $0xc8] sm:$0x1]  ;;  %342 = vst [vmem:[#allocation2 + $0xa4] sm:$0x1] %v341_v61  ;;  %345 = vst [vmem:[#allocation2 + $0xb0] sm:$0x1] %v344_v62 }
  0x30   : > { %v347_v1 = vsel %vm7259_vm5, 0, %v346_v63  ;;  %v350_v2 = vsel %vm7259_vm5, 0, %v349_v0 }
  0x31   : > { %348 = vst [vmem:[#allocation2 + $0xbc] sm:$0x1] %v347_v1  ;;  %351 = vst [vmem:[#allocation2 + $0xc8] sm:$0x1] %v350_v2 }
  0x32 PF: > { %v1065_v3 = vld [vmem:[%s10218_s3 + $0x4] sm:$0xf]  ;;  %vm1605_vm6 = vcmask 1043456   ;;  %v1073_v4 = vld [vmem:[#allocation2] sm:$0xf]  ;;  %vm1556_vm9 = vcmask 64512  }
  0x33   : > { %7087 = vmatprep.subr.msk.bf16.mxu0 %vm1605_vm6, %v1065_v3  ;;  %7088 = vmatprep.subr.msk.bf16.mxu1 %vm1605_vm6, %v1065_v3  ;;  %v1607_v5 = vsel %vm1605_vm6, %v1065_v3, 0  ;;  %v1074_v6 = vld [vmem:[#allocation2 + $0x4] sm:$0xf]  ;;  %v7313_v7 = vld [vmem:[#allocation2 + $0x8] sm:$0x1]  ;;  %v1125_v8 = vshrl.u32 %v1073_v4, 16 }
  0x34   : > { %6780 = vmatpush3.bf16.msra.mxu0 %v1607_v5  ;;  %7086 = vmatpush3.bf16.msra.mxu1 %v1607_v5  ;;  %vm1121_vm7 = vsmask.f32 3328  ;;  %v1128_v9 = vshll.u32 %v1073_v4, 16  ;;  %v1134_v10 = vshll.u32 %v1074_v6, 16  ;;  %vm1122_vm8 = vsmask.f32 7440 }
  0x35   : > { %v1127_v11 = vrot.slane %v1125_v8, 4  ;;  %v1138_v12 = vshrl.u32 %v1074_v6, 16  ;;  %v1144_v13 = vshll.u32 %v7313_v7, 16  ;;  %v6548_v14 = vld [vmem:[%s7218_s25] sm:$0xff]   ;;  %v6617_v20 = vld [vmem:[%s7218_s25 + $0x38] sm:$0xff]   ;;  %vm7332_vm12 = vmor %vm1121_vm7, %vm1122_vm8  ;;  %vm946_vm13 = vcmask 60416  }
  0x36   : > { %v1130_v15 = vrot.slane %v1128_v9, 5  ;;  %v1136_v16 = vrot.slane %v1134_v10, 5  ;;  %v6549_v17 = vunpack.c.l.bf16 %v6548_v14  ;;  %v6550_v18 = vunpack.c.h.bf16 %v6548_v14  ;;  %v7320_v19 = vld [vmem:[%s10216_s1] ss:$0 sm:$0xff]  ;;  %v7353_v44 = vld [vmem:[%s10218_s3 + $0x8] sm:$0xf] }
  0x37   : > { %v1140_v21 = vrot.slane %v1138_v12, 4  ;;  %v1146_v22 = vrot.slane %v1144_v13, 5  ;;  %v7326_v23 = vld [vmem:[%s10217_s2] ss:$0 sm:$0xff]  ;;  %vm622_vm10 = vsmask.f32 256  ;;  %v6577_v29 = vunpack.c.l.bf16 %v6617_v20  ;;  %7090 = vmatprep.subr.msk.bf16.mxu0 %vm1605_vm6, %v7353_v44 }
  0x38   : > { %v1131_v24 = vor.u32 %v1130_v15, %v1127_v11  ;;  %v423_v25 = vmul.f32 %v6549_v17, %v7320_v19  ;;  %v424_v26 = vmul.f32 %v6550_v18, %v7320_v19  ;;  %vm623_vm11 = vsmask.f32 4368  ;;  %v6618_v30 = vld [vmem:[%s7218_s25 + $0x40] sm:$0xff]   ;;  %v6611_v56 = vld [vmem:[%s7218_s25 + $0x8] sm:$0xff]   ;;  %v956_v9 = vld [vmem:[#allocation2 + $0x14] sm:$0x1] }
  0x39   : > { %v1141_v28 = vor.u32 %v1140_v21, %v1136_v16  ;;  %vm947_vm14 = vsmask.f32 7938  ;;  %v6578_v34 = vunpack.c.h.bf16 %v6617_v20  ;;  %v7342_v35 = vld [vmem:[%s10218_s3] sm:$0xf]  ;;  %v437_v37 = vmul.f32 %v6577_v29, %v7320_v19  ;;  %vm7369_vm0 = vmor %vm622_vm10, %vm623_vm11  ;;  %v949_v6 = vld [vmem:[#allocation2 + $0xc] sm:$0xf] }
  0x3a   : > { %v1132_v31 = vrot.slane %v1131_v24, 4  ;;  %v462_v32 = vadd.f32 %v7326_v23, %v423_v25  ;;  %v463_v33 = vadd.f32 %v7326_v23, %v424_v26  ;;  %7089 = vmatprep.subr.msk.bf16.mxu1 %vm1605_vm6, %v7342_v35  ;;  %v6581_v38 = vunpack.c.l.bf16 %v6618_v30  ;;  %vm7375_vm1 = vmand %vm946_vm13, %vm947_vm14 }
  0x3b   : > { %v1142_v36 = vrot.slane %v1141_v28, 4  ;;  %v6582_v39 = vunpack.c.h.bf16 %v6618_v30  ;;  %v438_v43 = vmul.f32 %v6578_v34, %v7320_v19  ;;  %v476_v46 = vadd.f32 %v7326_v23, %v437_v37  ;;  %v1001_v28 = vld [vmem:[#allocation2 + $0x60] sm:$0xf]  ;;  %v1005_v34 = vld [vmem:[#allocation2 + $0x68] sm:$0x1] }
  0x3c   : > { %v1137_v40 = vsel %vm7332_vm12, %v1132_v31, %v1136_v16  ;;  %v494_v41 = vmax.f32 %v462_v32, 0.0  ;;  %v495_v42 = vmax.f32 %v463_v33, 0.0  ;;  %v439_v47 = vmul.f32 %v6581_v38, %v7320_v19 }
  0x3d   : > { %v1147_v45 = vsel %vm7332_vm12, %v1142_v36, %v1146_v22  ;;  %v440_v48 = vmul.f32 %v6582_v39, %v7320_v19  ;;  %v477_v52 = vadd.f32 %v7326_v23, %v438_v43  ;;  %vm954_vm15 = vcmask 57344  }
  0x3e   : > { %v6111_v49 = vcombine.low %v1137_v40, %v1147_v45  ;;  %v6483_v50 = vpack.c.bf16 %v494_v41, %v494_v41  ;;  %v6484_v51 = vpack.c.bf16 %v495_v42, %v495_v42  ;;  %v508_v53 = vmax.f32 %v476_v46, 0.0  ;;  %vm7381_vm2 = vmand %vm954_vm15, %vm622_vm10  ;;  %v7393_v40 = vld [vmem:[%s7218_s25 + $0x10] sm:$0xff]   ;;  %v1008_v45 = vld [vmem:[#allocation2 + $0x6c] sm:$0xf] }
  0x3f   : > { %v478_v54 = vadd.f32 %v7326_v23, %v439_v47  ;;  %v479_v55 = vadd.f32 %v7326_v23, %v440_v48  ;;  %v10231_v61 = vmov 0  ;;  %v509_v62 = vmax.f32 %v477_v52, 0.0 }
  0x40   : > { %6781 = vmatprep.mubr.msk.bf16.mxu0 %vm1556_vm9, %v6111_v49  ;;  %v626_v57 = vshrl.u32 %v6483_v50, 16  ;;  %v629_v58 = vshll.u32 %v6483_v50, 16  ;;  %v634_v59 = vshrl.u32 %v6484_v51, 16  ;;  %v637_v60 = vshll.u32 %v6484_v51, 16 }
  0x41   : > { %v10232_v61 = vsel %vm7369_vm0, 4294967295, %v10231_v61  ;;  %v6497_v63 = vpack.c.bf16 %v508_v53, %v508_v53  ;;  %v510_v0 = vmax.f32 %v478_v54, 0.0  ;;  %v511_v1 = vmax.f32 %v479_v55, 0.0  ;;  %v1012_v53 = vld [vmem:[#allocation2 + $0x74] sm:$0x1] }
  0x42   : > { %10233 = vst [vmem:[#allocation3_spill] sm:$0xff] %v10232_v61  ;;  %v628_v2 = vrot.slane %v626_v57, 7  ;;  %v636_v3 = vrot.slane %v634_v59, 7  ;;  %v10234_v4 = vmov 0  ;;  %v6553_v5 = vunpack.c.l.bf16 %v6611_v56 }
  0x43   : > { %v10235_v4 = vsel %vm7375_vm1, 4294967295, %v10234_v4  ;;  %v10237_v8 = vmov 0  ;;  %v6498_v10 = vpack.c.bf16 %v509_v62, %v509_v62  ;;  %v745_v11 = vshrl.u32 %v6497_v63, 16 }
  0x44   : > { %10236 = vst [vmem:[#allocation4_spill] sm:$0xff] %v10235_v4  ;;  %v10238_v8 = vsel %vm7381_vm2, 4294967295, %v10237_v8  ;;  %v748_v12 = vshll.u32 %v6497_v63, 16  ;;  %v6499_v13 = vpack.c.bf16 %v510_v0, %v510_v0  ;;  %v631_v14 = vor.u32 %v629_v58, %v628_v2 }
  0x45   : > { %10239 = vst [vmem:[#allocation5_spill] sm:$0xff] %v10238_v8  ;;  %v632_v15 = vrot.slane %v628_v2, 4  ;;  %v639_v16 = vor.u32 %v637_v60, %v636_v3  ;;  %v641_v17 = vrot.slane %v636_v3, 4  ;;  %v747_v18 = vrot.slane %v745_v11, 7 }
  0x46   : > { %v753_v20 = vshrl.u32 %v6498_v10, 16  ;;  %v756_v21 = vshll.u32 %v6498_v10, 16  ;;  %v6500_v22 = vpack.c.bf16 %v511_v1, %v511_v1  ;;  %v950_v25 = vsel %vm7375_vm1, %v631_v14, %v949_v6  ;;  %v7419_v1 = vld [vmem:[%s7218_s25 + $0x48] sm:$0xff]   ;;  %v7429_v14 = vld [vmem:[%s7218_s25 + $0x50] sm:$0xff]  }
  0x47   : > { %v640_v24 = vsel %vm7369_vm0, %v632_v15, %v639_v16  ;;  %v957_v26 = vsel %vm7381_vm2, %v641_v17, %v956_v9  ;;  %v762_v29 = vshrl.u32 %v6499_v13, 16  ;;  %951 = vst [vmem:[#allocation2 + $0xc] sm:$0xf] %v950_v25  ;;  %v750_v30 = vor.u32 %v748_v12, %v747_v18 }
  0x48   : > { %953 = vst.msk [vmem:[#allocation2 + $0x10] sm:$0xf] %vm946_vm13, %v640_v24  ;;  %958 = vst [vmem:[#allocation2 + $0x14] sm:$0x1] %v957_v26  ;;  %v751_v31 = vrot.slane %v747_v18, 4  ;;  %v755_v32 = vrot.slane %v753_v20, 7  ;;  %v6554_v39 = vunpack.c.h.bf16 %v6611_v56  ;;  %v425_v46 = vmul.f32 %v6553_v5, %v7320_v19 }
  0x49   : > { %v765_v33 = vshll.u32 %v6499_v13, 16  ;;  %v764_v36 = vrot.slane %v762_v29, 7  ;;  %v770_v37 = vshrl.u32 %v6500_v22, 16  ;;  %v773_v38 = vshll.u32 %v6500_v22, 16 }
  0x4a   : > { %v758_v41 = vor.u32 %v756_v21, %v755_v32  ;;  %v760_v42 = vrot.slane %v755_v32, 4  ;;  %v1002_v43 = vsel %vm7375_vm1, %v750_v30, %v1001_v28  ;;  %v426_v50 = vmul.f32 %v6554_v39, %v7320_v19 }
  0x4b   : > { %1003 = vst [vmem:[#allocation2 + $0x60] sm:$0xf] %v1002_v43  ;;  %v767_v47 = vor.u32 %v765_v33, %v764_v36  ;;  %v768_v48 = vrot.slane %v764_v36, 4  ;;  %v772_v49 = vrot.slane %v770_v37, 7  ;;  %v464_v54 = vadd.f32 %v7326_v23, %v425_v46 }
  0x4c   : > { %v759_v51 = vsel %vm7369_vm0, %v751_v31, %v758_v41  ;;  %v1006_v52 = vsel %vm7381_vm2, %v760_v42, %v1005_v34  ;;  %v6557_v55 = vunpack.c.l.bf16 %v7393_v40  ;;  %v465_v59 = vadd.f32 %v7326_v23, %v426_v50 }
  0x4d   : > { %1004 = vst.msk [vmem:[#allocation2 + $0x64] sm:$0xf] %vm946_vm13, %v759_v51  ;;  %1007 = vst [vmem:[#allocation2 + $0x68] sm:$0x1] %v1006_v52  ;;  %v775_v56 = vor.u32 %v773_v38, %v772_v49  ;;  %v777_v57 = vrot.slane %v772_v49, 4  ;;  %v1009_v58 = vsel %vm7375_vm1, %v767_v47, %v1008_v45  ;;  %v2118_v60 = vrot.slane %v7313_v7, 5 }
  0x4e   : > { %1010 = vst [vmem:[#allocation2 + $0x6c] sm:$0xf] %v1009_v58  ;;  %v7412_v62 = vsel %vm1605_vm6, %v7342_v35, 0  ;;  %v7416_v63 = vsel %vm1605_vm6, %v7353_v44, 0  ;;  %v496_v0 = vmax.f32 %v464_v54, 0.0  ;;  %v6558_v35 = vunpack.c.h.bf16 %v7393_v40 }
  0x4f   : > { %v1075_v2 = vld [vmem:[#allocation2 + $0xc] sm:$0xf]  ;;  %v1076_v3 = vld [vmem:[#allocation2 + $0x10] sm:$0xf]  ;;  %v1106_v5 = vld [vmem:[#allocation2 + $0x14] sm:$0x1]  ;;  %v776_v6 = vsel %vm7369_vm0, %v768_v48, %v775_v56  ;;  %v1013_v9 = vsel %vm7381_vm2, %v777_v57, %v1012_v53  ;;  %v427_v10 = vmul.f32 %v6557_v55, %v7320_v19  ;;  %v6585_v17 = vunpack.c.l.bf16 %v7419_v1 }
  0x50   : > { %v1149_v11 = vshrl.u32 %v1075_v2, 16  ;;  %v1152_v44 = vshll.u32 %v1075_v2, 16  ;;  %v1158_v12 = vshll.u32 %v1076_v3, 16  ;;  %v1162_v13 = vshrl.u32 %v1076_v3, 16  ;;  %1011 = vst.msk [vmem:[#allocation2 + $0x70] sm:$0xf] %vm946_vm13, %v776_v6 }
  0x51   : > { %1014 = vst [vmem:[#allocation2 + $0x74] sm:$0x1] %v1013_v9  ;;  %v1168_v15 = vshll.u32 %v1106_v5, 16  ;;  %v497_v16 = vmax.f32 %v465_v59, 0.0  ;;  %v6586_v18 = vunpack.c.h.bf16 %v7419_v1  ;;  %v6589_v30 = vunpack.c.l.bf16 %v7429_v14  ;;  %v1067_v1 = vld [vmem:[%s10218_s3 + $0xc] sm:$0xf] }
  0x52   : > { %v1151_v20 = vrot.slane %v1149_v11, 4  ;;  %v1154_v21 = vrot.slane %v1152_v44, 5  ;;  %v1160_v22 = vrot.slane %v1158_v12, 5  ;;  %v1164_v24 = vrot.slane %v1162_v13, 4  ;;  %v1089_v25 = vld [vmem:[#allocation2 + $0x60] sm:$0xf] }
  0x53   : > { %v1170_v26 = vrot.slane %v1168_v15, 5  ;;  %v1317_v28 = vshrl.u32 %v1089_v25, 16  ;;  %v1320_v29 = vshll.u32 %v1089_v25, 16  ;;  %v6485_v36 = vpack.c.bf16 %v496_v0, %v496_v0 }
  0x54   : > { %v1155_v31 = vor.u32 %v1154_v21, %v1151_v20  ;;  %v1165_v32 = vor.u32 %v1164_v24, %v1160_v22  ;;  %v1090_v33 = vld [vmem:[#allocation2 + $0x64] sm:$0xf]  ;;  %v1113_v34 = vld [vmem:[#allocation2 + $0x68] sm:$0x1]  ;;  %v6486_v37 = vpack.c.bf16 %v497_v16, %v497_v16  ;;  %v428_v47 = vmul.f32 %v6558_v35, %v7320_v19 }
  0x55   : > { %v1319_v38 = vrot.slane %v1317_v28, 4  ;;  %v1322_v39 = vrot.slane %v1320_v29, 5  ;;  %v1326_v40 = vshll.u32 %v1090_v33, 16  ;;  %v1330_v41 = vshrl.u32 %v1090_v33, 16  ;;  %v1091_v42 = vld [vmem:[#allocation2 + $0x6c] sm:$0xf] }
  0x56   : > { %v1156_v43 = vrot.slane %v1155_v31, 4  ;;  %v1166_v45 = vrot.slane %v1165_v32, 4  ;;  %v1336_v46 = vshll.u32 %v1113_v34, 16  ;;  %v466_v53 = vadd.f32 %v7326_v23, %v427_v10  ;;  %v959_v29 = vld [vmem:[#allocation2 + $0x18] sm:$0xf] }
  0x57   : > { %v1323_v48 = vor.u32 %v1322_v39, %v1319_v38  ;;  %v1328_v49 = vrot.slane %v1326_v40, 5  ;;  %v1332_v50 = vrot.slane %v1330_v41, 4  ;;  %v1092_v51 = vld [vmem:[#allocation2 + $0x70] sm:$0xf]  ;;  %v1341_v57 = vshrl.u32 %v1091_v42, 16 }
  0x58   : > { %v1114_v52 = vld [vmem:[#allocation2 + $0x74] sm:$0x1]  ;;  %v1161_v54 = vsel %vm7332_vm12, %v1156_v43, %v1160_v22  ;;  %v1171_v55 = vsel %vm7332_vm12, %v1166_v45, %v1170_v26  ;;  %v1338_v56 = vrot.slane %v1336_v46, 5  ;;  %v1344_v2 = vshll.u32 %v1091_v42, 16 }
  0x59   : > { %v6112_v58 = vcombine.low %v1161_v54, %v1171_v55  ;;  %v1324_v59 = vrot.slane %v1323_v48, 4  ;;  %v1333_v0 = vor.u32 %v1332_v50, %v1328_v49  ;;  %v1343_v3 = vrot.slane %v1341_v57, 4 }
  0x5a   : > { %v1350_v5 = vshll.u32 %v1092_v51, 16  ;;  %v1354_v6 = vshrl.u32 %v1092_v51, 16  ;;  %v1360_v9 = vshll.u32 %v1114_v52, 16  ;;  %v1346_v11 = vrot.slane %v1344_v2, 5 }
  0x5b   : > { %6782 = vmatmul.mubr.msk.bf16.vlgmr.msra.gmra.mxu0 %vm1556_vm9, %v6112_v58  ;;  %v1329_v35 = vsel %vm7332_vm12, %v1324_v59, %v1328_v49  ;;  %v1334_v10 = vrot.slane %v1333_v0, 4  ;;  %v643_v44 = vshrl.u32 %v6485_v36, 16  ;;  %v646_v16 = vshll.u32 %v6485_v36, 16  ;;  %v963_v36 = vld [vmem:[#allocation2 + $0x20] sm:$0x1] }
  0x5c   : > { %v1352_v12 = vrot.slane %v1350_v5, 5  ;;  %v1356_v13 = vrot.slane %v1354_v6, 4  ;;  %v1362_v15 = vrot.slane %v1360_v9, 5  ;;  %6848 = vmatpush3.bf16.msra.mxu0 %v7416_v63  ;;  %v1347_v21 = vor.u32 %v1346_v11, %v1343_v3  ;;  %v966_v9 = vld [vmem:[#allocation2 + $0x24] sm:$0xf] }
  0x5d   : > { %v1339_v20 = vsel %vm7332_vm12, %v1334_v10, %v1338_v56  ;;  %v645_v22 = vrot.slane %v643_v44, 7  ;;  %v651_v24 = vshrl.u32 %v6486_v37, 16  ;;  %v654_v28 = vshll.u32 %v6486_v37, 16 }
  0x5e   : > { %v6119_v25 = vcombine.low %v1329_v35, %v1339_v20  ;;  %v1357_v26 = vor.u32 %v1356_v13, %v1352_v12  ;;  %v467_v31 = vadd.f32 %v7326_v23, %v428_v47  ;;  %v1348_v32 = vrot.slane %v1347_v21, 4 }
  0x5f   : > { %v648_v33 = vor.u32 %v646_v16, %v645_v22  ;;  %v649_v34 = vrot.slane %v645_v22, 4  ;;  %v653_v38 = vrot.slane %v651_v24, 7  ;;  %v498_v39 = vmax.f32 %v466_v53, 0.0  ;;  %v7466_v53 = vld [vmem:[%s7218_s25 + $0x18] sm:$0xff]  }
  0x60   : > { %6797 = vmatprep.mubr.msk.bf16.mxu1 %vm1556_vm9, %v6119_v25  ;;  %v1358_v63 = vrot.slane %v1357_v26, 4  ;;  %v499_v40 = vmax.f32 %v467_v31, 0.0  ;;  %v441_v41 = vmul.f32 %v6585_v17, %v7320_v19  ;;  %v1353_v37 = vsel %vm7332_vm12, %v1348_v32, %v1352_v12  ;;  %v1068_v31 = vld [vmem:[%s10218_s3 + $0x10] sm:$0xf] }
  0x61   : > { %v656_v42 = vor.u32 %v654_v28, %v653_v38  ;;  %v658_v43 = vrot.slane %v653_v38, 4  ;;  %v960_v45 = vsel %vm7375_vm1, %v648_v33, %v959_v29  ;;  %v6487_v47 = vpack.c.bf16 %v498_v39, %v498_v39  ;;  %v1015_v29 = vld [vmem:[#allocation2 + $0x78] sm:$0xf]  ;;  %7092 = vmatprep.subr.msk.bf16.mxu0 %vm1605_vm6, %v1068_v31 }
  0x62   : > { %v1363_v46 = vsel %vm7332_vm12, %v1358_v63, %v1362_v15  ;;  %961 = vst [vmem:[#allocation2 + $0x18] sm:$0xf] %v960_v45  ;;  %v6488_v48 = vpack.c.bf16 %v499_v40, %v499_v40  ;;  %v442_v49 = vmul.f32 %v6586_v18, %v7320_v19  ;;  %v480_v52 = vadd.f32 %v7326_v23, %v441_v41 }
  0x63   : > { %v6120_v50 = vcombine.low %v1353_v37, %v1363_v46  ;;  %v657_v17 = vsel %vm7369_vm0, %v649_v34, %v656_v42  ;;  %v964_v51 = vsel %vm7381_vm2, %v658_v43, %v963_v36  ;;  %v660_v54 = vshrl.u32 %v6487_v47, 16  ;;  %v1019_v42 = vld [vmem:[#allocation2 + $0x80] sm:$0x1] }
  0x64   : > { %962 = vst.msk [vmem:[#allocation2 + $0x1c] sm:$0xf] %vm946_vm13, %v657_v17  ;;  %965 = vst [vmem:[#allocation2 + $0x20] sm:$0x1] %v964_v51  ;;  %v663_v55 = vshll.u32 %v6487_v47, 16  ;;  %v668_v56 = vshrl.u32 %v6488_v48, 16  ;;  %v481_v18 = vadd.f32 %v7326_v23, %v442_v49  ;;  %v6590_v59 = vunpack.c.h.bf16 %v7429_v14 }
  0x65   : > { %v671_v57 = vshll.u32 %v6488_v48, 16  ;;  %6798 = vmatmul.mubr.msk.bf16.vlgmr.msra.gmra.mxu1 %vm1556_vm9, %v6120_v50  ;;  %v512_v58 = vmax.f32 %v480_v52, 0.0  ;;  %v443_v0 = vmul.f32 %v6589_v30, %v7320_v19  ;;  %v662_v2 = vrot.slane %v660_v54, 7 }
  0x66   : > { %6814 = vmatpush3.bf16.msra.mxu1 %v7412_v62  ;;  %v670_v3 = vrot.slane %v668_v56, 7  ;;  %v6561_v5 = vunpack.c.l.bf16 %v7466_v53  ;;  %v6562_v6 = vunpack.c.h.bf16 %v7466_v53  ;;  %v513_v35 = vmax.f32 %v481_v18, 0.0  ;;  %v970_v62 = vld [vmem:[#allocation2 + $0x2c] sm:$0x1] }
  0x67   : > { %v6501_v10 = vpack.c.bf16 %v512_v58, %v512_v58  ;;  %v444_v11 = vmul.f32 %v6590_v59, %v7320_v19  ;;  %v482_v44 = vadd.f32 %v7326_v23, %v443_v0  ;;  %7091 = vmatprep.subr.msk.bf16.mxu1 %vm1605_vm6, %v1067_v1  ;;  %v665_v12 = vor.u32 %v663_v55, %v662_v2 }
  0x68   : > { %v666_v14 = vrot.slane %v662_v2, 4  ;;  %v673_v30 = vor.u32 %v671_v57, %v670_v3  ;;  %v675_v13 = vrot.slane %v670_v3, 4  ;;  %v6502_v16 = vpack.c.bf16 %v513_v35, %v513_v35 }
  0x69   : > { %v1077_v15 = vld [vmem:[#allocation2 + $0x18] sm:$0xf]  ;;  %v779_v20 = vshrl.u32 %v6501_v10, 16  ;;  %v782_v21 = vshll.u32 %v6501_v10, 16  ;;  %v483_v22 = vadd.f32 %v7326_v23, %v444_v11  ;;  %v967_v28 = vsel %vm7375_vm1, %v665_v12, %v966_v9 }
  0x6a   : > { %v1173_v24 = vshrl.u32 %v1077_v15, 16  ;;  %v1176_v25 = vshll.u32 %v1077_v15, 16  ;;  %v674_v26 = vsel %vm7369_vm0, %v666_v14, %v673_v30  ;;  %968 = vst [vmem:[#allocation2 + $0x24] sm:$0xf] %v967_v28  ;;  %v971_v34 = vsel %vm7381_vm2, %v675_v13, %v970_v62 }
  0x6b   : > { %v1078_v32 = vld [vmem:[#allocation2 + $0x1c] sm:$0xf]  ;;  %v1107_v33 = vld [vmem:[#allocation2 + $0x20] sm:$0x1]  ;;  %969 = vst.msk [vmem:[#allocation2 + $0x28] sm:$0xf] %vm946_vm13, %v674_v26  ;;  %v429_v36 = vmul.f32 %v6561_v5, %v7320_v19  ;;  %v430_v59 = vmul.f32 %v6562_v6, %v7320_v19 }
  0x6c   : > { %v781_v38 = vrot.slane %v779_v20, 7  ;;  %v787_v63 = vshrl.u32 %v6502_v16, 16  ;;  %v1175_v39 = vrot.slane %v1173_v24, 4  ;;  %v1178_v40 = vrot.slane %v1176_v25, 5  ;;  %972 = vst [vmem:[#allocation2 + $0x2c] sm:$0x1] %v971_v34 }
  0x6d   : > { %v1182_v41 = vshll.u32 %v1078_v32, 16  ;;  %v1186_v37 = vshrl.u32 %v1078_v32, 16  ;;  %v1192_v43 = vshll.u32 %v1107_v33, 16  ;;  %v790_v17 = vshll.u32 %v6502_v16, 16 }
  0x6e   : > { %v784_v45 = vor.u32 %v782_v21, %v781_v38  ;;  %v785_v46 = vrot.slane %v781_v38, 4  ;;  %v789_v47 = vrot.slane %v787_v63, 7  ;;  %v1179_v48 = vor.u32 %v1178_v40, %v1175_v39 }
  0x6f   : > { %v1184_v49 = vrot.slane %v1182_v41, 5  ;;  %v1188_v50 = vrot.slane %v1186_v37, 4  ;;  %v1194_v51 = vrot.slane %v1192_v43, 5  ;;  %v514_v54 = vmax.f32 %v482_v44, 0.0  ;;  %v1022_v43 = vld [vmem:[#allocation2 + $0x84] sm:$0xf] }
  0x70   : > { %v794_v52 = vrot.slane %v789_v47, 4  ;;  %v1016_v53 = vsel %vm7375_vm1, %v784_v45, %v1015_v29  ;;  %v1180_v55 = vrot.slane %v1179_v48, 4  ;;  %v792_v57 = vor.u32 %v790_v17, %v789_v47  ;;  %v1026_v45 = vld [vmem:[#allocation2 + $0x8c] sm:$0x1] }
  0x71   : > { %v1189_v56 = vor.u32 %v1188_v50, %v1184_v49  ;;  %1017 = vst [vmem:[#allocation2 + $0x78] sm:$0xf] %v1016_v53  ;;  %v515_v1 = vmax.f32 %v483_v22, 0.0  ;;  %v6503_v58 = vpack.c.bf16 %v514_v54, %v514_v54  ;;  %v7503_v0 = vadd.f32 %v7326_v23, %v429_v36  ;;  %v1079_v5 = vld [vmem:[#allocation2 + $0x24] sm:$0xf] }
  0x72   : > { %v1020_v18 = vsel %vm7381_vm2, %v794_v52, %v1019_v42  ;;  %v1185_v2 = vsel %vm7332_vm12, %v1180_v55, %v1184_v49  ;;  %v1080_v9 = vld [vmem:[#allocation2 + $0x28] sm:$0xf]  ;;  %v793_v35 = vsel %vm7369_vm0, %v785_v46, %v792_v57  ;;  %v1197_v44 = vshrl.u32 %v1079_v5, 16  ;;  %v2879_v61 = vld [vmem:[#allocation2 + $0x24] sm:$0xf] }
  0x73   : > { %v1190_v3 = vrot.slane %v1189_v56, 4  ;;  %1021 = vst [vmem:[#allocation2 + $0x80] sm:$0x1] %v1020_v18  ;;  %v6504_v10 = vpack.c.bf16 %v515_v1, %v515_v1  ;;  %v1108_v11 = vld [vmem:[#allocation2 + $0x2c] sm:$0x1]  ;;  %v1200_v12 = vshll.u32 %v1079_v5, 16  ;;  %v469_v33 = vadd.f32 %v7326_v23, %v430_v59 }
  0x74   : > { %v1206_v14 = vshll.u32 %v1080_v9, 16  ;;  %v1210_v30 = vshrl.u32 %v1080_v9, 16  ;;  %1018 = vst.msk [vmem:[#allocation2 + $0x7c] sm:$0xf] %vm946_vm13, %v793_v35  ;;  %v1216_v13 = vshll.u32 %v1108_v11, 16  ;;  %v796_v62 = vshrl.u32 %v6503_v58, 16 }
  0x75   : > { %v1195_v6 = vsel %vm7332_vm12, %v1190_v3, %v1194_v51  ;;  %v799_v15 = vshll.u32 %v6503_v58, 16  ;;  %v1199_v20 = vrot.slane %v1197_v44, 4  ;;  %v1202_v21 = vrot.slane %v1200_v12, 5  ;;  %v6614_v18 = vld [vmem:[%s7218_s25 + $0x20] sm:$0xff]   ;;  %v6621_v3 = vld [vmem:[%s7218_s25 + $0x58] sm:$0xff]  }
  0x76   : > { %v6113_v16 = vcombine.low %v1185_v2, %v1195_v6  ;;  %v1208_v22 = vrot.slane %v1206_v14, 5  ;;  %v1212_v24 = vrot.slane %v1210_v30, 4  ;;  %v1218_v25 = vrot.slane %v1216_v13, 5  ;;  %v8062_v4 = vld [vmem:[#allocation2 + $0x28] sm:$0xf] }
  0x77   : > { %v798_v26 = vrot.slane %v796_v62, 7  ;;  %v804_v28 = vshrl.u32 %v6504_v10, 16  ;;  %v1203_v29 = vor.u32 %v1202_v21, %v1199_v20  ;;  %v807_v32 = vshll.u32 %v6504_v10, 16 }
  0x78   : > { %6785 = vmatprep.mubr.msk.bf16.mxu0 %vm1556_vm9, %v6113_v16  ;;  %v1093_v31 = vld [vmem:[#allocation2 + $0x78] sm:$0xf]  ;;  %v500_v34 = vmax.f32 %v7503_v0, 0.0  ;;  %v1213_v38 = vor.u32 %v1212_v24, %v1208_v22  ;;  %v501_v46 = vmax.f32 %v469_v33, 0.0  ;;  %v6565_v12 = vunpack.c.l.bf16 %v6614_v18 }
  0x79   : > { %v1365_v63 = vshrl.u32 %v1093_v31, 16  ;;  %v1368_v36 = vshll.u32 %v1093_v31, 16  ;;  %v801_v39 = vor.u32 %v799_v15, %v798_v26  ;;  %v1204_v40 = vrot.slane %v1203_v29, 4  ;;  %v7532_v15 = vld [vmem:[%s7218_s25 + $0x60] sm:$0xff]  }
  0x7a   : > { %v1115_v41 = vld [vmem:[#allocation2 + $0x80] sm:$0x1]  ;;  %v802_v37 = vrot.slane %v798_v26, 4  ;;  %v806_v42 = vrot.slane %v804_v28, 7  ;;  %v1214_v47 = vrot.slane %v1213_v38, 4  ;;  %v6489_v10 = vpack.c.bf16 %v500_v34, %v500_v34 }
  0x7b   : > { %v1094_v48 = vld [vmem:[#allocation2 + $0x7c] sm:$0xf]  ;;  %v1367_v49 = vrot.slane %v1365_v63, 4  ;;  %v1370_v50 = vrot.slane %v1368_v36, 5  ;;  %v1384_v17 = vshll.u32 %v1115_v41, 16  ;;  %v1209_v51 = vsel %vm7332_vm12, %v1204_v40, %v1208_v22 }
  0x7c   : > { %v1374_v52 = vshll.u32 %v1094_v48, 16  ;;  %v1378_v53 = vshrl.u32 %v1094_v48, 16  ;;  %v809_v54 = vor.u32 %v807_v32, %v806_v42  ;;  %v1219_v55 = vsel %vm7332_vm12, %v1214_v47, %v1218_v25  ;;  %v973_v32 = vld [vmem:[#allocation2 + $0x30] sm:$0xf] }
  0x7d   : > { %v1371_v56 = vor.u32 %v1370_v50, %v1367_v49  ;;  %v1386_v57 = vrot.slane %v1384_v17, 5  ;;  %v811_v1 = vrot.slane %v806_v42, 4  ;;  %v6114_v58 = vcombine.low %v1209_v51, %v1219_v55 }
  0x7e   : > { %v1376_v59 = vrot.slane %v1374_v52, 5  ;;  %v1380_v0 = vrot.slane %v1378_v53, 4  ;;  %v810_v2 = vsel %vm7369_vm0, %v802_v37, %v809_v54  ;;  %v1023_v9 = vsel %vm7375_vm1, %v801_v39, %v1022_v43  ;;  %v977_v39 = vld [vmem:[#allocation2 + $0x38] sm:$0x1] }
  0x7f   : > { %v1372_v5 = vrot.slane %v1371_v56, 4  ;;  %1025 = vst.msk [vmem:[#allocation2 + $0x88] sm:$0xf] %vm946_vm13, %v810_v2  ;;  %v1027_v35 = vsel %vm7381_vm2, %v811_v1, %v1026_v45  ;;  %6786 = vmatmul.mubr.msk.bf16.gmra.mxu0 %vm1556_vm9, %v6114_v58  ;;  %1024 = vst [vmem:[#allocation2 + $0x84] sm:$0xf] %v1023_v9  ;;  %v6490_v44 = vpack.c.bf16 %v501_v46, %v501_v46  ;;  %v6566_v14 = vunpack.c.h.bf16 %v6614_v18 }
  0x80   : > { %v1381_v11 = vor.u32 %v1380_v0, %v1376_v59  ;;  %1028 = vst [vmem:[#allocation2 + $0x8c] sm:$0x1] %v1027_v35  ;;  %v677_v6 = vshrl.u32 %v6489_v10, 16  ;;  %v680_v13 = vshll.u32 %v6489_v10, 16  ;;  %v6593_v62 = vunpack.c.l.bf16 %v6621_v3 }
  0x81   : > { %v1377_v30 = vsel %vm7332_vm12, %v1372_v5, %v1376_v59  ;;  %v685_v20 = vshrl.u32 %v6490_v44, 16  ;;  %v688_v21 = vshll.u32 %v6490_v44, 16  ;;  %v431_v22 = vmul.f32 %v6565_v12, %v7320_v19 }
  0x82   : > { %v1382_v16 = vrot.slane %v1381_v11, 4  ;;  %v679_v24 = vrot.slane %v677_v6, 7  ;;  %v432_v25 = vmul.f32 %v6566_v14, %v7320_v19  ;;  %v6594_v26 = vunpack.c.h.bf16 %v6621_v3 }
  0x83   : > { %v445_v28 = vmul.f32 %v6593_v62, %v7320_v19  ;;  %v687_v31 = vrot.slane %v685_v20, 7  ;;  %v470_v33 = vadd.f32 %v7326_v23, %v431_v22  ;;  %v6597_v34 = vunpack.c.l.bf16 %v7532_v15 }
  0x84   : > { %v1387_v29 = vsel %vm7332_vm12, %v1382_v16, %v1386_v57  ;;  %v682_v63 = vor.u32 %v680_v13, %v679_v24  ;;  %v683_v36 = vrot.slane %v679_v24, 4  ;;  %v471_v40 = vadd.f32 %v7326_v23, %v432_v25  ;;  %v980_v25 = vld [vmem:[#allocation2 + $0x3c] sm:$0xf] }
  0x85   : > { %v6121_v38 = vcombine.low %v1377_v30, %v1387_v29  ;;  %v690_v37 = vor.u32 %v688_v21, %v687_v31  ;;  %v692_v42 = vrot.slane %v687_v31, 4  ;;  %v502_v43 = vmax.f32 %v470_v33, 0.0 }
  0x86   : > { %v1096_v41 = vld [vmem:[#allocation2 + $0x88] sm:$0xf]  ;;  %v446_v45 = vmul.f32 %v6594_v26, %v7320_v19  ;;  %v1095_v46 = vld [vmem:[#allocation2 + $0x84] sm:$0xf]  ;;  %v974_v50 = vsel %vm7375_vm1, %v682_v63, %v973_v32  ;;  %v484_v17 = vadd.f32 %v7326_v23, %v445_v28  ;;  %v503_v1 = vmax.f32 %v471_v40, 0.0 }
  0x87   : > { %6801 = vmatprep.mubr.msk.bf16.mxu1 %vm1556_vm9, %v6121_v38  ;;  %v1116_v47 = vld [vmem:[#allocation2 + $0x8c] sm:$0x1]  ;;  %v1398_v48 = vshll.u32 %v1096_v41, 16  ;;  %v1402_v49 = vshrl.u32 %v1096_v41, 16  ;;  %v1389_v51 = vshrl.u32 %v1095_v46, 16  ;;  %v1392_v52 = vshll.u32 %v1095_v46, 16 }
  0x88   : > { %v1408_v53 = vshll.u32 %v1116_v47, 16  ;;  %v691_v54 = vsel %vm7369_vm0, %v683_v36, %v690_v37  ;;  %975 = vst [vmem:[#allocation2 + $0x30] sm:$0xf] %v974_v50  ;;  %v978_v57 = vsel %vm7381_vm2, %v692_v42, %v977_v39  ;;  %v6491_v0 = vpack.c.bf16 %v502_v43, %v502_v43 }
  0x89   : > { %v1400_v55 = vrot.slane %v1398_v48, 5  ;;  %v1404_v56 = vrot.slane %v1402_v49, 4  ;;  %976 = vst.msk [vmem:[#allocation2 + $0x34] sm:$0xf] %vm946_vm13, %v691_v54  ;;  %v1391_v18 = vrot.slane %v1389_v51, 4  ;;  %v1394_v58 = vrot.slane %v1392_v52, 5 }
  0x8a   : > { %v1410_v59 = vrot.slane %v1408_v53, 5  ;;  %979 = vst [vmem:[#allocation2 + $0x38] sm:$0x1] %v978_v57  ;;  %v6492_v3 = vpack.c.bf16 %v503_v1, %v503_v1  ;;  %v485_v5 = vadd.f32 %v7326_v23, %v446_v45  ;;  %v516_v9 = vmax.f32 %v484_v17, 0.0  ;;  %v6615_v51 = vld [vmem:[%s7218_s25 + $0x28] sm:$0xff]  }
  0x8b   : > { %v1405_v2 = vor.u32 %v1404_v56, %v1400_v55  ;;  %v1395_v35 = vor.u32 %v1394_v58, %v1391_v18  ;;  %v694_v10 = vshrl.u32 %v6491_v0, 16  ;;  %v697_v11 = vshll.u32 %v6491_v0, 16  ;;  %v1029_v0 = vld [vmem:[#allocation2 + $0x90] sm:$0xf] }
  0x8c   : > { %v6598_v44 = vunpack.c.h.bf16 %v7532_v15  ;;  %v702_v14 = vshrl.u32 %v6492_v3, 16  ;;  %v705_v30 = vshll.u32 %v6492_v3, 16  ;;  %v517_v6 = vmax.f32 %v485_v5, 0.0 }
  0x8d   : > { %v1406_v12 = vrot.slane %v1405_v2, 4  ;;  %v1396_v13 = vrot.slane %v1395_v35, 4  ;;  %v696_v62 = vrot.slane %v694_v10, 7  ;;  %v6505_v16 = vpack.c.bf16 %v516_v9, %v516_v9  ;;  %v1033_v10 = vld [vmem:[#allocation2 + $0x98] sm:$0x1] }
  0x8e   : > { %v447_v20 = vmul.f32 %v6597_v34, %v7320_v19  ;;  %v704_v24 = vrot.slane %v702_v14, 7  ;;  %v6506_v26 = vpack.c.bf16 %v517_v6, %v517_v6  ;;  %v448_v28 = vmul.f32 %v6598_v44, %v7320_v19  ;;  %v984_v34 = vld [vmem:[#allocation2 + $0x44] sm:$0x1] }
  0x8f   : > { %v1411_v21 = vsel %vm7332_vm12, %v1406_v12, %v1410_v59  ;;  %v7557_v22 = vld [vmem:[#allocation2 + $0x30] sm:$0xf]  ;;  %v1401_v15 = vsel %vm7332_vm12, %v1396_v13, %v1400_v55  ;;  %v699_v33 = vor.u32 %v697_v11, %v696_v62  ;;  %v700_v19 = vrot.slane %v696_v62, 4 }
  0x90   : > { %v7562_v29 = vld [vmem:[#allocation2 + $0x34] sm:$0xf]  ;;  %v1221_v31 = vshrl.u32 %v7557_v22, 16  ;;  %v1224_v32 = vshll.u32 %v7557_v22, 16  ;;  %v6122_v38 = vcombine.low %v1401_v15, %v1411_v21  ;;  %v707_v42 = vor.u32 %v705_v30, %v704_v24 }
  0x91   : > { %v7566_v63 = vld [vmem:[#allocation2 + $0x38] sm:$0x1]  ;;  %v1230_v36 = vshll.u32 %v7562_v29, 16  ;;  %v1234_v39 = vshrl.u32 %v7562_v29, 16  ;;  %v709_v46 = vrot.slane %v704_v24, 4  ;;  %v981_v47 = vsel %vm7375_vm1, %v699_v33, %v980_v25 }
  0x92   : > { %v1223_v40 = vrot.slane %v1221_v31, 4  ;;  %v1226_v41 = vrot.slane %v1224_v32, 5  ;;  %v1240_v37 = vshll.u32 %v7566_v63, 16  ;;  %6802 = vmatmul.mubr.msk.bf16.gmra.mxu1 %vm1556_vm9, %v6122_v38  ;;  %v708_v50 = vsel %vm7369_vm0, %v700_v19, %v707_v42  ;;  %982 = vst [vmem:[#allocation2 + $0x3c] sm:$0xf] %v981_v47 }
  0x93   : > { %v1232_v43 = vrot.slane %v1230_v36, 5  ;;  %v1236_v45 = vrot.slane %v1234_v39, 4  ;;  %v813_v17 = vshrl.u32 %v6505_v16, 16  ;;  %983 = vst.msk [vmem:[#allocation2 + $0x40] sm:$0xf] %vm946_vm13, %v708_v50  ;;  %v985_v53 = vsel %vm7381_vm2, %v709_v46, %v984_v34 }
  0x94   : > { %v1227_v48 = vor.u32 %v1226_v41, %v1223_v40  ;;  %v1242_v49 = vrot.slane %v1240_v37, 5  ;;  %v816_v54 = vshll.u32 %v6505_v16, 16  ;;  %v821_v55 = vshrl.u32 %v6506_v26, 16  ;;  %986 = vst [vmem:[#allocation2 + $0x44] sm:$0x1] %v985_v53 }
  0x95   : > { %v1237_v52 = vor.u32 %v1236_v45, %v1232_v43  ;;  %v815_v57 = vrot.slane %v813_v17, 7  ;;  %v824_v1 = vshll.u32 %v6506_v26, 16  ;;  %v486_v18 = vadd.f32 %v7326_v23, %v447_v20  ;;  %v7597_v25 = vld [vmem:[%s10216_s1] ss:$0 sm:$0xff]  ;;  %v1036_v47 = vld [vmem:[#allocation2 + $0x9c] sm:$0xf] }
  0x96   : > { %v1228_v56 = vrot.slane %v1227_v48, 4  ;;  %v823_v59 = vrot.slane %v821_v55, 7  ;;  %v487_v2 = vadd.f32 %v7326_v23, %v448_v28  ;;  %v6569_v3 = vunpack.c.l.bf16 %v6615_v51  ;;  %v1040_v53 = vld [vmem:[#allocation2 + $0xa4] sm:$0x1] }
  0x97   : > { %v1238_v58 = vrot.slane %v1237_v52, 4  ;;  %v818_v9 = vor.u32 %v816_v54, %v815_v57  ;;  %v819_v35 = vrot.slane %v815_v57, 4  ;;  %v518_v11 = vmax.f32 %v486_v18, 0.0  ;;  %v7616_v57 = vld [vmem:[%s10217_s2] ss:$0 sm:$0xff] }
  0x98   : > { %v1233_v5 = vsel %vm7332_vm12, %v1228_v56, %v1232_v43  ;;  %v826_v12 = vor.u32 %v824_v1, %v823_v59  ;;  %v828_v14 = vrot.slane %v823_v59, 4  ;;  %v519_v30 = vmax.f32 %v487_v2, 0.0 }
  0x99   : > { %v1243_v44 = vsel %vm7332_vm12, %v1238_v58, %v1242_v49  ;;  %v1030_v13 = vsel %vm7375_vm1, %v818_v9, %v1029_v0  ;;  %v6507_v62 = vpack.c.bf16 %v518_v11, %v518_v11  ;;  %v6570_v23 = vunpack.c.h.bf16 %v6615_v51  ;;  %v7588_v16 = vld [vmem:[#allocation2 + $0x3c] sm:$0xf]  ;;  %v6616_v49 = vld [vmem:[%s7218_s25 + $0x30] sm:$0xff]  }
  0x9a   : > { %v6115_v6 = vcombine.low %v1233_v5, %v1243_v44  ;;  %v827_v20 = vsel %vm7369_vm0, %v819_v35, %v826_v12  ;;  %1031 = vst [vmem:[#allocation2 + $0x90] sm:$0xf] %v1030_v13  ;;  %v1034_v21 = vsel %vm7381_vm2, %v828_v14, %v1033_v10  ;;  %v6508_v24 = vpack.c.bf16 %v519_v30, %v519_v30  ;;  %v7601_v28 = vld [vmem:[#allocation2 + $0x40] sm:$0xf] }
  0x9b   : > { %v433_v26 = vmul.f32 %v7597_v25, %v6569_v3  ;;  %v1245_v15 = vshrl.u32 %v7588_v16, 16  ;;  %v1248_v31 = vshll.u32 %v7588_v16, 16  ;;  %1032 = vst.msk [vmem:[#allocation2 + $0x94] sm:$0xf] %vm946_vm13, %v827_v20  ;;  %1035 = vst [vmem:[#allocation2 + $0x98] sm:$0x1] %v1034_v21  ;;  %v434_v48 = vmul.f32 %v7597_v25, %v6570_v23 }
  0x9c   : > { %6789 = vmatprep.mubr.msk.bf16.mxu0 %vm1556_vm9, %v6115_v6  ;;  %v830_v32 = vshrl.u32 %v6507_v62, 16  ;;  %v833_v33 = vshll.u32 %v6507_v62, 16  ;;  %v7606_v34 = vld [vmem:[#allocation2 + $0x44] sm:$0x1]  ;;  %v1254_v38 = vshll.u32 %v7601_v28, 16  ;;  %v1258_v36 = vshrl.u32 %v7601_v28, 16 }
  0x9d   : > { %v838_v39 = vshrl.u32 %v6508_v24, 16  ;;  %v841_v19 = vshll.u32 %v6508_v24, 16  ;;  %v1247_v40 = vrot.slane %v1245_v15, 4  ;;  %v1250_v41 = vrot.slane %v1248_v31, 5  ;;  %v6623_v20 = vld [vmem:[%s7218_s25 + $0x68] sm:$0xff]  }
  0x9e   : > { %v1264_v37 = vshll.u32 %v7606_v34, 16  ;;  %v832_v42 = vrot.slane %v830_v32, 7  ;;  %v1256_v43 = vrot.slane %v1254_v38, 5  ;;  %v1260_v45 = vrot.slane %v1258_v36, 4 }
  0x9f   : > { %v840_v46 = vrot.slane %v838_v39, 7  ;;  %v1251_v50 = vor.u32 %v1250_v41, %v1247_v40  ;;  %v472_v1 = vadd.f32 %v7616_v57, %v433_v26  ;;  %v473_v0 = vadd.f32 %v7616_v57, %v434_v48 }
  0xa0   : > { %v1266_v17 = vrot.slane %v1264_v37, 5  ;;  %v835_v51 = vor.u32 %v833_v33, %v832_v42  ;;  %v836_v52 = vrot.slane %v832_v42, 4  ;;  %v1261_v54 = vor.u32 %v1260_v45, %v1256_v43 }
  0xa1   : > { %v843_v55 = vor.u32 %v841_v19, %v840_v46  ;;  %v845_v56 = vrot.slane %v840_v46, 4  ;;  %v1252_v18 = vrot.slane %v1251_v50, 4  ;;  %v7619_v58 = vld [vmem:[#allocation2 + $0x90] sm:$0xf]  ;;  %v6573_v2 = vunpack.c.l.bf16 %v6616_v49 }
  0xa2   : > { %v1037_v59 = vsel %vm7375_vm1, %v835_v51, %v1036_v47  ;;  %v1262_v3 = vrot.slane %v1261_v54, 4  ;;  %v7624_v5 = vld [vmem:[#allocation2 + $0x94] sm:$0xf]  ;;  %v7626_v9 = vld [vmem:[#allocation2 + $0x98] sm:$0x1]  ;;  %v1413_v35 = vshrl.u32 %v7619_v58, 16  ;;  %v6574_v38 = vunpack.c.h.bf16 %v6616_v49 }
  0xa3   : > { %v844_v10 = vsel %vm7369_vm0, %v836_v52, %v843_v55  ;;  %1038 = vst [vmem:[#allocation2 + $0x9c] sm:$0xf] %v1037_v59  ;;  %v1041_v11 = vsel %vm7381_vm2, %v845_v56, %v1040_v53  ;;  %v1257_v44 = vsel %vm7332_vm12, %v1252_v18, %v1256_v43  ;;  %v1416_v12 = vshll.u32 %v7619_v58, 16 }
  0xa4   : > { %v1422_v14 = vshll.u32 %v7624_v5, 16  ;;  %v1426_v30 = vshrl.u32 %v7624_v5, 16  ;;  %1039 = vst.msk [vmem:[#allocation2 + $0xa0] sm:$0xf] %vm946_vm13, %v844_v10  ;;  %1042 = vst [vmem:[#allocation2 + $0xa4] sm:$0x1] %v1041_v11  ;;  %v1267_v6 = vsel %vm7332_vm12, %v1262_v3, %v1266_v17  ;;  %v435_v19 = vmul.f32 %v7597_v25, %v6573_v2 }
  0xa5   : > { %v1415_v13 = vrot.slane %v1413_v35, 4  ;;  %v1432_v62 = vshll.u32 %v7626_v9, 16  ;;  %v504_v23 = vmax.f32 %v472_v1, 0.0  ;;  %v6116_v21 = vcombine.low %v1257_v44, %v1267_v6 }
  0xa6   : > { %v1418_v24 = vrot.slane %v1416_v12, 5  ;;  %v1424_v26 = vrot.slane %v1422_v14, 5  ;;  %v1428_v15 = vrot.slane %v1426_v30, 4  ;;  %v505_v32 = vmax.f32 %v473_v0, 0.0  ;;  %v987_v12 = vld [vmem:[#allocation2 + $0x48] sm:$0xf] }
  0xa7   : > { %v1434_v31 = vrot.slane %v1432_v62, 5  ;;  %v6493_v33 = vpack.c.bf16 %v504_v23, %v504_v23  ;;  %6790 = vmatmul.mubr.msk.bf16.gmra.mxu0 %vm1556_vm9, %v6116_v21  ;;  %v6601_v40 = vunpack.c.l.bf16 %v6623_v20  ;;  %v436_v43 = vmul.f32 %v7597_v25, %v6574_v38 }
  0xa8   : > { %v1419_v36 = vor.u32 %v1418_v24, %v1415_v13  ;;  %v1429_v39 = vor.u32 %v1428_v15, %v1424_v26  ;;  %v6494_v41 = vpack.c.bf16 %v505_v32, %v505_v32  ;;  %v474_v48 = vadd.f32 %v7616_v57, %v435_v19  ;;  %v991_v24 = vld [vmem:[#allocation2 + $0x50] sm:$0x1] }
  0xa9   : > { %v711_v37 = vshrl.u32 %v6493_v33, 16  ;;  %v714_v42 = vshll.u32 %v6493_v33, 16  ;;  %v6602_v50 = vunpack.c.h.bf16 %v6623_v20  ;;  %v475_v53 = vadd.f32 %v7616_v57, %v436_v43  ;;  %v6624_v19 = vld [vmem:[%s7218_s25 + $0x70] sm:$0xff]  }
  0xaa   : > { %v1420_v45 = vrot.slane %v1419_v36, 4  ;;  %v1430_v46 = vrot.slane %v1429_v39, 4  ;;  %v7646_v47 = vld [vmem:[#allocation2 + $0x9c] sm:$0xf]  ;;  %v449_v54 = vmul.f32 %v7597_v25, %v6601_v40  ;;  %v719_v44 = vshrl.u32 %v6494_v41, 16 }
  0xab   : > { %v7649_v49 = vld [vmem:[#allocation2 + $0xa0] sm:$0xf]  ;;  %v7651_v17 = vld [vmem:[#allocation2 + $0xa4] sm:$0x1]  ;;  %v1437_v51 = vshrl.u32 %v7646_v47, 16  ;;  %v1440_v52 = vshll.u32 %v7646_v47, 16  ;;  %v450_v32 = vmul.f32 %v7597_v25, %v6602_v50 }
  0xac   : > { %v1425_v55 = vsel %vm7332_vm12, %v1420_v45, %v1424_v26  ;;  %v1435_v56 = vsel %vm7332_vm12, %v1430_v46, %v1434_v31  ;;  %v1446_v1 = vshll.u32 %v7649_v49, 16  ;;  %v1450_v18 = vshrl.u32 %v7649_v49, 16 }
  0xad   : > { %v6123_v59 = vcombine.low %v1425_v55, %v1435_v56  ;;  %v1439_v0 = vrot.slane %v1437_v51, 4  ;;  %v1442_v2 = vrot.slane %v1440_v52, 5  ;;  %v1456_v3 = vshll.u32 %v7651_v17, 16  ;;  %v994_v55 = vld [vmem:[#allocation2 + $0x54] sm:$0xf] }
  0xae   : > { %v1448_v35 = vrot.slane %v1446_v1, 5  ;;  %v1452_v10 = vrot.slane %v1450_v18, 4  ;;  %v713_v11 = vrot.slane %v711_v37, 7  ;;  %v722_v6 = vshll.u32 %v6494_v41, 16 }
  0xaf   : > { %6805 = vmatprep.mubr.msk.bf16.mxu1 %vm1556_vm9, %v6123_v59  ;;  %v1443_v14 = vor.u32 %v1442_v2, %v1439_v0  ;;  %v1458_v30 = vrot.slane %v1456_v3, 5  ;;  %v506_v13 = vmax.f32 %v474_v48, 0.0  ;;  %v721_v21 = vrot.slane %v719_v44, 7  ;;  %v7680_v0 = vld [vmem:[#allocation2 + $0x10] sm:$0xf] }
  0xb0   : > { %v1453_v62 = vor.u32 %v1452_v10, %v1448_v35  ;;  %v716_v23 = vor.u32 %v714_v42, %v713_v11  ;;  %v717_v20 = vrot.slane %v713_v11, 4  ;;  %v507_v15 = vmax.f32 %v475_v53, 0.0  ;;  %v998_v10 = vld [vmem:[#allocation2 + $0x5c] sm:$0x1] }
  0xb1   : > { %v1444_v26 = vrot.slane %v1443_v14, 4  ;;  %v6495_v31 = vpack.c.bf16 %v506_v13, %v506_v13  ;;  %v724_v38 = vor.u32 %v722_v6, %v721_v21  ;;  %v726_v36 = vrot.slane %v721_v21, 4 }
  0xb2   : > { %v1454_v33 = vrot.slane %v1453_v62, 4  ;;  %v988_v39 = vsel %vm7375_vm1, %v716_v23, %v987_v12  ;;  %v6496_v41 = vpack.c.bf16 %v507_v15, %v507_v15  ;;  %v488_v48 = vadd.f32 %v7616_v57, %v449_v54 }
  0xb3   : > { %v1449_v40 = vsel %vm7332_vm12, %v1444_v26, %v1448_v35  ;;  %989 = vst [vmem:[#allocation2 + $0x48] sm:$0xf] %v988_v39  ;;  %v728_v37 = vshrl.u32 %v6495_v31, 16  ;;  %v731_v42 = vshll.u32 %v6495_v31, 16  ;;  %v725_v45 = vsel %vm7369_vm0, %v717_v20, %v724_v38  ;;  %v7691_v20 = vld [vmem:[#allocation2 + $0x68] sm:$0x1] }
  0xb4   : > { %v1459_v43 = vsel %vm7332_vm12, %v1454_v33, %v1458_v30  ;;  %v992_v46 = vsel %vm7381_vm2, %v726_v36, %v991_v24  ;;  %990 = vst.msk [vmem:[#allocation2 + $0x4c] sm:$0xf] %vm946_vm13, %v725_v45  ;;  %v736_v52 = vshrl.u32 %v6496_v41, 16  ;;  %v739_v53 = vshll.u32 %v6496_v41, 16  ;;  %v7686_v30 = vld [vmem:[#allocation2 + $0x14] sm:$0x1] }
  0xb5   : > { %v6124_v50 = vcombine.low %v1449_v40, %v1459_v43  ;;  %993 = vst [vmem:[#allocation2 + $0x50] sm:$0x1] %v992_v46  ;;  %v730_v51 = vrot.slane %v728_v37, 7  ;;  %v489_v56 = vadd.f32 %v7616_v57, %v450_v32  ;;  %v520_v1 = vmax.f32 %v488_v48, 0.0  ;;  %v1043_v48 = vld [vmem:[#allocation2 + $0xa8] sm:$0xf] }
  0xb6   : > { %v6605_v18 = vunpack.c.l.bf16 %v6624_v19  ;;  %v6606_v59 = vunpack.c.h.bf16 %v6624_v19  ;;  %v2122_v2 = vrot.slane %v7680_v0, 5  ;;  %v738_v35 = vrot.slane %v736_v52, 7 }
  0xb7   : > { %6806 = vmatmul.mubr.msk.bf16.gmra.mxu1 %vm1556_vm9, %v6124_v50  ;;  %v733_v54 = vor.u32 %v731_v42, %v730_v51  ;;  %v734_v3 = vrot.slane %v730_v51, 4  ;;  %v521_v11 = vmax.f32 %v489_v56, 0.0  ;;  %v6509_v44 = vpack.c.bf16 %v520_v1, %v520_v1 }
  0xb8   : > { %v451_v12 = vmul.f32 %v7597_v25, %v6605_v18  ;;  %v452_v14 = vmul.f32 %v7597_v25, %v6606_v59  ;;  %v2125_v6 = vrot.slane %v7686_v30, 5  ;;  %v741_v13 = vor.u32 %v739_v53, %v738_v35 }
  0xb9   : > { %v743_v62 = vrot.slane %v738_v35, 4  ;;  %v995_v23 = vsel %vm7375_vm1, %v733_v54, %v994_v55  ;;  %v2174_v21 = vrot.slane %v7691_v20, 5  ;;  %v6510_v26 = vpack.c.bf16 %v521_v11, %v521_v11  ;;  %v1047_v55 = vld [vmem:[#allocation2 + $0xb0] sm:$0x1] }
  0xba   : > { %v7694_v24 = vld [vmem:[#allocation2 + $0x48] sm:$0xf]  ;;  %996 = vst [vmem:[#allocation2 + $0x54] sm:$0xf] %v995_v23  ;;  %v847_v15 = vshrl.u32 %v6509_v44, 16  ;;  %v850_v31 = vshll.u32 %v6509_v44, 16  ;;  %v742_v33 = vsel %vm7369_vm0, %v734_v3, %v741_v13  ;;  %v490_v41 = vadd.f32 %v7616_v57, %v451_v12 }
  0xbb   : > { %v1269_v25 = vshrl.u32 %v7694_v24, 16  ;;  %v1272_v32 = vshll.u32 %v7694_v24, 16  ;;  %v999_v38 = vsel %vm7381_vm2, %v743_v62, %v998_v10  ;;  %v7702_v36 = vld [vmem:[#allocation2 + $0x4c] sm:$0xf]  ;;  %997 = vst.msk [vmem:[#allocation2 + $0x58] sm:$0xf] %vm946_vm13, %v742_v33  ;;  %v491_v37 = vadd.f32 %v7616_v57, %v452_v14 }
  0xbc   : > { %v7704_v39 = vld [vmem:[#allocation2 + $0x50] sm:$0x1]  ;;  %1000 = vst [vmem:[#allocation2 + $0x5c] sm:$0x1] %v999_v38  ;;  %v849_v19 = vrot.slane %v847_v15, 7  ;;  %v855_v40 = vshrl.u32 %v6510_v26, 16 }
  0xbd   : > { %v1271_v42 = vrot.slane %v1269_v25, 4  ;;  %v1274_v43 = vrot.slane %v1272_v32, 5  ;;  %v1278_v45 = vshll.u32 %v7702_v36, 16  ;;  %v1282_v46 = vshrl.u32 %v7702_v36, 16 }
  0xbe   : > { %v1288_v50 = vshll.u32 %v7704_v39, 16  ;;  %v852_v51 = vor.u32 %v850_v31, %v849_v19  ;;  %v853_v52 = vrot.slane %v849_v19, 4  ;;  %v857_v53 = vrot.slane %v855_v40, 7 }
  0xbf   : > { %v1275_v56 = vor.u32 %v1274_v43, %v1271_v42  ;;  %v1280_v1 = vrot.slane %v1278_v45, 5  ;;  %v1284_v18 = vrot.slane %v1282_v46, 4  ;;  %v858_v59 = vshll.u32 %v6510_v26, 16 }
  0xc0   : > { %vm2110_vm3 = vcmask 1042432   ;;  %v1290_v54 = vrot.slane %v1288_v50, 5  ;;  %v862_v57 = vrot.slane %v857_v53, 4  ;;  %v1044_v3 = vsel %vm7375_vm1, %v852_v51, %v1043_v48  ;;  %v2062_v48 = vld [vmem:[#allocation2] sm:$0xe] }
  0xc1   : > { %v522_v35 = vmax.f32 %v490_v41, 0.0  ;;  %v1276_v10 = vrot.slane %v1275_v56, 4  ;;  %v1285_v11 = vor.u32 %v1284_v18, %v1280_v1  ;;  %v7714_v44 = vld [vmem:[#allocation2 + $0x54] sm:$0xf]  ;;  %v860_v12 = vor.u32 %v858_v59, %v857_v53  ;;  %1045 = vst [vmem:[#allocation2 + $0xa8] sm:$0xf] %v1044_v3 }
  0xc2   : > { %v523_v14 = vmax.f32 %v491_v37, 0.0  ;;  %v1293_v13 = vshrl.u32 %v7714_v44, 16  ;;  %v1296_v62 = vshll.u32 %v7714_v44, 16  ;;  %v1048_v23 = vsel %vm7381_vm2, %v862_v57, %v1047_v55  ;;  %v7722_v25 = vld [vmem:[#allocation2 + $0x58] sm:$0xf] }
  0xc3   : > { %v6511_v26 = vpack.c.bf16 %v522_v35, %v522_v35  ;;  %v1281_v15 = vsel %vm7332_vm12, %v1276_v10, %v1280_v1  ;;  %v1286_v31 = vrot.slane %v1285_v11, 4  ;;  %v7724_v32 = vld [vmem:[#allocation2 + $0x5c] sm:$0x1]  ;;  %v861_v33 = vsel %vm7369_vm0, %v853_v52, %v860_v12  ;;  %1049 = vst [vmem:[#allocation2 + $0xb0] sm:$0x1] %v1048_v23 }
  0xc4   : > { %v6512_v38 = vpack.c.bf16 %v523_v14, %v523_v14  ;;  %v1295_v19 = vrot.slane %v1293_v13, 4  ;;  %v1298_v40 = vrot.slane %v1296_v62, 5  ;;  %v1302_v41 = vshll.u32 %v7722_v25, 16  ;;  %1046 = vst.msk [vmem:[#allocation2 + $0xac] sm:$0xf] %vm946_vm13, %v861_v33 }
  0xc5   : > { %v1306_v37 = vshrl.u32 %v7722_v25, 16  ;;  %v1291_v42 = vsel %vm7332_vm12, %v1286_v31, %v1290_v54  ;;  %v1312_v43 = vshll.u32 %v7724_v32, 16  ;;  %v864_v45 = vshrl.u32 %v6511_v26, 16  ;;  %v1050_v18 = vld [vmem:[#allocation2 + $0xb4] sm:$0xf] }
  0xc6   : > { %v867_v46 = vshll.u32 %v6511_v26, 16  ;;  %v6117_v50 = vcombine.low %v1281_v15, %v1291_v42  ;;  %v1299_v51 = vor.u32 %v1298_v40, %v1295_v19  ;;  %v1304_v52 = vrot.slane %v1302_v41, 5  ;;  %v7739_v14 = vld [vmem:[#allocation2 + $0x4] sm:$0xf] }
  0xc7   : > { %v1308_v53 = vrot.slane %v1306_v37, 4  ;;  %v1314_v55 = vrot.slane %v1312_v43, 5  ;;  %v866_v56 = vrot.slane %v864_v45, 7  ;;  %v872_v1 = vshrl.u32 %v6512_v38, 16 }
  0xc8   : > { %vm2111_vm4 = vcmask 1046532   ;;  %6793 = vmatprep.mubr.msk.bf16.mxu0 %vm1556_vm9, %v6117_v50  ;;  %v1300_v59 = vrot.slane %v1299_v51, 4  ;;  %v7735_v3 = vld [vmem:[#allocation2 + $0xa8] sm:$0xf]  ;;  %v875_v54 = vshll.u32 %v6512_v38, 16  ;;  %v6175_v35 = vrot.slane %v2062_v48, 9 }
  0xc9   : > { %v1309_v57 = vor.u32 %v1308_v53, %v1304_v52  ;;  %v1461_v10 = vshrl.u32 %v7735_v3, 16  ;;  %v1464_v11 = vshll.u32 %v7735_v3, 16  ;;  %v869_v12 = vor.u32 %v867_v46, %v866_v56  ;;  %vm7748_vm5 = vmor %vm2110_vm3, %vm2111_vm4  ;;  %v1054_v48 = vld [vmem:[#allocation2 + $0xbc] sm:$0x1]  ;;  %v2063_v50 = vld [vmem:[#allocation2 + $0xc] sm:$0xe] }
  0xca   : > { %v2115_v13 = vrot.slane %v7739_v14, 5  ;;  %v1305_v62 = vsel %vm7332_vm12, %v1300_v59, %v1304_v52  ;;  %v7744_v26 = vld [vmem:[#allocation2 + $0xb0] sm:$0x1]  ;;  %v870_v15 = vrot.slane %v866_v56, 4  ;;  %v874_v31 = vrot.slane %v872_v1, 7 }
  0xcb   : > { %v1310_v23 = vrot.slane %v1309_v57, 4  ;;  %v7752_v38 = vld [vmem:[#allocation2 + $0xac] sm:$0xf]  ;;  %v1463_v19 = vrot.slane %v1461_v10, 4  ;;  %v1466_v40 = vrot.slane %v1464_v11, 5  ;;  %v1480_v41 = vshll.u32 %v7744_v26, 16 }
  0xcc   : > { %v1051_v37 = vsel %vm7375_vm1, %v869_v12, %v1050_v18  ;;  %v1470_v43 = vshll.u32 %v7752_v38, 16  ;;  %v1474_v45 = vshrl.u32 %v7752_v38, 16  ;;  %v877_v46 = vor.u32 %v875_v54, %v874_v31  ;;  %v2064_v12 = vld [vmem:[#allocation2 + $0x18] sm:$0xe] }
  0xcd   : > { %v1315_v42 = vsel %vm7332_vm12, %v1310_v23, %v1314_v55  ;;  %1052 = vst [vmem:[#allocation2 + $0xb4] sm:$0xf] %v1051_v37  ;;  %v1467_v52 = vor.u32 %v1466_v40, %v1463_v19  ;;  %v879_v53 = vrot.slane %v874_v31, 4  ;;  %v2116_v56 = vsel %vm7748_vm5, %v6175_v35, %v2115_v13  ;;  %v7775_v23 = vld [vmem:[#allocation2] sm:$0xf] }
  0xce   : > { %v6118_v51 = vcombine.low %v1305_v62, %v1315_v42  ;;  %v1472_v1 = vrot.slane %v1470_v43, 5  ;;  %v1476_v59 = vrot.slane %v1474_v45, 4  ;;  %v878_v18 = vsel %vm7369_vm0, %v870_v15, %v877_v46  ;;  %v2065_v31 = vld [vmem:[#allocation2 + $0x24] sm:$0xe] }
  0xcf   : > { %v2117_v55 = vrot.slane %v2115_v13, 4  ;;  %v1468_v57 = vrot.slane %v1467_v52, 4  ;;  %1053 = vst.msk [vmem:[#allocation2 + $0xb8] sm:$0xf] %vm946_vm13, %v878_v18  ;;  %v1055_v54 = vsel %vm7381_vm2, %v879_v53, %v1054_v48  ;;  %v6176_v10 = vrot.slane %v2063_v50, 9 }
  0xd0   : > { %6794 = vmatmul.mubr.msk.bf16.gmra.mxu0 %vm1556_vm9, %v6118_v51  ;;  %v2124_v11 = vrot.slane %v2122_v2, 4  ;;  %v1477_v35 = vor.u32 %v1476_v59, %v1472_v1  ;;  %v1482_v62 = vrot.slane %v1480_v41, 5  ;;  %1056 = vst [vmem:[#allocation2 + $0xbc] sm:$0x1] %v1055_v54  ;;  %v6143_v15 = vcombine.low %v7775_v23, %v7739_v14  ;;  %v7787_v41 = vld [vmem:[#allocation2 + $0xc] sm:$0xf] }
  0xd1   : > { %v2119_v13 = vsel %vm7748_vm5, %v2117_v55, %v2118_v60  ;;  %v2123_v40 = vsel %vm7748_vm5, %v6176_v10, %v2122_v2  ;;  %v1473_v37 = vsel %vm7332_vm12, %v1468_v57, %v1472_v1  ;;  %v6177_v45 = vrot.slane %v2064_v12, 9  ;;  %v7147_v2 = vld [vmem:[%s10218_s3 + $0x10] sm:$0xf]  ;;  %v7149_v50 = vld [vmem:[#allocation2 + $0x20] sm:$0x1] }
  0xd2   : > { %v6191_v19 = vcombine.low %v2116_v56, %v2119_v13  ;;  %v2126_v7 = vsel %vm7748_vm5, %v2124_v11, %v2125_v6  ;;  %v1478_v42 = vrot.slane %v1477_v35, 4  ;;  %v3402_v30 = vsel %vm1605_vm6, %v7147_v2, 0  ;;  %v7800_v6 = vld [vmem:[#allocation2 + $0x1c] sm:$0xf]  ;;  %v7807_v59 = vld [vmem:[#allocation2 + $0x28] sm:$0xf] }
  0xd3   : > { %v6192_v43 = vcombine.low %v2123_v40, %v2126_v7  ;;  %v2129_v48 = vrot.slane %v7800_v6, 5  ;;  %v2132_v51 = vrot.slane %v7149_v50, 5  ;;  %v6178_v52 = vrot.slane %v2065_v31, 9  ;;  %v7151_v10 = vld [vmem:[#allocation2 + $0x2c] sm:$0x1] }
  0xd4   : > { %v7793_v46 = vld [vmem:[#allocation2 + $0xb4] sm:$0xf]  ;;  %6849 = vmatprep.mubr.msk.bf16.mxu0 %vm1556_vm9, %v6191_v19  ;;  %v1483_v53 = vsel %vm7332_vm12, %v1478_v42, %v1482_v62  ;;  %v2136_v18 = vrot.slane %v7807_v59, 5  ;;  %v2139_v11 = vrot.slane %v7151_v10, 5  ;;  %v2066_v12 = vld [vmem:[#allocation2 + $0x30] sm:$0xe] }
  0xd5   : > { %v1485_v56 = vshrl.u32 %v7793_v46, 16  ;;  %v1488_v1 = vshll.u32 %v7793_v46, 16  ;;  %v6125_v55 = vcombine.low %v1473_v37, %v1483_v53  ;;  %v2130_v57 = vsel %vm7748_vm5, %v6177_v45, %v2129_v48  ;;  %v7815_v35 = vld [vmem:[%s10218_s3 + $0x18] sm:$0xf]  ;;  %v7152_v19 = vld [vmem:[%s10218_s3 + $0xc] sm:$0xf] }
  0xd6   : > { %v2131_v54 = vrot.slane %v2129_v48, 4  ;;  %v7817_v62 = vld [vmem:[#allocation2 + $0xb8] sm:$0xf]  ;;  %v7823_v40 = vsel %vm1605_vm6, %v7152_v19, 0  ;;  %v2138_v7 = vrot.slane %v2136_v18, 4  ;;  %v2137_v48 = vsel %vm7748_vm5, %v6178_v52, %v2136_v18 }
  0xd7   : > { %v1487_v13 = vrot.slane %v1485_v56, 4  ;;  %v1490_v31 = vrot.slane %v1488_v1, 5  ;;  %6809 = vmatprep.mubr.msk.bf16.mxu1 %vm1556_vm9, %v6125_v55  ;;  %v7826_v37 = vld [vmem:[#allocation2 + $0xbc] sm:$0x1]  ;;  %v1494_v42 = vshll.u32 %v7817_v62, 16  ;;  %v1498_v45 = vshrl.u32 %v7817_v62, 16 }
  0xd8   : > { %6850 = vmatmul.mubr.msk.bf16.vlgmr.msra.gmra.mxu0 %vm1556_vm9, %v6192_v43  ;;  %v2133_v2 = vsel %vm7748_vm5, %v2131_v54, %v2132_v51  ;;  %v1504_v53 = vshll.u32 %v7826_v37, 16  ;;  %v2140_v1 = vsel %vm7748_vm5, %v2138_v7, %v2139_v11  ;;  %v2067_v55 = vld [vmem:[#allocation2 + $0x3c] sm:$0xe]  ;;  %v7838_v60 = vld [vmem:[#allocation2 + $0x18] sm:$0xf]  ;;  %v6179_v51 = vrot.slane %v2066_v12, 9 }
  0xd9   : > { %v1491_v50 = vor.u32 %v1490_v31, %v1487_v13  ;;  %6916 = vmatpush3.bf16.msra.mxu0 %v3402_v30  ;;  %v6193_v56 = vcombine.low %v2130_v57, %v2133_v2  ;;  %v1496_v10 = vrot.slane %v1494_v42, 5  ;;  %v1500_v19 = vrot.slane %v1498_v45, 4  ;;  %v2068_v54 = vld [vmem:[#allocation2 + $0x48] sm:$0xe]  ;;  %v7848_v42 = vld [vmem:[#allocation2 + $0x24] sm:$0xf] }
  0xda   : > { %7094 = vmatprep.subr.msk.bf16.mxu0 %vm1605_vm6, %v7815_v35  ;;  %v1506_v18 = vrot.slane %v1504_v53, 5  ;;  %v2143_v30 = vrot.slane %v7562_v29, 5  ;;  %v2146_v57 = vrot.slane %v7566_v63, 5  ;;  %v6194_v13 = vcombine.low %v2137_v48, %v2140_v1  ;;  %v2069_v1 = vld [vmem:[#allocation2 + $0x54] sm:$0xe] }
  0xdb   : > { %v1492_v52 = vrot.slane %v1491_v50, 4  ;;  %6853 = vmatprep.mubr.msk.bf16.mxu0 %vm1556_vm9, %v6193_v56  ;;  %v1501_v11 = vor.u32 %v1500_v19, %v1496_v10  ;;  %v6180_v31 = vrot.slane %v2067_v55, 9  ;;  %v2150_v7 = vrot.slane %v7601_v28, 5  ;;  %v2070_v55 = vld [vmem:[#allocation2 + $0x60] sm:$0xe] }
  0xdc   : > { %v2144_v45 = vsel %vm7748_vm5, %v6179_v51, %v2143_v30  ;;  %v2145_v2 = vrot.slane %v2143_v30, 4  ;;  %v2153_v50 = vrot.slane %v7606_v34, 5  ;;  %v6181_v12 = vrot.slane %v2068_v54, 9  ;;  %v2071_v30 = vld [vmem:[#allocation2 + $0x6c] sm:$0xe] }
  0xdd   : > { %v1497_v63 = vsel %vm7332_vm12, %v1492_v52, %v1496_v10  ;;  %v1502_v53 = vrot.slane %v1501_v11, 4  ;;  %v2151_v48 = vsel %vm7748_vm5, %v6180_v31, %v2150_v7  ;;  %v2152_v56 = vrot.slane %v2150_v7, 4 }
  0xde   : > { %v2147_v19 = vsel %vm7748_vm5, %v2145_v2, %v2146_v57  ;;  %v2157_v43 = vrot.slane %v7702_v36, 5  ;;  %v2160_v51 = vrot.slane %v7704_v39, 5  ;;  %v6147_v52 = vcombine.low %v7557_v22, %v7562_v29 }
  0xdf   : > { %v1507_v34 = vsel %vm7332_vm12, %v1502_v53, %v1506_v18  ;;  %v6195_v10 = vcombine.low %v2144_v45, %v2147_v19  ;;  %v2154_v11 = vsel %vm7748_vm5, %v2152_v56, %v2153_v50  ;;  %v6182_v18 = vrot.slane %v2069_v1, 9  ;;  %v7882_v53 = vld [vmem:[#allocation2 + $0x64] sm:$0xf]  ;;  %v2072_v56 = vld [vmem:[#allocation2 + $0x78] sm:$0xe] }
  0xe0   : > { %6854 = vmatmul.mubr.msk.bf16.gmra.mxu0 %vm1556_vm9, %v6194_v13  ;;  %v6126_v31 = vcombine.low %v1497_v63, %v1507_v34  ;;  %v6196_v57 = vcombine.low %v2151_v48, %v2154_v11  ;;  %v2159_v7 = vrot.slane %v2157_v43, 4  ;;  %v2158_v39 = vsel %vm7748_vm5, %v6181_v12, %v2157_v43  ;;  %v7891_v12 = vld [vmem:[#allocation2 + $0x60] sm:$0xf]  ;;  %v7895_v34 = vld [vmem:[#allocation2 + $0x70] sm:$0xf] }
  0xe1   : > { %6857 = vmatprep.mubr.msk.bf16.mxu0 %vm1556_vm9, %v6195_v10  ;;  %v2164_v13 = vrot.slane %v7722_v25, 5  ;;  %v2167_v45 = vrot.slane %v7724_v32, 5  ;;  %v6183_v63 = vrot.slane %v2070_v55, 9  ;;  %v2171_v48 = vrot.slane %v7882_v53, 5  ;;  %v7158_v11 = vld [vmem:[#allocation2 + $0x74] sm:$0x1] }
  0xe2   : > { %6810 = vmatmul.mubr.msk.bf16.gmra.mxu1 %vm1556_vm9, %v6126_v31  ;;  %v2161_v2 = vsel %vm7748_vm5, %v2159_v7, %v2160_v51  ;;  %v6184_v55 = vrot.slane %v2071_v30, 9  ;;  %v2178_v10 = vrot.slane %v7895_v34, 5  ;;  %v2181_v14 = vrot.slane %v7158_v11, 5  ;;  %v7902_v7 = vld [vmem:[#allocation2 + $0x7c] sm:$0xf] }
  0xe3   : > { %6815 = vmatprep.mubr.msk.bf16.mxu1 %vm1556_vm9, %v6143_v15  ;;  %v2166_v32 = vrot.slane %v2164_v13, 4  ;;  %v6197_v19 = vcombine.low %v2158_v39, %v2161_v2  ;;  %v2173_v51 = vrot.slane %v2171_v48, 4  ;;  %v2165_v23 = vsel %vm7748_vm5, %v6182_v18, %v2164_v13  ;;  %v2073_v30 = vld [vmem:[#allocation2 + $0x84] sm:$0xe]  ;;  %v7911_v43 = vld [vmem:[#allocation2 + $0x6c] sm:$0xf] }
  0xe4   : > { %v6185_v31 = vrot.slane %v2072_v56, 9  ;;  %v2185_v1 = vrot.slane %v7902_v7, 5  ;;  %v2172_v39 = vsel %vm7748_vm5, %v6183_v63, %v2171_v48  ;;  %v2180_v11 = vrot.slane %v2178_v10, 4  ;;  %v7161_v63 = vld [vmem:[#allocation2 + $0x80] sm:$0x1] }
  0xe5   : > { %v2168_v15 = vsel %vm7748_vm5, %v2166_v32, %v2167_v45  ;;  %v2175_v2 = vsel %vm7748_vm5, %v2173_v51, %v2174_v21  ;;  %v7918_v13 = vsel %vm7748_vm5, %v6184_v55, %v2178_v10  ;;  %v2188_v48 = vrot.slane %v7161_v63, 5  ;;  %v2074_v51 = vld [vmem:[#allocation2 + $0x90] sm:$0xe]  ;;  %v2075_v10 = vld [vmem:[#allocation2 + $0x9c] sm:$0xe] }
  0xe6   : > { %v7922_v45 = vsel %vm7748_vm5, %v6185_v31, %v2185_v1  ;;  %v2187_v20 = vrot.slane %v2185_v1, 4  ;;  %v6198_v21 = vcombine.low %v2165_v23, %v2168_v15  ;;  %v7927_v56 = vsel %vm7748_vm5, %v2180_v11, %v2181_v14  ;;  %v7936_v31 = vld [vmem:[#allocation2 + $0x78] sm:$0xf]  ;;  %v7164_v23 = vld [vmem:[#allocation2 + $0x8c] sm:$0x1] }
  0xe7   : > { %v6186_v32 = vrot.slane %v2073_v30, 9  ;;  %v6199_v18 = vcombine.low %v2172_v39, %v2175_v2  ;;  %v2195_v14 = vrot.slane %v7164_v23, 5  ;;  %v7943_v15 = vld [vmem:[%s10218_s3 + $0x14] sm:$0xf]  ;;  %v10242_v30 = vcombine.low %v7787_v41, %v7680_v0 }
  0xe8   : > { %6858 = vmatmul.mubr.msk.bf16.gmra.mxu0 %vm1556_vm9, %v6196_v57  ;;  %v7929_v57 = vld [vmem:[#allocation2 + $0x88] sm:$0xf]  ;;  %v7934_v1 = vsel %vm7748_vm5, %v2187_v20, %v2188_v48  ;;  %v7953_v20 = vld [vmem:[#allocation2 + $0x84] sm:$0xf]  ;;  %v10243_v0 = vcombine.low %v7838_v60, %v7800_v6  ;;  %v6187_v23 = vrot.slane %v2074_v51, 9  ;;  %v2202_v63 = vrot.slane %v7626_v9, 5 }
  0xe9   : > { %6861 = vmatprep.mubr.msk.bf16.mxu0 %vm1556_vm9, %v6197_v19  ;;  %v2192_v55 = vrot.slane %v7929_v57, 5  ;;  %v2076_v48 = vld [vmem:[#allocation2 + $0xa8] sm:$0xe]  ;;  %v6188_v19 = vrot.slane %v2075_v10, 9  ;;  %v2209_v60 = vrot.slane %v7651_v17, 5  ;;  %v2216_v17 = vrot.slane %v7744_v26, 5 }
  0xea   : > { %6816 = vmatmul.mubr.msk.bf16.vlgmr.msra.gmra.mxu1 %vm1556_vm9, %v10242_v30  ;;  %v2199_v30 = vrot.slane %v7624_v5, 5  ;;  %v2077_v6 = vld [vmem:[#allocation2 + $0xb4] sm:$0xe]  ;;  %v6189_v10 = vrot.slane %v2076_v48, 9  ;;  %v2220_v48 = vrot.slane %v7817_v62, 5 }
  0xeb   : > { %v2194_v11 = vrot.slane %v2192_v55, 4  ;;  %6882 = vmatpush3.bf16.msra.mxu1 %v7823_v40  ;;  %6819 = vmatprep.mubr.msk.bf16.mxu1 %vm1556_vm9, %v10243_v0  ;;  %v7964_v41 = vsel %vm7748_vm5, %v6186_v32, %v2192_v55  ;;  %v2206_v40 = vrot.slane %v7649_v49, 5  ;;  %v6190_v54 = vrot.slane %v2077_v6, 9  ;;  %v2873_v51 = vld [vmem:[#allocation2 + $0xc] sm:$0xf] }
  0xec   : > { %7093 = vmatprep.subr.msk.bf16.mxu1 %vm1605_vm6, %v7943_v15  ;;  %v2201_v32 = vrot.slane %v2199_v30, 4  ;;  %v8005_v55 = vld [vmem:[#allocation2 + $0x10] sm:$0xf]  ;;  %v8014_v0 = vld [vmem:[#allocation2 + $0x14] sm:$0x1] }
  0xed   : > { %v7969_v50 = vsel %vm7748_vm5, %v2194_v11, %v2195_v14  ;;  %v7982_v14 = vsel %vm7748_vm5, %v6188_v19, %v2206_v40  ;;  %v2208_v9 = vrot.slane %v2206_v40, 4  ;;  %v2213_v11 = vrot.slane %v7752_v38, 5  ;;  %v8043_v6 = vld [vmem:[#allocation2 + $0x20] sm:$0x1] }
  0xee   : > { %v7995_v19 = vsel %vm7748_vm5, %v6187_v23, %v2199_v30  ;;  %v7999_v26 = vsel %vm7748_vm5, %v2201_v32, %v2202_v63  ;;  %v2222_v23 = vrot.slane %v2220_v48, 4  ;;  %v2223_v30 = vrot.slane %v7826_v37, 5 }
  0xef   : > { %v2215_v40 = vrot.slane %v2213_v11, 4  ;;  %v10244_v63 = vcombine.low %v7848_v42, %v7807_v59  ;;  %v8034_v37 = vsel %vm7748_vm5, %v6190_v54, %v2220_v48  ;;  %v2931_v42 = vshll.u32 %v8005_v55, 16 }
  0xf0   : > { %6862 = vmatmul.mubr.msk.bf16.gmra.mxu0 %vm1556_vm9, %v6198_v21  ;;  %v8003_v21 = vsel %vm7748_vm5, %v2208_v9, %v2209_v60  ;;  %v2922_v9 = vshrl.u32 %v2873_v51, 16  ;;  %v2941_v29 = vshll.u32 %v8014_v0, 16  ;;  %v8047_v48 = vsel %vm7748_vm5, %v2222_v23, %v2223_v30 }
  0xf1   : > { %6865 = vmatprep.mubr.msk.bf16.mxu0 %vm1556_vm9, %v6199_v18  ;;  %v8011_v18 = vsel %vm7748_vm5, %v6189_v10, %v2213_v11  ;;  %v8022_v60 = vsel %vm7748_vm5, %v2215_v40, %v2216_v17  ;;  %v2925_v10 = vshll.u32 %v2873_v51, 16  ;;  %v2876_v11 = vld [vmem:[#allocation2 + $0x18] sm:$0xf]  ;;  %v2935_v17 = vshrl.u32 %v8005_v55, 16  ;;  %v8038_v40 = vld [vmem:[#allocation2 + $0x1c] sm:$0xf] }
  0xf2   : > { %6820 = vmatmul.mubr.msk.bf16.gmra.mxu1 %vm1556_vm9, %v10244_v63  ;;  %v2924_v63 = vrot.slane %v2922_v9, 4  ;;  %v2946_v59 = vshrl.u32 %v2876_v11, 16  ;;  %v2949_v54 = vshll.u32 %v2876_v11, 16  ;;  %v2955_v39 = vshll.u32 %v8038_v40, 16 }
  0xf3   : > { %6823 = vmatprep.mubr.msk.bf16.mxu1 %vm1556_vm9, %v6147_v52  ;;  %v2927_v22 = vrot.slane %v2925_v10, 5  ;;  %v2933_v52 = vrot.slane %v2931_v42, 5  ;;  %v2937_v32 = vrot.slane %v2935_v17, 4  ;;  %v2959_v8 = vshrl.u32 %v8038_v40, 16 }
  0xf4   : > { %v10245_v9 = vcombine.low %v7918_v13, %v7927_v56  ;;  %v2943_v42 = vrot.slane %v2941_v29, 5  ;;  %v2948_v17 = vrot.slane %v2946_v59, 4  ;;  %v2951_v51 = vrot.slane %v2949_v54, 5 }
  0xf5   : > { %v2928_v2 = vor.u32 %v2927_v22, %v2924_v63  ;;  %v2938_v10 = vor.u32 %v2937_v32, %v2933_v52  ;;  %v10246_v11 = vcombine.low %v7922_v45, %v7934_v1  ;;  %v8059_v30 = vrot.slane %v2955_v39, 5  ;;  %v8077_v39 = vld [vmem:[#allocation2 + $0x2c] sm:$0x1] }
  0xf6   : > { %v2961_v63 = vrot.slane %v2959_v8, 4  ;;  %v2965_v22 = vshll.u32 %v8043_v6, 16  ;;  %v6206_v13 = vcombine.low %v8034_v37, %v8047_v48  ;;  %v2952_v32 = vor.u32 %v2951_v51, %v2948_v17 }
  0xf7   : > { %v2929_v23 = vrot.slane %v2928_v2, 4  ;;  %v2939_v56 = vrot.slane %v2938_v10, 4  ;;  %v8068_v59 = vsel %vm1605_vm6, %v7943_v15, 0  ;;  %v10247_v45 = vcombine.low %v7588_v16, %v7601_v28 }
  0xf8   : > { %6866 = vmatmul.mubr.msk.bf16.gmra.mxu0 %vm1556_vm9, %v10245_v9  ;;  %v2962_v1 = vor.u32 %v2961_v63, %v8059_v30  ;;  %v2970_v2 = vshrl.u32 %v2879_v61, 16  ;;  %v2973_v29 = vshll.u32 %v2879_v61, 16  ;;  %v10248_v51 = vcombine.low %v7694_v24, %v7702_v36  ;;  %v8096_v63 = vld [vmem:[#allocation2 + $0x38] sm:$0x1] }
  0xf9   : > { %6869 = vmatprep.mubr.msk.bf16.mxu0 %vm1556_vm9, %v10246_v11  ;;  %v2934_v8 = vsel %vm7332_vm12, %v2929_v23, %v2933_v52  ;;  %v2944_v15 = vsel %vm7332_vm12, %v2939_v56, %v2943_v42  ;;  %v2953_v16 = vrot.slane %v2952_v32, 4  ;;  %v2979_v28 = vshll.u32 %v8062_v4, 16  ;;  %v2882_v52 = vld [vmem:[#allocation2 + $0x30] sm:$0xf]  ;;  %v8091_v11 = vld [vmem:[#allocation2 + $0x34] sm:$0xf] }
  0xfa   : > { %6824 = vmatmul.mubr.msk.bf16.gmra.mxu1 %vm1556_vm9, %v10247_v45  ;;  %v2983_v54 = vshrl.u32 %v8062_v4, 16  ;;  %v2967_v9 = vrot.slane %v2965_v22, 5  ;;  %v8089_v10 = vsel %vm1605_vm6, %v7815_v35, 0  ;;  %v2972_v61 = vrot.slane %v2970_v2, 4 }
  0xfb   : > { %6827 = vmatprep.mubr.msk.bf16.mxu1 %vm1556_vm9, %v10248_v51  ;;  %v2975_v17 = vrot.slane %v2973_v29, 5  ;;  %v8093_v24 = vcombine.low %v2934_v8, %v2944_v15  ;;  %v2981_v36 = vrot.slane %v2979_v28, 5  ;;  %v2989_v42 = vshll.u32 %v8077_v39, 16  ;;  %v2885_v51 = vld [vmem:[#allocation2 + $0x3c] sm:$0xf] }
  0xfc   : > { %v2985_v23 = vrot.slane %v2983_v54, 4  ;;  %v2963_v56 = vrot.slane %v2962_v1, 4  ;;  %v2994_v45 = vshrl.u32 %v2882_v52, 16  ;;  %v2997_v22 = vshll.u32 %v2882_v52, 16 }
  0xfd   : > { %v2976_v32 = vor.u32 %v2975_v17, %v2972_v61  ;;  %v10249_v35 = vcombine.low %v7964_v41, %v7969_v50  ;;  %v2958_v8 = vsel %vm7332_vm12, %v2953_v16, %v8059_v30  ;;  %v2991_v29 = vrot.slane %v2989_v42, 5  ;;  %v8111_v41 = vld [vmem:[#allocation2 + $0x40] sm:$0xf] }
  0xfe   : > { %v2986_v2 = vor.u32 %v2985_v23, %v2981_v36  ;;  %v3003_v15 = vshll.u32 %v8091_v11, 16  ;;  %v10250_v1 = vcombine.low %v7995_v19, %v7999_v26  ;;  %v2996_v54 = vrot.slane %v2994_v45, 4 }
  0xff   : > { %v2977_v28 = vrot.slane %v2976_v32, 4  ;;  %v2999_v52 = vrot.slane %v2997_v22, 5  ;;  %v3007_v50 = vshrl.u32 %v8091_v11, 16  ;;  %v3013_v30 = vshll.u32 %v8096_v63, 16  ;;  %v8122_v32 = vld [vmem:[#allocation2 + $0x44] sm:$0x1] }
 0x100   : > { %6870 = vmatmul.mubr.msk.bf16.gmra.mxu0 %vm1556_vm9, %v10249_v35  ;;  %v2987_v61 = vrot.slane %v2986_v2, 4  ;;  %v8113_v17 = vrot.slane %v3003_v15, 5  ;;  %v3018_v16 = vshrl.u32 %v2885_v51, 16  ;;  %v10251_v23 = vcombine.low %v7714_v44, %v7722_v25  ;;  %v2888_v22 = vld [vmem:[#allocation2 + $0x48] sm:$0xf] }
 0x101   : > { %6873 = vmatprep.mubr.msk.bf16.mxu0 %vm1556_vm9, %v10250_v1  ;;  %v2968_v19 = vsel %vm7332_vm12, %v2963_v56, %v2967_v9  ;;  %v3000_v26 = vor.u32 %v2999_v52, %v2996_v54  ;;  %v3009_v42 = vrot.slane %v3007_v50, 4  ;;  %v3021_v45 = vshll.u32 %v2885_v51, 16  ;;  %v8134_v54 = vld [vmem:[#allocation2 + $0x4c] sm:$0xf] }
 0x102   : > { %6828 = vmatmul.mubr.msk.bf16.gmra.mxu1 %vm1556_vm9, %v10251_v23  ;;  %v10252_v35 = vcombine.low %v7891_v12, %v7882_v53  ;;  %v2982_v2 = vsel %vm7332_vm12, %v2977_v28, %v2981_v36  ;;  %v2992_v44 = vsel %vm7332_vm12, %v2987_v61, %v2991_v29  ;;  %v3020_v25 = vrot.slane %v3018_v16, 4  ;;  %v8140_v61 = vld [vmem:[#allocation2 + $0x50] sm:$0x1] }
 0x103   : > { %v3027_v9 = vshll.u32 %v8111_v41, 16  ;;  %v3001_v56 = vrot.slane %v3000_v26, 4  ;;  %v3010_v15 = vor.u32 %v3009_v42, %v8113_v17  ;;  %v3015_v1 = vrot.slane %v3013_v30, 5 }
 0x104   : > { %6831 = vmatprep.mubr.msk.bf16.mxu1 %vm1556_vm9, %v10252_v35  ;;  %v3023_v51 = vrot.slane %v3021_v45, 5  ;;  %v3031_v53 = vshrl.u32 %v8111_v41, 16  ;;  %v3037_v12 = vshll.u32 %v8122_v32, 16  ;;  %v3042_v50 = vshrl.u32 %v2888_v22, 16  ;;  %v2891_v35 = vld [vmem:[#allocation2 + $0x54] sm:$0xf] }
 0x105   : > { %v3029_v52 = vrot.slane %v3027_v9, 5  ;;  %v8138_v36 = vcombine.low %v2958_v8, %v2968_v19  ;;  %v3011_v28 = vrot.slane %v3010_v15, 4  ;;  %v3045_v16 = vshll.u32 %v2888_v22, 16 }
 0x106   : > { %v3024_v29 = vor.u32 %v3023_v51, %v3020_v25  ;;  %v10253_v23 = vcombine.low %v7982_v14, %v8003_v21  ;;  %v8146_v30 = vcombine.low %v2982_v2, %v2992_v44  ;;  %v3033_v26 = vrot.slane %v3031_v53, 4  ;;  %v8157_v2 = vld [vmem:[#allocation2 + $0x58] sm:$0xf]  ;;  %v8168_v51 = vld [vmem:[#allocation2 + $0x5c] sm:$0x1] }
 0x107   : > { %v3044_v42 = vrot.slane %v3042_v50, 4  ;;  %v3051_v45 = vshll.u32 %v8134_v54, 16  ;;  %v10254_v8 = vcombine.low %v8011_v18, %v8022_v60  ;;  %v3006_v19 = vsel %vm7332_vm12, %v3001_v56, %v8113_v17 }
 0x108   : > { %6874 = vmatmul.mubr.msk.bf16.gmra.mxu0 %vm1556_vm9, %v10253_v23  ;;  %v3025_v22 = vrot.slane %v3024_v29, 4  ;;  %v3047_v14 = vrot.slane %v3045_v16, 5  ;;  %v3055_v21 = vshrl.u32 %v8134_v54, 16  ;;  %v3016_v44 = vsel %vm7332_vm12, %v3011_v28, %v3015_v1 }
 0x109   : > { %6877 = vmatprep.mubr.msk.bf16.mxu0 %vm1556_vm9, %v10254_v8  ;;  %v3034_v25 = vor.u32 %v3033_v26, %v3029_v52  ;;  %v3039_v9 = vrot.slane %v3037_v12, 5  ;;  %v8161_v15 = vrot.slane %v3051_v45, 5  ;;  %v10255_v18 = vcombine.low %v7911_v43, %v7895_v34  ;;  %v2894_v26 = vld [vmem:[#allocation2 + $0x60] sm:$0xf]  ;;  %v8182_v8 = vld [vmem:[#allocation2 + $0x64] sm:$0xf] }
 0x10a   : > { %v3048_v60 = vor.u32 %v3047_v14, %v3044_v42  ;;  %v3057_v17 = vrot.slane %v3055_v21, 4  ;;  %v3061_v56 = vshll.u32 %v8140_v61, 16  ;;  %v3066_v53 = vshrl.u32 %v2891_v35, 16 }
 0x10b   : > { %6832 = vmatmul.mubr.msk.bf16.gmra.mxu1 %vm1556_vm9, %v10255_v18  ;;  %v10256_v50 = vcombine.low %v7936_v31, %v7902_v7  ;;  %v3030_v1 = vsel %vm7332_vm12, %v3025_v22, %v3029_v52  ;;  %v3035_v12 = vrot.slane %v3034_v25, 4  ;;  %v3069_v28 = vshll.u32 %v2891_v35, 16 }
 0x10c   : > { %v3075_v43 = vshll.u32 %v8157_v2, 16  ;;  %v3049_v34 = vrot.slane %v3048_v60, 4  ;;  %v3058_v29 = vor.u32 %v3057_v17, %v8161_v15  ;;  %v3068_v16 = vrot.slane %v3066_v53, 4  ;;  %v2897_v53 = vld [vmem:[#allocation2 + $0x6c] sm:$0xf] }
 0x10d   : > { %6835 = vmatprep.mubr.msk.bf16.mxu1 %vm1556_vm9, %v10256_v50  ;;  %v3079_v23 = vshrl.u32 %v8157_v2, 16  ;;  %v3040_v42 = vsel %vm7332_vm12, %v3035_v12, %v3039_v9  ;;  %v3071_v7 = vrot.slane %v3069_v28, 5  ;;  %v3085_v45 = vshll.u32 %v8168_v51, 16  ;;  %v8192_v9 = vld [vmem:[#allocation2 + $0x68] sm:$0x1] }
 0x10e   : > { %v3077_v31 = vrot.slane %v3075_v43, 5  ;;  %v8184_v52 = vcombine.low %v3006_v19, %v3016_v44  ;;  %v8186_v35 = vcombine.low %v3030_v1, %v3040_v42  ;;  %v3063_v22 = vrot.slane %v3061_v56, 5  ;;  %v8201_v1 = vld [vmem:[#allocation2 + $0x70] sm:$0xf] }
 0x10f   : > { %v3081_v14 = vrot.slane %v3079_v23, 4  ;;  %v3059_v21 = vrot.slane %v3058_v29, 4  ;;  %v3072_v25 = vor.u32 %v3071_v7, %v3068_v16  ;;  %v3090_v18 = vshrl.u32 %v2894_v26, 16  ;;  %v8218_v7 = vld [vmem:[#allocation2 + $0x74] sm:$0x1] }
 0x110   : > { %6878 = vmatmul.mubr.msk.bf16.gmra.mxu0 %vm1556_vm9, %v6206_v13  ;;  %v3093_v60 = vshll.u32 %v2894_v26, 16  ;;  %v3087_v44 = vrot.slane %v3085_v45, 5  ;;  %v3099_v17 = vshll.u32 %v8182_v8, 16  ;;  %v3103_v56 = vshrl.u32 %v8182_v8, 16 }
 0x111   : > { %6917 = vmatprep.mubr.msk.bf16.mxu0 %vm1556_vm9, %v8093_v24  ;;  %v3082_v19 = vor.u32 %v3081_v14, %v3077_v31  ;;  %v3054_v37 = vsel %vm7332_vm12, %v3049_v34, %v8161_v15  ;;  %v3073_v48 = vrot.slane %v3072_v25, 4  ;;  %v3092_v13 = vrot.slane %v3090_v18, 4 }
 0x112   : > { %v3095_v50 = vrot.slane %v3093_v60, 5  ;;  %v10257_v12 = vcombine.low %v7953_v20, %v7929_v57  ;;  %v3101_v28 = vrot.slane %v3099_v17, 5  ;;  %v3105_v43 = vrot.slane %v3103_v56, 4 }
 0x113   : > { %v3083_v24 = vrot.slane %v3082_v19, 4  ;;  %v3109_v29 = vshll.u32 %v8192_v9, 16  ;;  %v10258_v16 = vcombine.low %v7619_v58, %v7624_v5  ;;  %v3064_v15 = vsel %vm7332_vm12, %v3059_v21, %v3063_v22  ;;  %v2900_v58 = vld [vmem:[#allocation2 + $0x78] sm:$0xf]  ;;  %v8221_v22 = vld [vmem:[#allocation2 + $0x7c] sm:$0xf] }
 0x114   : > { %6836 = vmatmul.mubr.msk.bf16.gmra.mxu1 %vm1556_vm9, %v10257_v12  ;;  %v3096_v34 = vor.u32 %v3095_v50, %v3092_v13  ;;  %v3114_v23 = vshrl.u32 %v2897_v53, 16  ;;  %v3117_v26 = vshll.u32 %v2897_v53, 16  ;;  %v3078_v57 = vsel %vm7332_vm12, %v3073_v48, %v3077_v31  ;;  %v8236_v53 = vld [vmem:[#allocation2 + $0x80] sm:$0x1] }
 0x115   : > { %6839 = vmatprep.mubr.msk.bf16.mxu1 %vm1556_vm9, %v10258_v16  ;;  %v3088_v20 = vsel %vm7332_vm12, %v3083_v24, %v3087_v44  ;;  %v3106_v42 = vor.u32 %v3105_v43, %v3101_v28  ;;  %v3123_v45 = vshll.u32 %v8201_v1, 16  ;;  %v3111_v14 = vrot.slane %v3109_v29, 5  ;;  %v8231_v44 = vld [vmem:[%s10218_s3 + $0x20] sm:$0xf]  ;;  %v2903_v24 = vld [vmem:[#allocation2 + $0x84] sm:$0xf] }
 0x116   : > { %v3097_v5 = vrot.slane %v3096_v34, 4  ;;  %v3116_v25 = vrot.slane %v3114_v23, 4  ;;  %v3119_v18 = vrot.slane %v3117_v26, 5  ;;  %v8223_v21 = vcombine.low %v3054_v37, %v3064_v15  ;;  %v8248_v34 = vld [vmem:[#allocation2 + $0x88] sm:$0xf] }
 0x117   : > { %v3107_v60 = vrot.slane %v3106_v42, 4  ;;  %v8225_v19 = vrot.slane %v3123_v45, 5  ;;  %v3127_v31 = vshrl.u32 %v8201_v1, 16  ;;  %v3133_v56 = vshll.u32 %v8218_v7, 16 }
 0x118   : > { %6918 = vmatmul.mubr.msk.bf16.vlgmr.msra.gmra.mxu0 %vm1556_vm9, %v8138_v36  ;;  %v3120_v17 = vor.u32 %v3119_v18, %v3116_v25  ;;  %v3138_v37 = vshrl.u32 %v2900_v58, 16  ;;  %v3141_v48 = vshll.u32 %v2900_v58, 16  ;;  %v8241_v13 = vcombine.low %v3078_v57, %v3088_v20 }
 0x119   : > { %6984 = vmatpush3.bf16.msra.mxu0 %v8089_v10  ;;  %6921 = vmatprep.mubr.msk.bf16.mxu0 %vm1556_vm9, %v8146_v30  ;;  %v3102_v50 = vsel %vm7332_vm12, %v3097_v5, %v3101_v28  ;;  %v3129_v12 = vrot.slane %v3127_v31, 4  ;;  %v3147_v36 = vshll.u32 %v8221_v22, 16  ;;  %v3112_v43 = vsel %vm7332_vm12, %v3107_v60, %v3111_v14  ;;  %v8265_v14 = vld [vmem:[#allocation2 + $0x8c] sm:$0x1] }
 0x11a   : > { %v3121_v29 = vrot.slane %v3120_v17, 4  ;;  %v3140_v16 = vrot.slane %v3138_v37, 4  ;;  %v3143_v15 = vrot.slane %v3141_v48, 5  ;;  %7096 = vmatprep.subr.msk.bf16.mxu0 %vm1605_vm6, %v8231_v44  ;;  %v10259_v10 = vcombine.low %v7646_v47, %v7649_v49 }
 0x11b   : > { %v3130_v30 = vor.u32 %v3129_v12, %v8225_v19  ;;  %v3149_v28 = vrot.slane %v3147_v36, 5  ;;  %v3151_v23 = vshrl.u32 %v8221_v22, 16  ;;  %v3157_v26 = vshll.u32 %v8236_v53, 16  ;;  %v7107_v12 = vld [vmem:[#allocation2 + $0xc] sm:$0xff]  }
 0x11c   : > { %6840 = vmatmul.mubr.msk.bf16.gmra.mxu1 %vm1556_vm9, %v10259_v10  ;;  %v10260_v57 = vcombine.low %v7735_v3, %v7752_v38  ;;  %v3135_v20 = vrot.slane %v3133_v56, 5  ;;  %v3144_v42 = vor.u32 %v3143_v15, %v3140_v16  ;;  %v3162_v45 = vshrl.u32 %v2903_v24, 16  ;;  %v2906_v3 = vld [vmem:[#allocation2 + $0x90] sm:$0xf]  ;;  %v8281_v15 = vld [vmem:[#allocation2 + $0x98] sm:$0x1] }
 0x11d   : > { %v3165_v58 = vshll.u32 %v2903_v24, 16  ;;  %v8263_v5 = vcombine.low %v3102_v50, %v3112_v43  ;;  %v3131_v47 = vrot.slane %v3130_v30, 4  ;;  %v3153_v49 = vrot.slane %v3151_v23, 4  ;;  %v8274_v50 = vld [vmem:[#allocation2 + $0x94] sm:$0xf] }
 0x11e   : > { %6843 = vmatprep.mubr.msk.bf16.mxu1 %vm1556_vm9, %v10260_v57  ;;  %v3171_v25 = vshll.u32 %v8248_v34, 16  ;;  %v3145_v18 = vrot.slane %v3144_v42, 4  ;;  %v3164_v60 = vrot.slane %v3162_v45, 4  ;;  %v3175_v17 = vshrl.u32 %v8248_v34, 16 }
 0x11f   : > { %v3167_v31 = vrot.slane %v3165_v58, 5  ;;  %v3126_v38 = vsel %vm7332_vm12, %v3121_v29, %v8225_v19  ;;  %v3154_v56 = vor.u32 %v3153_v49, %v3149_v28  ;;  %v3159_v37 = vrot.slane %v3157_v26, 5 }
 0x120   : > { %v8272_v48 = vrot.slane %v3171_v25, 5  ;;  %6922 = vmatmul.mubr.msk.bf16.gmra.mxu0 %vm1556_vm9, %v8184_v52  ;;  %v3136_v36 = vsel %vm7332_vm12, %v3131_v47, %v3135_v20  ;;  %v3177_v43 = vrot.slane %v3175_v17, 4  ;;  %v3181_v16 = vshll.u32 %v8265_v14, 16  ;;  %v2909_v20 = vld [vmem:[#allocation2 + $0x9c] sm:$0xf] }
 0x121   : > { %v3168_v24 = vor.u32 %v3167_v31, %v3164_v60  ;;  %6925 = vmatprep.mubr.msk.bf16.mxu0 %vm1556_vm9, %v8186_v35  ;;  %v3150_v19 = vsel %vm7332_vm12, %v3145_v18, %v3149_v28  ;;  %v3155_v29 = vrot.slane %v3154_v56, 4  ;;  %v3186_v10 = vshrl.u32 %v2906_v3, 16  ;;  %v8299_v47 = vld [vmem:[#allocation2 + $0xa0] sm:$0xf]  ;;  %v8306_v17 = vld [vmem:[#allocation2 + $0xa4] sm:$0x1] }
 0x122   : > { %v3189_v30 = vshll.u32 %v2906_v3, 16  ;;  %v3178_v52 = vor.u32 %v3177_v43, %v8272_v48  ;;  %v3195_v26 = vshll.u32 %v8274_v50, 16  ;;  %v3199_v57 = vshrl.u32 %v8274_v50, 16 }
 0x123   : > { %v8287_v23 = vrot.slane %v3168_v24, 4  ;;  %v10261_v42 = vcombine.low %v7793_v46, %v7817_v62  ;;  %v3160_v35 = vsel %vm7332_vm12, %v3155_v29, %v3159_v37  ;;  %v3188_v28 = vrot.slane %v3186_v10, 4  ;;  %v7108_v24 = vld [vmem:[#allocation2 + $0x18] sm:$0xff]   ;;  %v8314_v10 = vld [vmem:[#allocation2 + $0xac] sm:$0xf] }
 0x124   : > { %v3191_v45 = vrot.slane %v3189_v30, 5  ;;  %v3205_v58 = vshll.u32 %v8281_v15, 16  ;;  %v8302_v49 = vcombine.low %v3126_v38, %v3136_v36  ;;  %v8304_v25 = vcombine.low %v3150_v19, %v3160_v35  ;;  %v2912_v36 = vld [vmem:[#allocation2 + $0xa8] sm:$0xf] }
 0x125   : > { %6844 = vmatmul.mubr.msk.bf16.gmra.mxu1 %vm1556_vm9, %v10261_v42  ;;  %v3183_v18 = vrot.slane %v3181_v16, 5  ;;  %v3197_v60 = vrot.slane %v3195_v26, 5  ;;  %v3179_v46 = vrot.slane %v3178_v52, 4  ;;  %v3201_v31 = vrot.slane %v3199_v57, 4  ;;  %v7109_v30 = vld [vmem:[#allocation2 + $0x24] sm:$0xff]  }
 0x126   : > { %6883 = vmatprep.mubr.msk.bf16.mxu1 %vm1556_vm9, %v7107_v12  ;;  %v3192_v62 = vor.u32 %v3191_v45, %v3188_v28  ;;  %v3210_v3 = vshrl.u32 %v2909_v20, 16  ;;  %v3174_v56 = vsel %vm7332_vm12, %v8287_v23, %v8272_v48  ;;  %v3213_v37 = vshll.u32 %v2909_v20, 16  ;;  %v8325_v42 = vld [vmem:[#allocation2 + $0xb0] sm:$0x1] }
 0x127   : > { %v3219_v12 = vshll.u32 %v8299_v47, 16  ;;  %v3223_v38 = vshrl.u32 %v8299_v47, 16  ;;  %v3202_v16 = vor.u32 %v3201_v31, %v3197_v60  ;;  %v3207_v19 = vrot.slane %v3205_v58, 5  ;;  %v2915_v31 = vld [vmem:[#allocation2 + $0xb4] sm:$0xf] }
 0x128   : > { %v3193_v43 = vrot.slane %v3192_v62, 4  ;;  %v3212_v29 = vrot.slane %v3210_v3, 4  ;;  %6926 = vmatmul.mubr.msk.bf16.gmra.mxu0 %vm1556_vm9, %v8223_v21  ;;  %v3215_v52 = vrot.slane %v3213_v37, 5  ;;  %v3229_v23 = vshll.u32 %v8306_v17, 16  ;;  %v8340_v37 = vld [vmem:[#allocation2 + $0xb8] sm:$0xf] }
 0x129   : > { %v8318_v26 = vrot.slane %v3219_v12, 5  ;;  %v3225_v48 = vrot.slane %v3223_v38, 4  ;;  %6929 = vmatprep.mubr.msk.bf16.mxu0 %vm1556_vm9, %v8241_v13  ;;  %v3184_v57 = vsel %vm7332_vm12, %v3179_v46, %v3183_v18  ;;  %v3203_v20 = vrot.slane %v3202_v16, 4  ;;  %v8334_v13 = vld [vmem:[%s10218_s3 + $0x1c] sm:$0xf] }
 0x12a   : > { %v3234_v35 = vshrl.u32 %v2912_v36, 16  ;;  %v3237_v28 = vshll.u32 %v2912_v36, 16  ;;  %v3198_v21 = vsel %vm7332_vm12, %v3193_v43, %v3197_v60  ;;  %v3216_v45 = vor.u32 %v3215_v52, %v3212_v29 }
 0x12b   : > { %v3226_v58 = vor.u32 %v3225_v48, %v8318_v26  ;;  %v3243_v62 = vshll.u32 %v8314_v10, 16  ;;  %v3208_v18 = vsel %vm7332_vm12, %v3203_v20, %v3207_v19  ;;  %v3247_v60 = vshrl.u32 %v8314_v10, 16 }
 0x12c   : > { %v3236_v46 = vrot.slane %v3234_v35, 4  ;;  %v3239_v3 = vrot.slane %v3237_v28, 5  ;;  %v8344_v12 = vrot.slane %v3216_v45, 4  ;;  %v8348_v36 = vrot.slane %v3229_v23, 5  ;;  %v6625_v23 = vld [vmem:[%s7218_s25 + $0x78] sm:$0xff]   ;;  %v7110_v35 = vld [vmem:[#allocation2 + $0x30] sm:$0xff]  }
 0x12d   : > { %6884 = vmatmul.mubr.msk.bf16.vlgmr.msra.gmra.mxu1 %vm1556_vm9, %v7108_v24  ;;  %v8346_v38 = vrot.slane %v3226_v58, 4  ;;  %v8350_v24 = vrot.slane %v3243_v62, 5  ;;  %v3249_v16 = vrot.slane %v3247_v60, 4  ;;  %v3253_v19 = vshll.u32 %v8325_v42, 16 }
 0x12e   : > { %6950 = vmatpush3.bf16.msra.mxu1 %v8068_v59  ;;  %6887 = vmatprep.mubr.msk.bf16.mxu1 %vm1556_vm9, %v7109_v30  ;;  %v3240_v43 = vor.u32 %v3239_v3, %v3236_v46  ;;  %v3258_v29 = vshrl.u32 %v2915_v31, 16  ;;  %v6265_v59 = vcombine.low %v3174_v56, %v3184_v57  ;;  %v8355_v52 = vcombine.low %v3198_v21, %v3208_v18  ;;  %v8357_v30 = vld [vmem:[#allocation2 + $0xbc] sm:$0x1]  ;;  %v3597_v46 = vld [vmem:[#allocation2 + $0xc] sm:$0xe] }
 0x12f   : > { %7095 = vmatprep.subr.msk.bf16.mxu1 %vm1605_vm6, %v8334_v13  ;;  %v3261_v48 = vshll.u32 %v2915_v31, 16  ;;  %v3267_v20 = vshll.u32 %v8340_v37, 16  ;;  %v3222_v28 = vsel %vm7332_vm12, %v8344_v12, %v8318_v26  ;;  %v3250_v58 = vor.u32 %v3249_v16, %v8350_v24  ;;  %v7111_v56 = vld [vmem:[#allocation2 + $0x3c] sm:$0xff]  }
 0x130   : > { %v3241_v45 = vrot.slane %v3240_v43, 4  ;;  %v3255_v62 = vrot.slane %v3253_v19, 5  ;;  %6930 = vmatmul.mubr.msk.bf16.gmra.mxu0 %vm1556_vm9, %v8263_v5  ;;  %v3260_v57 = vrot.slane %v3258_v29, 4  ;;  %v3271_v18 = vshrl.u32 %v8340_v37, 16 }
 0x131   : > { %v3263_v21 = vrot.slane %v3261_v48, 5  ;;  %v3269_v31 = vrot.slane %v3267_v20, 5  ;;  %6933 = vmatprep.mubr.msk.bf16.mxu0 %vm1556_vm9, %v8302_v49  ;;  %v3232_v26 = vsel %vm7332_vm12, %v8346_v38, %v8348_v36  ;;  %v3251_v3 = vrot.slane %v3250_v58, 4  ;;  %v7166_v38 = vld [vmem:[%s10216_s1] ss:$0 sm:$0xff] }
 0x132   : > { %v3277_v60 = vshll.u32 %v8357_v30, 16  ;;  %v6609_v12 = vunpack.c.l.bf16 %v6625_v23  ;;  %v3273_v16 = vrot.slane %v3271_v18, 4  ;;  %v6610_v5 = vunpack.c.h.bf16 %v6625_v23  ;;  %v3598_v20 = vld [vmem:[#allocation2 + $0x18] sm:$0xe] }
 0x133   : > { %v3264_v43 = vor.u32 %v3263_v21, %v3260_v57  ;;  %v6287_v19 = vrot.slane %v3597_v46, 9  ;;  %v3246_v29 = vsel %vm7332_vm12, %v3241_v45, %v8350_v24  ;;  %v3256_v49 = vsel %vm7332_vm12, %v3251_v3, %v3255_v62  ;;  %v7167_v24 = vld [vmem:[%s10217_s2] ss:$0 sm:$0xff] }
 0x134   : > { %v453_v36 = vmul.f32 %v7166_v38, %v6609_v12  ;;  %v3663_v48 = vrot.slane %v8005_v55, 5  ;;  %v3274_v58 = vor.u32 %v3273_v16, %v3269_v31  ;;  %v454_v46 = vmul.f32 %v7166_v38, %v6610_v5  ;;  %v7113_v38 = vld [vmem:[#allocation2 + $0x54] sm:$0xff]  }
 0x135   : > { %6888 = vmatmul.mubr.msk.bf16.gmra.mxu1 %vm1556_vm9, %v7110_v35  ;;  %v3265_v23 = vrot.slane %v3264_v43, 4  ;;  %v3279_v35 = vrot.slane %v3277_v60, 5  ;;  %v3666_v21 = vrot.slane %v8014_v0, 5  ;;  %v6288_v3 = vrot.slane %v3598_v20, 9  ;;  %v7112_v60 = vld [vmem:[#allocation2 + $0x48] sm:$0xff]  }
 0x136   : > { %6891 = vmatprep.mubr.msk.bf16.mxu1 %vm1556_vm9, %v7111_v56  ;;  %v492_v45 = vadd.f32 %v7167_v24, %v453_v36  ;;  %v8392_v62 = vsel %vm7748_vm5, %v6287_v19, %v3663_v48  ;;  %v3665_v57 = vrot.slane %v3663_v48, 4  ;;  %v3275_v56 = vrot.slane %v3274_v58, 4  ;;  %v3599_v19 = vld [vmem:[#allocation2 + $0x24] sm:$0xe] }
 0x137   : > { %v3270_v55 = vsel %vm7332_vm12, %v3265_v23, %v3269_v31  ;;  %v493_v18 = vadd.f32 %v7167_v24, %v454_v46  ;;  %v3670_v16 = vrot.slane %v8038_v40, 5  ;;  %v3673_v5 = vrot.slane %v8043_v6, 5 }
 0x138   : > { %v524_v12 = vmax.f32 %v492_v45, 0.0  ;;  %v8399_v43 = vsel %vm7748_vm5, %v3665_v57, %v3666_v21  ;;  %6934 = vmatmul.mubr.msk.bf16.gmra.mxu0 %vm1556_vm9, %v8304_v25  ;;  %v6267_v0 = vcombine.low %v3222_v28, %v3232_v26  ;;  %v3280_v31 = vsel %vm7332_vm12, %v3275_v56, %v3279_v35  ;;  %v3600_v35 = vld [vmem:[#allocation2 + $0x30] sm:$0xe] }
 0x139   : > { %v525_v36 = vmax.f32 %v493_v18, 0.0  ;;  %v6303_v48 = vcombine.low %v8392_v62, %v8399_v43  ;;  %6937 = vmatprep.mubr.msk.bf16.mxu0 %vm1556_vm9, %v6265_v59  ;;  %v8410_v20 = vcombine.low %v3246_v29, %v3256_v49  ;;  %v8414_v6 = vsel %vm7748_vm5, %v6288_v3, %v3670_v16  ;;  %v3601_v49 = vld [vmem:[#allocation2 + $0x3c] sm:$0xe]  ;;  %v5146_v62 = vld [vmem:[#allocation2 + $0x18] sm:$0xe] }
 0x13a   : > { %v6513_v40 = vpack.c.bf16 %v524_v12, %v524_v12  ;;  %v3672_v23 = vrot.slane %v3670_v16, 4  ;;  %v8416_v58 = vcombine.low %v3270_v55, %v3280_v31  ;;  %v6289_v28 = vrot.slane %v3599_v19, 9  ;;  %v1057_v12 = vld [vmem:[#allocation2 + $0xc0] sm:$0xf] }
 0x13b   : > { %v6514_v25 = vpack.c.bf16 %v525_v36, %v525_v36  ;;  %v3677_v26 = vrot.slane %v8062_v4, 5  ;;  %v3680_v29 = vrot.slane %v8077_v39, 5  ;;  %v6290_v18 = vrot.slane %v3600_v35, 9  ;;  %v7114_v19 = vld [vmem:[#allocation2 + $0x60] sm:$0xff]   ;;  %v1061_v36 = vld [vmem:[#allocation2 + $0xc8] sm:$0x1] }
 0x13c   : > { %v881_v46 = vshrl.u32 %v6513_v40, 16  ;;  %v884_v24 = vshll.u32 %v6513_v40, 16  ;;  %v8422_v59 = vsel %vm7748_vm5, %v3672_v23, %v3673_v5  ;;  %v3684_v3 = vrot.slane %v8091_v11, 5  ;;  %v3602_v11 = vld [vmem:[#allocation2 + $0x48] sm:$0xe] }
 0x13d   : > { %6892 = vmatmul.mubr.msk.bf16.gmra.mxu1 %vm1556_vm9, %v7112_v60  ;;  %v889_v45 = vshrl.u32 %v6514_v25, 16  ;;  %v892_v57 = vshll.u32 %v6514_v25, 16  ;;  %v6304_v21 = vcombine.low %v8414_v6, %v8422_v59  ;;  %v8430_v4 = vsel %vm7748_vm5, %v6289_v28, %v3677_v26  ;;  %v7115_v25 = vld [vmem:[#allocation2 + $0x6c] sm:$0xff]  }
 0x13e   : > { %6895 = vmatprep.mubr.msk.bf16.mxu1 %vm1556_vm9, %v7113_v38  ;;  %v883_v55 = vrot.slane %v881_v46, 7  ;;  %v3679_v56 = vrot.slane %v3677_v26, 4  ;;  %v3687_v39 = vrot.slane %v8096_v63, 5  ;;  %v6291_v16 = vrot.slane %v3601_v49, 9 }
 0x13f   : > { %v891_v60 = vrot.slane %v889_v45, 7  ;;  %v3691_v5 = vrot.slane %v8111_v41, 5  ;;  %v8441_v23 = vsel %vm7748_vm5, %v6290_v18, %v3684_v3  ;;  %v3686_v26 = vrot.slane %v3684_v3, 4  ;;  %v3603_v45 = vld [vmem:[#allocation2 + $0x54] sm:$0xe] }
 0x140   : > { %v886_v38 = vor.u32 %v884_v24, %v883_v55  ;;  %v887_v31 = vrot.slane %v883_v55, 4  ;;  %v8437_v40 = vsel %vm7748_vm5, %v3679_v56, %v3680_v29  ;;  %6938 = vmatmul.mubr.msk.bf16.gmra.mxu0 %vm1556_vm9, %v8355_v52  ;;  %v3694_v49 = vrot.slane %v8122_v32, 5  ;;  %v3604_v3 = vld [vmem:[#allocation2 + $0x60] sm:$0xe] }
 0x141   : > { %v894_v63 = vor.u32 %v892_v57, %v891_v60  ;;  %v896_v28 = vrot.slane %v891_v60, 4  ;;  %v6305_v41 = vcombine.low %v8430_v4, %v8437_v40  ;;  %6941 = vmatprep.mubr.msk.bf16.mxu0 %vm1556_vm9, %v6267_v0  ;;  %v8452_v24 = vsel %vm7748_vm5, %v6291_v16, %v3691_v5  ;;  %v4428_v4 = vld [vmem:[#allocation2 + $0x30] sm:$0xf] }
 0x142   : > { %v1058_v46 = vsel %vm7375_vm1, %v886_v38, %v1057_v12  ;;  %v3693_v29 = vrot.slane %v3691_v5, 4  ;;  %v8461_v0 = vsel %vm7748_vm5, %v3686_v26, %v3687_v39  ;;  %v6292_v18 = vrot.slane %v3602_v11, 9  ;;  %v3605_v39 = vld [vmem:[#allocation2 + $0x6c] sm:$0xe] }
 0x143   : > { %v895_v57 = vsel %vm7369_vm0, %v887_v31, %v894_v63  ;;  %1059 = vst [vmem:[#allocation2 + $0xc0] sm:$0xf] %v1058_v46  ;;  %v1062_v56 = vsel %vm7381_vm2, %v896_v28, %v1061_v36  ;;  %v6306_v32 = vcombine.low %v8441_v23, %v8461_v0  ;;  %v3698_v12 = vrot.slane %v8134_v54, 5 }
 0x144   : > { %1060 = vst.msk [vmem:[#allocation2 + $0xc4] sm:$0xf] %vm946_vm13, %v895_v57  ;;  %1063 = vst [vmem:[#allocation2 + $0xc8] sm:$0x1] %v1062_v56  ;;  %v8469_v60 = vsel %vm7748_vm5, %v3693_v29, %v3694_v49  ;;  %v3701_v16 = vrot.slane %v8140_v61, 5  ;;  %v3705_v38 = vrot.slane %v8157_v2, 5 }
 0x145   : > { %6896 = vmatmul.mubr.msk.bf16.gmra.mxu1 %vm1556_vm9, %v7114_v19  ;;  %v6293_v19 = vrot.slane %v3603_v45, 9  ;;  %v3708_v31 = vrot.slane %v8168_v51, 5  ;;  %v8480_v36 = vsel %vm7748_vm5, %v6292_v18, %v3698_v12  ;;  %v3700_v11 = vrot.slane %v3698_v12, 4  ;;  %v3606_v61 = vld [vmem:[#allocation2 + $0x78] sm:$0xe]  ;;  %v7117_v49 = vld [vmem:[#allocation2 + $0x84] sm:$0xff]  }
 0x146   : > { %6899 = vmatprep.mubr.msk.bf16.mxu1 %vm1556_vm9, %v7115_v25  ;;  %v6294_v63 = vrot.slane %v3604_v3, 9  ;;  %v3712_v54 = vrot.slane %v8182_v8, 5  ;;  %v3707_v28 = vrot.slane %v3705_v38, 4  ;;  %v3715_v26 = vrot.slane %v8192_v9, 5  ;;  %v7116_v2 = vld [vmem:[#allocation2 + $0x78] sm:$0xff]  }
 0x147   : > { %v8485_v25 = vsel %vm7748_vm5, %v6293_v19, %v3705_v38  ;;  %v6295_v35 = vrot.slane %v3605_v39, 9  ;;  %v8490_v51 = vsel %vm7748_vm5, %v3700_v11, %v3701_v16  ;;  %v3719_v8 = vrot.slane %v8201_v1, 5  ;;  %v3607_v3 = vld [vmem:[#allocation2 + $0x84] sm:$0xe]  ;;  %v3608_v19 = vld [vmem:[#allocation2 + $0x90] sm:$0xe] }
 0x148   : > { %v8494_v46 = vsel %vm7748_vm5, %v6294_v63, %v3712_v54  ;;  %v3714_v29 = vrot.slane %v3712_v54, 4  ;;  %6942 = vmatmul.mubr.msk.bf16.gmra.mxu0 %vm1556_vm9, %v8410_v20  ;;  %v8503_v45 = vsel %vm7748_vm5, %v3707_v28, %v3708_v31  ;;  %v3722_v52 = vrot.slane %v8218_v7, 5 }
 0x149   : > { %v6296_v57 = vrot.slane %v3606_v61, 9  ;;  %6945 = vmatprep.mubr.msk.bf16.mxu0 %vm1556_vm9, %v8416_v58  ;;  %v8516_v56 = vsel %vm7748_vm5, %v6295_v35, %v3719_v8  ;;  %v3721_v18 = vrot.slane %v3719_v8, 4  ;;  %v3729_v8 = vrot.slane %v8236_v53, 5 }
 0x14a   : > { %v2918_v55 = vld [vmem:[#allocation2 + $0xc0] sm:$0xf]  ;;  %v8512_v20 = vsel %vm7748_vm5, %v3714_v29, %v3715_v26  ;;  %v3726_v26 = vrot.slane %v8221_v22, 5  ;;  %v3736_v28 = vrot.slane %v8265_v14, 5  ;;  %v6298_v1 = vrot.slane %v3608_v19, 9 }
 0x14b   : > { %v8518_v12 = vld [vmem:[#allocation2 + $0xc4] sm:$0xf]  ;;  %v8520_v7 = vld [vmem:[#allocation2 + $0xc8] sm:$0x1]  ;;  %v3282_v16 = vshrl.u32 %v2918_v55, 16  ;;  %v3285_v58 = vshll.u32 %v2918_v55, 16  ;;  %v8530_v63 = vsel %vm7748_vm5, %v3721_v18, %v3722_v52 }
 0x14c   : > { %v3291_v38 = vshll.u32 %v8518_v12, 16  ;;  %v3295_v31 = vshrl.u32 %v8518_v12, 16  ;;  %v3301_v11 = vshll.u32 %v8520_v7, 16  ;;  %v8539_v39 = vsel %vm7748_vm5, %v6296_v57, %v3726_v26  ;;  %v3609_v22 = vld [vmem:[#allocation2 + $0x9c] sm:$0xe] }
 0x14d   : > { %6900 = vmatmul.mubr.msk.bf16.gmra.mxu1 %vm1556_vm9, %v7116_v2  ;;  %v3284_v54 = vrot.slane %v3282_v16, 4  ;;  %v3287_v61 = vrot.slane %v3285_v58, 5  ;;  %v3728_v52 = vrot.slane %v3726_v26, 4  ;;  %v6297_v18 = vrot.slane %v3607_v3, 9  ;;  %v3610_v19 = vld [vmem:[#allocation2 + $0xa8] sm:$0xe] }
 0x14e   : > { %6903 = vmatprep.mubr.msk.bf16.mxu1 %vm1556_vm9, %v7117_v49  ;;  %v3293_v35 = vrot.slane %v3291_v38, 5  ;;  %v3297_v2 = vrot.slane %v3295_v31, 4  ;;  %v3303_v29 = vrot.slane %v3301_v11, 5  ;;  %v7118_v49 = vld [vmem:[#allocation2 + $0x90] sm:$0xff]   ;;  %v3733_v58 = vrot.slane %v8248_v34, 5  ;;  %v7119_v38 = vld [vmem:[#allocation2 + $0x9c] sm:$0xff]  }
 0x14f   : > { %v3288_v55 = vor.u32 %v3287_v61, %v3284_v54  ;;  %v8545_v53 = vsel %vm7748_vm5, %v3728_v52, %v3729_v8  ;;  %v3740_v11 = vrot.slane %v8274_v50, 5  ;;  %v3743_v57 = vrot.slane %v8281_v15, 5  ;;  %v7123_v8 = vld [vmem:[#allocation2 + $0x18] sm:$0xff]  }
 0x150   : > { %v3298_v16 = vor.u32 %v3297_v2, %v3293_v35  ;;  %v8553_v34 = vsel %vm7748_vm5, %v6297_v18, %v3733_v58  ;;  %v3735_v14 = vrot.slane %v3733_v58, 4  ;;  %v6299_v2 = vrot.slane %v3609_v22, 9  ;;  %v3611_v18 = vld [vmem:[#allocation2 + $0xb4] sm:$0xe]  ;;  %v3612_v58 = vld [vmem:[#allocation2 + $0xc0] sm:$0xe] }
 0x151   : > { %v3289_v31 = vrot.slane %v3288_v55, 4  ;;  %v8559_v26 = vsel %vm7748_vm5, %v6298_v1, %v3740_v11  ;;  %v3742_v50 = vrot.slane %v3740_v11, 4  ;;  %v3747_v52 = vrot.slane %v8299_v47, 5 }
 0x152   : > { %v3299_v54 = vrot.slane %v3298_v16, 4  ;;  %v8566_v55 = vsel %vm7748_vm5, %v3735_v14, %v3736_v28  ;;  %v3754_v22 = vrot.slane %v8314_v10, 5  ;;  %v3761_v11 = vrot.slane %v8340_v37, 5 }
 0x153   : > { %v3294_v61 = vsel %vm7332_vm12, %v3289_v31, %v3293_v35  ;;  %v3750_v35 = vrot.slane %v8306_v17, 5  ;;  %v8581_v47 = vsel %vm7748_vm5, %v6299_v2, %v3747_v52  ;;  %v3749_v17 = vrot.slane %v3747_v52, 4  ;;  %v7124_v52 = vld [vmem:[#allocation2 + $0x24] sm:$0xff]  }
 0x154   : > { %v3304_v15 = vsel %vm7332_vm12, %v3299_v54, %v3303_v29  ;;  %v6300_v29 = vrot.slane %v3610_v19, 9  ;;  %v6301_v31 = vrot.slane %v3611_v18, 9  ;;  %v7120_v54 = vld [vmem:[#allocation2 + $0xa8] sm:$0xff]   ;;  %v3756_v10 = vrot.slane %v3754_v22, 4 }
 0x155   : > { %6904 = vmatmul.mubr.msk.bf16.gmra.mxu1 %vm1556_vm9, %v7118_v49  ;;  %v6270_v1 = vcombine.low %v3294_v61, %v3304_v15  ;;  %v8575_v49 = vsel %vm7748_vm5, %v3742_v50, %v3743_v57  ;;  %v3764_v57 = vrot.slane %v8357_v30, 5  ;;  %v8591_v14 = vsel %vm7748_vm5, %v3749_v17, %v3750_v35  ;;  %v7121_v50 = vld [vmem:[#allocation2 + $0xb4] sm:$0xff]   ;;  %v5147_v35 = vld [vmem:[#allocation2 + $0x24] sm:$0xe] }
 0x156   : > { %6907 = vmatprep.mubr.msk.bf16.mxu1 %vm1556_vm9, %v7119_v38  ;;  %v3757_v38 = vrot.slane %v8325_v42, 5  ;;  %v8595_v19 = vsel %vm7748_vm5, %v6300_v29, %v3754_v22  ;;  %v6302_v61 = vrot.slane %v3612_v58, 9  ;;  %v8601_v37 = vsel %vm7748_vm5, %v6301_v31, %v3761_v11  ;;  %v8633_v31 = vpop.f32.mrf.mxu0 }
 0x157   : > { %6946 = vmatmul.mubr.msk.bf16.gmra.mxu0 %vm1556_vm9, %v6270_v1  ;;  %v3763_v30 = vrot.slane %v3761_v11, 4  ;;  %v3768_v2 = vrot.slane %v8518_v12, 5  ;;  %v7125_v12 = vld [vmem:[#allocation2 + $0x30] sm:$0xff]   ;;  %10266 = vst [vmem:[#allocation3_spill] sm:$0xff] %v8633_v31  ;;  %v7126_v11 = vld [vmem:[#allocation2 + $0x3c] sm:$0xff]   ;;  %v6399_v59 = vrot.slane %v5146_v62, 9 }
 0x158   : > { %6985 = vmatprep.mubr.msk.bf16.mxu0 %vm1556_vm9, %v7123_v8  ;;  %v8606_v15 = vsel %vm7748_vm5, %v3756_v10, %v3757_v38  ;;  %v3771_v8 = vrot.slane %v8520_v7, 5  ;;  %v5419_v7 = vsel %vm1605_vm6, %v8231_v44, 0  ;;  %v7122_v38 = vld [vmem:[#allocation2 + $0xc0] sm:$0xff]   ;;  %v8640_v44 = vpop.f32.mrf.mxu0  ;;  %v8671_v62 = vld [vmem:[#allocation2 + $0x2c] sm:$0x1]  ;;  %v4522_v9 = vshll.u32 %v4428_v4, 16 }
 0x159   : > { %v8613_v18 = vsel %vm7748_vm5, %v3763_v30, %v3764_v57  ;;  %v8617_v1 = vsel %vm7748_vm5, %v6302_v61, %v3768_v2  ;;  %v3770_v29 = vrot.slane %v3768_v2, 4  ;;  %v7127_v57 = vld [vmem:[#allocation2 + $0x48] sm:$0xff]   ;;  %10267 = vst [vmem:[#allocation5_spill] sm:$0xff] %v8640_v44  ;;  %v4423_v61 = vld [vmem:[#allocation2 + $0x1c] sm:$0xf] }
 0x15a   : > { %v8644_v10 = vpop.f32.mrf.mxu0  ;;  %v8648_v30 = vld [vmem:[#allocation2 + $0x28] sm:$0xf]  ;;  %v4425_v2 = vld [vmem:[#allocation2 + $0x24] sm:$0xf]  ;;  %v5212_v43 = vrot.slane %v4423_v61, 5 }
 0x15b   : > { %v8627_v17 = vsel %vm7748_vm5, %v3770_v29, %v3771_v8  ;;  %10268 = vst [vmem:[#allocation6_spill] sm:$0xff] %v8644_v10  ;;  %v7128_v8 = vld [vmem:[#allocation2 + $0x54] sm:$0xff]   ;;  %v4424_v29 = vld [vmem:[#allocation2 + $0x20] sm:$0x1]  ;;  %v4504_v22 = vshll.u32 %v8648_v30, 16  ;;  %v4508_v6 = vshrl.u32 %v8648_v30, 16 }
 0x15c   : > { %10265 = vst [vmem:[#allocation4_spill] sm:$0xff] %v8627_v17  ;;  %v4490_v58 = vshll.u32 %v4424_v29, 16  ;;  %v5219_v42 = vrot.slane %v8648_v30, 5  ;;  %v8679_v30 = vsel %vm7748_vm5, %v6399_v59, %v5212_v43  ;;  %v4514_v59 = vshll.u32 %v8671_v62, 16  ;;  %v7132_v44 = vld [vmem:[#allocation2 + $0x84] sm:$0xff]  }
 0x15d   : > { %6908 = vmatmul.mubr.msk.bf16.gmra.mxu1 %vm1556_vm9, %v7120_v54  ;;  %v4422_v54 = vld [vmem:[#allocation2 + $0x18] sm:$0xf]  ;;  %v8673_v3 = vrot.slane %v4504_v22, 5  ;;  %v6400_v22 = vrot.slane %v5147_v35, 9  ;;  %v10272_v35 = vcombine.low %v8452_v24, %v8469_v60 }
 0x15e   : > { %6911 = vmatprep.mubr.msk.bf16.mxu1 %vm1556_vm9, %v7121_v50  ;;  %v4951_v50 = vsel %vm1605_vm6, %v8334_v13, 0  ;;  %v8658_v13 = vpop.f32.mrf.mxu0  ;;  %v5221_v0 = vrot.slane %v5219_v42, 4 }
 0x15f   : > { %6986 = vmatmul.mubr.msk.bf16.vlgmr.msra.gmra.mxu0 %vm1556_vm9, %v7124_v52  ;;  %v7129_v52 = vld [vmem:[#allocation2 + $0x60] sm:$0xff]   ;;  %10269 = vst [vmem:[#allocation7_spill] sm:$0xff] %v8658_v13 }
 0x160   : > { %7052 = vmatpush3.bf16.msra.mxu0 %v5419_v7  ;;  %6989 = vmatprep.mubr.msk.bf16.mxu0 %vm1556_vm9, %v7125_v12  ;;  %v4474_v12 = vshll.u32 %v4422_v54, 16  ;;  %v4480_v7 = vshll.u32 %v4423_v61, 16  ;;  %v8669_v28 = vpop.f32.mrf.mxu0 }
 0x161   : > { %10270 = vst [vmem:[#allocation8_spill] sm:$0xff] %v8669_v28  ;;  %v8696_v28 = vld [vmem:[#allocation2 + $0x40] sm:$0xf] }
 0x162   : > { %v4476_v40 = vrot.slane %v4474_v12, 5  ;;  %v8702_v23 = vpop.f32.mrf.mxu0 }
 0x163   : > { %10273 = vst [vmem:[#allocation10_spill] sm:$0xff] %v8702_v23  ;;  %v4556_v23 = vshrl.u32 %v8696_v28, 16 }
 0x165   : > { %6912 = vmatmul.mubr.msk.bf16.gmra.mxu1 %vm1556_vm9, %v7122_v38  ;;  %v4484_v38 = vshrl.u32 %v4423_v61, 16  ;;  %v5215_v61 = vrot.slane %v4424_v29, 5  ;;  %v4519_v29 = vshrl.u32 %v4428_v4, 16 }
 0x166   : > { %6951 = vmatprep.mubr.msk.bf16.mxu1 %vm1556_vm9, %v6303_v48  ;;  %v4471_v48 = vshrl.u32 %v4422_v54, 16  ;;  %v5214_v54 = vrot.slane %v5212_v43, 4  ;;  %v5222_v43 = vrot.slane %v8671_v62, 5  ;;  %v4524_v62 = vrot.slane %v4522_v9, 5  ;;  %v8714_v9 = vpop.f32.mrf.mxu0 }
 0x167   : > { %6990 = vmatmul.mubr.msk.bf16.gmra.mxu0 %vm1556_vm9, %v7126_v11  ;;  %v4495_v11 = vshrl.u32 %v4425_v2, 16 }
 0x168   : > { %6993 = vmatprep.mubr.msk.bf16.mxu0 %vm1556_vm9, %v7127_v57  ;;  %v4498_v57 = vshll.u32 %v4425_v2, 16  ;;  %v4486_v2 = vrot.slane %v4484_v38, 4  ;;  %v7131_v38 = vld [vmem:[#allocation2 + $0x78] sm:$0xff]   ;;  %v8683_v5 = vsel %vm7748_vm5, %v5214_v54, %v5215_v61  ;;  %v5148_v61 = vld [vmem:[#allocation2 + $0x30] sm:$0xe] }
 0x169   : > { %v4497_v16 = vrot.slane %v4495_v11, 4  ;;  %v8685_v11 = vrot.slane %v4490_v58, 5  ;;  %v4431_v54 = vld [vmem:[#allocation2 + $0x3c] sm:$0xf] }
 0x16a   : > { %v4543_v24 = vshrl.u32 %v4431_v54, 16  ;;  %v4546_v60 = vshll.u32 %v4431_v54, 16  ;;  %v8718_v54 = vsel %vm7748_vm5, %v6400_v22, %v5219_v42  ;;  %v7133_v42 = vld [vmem:[#allocation2 + $0x90] sm:$0xff]  }
 0x16d   : > { %6952 = vmatmul.mubr.msk.bf16.vlgmr.msra.gmra.mxu1 %vm1556_vm9, %v6304_v21  ;;  %v8662_v21 = vld [vmem:[#allocation2 + $0x34] sm:$0xf] }
 0x16e   : > { %7018 = vmatpush3.bf16.msra.mxu1 %v4951_v50  ;;  %6955 = vmatprep.mubr.msk.bf16.mxu1 %vm1556_vm9, %v6305_v41  ;;  %v4473_v50 = vrot.slane %v4471_v48, 4  ;;  %v8666_v41 = vrot.slane %v4480_v7, 5  ;;  %v4510_v48 = vrot.slane %v4508_v6, 4  ;;  %v4532_v12 = vshrl.u32 %v8662_v21, 16  ;;  %v7130_v7 = vld [vmem:[#allocation2 + $0x6c] sm:$0xff]  }
 0x16f   : > { %6994 = vmatmul.mubr.msk.bf16.gmra.mxu0 %vm1556_vm9, %v7128_v8  ;;  %v4500_v8 = vrot.slane %v4498_v57, 5  ;;  %v8691_v57 = vpop.f32.mrf.mxu1 }
 0x170   : > { %6997 = vmatprep.mubr.msk.bf16.mxu0 %vm1556_vm9, %v7129_v52  ;;  %v4528_v52 = vshll.u32 %v8662_v21, 16  ;;  %10271 = vst [vmem:[#allocation9_spill] sm:$0xff] %v8691_v57  ;;  %v4477_v6 = vor.u32 %v4476_v40, %v4473_v50  ;;  %v4487_v4 = vor.u32 %v4486_v2, %v8666_v41  ;;  %v4511_v58 = vor.u32 %v4510_v48, %v8673_v3  ;;  %v4430_v40 = vld [vmem:[#allocation2 + $0x38] sm:$0x1] }
 0x171   : > { %v5226_v50 = vrot.slane %v8662_v21, 5  ;;  %v4521_v2 = vrot.slane %v4519_v29, 4  ;;  %v4534_v13 = vrot.slane %v4532_v12, 4  ;;  %v4516_v48 = vrot.slane %v4514_v59, 5 }
 0x172   : > { %v8706_v57 = vrot.slane %v4528_v52, 5  ;;  %v4488_v21 = vrot.slane %v4487_v4, 4  ;;  %v6401_v29 = vrot.slane %v5148_v61, 9  ;;  %v4512_v12 = vrot.slane %v4511_v58, 4 }
 0x173   : > { %v5228_v10 = vrot.slane %v5226_v50, 4  ;;  %v4525_v31 = vor.u32 %v4524_v62, %v4521_v2  ;;  %v4538_v17 = vshll.u32 %v4430_v40, 16  ;;  %v4548_v4 = vrot.slane %v4546_v60, 5 }
 0x174   : > { %v4558_v61 = vrot.slane %v4556_v23, 4  ;;  %v4493_v22 = vsel %vm7332_vm12, %v4488_v21, %v8685_v11  ;;  %v8749_v23 = vpop.f32.mrf.mxu0  ;;  %v4517_v11 = vsel %vm7332_vm12, %v4512_v12, %v4516_v48  ;;  %v4434_v21 = vld [vmem:[#allocation2 + $0x48] sm:$0xf] }
 0x175   : > { %6956 = vmatmul.mubr.msk.bf16.gmra.mxu1 %vm1556_vm9, %v6306_v32  ;;  %v4501_v32 = vor.u32 %v4500_v8, %v4497_v16  ;;  %v8712_v16 = vpop.f32.mrf.mxu1  ;;  %v4478_v8 = vrot.slane %v4477_v6, 4  ;;  %v4545_v6 = vrot.slane %v4543_v24, 4 }
 0x176   : > { %6959 = vmatprep.mubr.msk.bf16.mxu1 %vm1556_vm9, %v10272_v35  ;;  %v4552_v35 = vshll.u32 %v8696_v28, 16  ;;  %10274 = vst [vmem:[#allocation11_spill] sm:$0xff] %v8712_v16  ;;  %v8721_v16 = vld [vmem:[#allocation2 + $0x44] sm:$0x1]  ;;  %v8775_v48 = vpop.f32.mrf.mxu0 }
 0x177   : > { %6998 = vmatmul.mubr.msk.bf16.gmra.mxu0 %vm1556_vm9, %v7130_v7  ;;  %v4502_v52 = vrot.slane %v4501_v32, 4  ;;  %v5229_v7 = vrot.slane %v4430_v40, 5  ;;  %v10275_v32 = vcombine.low %v8480_v36, %v8490_v51  ;;  %v8729_v58 = vpop.f32.mrf.mxu1  ;;  %v8739_v40 = vsel %vm7748_vm5, %v5221_v0, %v5222_v43 }
 0x178   : > { %7001 = vmatprep.mubr.msk.bf16.mxu0 %vm1556_vm9, %v7131_v38  ;;  %v4535_v38 = vor.u32 %v4534_v13, %v8706_v57  ;;  %v8723_v59 = vrot.slane %v4552_v35, 5  ;;  %10276 = vst [vmem:[#allocation12_spill] sm:$0xff] %v8729_v58  ;;  %v4483_v13 = vsel %vm7332_vm12, %v4478_v8, %v8666_v41  ;;  %v8743_v36 = vsel %vm7748_vm5, %v6401_v29, %v5226_v50  ;;  %v4435_v35 = vld [vmem:[#allocation2 + $0x4c] sm:$0xf]  ;;  %v5150_v8 = vld [vmem:[#allocation2 + $0x48] sm:$0xe] }
 0x179   : > { %v10277_v51 = vcombine.low %v8485_v25, %v8503_v45  ;;  %v4507_v41 = vsel %vm7332_vm12, %v4502_v52, %v8673_v3  ;;  %v8758_v43 = vsel %vm7748_vm5, %v5228_v10, %v5229_v7  ;;  %v5233_v0 = vrot.slane %v8696_v28, 5  ;;  %v5149_v45 = vld [vmem:[#allocation2 + $0x3c] sm:$0xe]  ;;  %v8766_v10 = vpop.f32.mrf.mxu1 }
 0x17a   : > { %v4526_v50 = vrot.slane %v4525_v31, 4  ;;  %v4536_v2 = vrot.slane %v4535_v38, 4  ;;  %v4540_v25 = vrot.slane %v4538_v17, 5  ;;  %v4562_v62 = vshll.u32 %v8721_v16, 16  ;;  %10278 = vst [vmem:[#allocation13_spill] sm:$0xff] %v8766_v10 }
 0x17b   : > { %v4549_v24 = vor.u32 %v4548_v4, %v4545_v6  ;;  %v4559_v60 = vor.u32 %v4558_v61, %v8723_v59  ;;  %v8769_v28 = vcombine.low %v4483_v13, %v4493_v22  ;;  %v8777_v29 = vcombine.low %v4507_v41, %v4517_v11  ;;  %v8780_v38 = vld [vmem:[#allocation2 + $0x50] sm:$0x1]  ;;  %v4437_v13 = vld [vmem:[#allocation2 + $0x54] sm:$0xf]  ;;  %v7134_v22 = vld [vmem:[#allocation2 + $0x9c] sm:$0xff]   ;;  %v8793_v31 = vpop.f32.mrf.mxu1 }
 0x17c   : > { %v6402_v52 = vrot.slane %v5149_v45, 9  ;;  %v5235_v12 = vrot.slane %v5233_v0, 4  ;;  %v5236_v7 = vrot.slane %v8721_v16, 5  ;;  %v4531_v6 = vsel %vm7332_vm12, %v4526_v50, %v8706_v57  ;;  %10280 = vst [vmem:[#allocation14_spill] sm:$0xff] %v8793_v31  ;;  %v7135_v57 = vld [vmem:[#allocation2 + $0xa8] sm:$0xff]  }
 0x17d   : > { %6960 = vmatmul.mubr.msk.bf16.gmra.mxu1 %vm1556_vm9, %v10275_v32  ;;  %v4541_v4 = vsel %vm7332_vm12, %v4536_v2, %v4540_v25  ;;  %v4564_v61 = vrot.slane %v4562_v62, 5  ;;  %v6403_v32 = vrot.slane %v5150_v8, 9  ;;  %v4560_v41 = vrot.slane %v4559_v60, 4 }
 0x17e   : > { %6963 = vmatprep.mubr.msk.bf16.mxu1 %vm1556_vm9, %v10277_v51  ;;  %v4550_v51 = vrot.slane %v4549_v24, 4  ;;  %v4567_v11 = vshrl.u32 %v4434_v21, 16  ;;  %v4570_v45 = vshll.u32 %v4434_v21, 16  ;;  %v10279_v16 = vcombine.low %v8494_v46, %v8512_v20  ;;  %v8800_v24 = vpop.f32.mrf.mxu0 }
 0x17f   : > { %7002 = vmatmul.mubr.msk.bf16.gmra.mxu0 %vm1556_vm9, %v7132_v44  ;;  %v5240_v44 = vrot.slane %v4435_v35, 5  ;;  %v5243_v2 = vrot.slane %v8780_v38, 5  ;;  %v4576_v25 = vshll.u32 %v4435_v35, 16  ;;  %v4580_v62 = vshrl.u32 %v4435_v35, 16  ;;  %10282 = vst [vmem:[#allocation15_spill] sm:$0xff] %v8800_v24 }
 0x180   : > { %7005 = vmatprep.mubr.msk.bf16.mxu0 %vm1556_vm9, %v7133_v42  ;;  %v8787_v42 = vld [vmem:[#allocation2 + $0x58] sm:$0xf]  ;;  %v10281_v8 = vcombine.low %v8516_v56, %v8530_v63  ;;  %v4591_v60 = vshrl.u32 %v4437_v13, 16  ;;  %v4594_v21 = vshll.u32 %v4437_v13, 16  ;;  %v8808_v17 = vsel %vm7748_vm5, %v6402_v52, %v5233_v0  ;;  %v8824_v52 = vld [vmem:[#allocation2 + $0x64] sm:$0xf] }
 0x181   : > { %v5242_v50 = vrot.slane %v5240_v44, 4  ;;  %v4600_v46 = vshll.u32 %v8787_v42, 16  ;;  %v4604_v20 = vshrl.u32 %v8787_v42, 16  ;;  %v8812_v35 = vsel %vm7748_vm5, %v5235_v12, %v5236_v7  ;;  %v4440_v13 = vld [vmem:[#allocation2 + $0x60] sm:$0xf]  ;;  %v8826_v12 = vpop.f32.mrf.mxu1 }
 0x182   : > { %v8816_v56 = vsel %vm7748_vm5, %v6403_v32, %v5240_v44  ;;  %v4555_v63 = vsel %vm7332_vm12, %v4550_v51, %v8723_v59  ;;  %v4572_v0 = vrot.slane %v4570_v45, 5  ;;  %10283 = vst [vmem:[#allocation16_spill] sm:$0xff] %v8826_v12  ;;  %v8833_v7 = vrot.slane %v4576_v25, 5  ;;  %v7136_v25 = vld [vmem:[#allocation2 + $0xb4] sm:$0xff]   ;;  %v7137_v12 = vld [vmem:[#allocation2 + $0xc0] sm:$0xff]  }
 0x183   : > { %v8831_v44 = vsel %vm7748_vm5, %v5242_v50, %v5243_v2  ;;  %v4582_v32 = vrot.slane %v4580_v62, 4  ;;  %v4586_v59 = vshll.u32 %v8780_v38, 16  ;;  %v4593_v51 = vrot.slane %v4591_v60, 4  ;;  %v4443_v38 = vld [vmem:[#allocation2 + $0x6c] sm:$0xf] }
 0x184   : > { %v4606_v45 = vrot.slane %v4604_v20, 4  ;;  %v4618_v3 = vshll.u32 %v4440_v13, 16  ;;  %v4624_v50 = vshll.u32 %v8824_v52, 16  ;;  %v4628_v2 = vshrl.u32 %v8824_v52, 16 }
 0x185   : > { %6964 = vmatmul.mubr.msk.bf16.gmra.mxu1 %vm1556_vm9, %v10279_v16  ;;  %v8804_v16 = vcombine.low %v4531_v6, %v4541_v4  ;;  %v4565_v6 = vsel %vm7332_vm12, %v4560_v41, %v4564_v61  ;;  %v4569_v4 = vrot.slane %v4567_v11, 4  ;;  %v5151_v61 = vld [vmem:[#allocation2 + $0x54] sm:$0xe]  ;;  %v4596_v41 = vrot.slane %v4594_v21, 5 }
 0x186   : > { %6967 = vmatprep.mubr.msk.bf16.mxu1 %vm1556_vm9, %v10281_v8  ;;  %v8838_v11 = vrot.slane %v4600_v46, 5  ;;  %v8840_v8 = vld [vmem:[#allocation2 + $0x5c] sm:$0x1]  ;;  %v8846_v62 = vcombine.low %v4555_v63, %v4565_v6  ;;  %v8850_v46 = vld [vmem:[#allocation2 + $0x70] sm:$0xf]  ;;  %v10285_v20 = vcombine.low %v8539_v39, %v8545_v53  ;;  %v4583_v31 = vor.u32 %v4582_v32, %v8833_v7 }
 0x187   : > { %7006 = vmatmul.mubr.msk.bf16.gmra.mxu0 %vm1556_vm9, %v7134_v22  ;;  %v8836_v22 = vpop.f32.mrf.mxu0  ;;  %v4573_v21 = vor.u32 %v4572_v0, %v4569_v4  ;;  %v8859_v10 = vrot.slane %v4586_v59, 5  ;;  %v6404_v63 = vrot.slane %v5151_v61, 9  ;;  %v5247_v6 = vrot.slane %v8787_v42, 5  ;;  %v5152_v59 = vld [vmem:[#allocation2 + $0x60] sm:$0xe] }
 0x188   : > { %7009 = vmatprep.mubr.msk.bf16.mxu0 %vm1556_vm9, %v7135_v57  ;;  %10284 = vst [vmem:[#allocation17_spill] sm:$0xff] %v8836_v22  ;;  %v4615_v57 = vshrl.u32 %v4440_v13, 16  ;;  %v8856_v13 = vpop.f32.mrf.mxu1  ;;  %v10287_v4 = vcombine.low %v8553_v34, %v8566_v55  ;;  %v5250_v39 = vrot.slane %v8840_v8, 5  ;;  %v4597_v53 = vor.u32 %v4596_v41, %v4593_v51  ;;  %v4442_v34 = vld [vmem:[#allocation2 + $0x68] sm:$0x1] }
 0x189   : > { %10286 = vst [vmem:[#allocation18_spill] sm:$0xff] %v8856_v13  ;;  %v8866_v0 = vpop.f32.mrf.mxu0  ;;  %v4610_v32 = vshll.u32 %v8840_v8, 16  ;;  %v4620_v61 = vrot.slane %v4618_v3, 5  ;;  %v8871_v13 = vrot.slane %v4624_v50, 5  ;;  %v4630_v42 = vrot.slane %v4628_v2, 4 }
 0x18a   : > { %10288 = vst [vmem:[#allocation19_spill] sm:$0xff] %v8866_v0  ;;  %v4617_v60 = vrot.slane %v4615_v57, 4  ;;  %v4639_v55 = vshrl.u32 %v4443_v38, 16  ;;  %v4648_v58 = vshll.u32 %v8850_v46, 16  ;;  %v4652_v0 = vshrl.u32 %v8850_v46, 16  ;;  %v8876_v51 = vpop.f32.mrf.mxu1 }
 0x18b   : > { %10289 = vst [vmem:[#allocation20_spill] sm:$0xff] %v8876_v51  ;;  %v8879_v41 = vrot.slane %v4573_v21, 4  ;;  %v8883_v3 = vsel %vm7748_vm5, %v6404_v63, %v5247_v6  ;;  %v5254_v8 = vrot.slane %v8824_v52, 5  ;;  %v8888_v50 = vrot.slane %v4583_v31, 4  ;;  %v7138_v51 = vld [vmem:[#allocation2 + $0xcc] sm:$0xff]  }
 0x18c   : > { %v8890_v2 = vrot.slane %v4597_v53, 4  ;;  %v4621_v21 = vor.u32 %v4620_v61, %v4617_v60  ;;  %v4631_v22 = vor.u32 %v4630_v42, %v8871_v13  ;;  %v4634_v63 = vshll.u32 %v4442_v34, 16  ;;  %v5153_v42 = vld [vmem:[#allocation2 + $0x6c] sm:$0xe] }
 0x18d   : > { %6968 = vmatmul.mubr.msk.bf16.gmra.mxu1 %vm1556_vm9, %v10285_v20  ;;  %v4607_v20 = vor.u32 %v4606_v45, %v8838_v11  ;;  %v5249_v45 = vrot.slane %v5247_v6, 4  ;;  %v8899_v6 = vld [vmem:[#allocation2 + $0x74] sm:$0x1]  ;;  %v4641_v52 = vrot.slane %v4639_v55, 4  ;;  %v8901_v31 = vrot.slane %v4648_v58, 5 }
 0x18e   : > { %6971 = vmatprep.mubr.msk.bf16.mxu1 %vm1556_vm9, %v10287_v4  ;;  %v4642_v4 = vshll.u32 %v4443_v38, 16  ;;  %v6405_v38 = vrot.slane %v5152_v59, 9  ;;  %v4654_v53 = vrot.slane %v4652_v0, 4  ;;  %v4579_v60 = vsel %vm7332_vm12, %v8879_v41, %v8833_v7 }
 0x18f   : > { %7010 = vmatmul.mubr.msk.bf16.gmra.mxu0 %vm1556_vm9, %v7136_v25  ;;  %v8892_v25 = vrot.slane %v4610_v32, 5  ;;  %v10292_v32 = vcombine.low %v8559_v26, %v8575_v49  ;;  %v8915_v59 = vsel %vm7748_vm5, %v5249_v45, %v5250_v39  ;;  %v5256_v61 = vrot.slane %v5254_v8, 4  ;;  %v4447_v45 = vld [vmem:[#allocation2 + $0x7c] sm:$0xf] }
 0x190   : > { %7013 = vmatprep.mubr.msk.bf16.mxu0 %vm1556_vm9, %v7137_v12  ;;  %v8886_v57 = vpop.f32.mrf.mxu0  ;;  %v8894_v12 = vrot.slane %v4607_v20, 4  ;;  %v8907_v20 = vpop.f32.mrf.mxu1  ;;  %v5257_v58 = vrot.slane %v4442_v34, 5  ;;  %v10294_v0 = vcombine.low %v8581_v47, %v8591_v14  ;;  %v4589_v49 = vsel %vm7332_vm12, %v8888_v50, %v8859_v10  ;;  %v4446_v14 = vld [vmem:[#allocation2 + $0x78] sm:$0xf] }
 0x191   : > { %10290 = vst [vmem:[#allocation21_spill] sm:$0xff] %v8886_v57  ;;  %v4644_v57 = vrot.slane %v4642_v4, 5  ;;  %10293 = vst [vmem:[#allocation23_spill] sm:$0xff] %v8907_v20  ;;  %v4603_v7 = vsel %vm7332_vm12, %v8890_v2, %v8838_v11  ;;  %v8933_v39 = vsel %vm7748_vm5, %v6405_v38, %v5254_v8  ;;  %v5261_v47 = vrot.slane %v8850_v46, 5  ;;  %v5154_v46 = vld [vmem:[#allocation2 + $0x78] sm:$0xe] }
 0x192   : > { %v8897_v24 = vpop.f32.mrf.mxu0  ;;  %v4622_v34 = vrot.slane %v4621_v21, 4  ;;  %v4632_v55 = vrot.slane %v4631_v22, 4  ;;  %v4636_v4 = vrot.slane %v4634_v63, 5  ;;  %v4658_v41 = vshll.u32 %v8899_v6, 16  ;;  %v8945_v38 = vpop.f32.mrf.mxu1  ;;  %v4448_v63 = vld [vmem:[#allocation2 + $0x80] sm:$0x1] }
 0x193   : > { %10291 = vst [vmem:[#allocation22_spill] sm:$0xff] %v8897_v24  ;;  %v4613_v11 = vsel %vm7332_vm12, %v8894_v12, %v8892_v25  ;;  %v4645_v8 = vor.u32 %v4644_v57, %v4641_v52  ;;  %v4655_v50 = vor.u32 %v4654_v53, %v8901_v31  ;;  %v5268_v2 = vrot.slane %v4447_v45, 5  ;;  %10297 = vst [vmem:[#allocation26_spill] sm:$0xff] %v8945_v38 }
 0x194   : > { %v8921_v26 = vpop.f32.mrf.mxu0  ;;  %v10298_v22 = vcombine.low %v8679_v30, %v8683_v5  ;;  %v6406_v21 = vrot.slane %v5153_v42, 9  ;;  %v4666_v25 = vshll.u32 %v4446_v14, 16  ;;  %v5263_v12 = vrot.slane %v5261_v47, 4 }
 0x195   : > { %6972 = vmatmul.mubr.msk.bf16.gmra.mxu1 %vm1556_vm9, %v10292_v32  ;;  %10295 = vst [vmem:[#allocation24_spill] sm:$0xff] %v8921_v26  ;;  %v4663_v32 = vshrl.u32 %v4446_v14, 16  ;;  %v5264_v52 = vrot.slane %v8899_v6, 5  ;;  %v4672_v53 = vshll.u32 %v4447_v45, 16  ;;  %v4627_v5 = vsel %vm7332_vm12, %v4622_v34, %v8871_v13 }
 0x196   : > { %6975 = vmatprep.mubr.msk.bf16.mxu1 %vm1556_vm9, %v10294_v0  ;;  %v8938_v10 = vpop.f32.mrf.mxu0  ;;  %v4676_v0 = vshrl.u32 %v4447_v45, 16  ;;  %v4637_v30 = vsel %vm7332_vm12, %v4632_v55, %v4636_v4  ;;  %v4656_v14 = vrot.slane %v4655_v50, 4  ;;  %v5270_v38 = vrot.slane %v5268_v2, 4  ;;  %v8969_v45 = vpop.f32.mrf.mxu1 }
 0x197   : > { %7014 = vmatmul.mubr.msk.bf16.gmra.mxu0 %vm1556_vm9, %v7138_v51  ;;  %10296 = vst [vmem:[#allocation25_spill] sm:$0xff] %v8938_v10  ;;  %v8953_v51 = vsel %vm7748_vm5, %v5256_v61, %v5257_v58  ;;  %v4660_v61 = vrot.slane %v4658_v41, 5  ;;  %v6407_v58 = vrot.slane %v5154_v46, 9  ;;  %v5271_v20 = vrot.slane %v4448_v63, 5  ;;  %10300 = vst [vmem:[#allocation27_spill] sm:$0xff] %v8969_v45 }
 0x198   : > { %7053 = vmatprep.mubr.msk.bf16.mxu0 %vm1556_vm9, %v10298_v22  ;;  %v8955_v57 = vpop.f32.mrf.mxu0  ;;  %v4646_v22 = vrot.slane %v4645_v8, 4  ;;  %v10299_v6 = vcombine.low %v8595_v19, %v8606_v15  ;;  %v8971_v10 = vcombine.low %v4579_v60, %v4589_v49  ;;  %v4665_v34 = vrot.slane %v4663_v32, 4  ;;  %v4449_v8 = vld [vmem:[#allocation2 + $0x84] sm:$0xf]  ;;  %v4450_v32 = vld [vmem:[#allocation2 + $0x88] sm:$0xf] }
 0x199   : > { %v4668_v55 = vrot.slane %v4666_v25, 5  ;;  %v10301_v4 = vcombine.low %v8601_v37, %v8613_v18  ;;  %v8983_v19 = vsel %vm7748_vm5, %v6406_v21, %v5261_v47  ;;  %v8987_v15 = vsel %vm7748_vm5, %v5263_v12, %v5264_v52  ;;  %v5155_v25 = vld [vmem:[#allocation2 + $0x84] sm:$0xe] }
 0x19a   : > { %v8963_v42 = vpop.f32.mrf.mxu0  ;;  %v8989_v60 = vrot.slane %v4672_v53, 5  ;;  %v4678_v49 = vrot.slane %v4676_v0, 4  ;;  %v8991_v50 = vcombine.low %v4603_v7, %v4613_v11  ;;  %v8995_v18 = vcombine.low %v4627_v5, %v4637_v30  ;;  %v9024_v5 = vld [vmem:[#allocation2 + $0x94] sm:$0xf] }
 0x19b   : > { %v4682_v46 = vshll.u32 %v4448_v63, 16  ;;  %v10302_v47 = vcombine.low %v8718_v54, %v8739_v40  ;;  %v4651_v7 = vsel %vm7332_vm12, %v4646_v22, %v8901_v31  ;;  %v4661_v11 = vsel %vm7332_vm12, %v4656_v14, %v4660_v61  ;;  %v9016_v54 = vpop.f32.mrf.mxu1 }
 0x19c   : > { %v8979_v41 = vpop.f32.mrf.mxu0  ;;  %v9010_v12 = vsel %vm7748_vm5, %v6407_v58, %v5268_v2  ;;  %v9014_v63 = vsel %vm7748_vm5, %v5270_v38, %v5271_v20  ;;  %10303 = vst [vmem:[#allocation28_spill] sm:$0xff] %v9016_v54  ;;  %v10304_v40 = vcombine.low %v8743_v36, %v8758_v43  ;;  %v4669_v52 = vor.u32 %v4668_v55, %v4665_v34  ;;  %v4452_v2 = vld [vmem:[#allocation2 + $0x90] sm:$0xf]  ;;  %v9029_v38 = vld [vmem:[#allocation2 + $0x8c] sm:$0x1] }
 0x19d   : > { %6976 = vmatmul.mubr.msk.bf16.gmra.mxu1 %vm1556_vm9, %v10299_v6  ;;  %v4687_v53 = vshrl.u32 %v4449_v8, 16  ;;  %v4690_v0 = vshll.u32 %v4449_v8, 16  ;;  %v4679_v20 = vor.u32 %v4678_v49, %v8989_v60  ;;  %v6408_v61 = vrot.slane %v5155_v25, 9  ;;  %v9037_v34 = vld [vmem:[#allocation2 + $0xa0] sm:$0xf] }
 0x19e   : > { %6979 = vmatprep.mubr.msk.bf16.mxu1 %vm1556_vm9, %v10301_v4  ;;  %v9001_v21 = vpop.f32.mrf.mxu0  ;;  %v4696_v58 = vshll.u32 %v4450_v32, 16  ;;  %v4700_v36 = vshrl.u32 %v4450_v32, 16  ;;  %v9031_v43 = vcombine.low %v4651_v7, %v4661_v11  ;;  %v9035_v14 = vrot.slane %v4682_v46, 5  ;;  %v10307_v7 = vld [vmem:[#allocation4_spill] sm:$0xff] }
 0x19f   : > { %7054 = vmatmul.mubr.msk.bf16.vlgmr.msra.gmra.mxu0 %vm1556_vm9, %v10302_v47  ;;  %v5275_v6 = vrot.slane %v4450_v32, 5  ;;  %v4711_v4 = vshrl.u32 %v4452_v2, 16  ;;  %v4714_v8 = vshll.u32 %v4452_v2, 16  ;;  %v4720_v49 = vshll.u32 %v9024_v5, 16  ;;  %v4455_v47 = vld [vmem:[#allocation2 + $0x9c] sm:$0xf] }
 0x1a0   : > { %7057 = vmatprep.mubr.msk.bf16.mxu0 %vm1556_vm9, %v10304_v40  ;;  %v9026_v30 = vpop.f32.mrf.mxu0  ;;  %10305 = vst [vmem:[#allocation29_spill] sm:$0xff] %v9031_v43  ;;  %v4724_v25 = vshrl.u32 %v9024_v5, 16  ;;  %v10308_v11 = vcombine.low %v8617_v1, %v10307_v7  ;;  %v9049_v46 = vrot.slane %v4669_v52, 4  ;;  %v5278_v32 = vrot.slane %v9029_v38, 5  ;;  %v9064_v52 = vld [vmem:[#allocation2 + $0x98] sm:$0x1] }
 0x1a1   : > { %v4689_v22 = vrot.slane %v4687_v53, 4  ;;  %v4692_v31 = vrot.slane %v4690_v0, 5  ;;  %v9056_v37 = vrot.slane %v4679_v20, 4  ;;  %v9060_v13 = vsel %vm7748_vm5, %v6408_v61, %v5275_v6  ;;  %v5156_v53 = vld [vmem:[#allocation2 + $0x90] sm:$0xe] }
 0x1a2   : > { %v9039_v55 = vpop.f32.mrf.mxu0  ;;  %v9043_v40 = vpop.f32.mrf.mxu1  ;;  %v9062_v1 = vrot.slane %v4696_v58, 5  ;;  %v4702_v7 = vrot.slane %v4700_v36, 4  ;;  %v4735_v0 = vshrl.u32 %v4455_v47, 16  ;;  %v4748_v54 = vshrl.u32 %v9037_v34, 16 }
 0x1a3   : > { %10306 = vst [vmem:[#allocation30_spill] sm:$0xff] %v9043_v40  ;;  %v4738_v40 = vshll.u32 %v4455_v47, 16  ;;  %v10310_v20 = vcombine.low %v8808_v17, %v8812_v35  ;;  %v4713_v58 = vrot.slane %v4711_v4, 4  ;;  %v4716_v36 = vrot.slane %v4714_v8, 5 }
 0x1a4   : > { %v9054_v2 = vpop.f32.mrf.mxu0  ;;  %v9076_v45 = vrot.slane %v4720_v49, 5  ;;  %v4726_v26 = vrot.slane %v4724_v25, 4  ;;  %v10313_v47 = vcombine.low %v8816_v56, %v8831_v44  ;;  %v5277_v35 = vrot.slane %v5275_v6, 4 }
 0x1a5   : > { %6980 = vmatmul.mubr.msk.bf16.gmra.mxu1 %vm1556_vm9, %v10308_v11  ;;  %v9066_v11 = vpop.f32.mrf.mxu1  ;;  %v4706_v4 = vshll.u32 %v9029_v38, 16  ;;  %v4703_v49 = vor.u32 %v4702_v7, %v9062_v1  ;;  %v6409_v25 = vrot.slane %v5156_v53, 9  ;;  %v4730_v56 = vshll.u32 %v9064_v52, 16  ;;  %v4457_v7 = vld [vmem:[#allocation2 + $0xa4] sm:$0x1] }
 0x1a6   : > { %7019 = vmatprep.mubr.msk.bf16.mxu1 %vm1556_vm9, %v8769_v28  ;;  %10309 = vst [vmem:[#allocation4_spill] sm:$0xff] %v9066_v11  ;;  %v4744_v28 = vshll.u32 %v9037_v34, 16  ;;  %v9074_v61 = vpop.f32.mrf.mxu0  ;;  %v4737_v24 = vrot.slane %v4735_v0, 4  ;;  %v4740_v43 = vrot.slane %v4738_v40, 5  ;;  %v4750_v6 = vrot.slane %v4748_v54, 4 }
 0x1a7   : > { %7058 = vmatmul.mubr.msk.bf16.gmra.mxu0 %vm1556_vm9, %v10310_v20  ;;  %10311 = vst [vmem:[#allocation31_spill] sm:$0xff] %v9074_v61  ;;  %v9078_v11 = vpop.f32.mrf.mxu1  ;;  %v4693_v20 = vor.u32 %v4692_v31, %v4689_v22  ;;  %v4685_v38 = vsel %vm7332_vm12, %v9056_v37, %v9035_v14  ;;  %v4717_v22 = vor.u32 %v4716_v36, %v4713_v58  ;;  %v5289_v53 = vrot.slane %v9037_v34, 5  ;;  %v4458_v58 = vld [vmem:[#allocation2 + $0xa8] sm:$0xf] }
 0x1a8   : > { %10312 = vst [vmem:[#allocation32_spill] sm:$0xff] %v9078_v11  ;;  %7061 = vmatprep.mubr.msk.bf16.mxu0 %vm1556_vm9, %v10313_v47  ;;  %v9089_v8 = vpop.f32.mrf.mxu0  ;;  %v5282_v11 = vrot.slane %v9024_v5, 5  ;;  %v5157_v47 = vld [vmem:[#allocation2 + $0x9c] sm:$0xe]  ;;  %v9096_v61 = vrot.slane %v4744_v28, 5  ;;  %v4727_v5 = vor.u32 %v4726_v26, %v9076_v45  ;;  %v9110_v54 = vsel %vm7748_vm5, %v5277_v35, %v5278_v32 }
 0x1a9   : > { %v9094_v44 = vpop.f32.mrf.mxu1  ;;  %v4694_v40 = vrot.slane %v4693_v20, 4  ;;  %v4708_v0 = vrot.slane %v4706_v4, 5  ;;  %v5285_v28 = vrot.slane %v9064_v52, 5  ;;  %v4704_v26 = vrot.slane %v4703_v49, 4  ;;  %v4459_v4 = vld [vmem:[#allocation2 + $0xac] sm:$0xf] }
 0x1aa   : > { %10314 = vst [vmem:[#allocation33_spill] sm:$0xff] %v9094_v44  ;;  %v9098_v31 = vpop.f32.mrf.mxu0  ;;  %v9119_v14 = vsel %vm7748_vm5, %v6409_v25, %v5282_v11  ;;  %v5284_v34 = vrot.slane %v5282_v11, 4  ;;  %v4732_v32 = vrot.slane %v4730_v56, 5  ;;  %v4741_v35 = vor.u32 %v4740_v43, %v4737_v24  ;;  %v5158_v43 = vld [vmem:[#allocation2 + $0xa8] sm:$0xe] }
 0x1ab   : > { %10315 = vst [vmem:[#allocation34_spill] sm:$0xff] %v9098_v31  ;;  %v6817_v17 = vpop.f32.mrf.mxu1  ;;  %v4751_v20 = vor.u32 %v4750_v6, %v9096_v61  ;;  %v4754_v52 = vshll.u32 %v4457_v7, 16  ;;  %v4718_v25 = vrot.slane %v4717_v22, 4  ;;  %v4728_v44 = vrot.slane %v4727_v5, 4 }
 0x1ac   : > { %v9115_v37 = vpop.f32.mrf.mxu0  ;;  %v5291_v11 = vrot.slane %v5289_v53, 4  ;;  %v10319_v56 = vcombine.low %v8933_v39, %v8953_v51  ;;  %v4699_v24 = vsel %vm7332_vm12, %v4694_v40, %v9062_v1  ;;  %v4762_v6 = vshll.u32 %v4458_v58, 16  ;;  %v4460_v39 = vld [vmem:[#allocation2 + $0xb0] sm:$0x1] }
 0x1ad   : > { %7020 = vmatmul.mubr.msk.bf16.vlgmr.msra.gmra.mxu1 %vm1556_vm9, %v8777_v29  ;;  %10316 = vst [vmem:[#allocation35_spill] sm:$0xff] %v9115_v37  ;;  %v6410_v29 = vrot.slane %v5157_v47, 9  ;;  %v9121_v36 = vpop.f32.mrf.mxu1  ;;  %v5292_v47 = vrot.slane %v4457_v7, 5  ;;  %v4709_v22 = vsel %vm7332_vm12, %v4704_v26, %v4708_v0  ;;  %v9143_v5 = vsel %vm7748_vm5, %v5284_v34, %v5285_v28 }
 0x1ae   : > { %7023 = vmatprep.mubr.msk.bf16.mxu1 %vm1556_vm9, %v8804_v16  ;;  %v10317_v16 = vcombine.low %v8883_v3, %v8915_v59  ;;  %v9128_v49 = vpop.f32.mrf.mxu0  ;;  %v5296_v3 = vrot.slane %v4459_v4, 5  ;;  %v4759_v59 = vshrl.u32 %v4458_v58, 16  ;;  %v4768_v51 = vshll.u32 %v4459_v4, 16 }
 0x1af   : > { %10318 = vst [vmem:[#allocation36_spill] sm:$0xff] %v9128_v49  ;;  %v6818_v37 = vpop.f32.mrf.mxu1  ;;  %v4772_v7 = vshrl.u32 %v4459_v4, 16  ;;  %v9147_v1 = vsel %vm7748_vm5, %v6410_v29, %v5289_v53  ;;  %v4742_v40 = vrot.slane %v4741_v35, 4  ;;  %v4752_v49 = vrot.slane %v4751_v20, 4 }
 0x1b0   : > { %7062 = vmatmul.mubr.msk.bf16.gmra.mxu0 %vm1556_vm9, %v10317_v16  ;;  %v9137_v16 = vpop.f32.mrf.mxu0  ;;  %v4756_v58 = vrot.slane %v4754_v52, 5  ;;  %v4723_v0 = vsel %vm7332_vm12, %v4718_v25, %v9076_v45  ;;  %v4733_v28 = vsel %vm7332_vm12, %v4728_v44, %v4732_v32  ;;  %v9158_v26 = vsel %vm7748_vm5, %v5291_v11, %v5292_v47  ;;  %v9177_v11 = vld [vmem:[#allocation2 + $0xb4] sm:$0xe]  ;;  %v10321_v47 = vld [vmem:[#allocation3_spill] sm:$0xff] }
 0x1b1   : > { %7065 = vmatprep.mubr.msk.bf16.mxu0 %vm1556_vm9, %v10319_v56  ;;  %v1938_v56 = vpop.f32.mrf.mxu1  ;;  %v6411_v34 = vrot.slane %v5158_v43, 9  ;;  %v5298_v53 = vrot.slane %v5296_v3, 4  ;;  %v5299_v29 = vrot.slane %v4460_v39, 5  ;;  %v4761_v35 = vrot.slane %v4759_v59, 4 }
 0x1b2   : > { %v9149_v31 = vpop.f32.mrf.mxu0  ;;  %v4764_v20 = vrot.slane %v4762_v6, 5  ;;  %v10320_v44 = vsel %vm7332_vm12, %v9049_v46, %v8989_v60  ;;  %v6424_v52 = vcombine.low %v9060_v13, %v9110_v54  ;;  %v4774_v25 = vrot.slane %v4772_v7, 4 }
 0x1b3   : > { %v6821_v4 = vpop.f32.mrf.mxu1  ;;  %v9171_v32 = vcombine.low %v10320_v44, %v4685_v38  ;;  %v1944_v43 = vadd.f32 %v6817_v17, %v10321_v47  ;;  %v9180_v59 = vcombine.low %v4699_v24, %v4709_v22  ;;  %v4747_v6 = vsel %vm7332_vm12, %v4742_v40, %v9096_v61 }
 0x1b4   : > { %v9164_v45 = vpop.f32.mrf.mxu0  ;;  %v4757_v60 = vsel %vm7332_vm12, %v4752_v49, %v4756_v58  ;;  %v10322_v13 = vcombine.low %v8983_v19, %v8987_v15  ;;  %v6425_v17 = vcombine.low %v9119_v14, %v9143_v5  ;;  %v9195_v38 = vcombine.low %v4723_v0, %v4733_v28  ;;  %v10324_v5 = vld [vmem:[#allocation5_spill] sm:$0xff]  ;;  %v9222_v58 = vld [vmem:[#allocation2 + $0xb4] sm:$0xf]  ;;  %v10326_v0 = vld [vmem:[#allocation7_spill] sm:$0xff] }
 0x1b5   : > { %7024 = vmatmul.mubr.msk.bf16.gmra.mxu1 %vm1556_vm9, %v8846_v62  ;;  %v9175_v62 = vrot.slane %v4768_v51, 5  ;;  %v4778_v24 = vshll.u32 %v4460_v39, 16  ;;  %v10323_v49 = vcombine.low %v9010_v12, %v9014_v63  ;;  %v9205_v19 = vsel %vm7748_vm5, %v6411_v34, %v5296_v3  ;;  %v10325_v51 = vld [vmem:[#allocation6_spill] sm:$0xff]  ;;  %v9220_v3 = vld [vmem:[#allocation2 + $0xbc] sm:$0x1]  ;;  %v10327_v34 = vld [vmem:[#allocation8_spill] sm:$0xff] }
 0x1b6   : > { %7027 = vmatprep.mubr.msk.bf16.mxu1 %vm1556_vm9, %v8971_v10  ;;  %v1951_v10 = vpop.f32.mrf.mxu1  ;;  %v9191_v46 = vpop.f32.mrf.mxu0  ;;  %v9209_v15 = vsel %vm7748_vm5, %v5298_v53, %v5299_v29  ;;  %v4765_v14 = vor.u32 %v4764_v20, %v4761_v35  ;;  %v6412_v22 = vrot.slane %v9177_v11, 9  ;;  %v1936_v39 = vadd.f32 %v9121_v36, %v10324_v5  ;;  %v10328_v29 = vld [vmem:[#allocation10_spill] sm:$0xff]  ;;  %v10329_v5 = vld [vmem:[#allocation15_spill] sm:$0xff] }
 0x1b7   : > { %v1947_v7 = vadd.f32 %v6818_v37, %v10325_v51  ;;  %v9217_v12 = vcombine.low %v4747_v6, %v4757_v60  ;;  %v4775_v63 = vor.u32 %v4774_v25, %v9175_v62  ;;  %v1939_v28 = vadd.f32 %v1938_v56, %v10326_v0  ;;  %v9238_v56 = vld [vmem:[#allocation2 + $0xb8] sm:$0xf] }
 0x1b8   : > { %7066 = vmatmul.mubr.msk.bf16.gmra.mxu0 %vm1556_vm9, %v10322_v13  ;;  %v6822_v61 = vpop.f32.mrf.mxu1  ;;  %v9215_v40 = vpop.f32.mrf.mxu0  ;;  %v1960_v53 = vadd.f32 %v6821_v4, %v10327_v34  ;;  %v1952_v35 = vadd.f32 %v1951_v10, %v10328_v29  ;;  %v9228_v36 = vadd.f32 %v8955_v57, %v1944_v43  ;;  %v9236_v47 = vrot.slane %v4778_v24, 5 }
 0x1b9   : > { %7069 = vmatprep.mubr.msk.bf16.mxu0 %vm1556_vm9, %v10323_v49  ;;  %v1963_v37 = vadd.f32 %v6822_v61, %v8714_v9  ;;  %v4766_v10 = vrot.slane %v4765_v14, 4  ;;  %v5303_v57 = vrot.slane %v9238_v56, 5  ;;  %v5306_v9 = vrot.slane %v9220_v3, 5  ;;  %v9257_v49 = vld [vmem:[#allocation2 + $0xc4] sm:$0xf] }
 0x1ba   : > { %v1954_v20 = vpop.f32.mrf.mxu1  ;;  %v9232_v11 = vpop.f32.mrf.mxu0  ;;  %v4776_v60 = vrot.slane %v4775_v63, 4  ;;  %v9251_v13 = vadd.f32 %v8963_v42, %v1936_v39  ;;  %v4786_v61 = vshll.u32 %v9222_v58, 16  ;;  %v9260_v14 = vadd.f32 %v9001_v21, %v1939_v28  ;;  %v5160_v39 = vld [vmem:[#allocation2 + $0xc0] sm:$0xe]  ;;  %v10330_v21 = vld [vmem:[#allocation31_spill] sm:$0xff] }
 0x1bb   : > { %v1955_v44 = vadd.f32 %v1954_v20, %v8749_v23  ;;  %v4783_v23 = vshrl.u32 %v9222_v58, 16  ;;  %v5310_v51 = vrot.slane %v9257_v49, 5  ;;  %v9274_v63 = vadd.f32 %v9054_v2, %v1963_v37  ;;  %v9285_v28 = vld [vmem:[#allocation2 + $0xc8] sm:$0x1] }
 0x1bc   : > { %v6825_v4 = vpop.f32.mrf.mxu1  ;;  %v9248_v6 = vpop.f32.mrf.mxu0  ;;  %v4792_v0 = vshll.u32 %v9238_v56, 16  ;;  %v10331_v2 = vld [vmem:[#allocation17_spill] sm:$0xff] }
 0x1bd   : > { %7028 = vmatmul.mubr.msk.bf16.gmra.mxu1 %vm1556_vm9, %v8991_v50  ;;  %v1976_v43 = vadd.f32 %v6825_v4, %v8775_v48  ;;  %v9254_v50 = vadd.f32 %v8979_v41, %v1947_v7  ;;  %v9263_v48 = vadd.f32 %v9026_v30, %v1960_v53  ;;  %v4464_v7 = vld [vmem:[#allocation2 + $0xc0] sm:$0xf]  ;;  %v9277_v58 = vadd.f32 %v10330_v21, %v1955_v44 }
 0x1be   : > { %7031 = vmatprep.mubr.msk.bf16.mxu1 %vm1556_vm9, %v8995_v18  ;;  %v1967_v24 = vpop.f32.mrf.mxu1  ;;  %v9266_v18 = vadd.f32 %v9039_v55, %v1952_v35  ;;  %v9270_v41 = vpop.f32.mrf.mxu0  ;;  %v9282_v55 = vsel %vm7748_vm5, %v6412_v22, %v5303_v57  ;;  %v4796_v35 = vshrl.u32 %v9238_v56, 16  ;;  %v10332_v22 = vld [vmem:[#allocation34_spill] sm:$0xff]  ;;  %v4781_v44 = vsel %vm7332_vm12, %v4776_v60, %v9236_v47 }
 0x1bf   : > { %v1968_v42 = vadd.f32 %v1967_v24, %v10329_v5  ;;  %v9288_v34 = vadd.f32 %v9089_v8, %v1976_v43  ;;  %v6413_v8 = vrot.slane %v5160_v39, 9  ;;  %v4807_v4 = vshrl.u32 %v4464_v7, 16  ;;  %v10333_v43 = vld [vmem:[#allocation19_spill] sm:$0xff]  ;;  %v10337_v39 = vld [vmem:[#allocation21_spill] sm:$0xff] }
 0x1c0   : > { %7070 = vmatmul.mubr.msk.bf16.gmra.mxu0 %vm1556_vm9, %v6424_v52  ;;  %v6826_v30 = vpop.f32.mrf.mxu1  ;;  %v5305_v52 = vrot.slane %v5303_v57, 4  ;;  %v9291_v29 = vpop.f32.mrf.mxu0  ;;  %v4810_v57 = vshll.u32 %v4464_v7, 16  ;;  %v5312_v21 = vrot.slane %v5310_v51, 4  ;;  %v4816_v47 = vshll.u32 %v9257_v49, 16 }
 0x1c1   : > { %7073 = vmatprep.mubr.msk.bf16.mxu0 %vm1556_vm9, %v6425_v17  ;;  %v1979_v53 = vadd.f32 %v6826_v30, %v10331_v2  ;;  %v4771_v17 = vsel %vm7332_vm12, %v4766_v10, %v9175_v62  ;;  %v9298_v20 = vadd.f32 %v10332_v22, %v1968_v42  ;;  %v5313_v62 = vrot.slane %v9285_v28, 5  ;;  %v10334_v10 = vld [vmem:[#allocation35_spill] sm:$0xff]  ;;  %v10336_v30 = vld [vmem:[#allocation29_spill] sm:$0xff] }
 0x1c2   : > { %v1970_v37 = vpop.f32.mrf.mxu1  ;;  %v9304_v5 = vpop.f32.mrf.mxu0  ;;  %v4785_v2 = vrot.slane %v4783_v23, 4  ;;  %v4788_v22 = vrot.slane %v4786_v61, 5  ;;  %v4820_v60 = vshrl.u32 %v9257_v49, 16  ;;  %v9326_v61 = vcombine.low %v4771_v17, %v4781_v44  ;;  %v9339_v17 = vld [vmem:[#allocation2 + $0xd4] sm:$0x1] }
 0x1c3   : > { %v1971_v24 = vadd.f32 %v1970_v37, %v10333_v43  ;;  %v9308_v56 = vadd.f32 %v10334_v10, %v1979_v53  ;;  %v5307_v53 = vsel %vm7748_vm5, %v5305_v52, %v5306_v9  ;;  %v9321_v43 = vrot.slane %v4792_v0, 5  ;;  %v10338_v10 = vld [vmem:[#allocation36_spill] sm:$0xff]  ;;  %v4468_v0 = vld [vmem:[#allocation2 + $0xd0] sm:$0xf] }
 0x1c4   : > { %v6829_v42 = vpop.f32.mrf.mxu1  ;;  %v9317_v37 = vpop.f32.mrf.mxu0  ;;  %v4798_v25 = vrot.slane %v4796_v35, 4  ;;  %v4809_v49 = vrot.slane %v4807_v4, 4  ;;  %v4812_v54 = vrot.slane %v4810_v57, 5  ;;  %v5311_v9 = vsel %vm7748_vm5, %v6413_v8, %v5310_v51  ;;  %v5161_v8 = vld [vmem:[#allocation2 + $0xcc] sm:$0xe] }
 0x1c5   : > { %10335 = vst [vmem:[#allocation3_spill] sm:$0xff] %v9308_v56  ;;  %7032 = vmatmul.mubr.msk.bf16.gmra.mxu1 %vm1556_vm9, %v10336_v30  ;;  %v1992_v7 = vadd.f32 %v6829_v42, %v10337_v39  ;;  %v9324_v30 = vadd.f32 %v10338_v10, %v1971_v24  ;;  %v10339_v42 = vld [vmem:[#allocation22_spill] sm:$0xff]  ;;  %v5314_v52 = vsel %vm7748_vm5, %v5312_v21, %v5313_v62  ;;  %v9349_v4 = vrot.slane %v4816_v47, 5  ;;  %v10342_v24 = vld [vmem:[#allocation24_spill] sm:$0xff] }
 0x1c6   : > { %7035 = vmatprep.mubr.msk.bf16.mxu1 %vm1556_vm9, %v9171_v32  ;;  %v1983_v23 = vpop.f32.mrf.mxu1  ;;  %v10340_v32 = vcombine.low %v9147_v1, %v9158_v26  ;;  %v9333_v56 = vpop.f32.mrf.mxu0  ;;  %v10341_v1 = vcombine.low %v9205_v19, %v9209_v15  ;;  %v6428_v26 = vcombine.low %v9282_v55, %v5307_v53  ;;  %v4822_v51 = vrot.slane %v4820_v60, 4  ;;  %v10343_v53 = vld [vmem:[#allocation25_spill] sm:$0xff] }
 0x1c7   : > { %v1984_v39 = vadd.f32 %v1983_v23, %v10339_v42  ;;  %v9342_v35 = vadd.f32 %v9137_v16, %v1992_v7  ;;  %v5317_v57 = vrot.slane %v4468_v0, 5  ;;  %v4789_v10 = vor.u32 %v4788_v22, %v4785_v2  ;;  %v4467_v7 = vld [vmem:[#allocation2 + $0xcc] sm:$0xf] }
 0x1c8   : > { %7074 = vmatmul.mubr.msk.bf16.gmra.mxu0 %vm1556_vm9, %v10340_v32  ;;  %v6830_v44 = vpop.f32.mrf.mxu1  ;;  %v9352_v62 = vpop.f32.mrf.mxu0  ;;  %v4802_v16 = vshll.u32 %v9220_v3, 16  ;;  %v4799_v15 = vor.u32 %v4798_v25, %v9321_v43  ;;  %v6429_v55 = vcombine.low %v5311_v9, %v5314_v52  ;;  %v4813_v47 = vor.u32 %v4812_v54, %v4809_v49 }
 0x1c9   : > { %7077 = vmatprep.mubr.msk.bf16.mxu0 %vm1556_vm9, %v10341_v1  ;;  %v1995_v21 = vadd.f32 %v6830_v44, %v10342_v24  ;;  %v9356_v23 = vadd.f32 %v9149_v31, %v1984_v39  ;;  %v4826_v60 = vshll.u32 %v9285_v28, 16  ;;  %v6414_v44 = vrot.slane %v5161_v8, 9  ;;  %v10344_v28 = vld [vmem:[#allocation9_spill] sm:$0xff] }
 0x1ca   : > { %v1986_v19 = vpop.f32.mrf.mxu1  ;;  %v9361_v32 = vpop.f32.mrf.mxu0  ;;  %v5320_v2 = vrot.slane %v9339_v17, 5  ;;  %v4823_v31 = vor.u32 %v4822_v51, %v9349_v4  ;;  %v5319_v25 = vrot.slane %v5317_v57, 4  ;;  %v4831_v54 = vshrl.u32 %v4467_v7, 16 }
 0x1cb   : > { %v1987_v42 = vadd.f32 %v1986_v19, %v10343_v53  ;;  %v9365_v3 = vadd.f32 %v9164_v45, %v1995_v21  ;;  %v4834_v49 = vshll.u32 %v4467_v7, 16  ;;  %v4840_v52 = vshll.u32 %v4468_v0, 16  ;;  %v10345_v19 = vld [vmem:[#allocation11_spill] sm:$0xff] }
 0x1cc   : > { %v6833_v22 = vpop.f32.mrf.mxu1  ;;  %v9373_v9 = vpop.f32.mrf.mxu0  ;;  %v4844_v1 = vshrl.u32 %v4468_v0, 16  ;;  %v4790_v24 = vrot.slane %v4789_v10, 4  ;;  %v4804_v21 = vrot.slane %v4802_v16, 5  ;;  %v4814_v51 = vrot.slane %v4813_v47, 4 }
 0x1cd   : > { %7036 = vmatmul.mubr.msk.bf16.gmra.mxu1 %vm1556_vm9, %v9180_v59  ;;  %v2008_v39 = vadd.f32 %v6833_v22, %v10344_v28  ;;  %v9376_v45 = vadd.f32 %v9191_v46, %v1987_v42  ;;  %v4800_v59 = vrot.slane %v4799_v15, 4  ;;  %v4828_v22 = vrot.slane %v4826_v60, 5  ;;  %v10346_v42 = vld [vmem:[#allocation12_spill] sm:$0xff] }
 0x1ce   : > { %7039 = vmatprep.mubr.msk.bf16.mxu1 %vm1556_vm9, %v9195_v38  ;;  %v1999_v8 = vpop.f32.mrf.mxu1  ;;  %v9380_v7 = vpop.f32.mrf.mxu0  ;;  %v5318_v38 = vsel %vm7748_vm5, %v6414_v44, %v5317_v57  ;;  %v4824_v10 = vrot.slane %v4823_v31, 4  ;;  %v5321_v16 = vsel %vm7748_vm5, %v5319_v25, %v5320_v2  ;;  %v4833_v15 = vrot.slane %v4831_v54, 4  ;;  %v10347_v44 = vld [vmem:[#allocation13_spill] sm:$0xff] }
 0x1cf   : > { %v2000_v53 = vadd.f32 %v1999_v8, %v10345_v19  ;;  %v9385_v0 = vadd.f32 %v9215_v40, %v2008_v39  ;;  %v4836_v47 = vrot.slane %v4834_v49, 5  ;;  %v4842_v60 = vrot.slane %v4840_v52, 5  ;;  %v10348_v52 = vld [vmem:[#allocation14_spill] sm:$0xff] }
 0x1d0   : > { %7078 = vmatmul.mubr.msk.bf16.gmra.mxu0 %vm1556_vm9, %v6428_v26  ;;  %v6834_v46 = vpop.f32.mrf.mxu1  ;;  %v9391_v28 = vpop.f32.mrf.mxu0  ;;  %v4846_v8 = vrot.slane %v4844_v1, 4  ;;  %v6430_v33 = vcombine.low %v5318_v38, %v5321_v16  ;;  %v4819_v54 = vsel %vm7332_vm12, %v4814_v51, %v9349_v4  ;;  %v4850_v49 = vshll.u32 %v9339_v17, 16 }
 0x1d1   : > { %7081 = vmatprep.mubr.msk.bf16.mxu0 %vm1556_vm9, %v6429_v55  ;;  %v2011_v26 = vadd.f32 %v6834_v46, %v10346_v42  ;;  %v9394_v57 = vadd.f32 %v9232_v11, %v2000_v53  ;;  %v4795_v55 = vsel %vm7332_vm12, %v4790_v24, %v9321_v43  ;;  %v4805_v11 = vsel %vm7332_vm12, %v4800_v59, %v4804_v21  ;;  %v10349_v21 = vld [vmem:[#allocation16_spill] sm:$0xff] }
 0x1d2   : > { %v2002_v40 = vpop.f32.mrf.mxu1  ;;  %v9400_v2 = vpop.f32.mrf.mxu0  ;;  %v4829_v43 = vsel %vm7332_vm12, %v4824_v10, %v4828_v22  ;;  %v4847_v24 = vor.u32 %v4846_v8, %v4842_v60  ;;  %v6380_v22 = vcombine.low %v4795_v55, %v4805_v11  ;;  %v4852_v46 = vrot.slane %v4850_v49, 5 }
 0x1d3   : > { %v2003_v39 = vadd.f32 %v2002_v40, %v10347_v44  ;;  %v9403_v31 = vadd.f32 %v9248_v6, %v2011_v26  ;;  %v4837_v6 = vor.u32 %v4836_v47, %v4833_v15  ;;  %v6381_v38 = vcombine.low %v4819_v54, %v4829_v43  ;;  %v10351_v26 = vld [vmem:[#allocation20_spill] sm:$0xff] }
 0x1d4   : > { %v6837_v25 = vpop.f32.mrf.mxu1  ;;  %v4848_v15 = vrot.slane %v4847_v24, 4  ;;  %v10354_v24 = vld [vmem:[#allocation27_spill] sm:$0xff] }
 0x1d5   : > { %7040 = vmatmul.mubr.msk.bf16.gmra.mxu1 %vm1556_vm9, %v9217_v12  ;;  %v2024_v1 = vadd.f32 %v6837_v25, %v10348_v52  ;;  %v6880_v12 = vpop.f32.mrf.mxu0  ;;  %v9419_v19 = vadd.f32 %v9270_v41, %v2003_v39  ;;  %v4838_v16 = vrot.slane %v4837_v6, 4  ;;  %v10352_v39 = vld [vmem:[#allocation23_spill] sm:$0xff] }
 0x1d6   : > { %7043 = vmatprep.mubr.msk.bf16.mxu1 %vm1556_vm9, %v9326_v61  ;;  %v2015_v59 = vpop.f32.mrf.mxu1  ;;  %v10350_v61 = vld [vmem:[#allocation18_spill] sm:$0xff] }
 0x1d7   : > { %v2016_v53 = vadd.f32 %v2015_v59, %v10349_v21  ;;  %v2473_v4 = vpop.f32.mrf.mxu0  ;;  %v9424_v51 = vadd.f32 %v9291_v29, %v2024_v1 }
 0x1d8   : > { %7082 = vmatmul.mubr.msk.bf16.gmra.mxu0 %vm1556_vm9, %v6430_v33  ;;  %v6838_v17 = vpop.f32.mrf.mxu1  ;;  %v4843_v33 = vsel %vm7332_vm12, %v4838_v16, %v4842_v60 }
 0x1d9   : > { %v2027_v10 = vadd.f32 %v6838_v17, %v10350_v61  ;;  %v6919_v47 = vpop.f32.mrf.mxu0  ;;  %v9428_v41 = vadd.f32 %v9304_v5, %v2016_v53  ;;  %v4853_v5 = vsel %vm7332_vm12, %v4848_v15, %v4852_v46  ;;  %v10355_v53 = vld [vmem:[#allocation28_spill] sm:$0xff] }
 0x1da   : > { %v2018_v42 = vpop.f32.mrf.mxu1  ;;  %v6382_v6 = vcombine.low %v4843_v33, %v4853_v5  ;;  %v10357_v15 = vld [vmem:[#allocation4_spill] sm:$0xff]  ;;  %v10359_v5 = vld [vmem:[#allocation33_spill] sm:$0xff] }
 0x1db   : > { %v2019_v8 = vadd.f32 %v2018_v42, %v10351_v26  ;;  %v3438_v40 = vpop.f32.mrf.mxu0  ;;  %v9432_v44 = vadd.f32 %v9317_v37, %v2027_v10  ;;  %v10353_v37 = vld [vmem:[#allocation26_spill] sm:$0xff] }
 0x1dc   : > { %v6841_v29 = vpop.f32.mrf.mxu1 }
 0x1dd   : > { %7044 = vmatmul.mubr.msk.bf16.gmra.mxu1 %vm1556_vm9, %v6380_v22  ;;  %v2040_v55 = vadd.f32 %v6841_v29, %v10352_v39  ;;  %v6920_v25 = vpop.f32.mrf.mxu0  ;;  %v9442_v11 = vadd.f32 %v9333_v56, %v2019_v8  ;;  %v10358_v29 = vld [vmem:[#allocation32_spill] sm:$0xff] }
 0x1de   : > { %7047 = vmatprep.mubr.msk.bf16.mxu1 %vm1556_vm9, %v6381_v38  ;;  %v2031_v54 = vpop.f32.mrf.mxu1 }
 0x1df   : > { %v2032_v43 = vadd.f32 %v2031_v54, %v10353_v37  ;;  %v3441_v49 = vpop.f32.mrf.mxu0  ;;  %v9446_v52 = vadd.f32 %v9352_v62, %v2040_v55  ;;  %v10356_v62 = vld [vmem:[#allocation30_spill] sm:$0xff] }
 0x1e0   : > { %v6842_v1 = vpop.f32.mrf.mxu1 }
 0x1e1   : > { %v2043_v59 = vadd.f32 %v6842_v1, %v10354_v24  ;;  %v6923_v21 = vpop.f32.mrf.mxu0  ;;  %v9450_v60 = vadd.f32 %v9361_v32, %v2032_v43 }
 0x1e2   : > { %v2034_v27 = vpop.f32.mrf.mxu1 }
 0x1e3   : > { %v2035_v17 = vadd.f32 %v2034_v27, %v10355_v53  ;;  %v3454_v56 = vpop.f32.mrf.mxu0  ;;  %v9454_v22 = vadd.f32 %v9373_v9, %v2043_v59 }
 0x1e5   : > { %v6845_v38 = vpop.f32.mrf.mxu1  ;;  %7048 = vmatmul.mubr.msk.bf16.gmra.mxu1 %vm1556_vm9, %v6382_v6  ;;  %v6924_v61 = vpop.f32.mrf.mxu0  ;;  %v9459_v10 = vadd.f32 %v9380_v7, %v2035_v17 }
 0x1e6   : > { %v2056_v46 = vadd.f32 %v6845_v38, %v10356_v62 }
 0x1e7   : > { %v2047_v16 = vpop.f32.mrf.mxu1  ;;  %v3457_v42 = vpop.f32.mrf.mxu0 }
 0x1e8   : > { %v2048_v32 = vadd.f32 %v2047_v16, %v10357_v15  ;;  %v9463_v26 = vadd.f32 %v9391_v28, %v2056_v46 }
 0x1e9   : > { %v6846_v8 = vpop.f32.mrf.mxu1  ;;  %v6927_v39 = vpop.f32.mrf.mxu0 }
 0x1ea   : > { %v2059_v9 = vadd.f32 %v6846_v8, %v10358_v29  ;;  %v9467_v55 = vadd.f32 %v9400_v2, %v2048_v32 }
 0x1eb   : > { %v2050_v33 = vpop.f32.mrf.mxu1  ;;  %v3470_v37 = vpop.f32.mrf.mxu0 }
 0x1ec   : > { %v2051_v54 = vadd.f32 %v2050_v33, %v10359_v5  ;;  %v9470_v7 = vadd.f32 %v6880_v12, %v2059_v9 }
 0x1ed   : > { %v6885_v43 = vpop.f32.mrf.mxu1  ;;  %v6928_v6 = vpop.f32.mrf.mxu0 }
 0x1ee   : > { %v2843_v1 = vadd.f32 %v6885_v43, %v9228_v36  ;;  %v9473_v24 = vadd.f32 %v2473_v4, %v2051_v54 }
 0x1ef   : > { %v2714_v28 = vpop.f32.mrf.mxu1  ;;  %v3473_v27 = vpop.f32.mrf.mxu0 }
 0x1f0   : > { %v2841_v59 = vadd.f32 %v2714_v28, %v9251_v13  ;;  %v9476_v53 = vadd.f32 %v6919_v47, %v2843_v1 }
 0x1f1   : > { %v6886_v2 = vpop.f32.mrf.mxu1  ;;  %v6931_v38 = vpop.f32.mrf.mxu0 }
 0x1f2   : > { %v2844_v17 = vadd.f32 %v6886_v2, %v9254_v50  ;;  %v9479_v62 = vadd.f32 %v3438_v40, %v2841_v59  ;;  %v10360_v2 = vld [vmem:[#allocation3_spill] sm:$0xff] }
 0x1f3   : > { %v2717_v12 = vpop.f32.mrf.mxu1  ;;  %v3486_v16 = vpop.f32.mrf.mxu0 }
 0x1f4   : > { %v2842_v46 = vadd.f32 %v2717_v12, %v9260_v14  ;;  %v9482_v36 = vadd.f32 %v6920_v25, %v2844_v17 }
 0x1f5   : > { %v6889_v4 = vpop.f32.mrf.mxu1  ;;  %v6932_v32 = vpop.f32.mrf.mxu0 }
 0x1f6   : > { %v2847_v15 = vadd.f32 %v6889_v4, %v9263_v48  ;;  %v9485_v13 = vadd.f32 %v3441_v49, %v2842_v46 }
 0x1f7   : > { %v2730_v47 = vpop.f32.mrf.mxu1  ;;  %v3489_v29 = vpop.f32.mrf.mxu0 }
 0x1f8   : > { %v2845_v8 = vadd.f32 %v2730_v47, %v9266_v18  ;;  %v9488_v50 = vadd.f32 %v6923_v21, %v2847_v15 }
 0x1f9   : > { %v6890_v40 = vpop.f32.mrf.mxu1  ;;  %v6935_v33 = vpop.f32.mrf.mxu0 }
 0x1fa   : > { %v2848_v9 = vadd.f32 %v6890_v40, %v9274_v63  ;;  %v9491_v14 = vadd.f32 %v3454_v56, %v2845_v8 }
 0x1fb   : > { %v2733_v25 = vpop.f32.mrf.mxu1  ;;  %v3502_v54 = vpop.f32.mrf.mxu0 }
 0x1fc   : > { %v2846_v5 = vadd.f32 %v2733_v25, %v9277_v58  ;;  %v9494_v48 = vadd.f32 %v6924_v61, %v2848_v9 }
 0x1fd   : > { %v6893_v49 = vpop.f32.mrf.mxu1  ;;  %v6936_v1 = vpop.f32.mrf.mxu0 }
 0x1fe   : > { %v2851_v43 = vadd.f32 %v6893_v49, %v9288_v34  ;;  %v9497_v18 = vadd.f32 %v3457_v42, %v2846_v5 }
 0x1ff   : > { %v2746_v21 = vpop.f32.mrf.mxu1  ;;  %v3505_v59 = vpop.f32.mrf.mxu0 }
 0x200   : > { %v2849_v28 = vadd.f32 %v2746_v21, %v9298_v20  ;;  %v9500_v63 = vadd.f32 %v6927_v39, %v2851_v43 }
 0x201   : > { %v6894_v56 = vpop.f32.mrf.mxu1  ;;  %v6939_v12 = vpop.f32.mrf.mxu0 }
 0x202   : > { %v2852_v17 = vadd.f32 %v6894_v56, %v10360_v2  ;;  %v9503_v58 = vadd.f32 %v3470_v37, %v2849_v28 }
 0x203   : > { %v2749_v61 = vpop.f32.mrf.mxu1  ;;  %v3518_v4 = vpop.f32.mrf.mxu0 }
 0x204   : > { %v2850_v46 = vadd.f32 %v2749_v61, %v9324_v30  ;;  %v9506_v34 = vadd.f32 %v6928_v6, %v2852_v17 }
 0x205   : > { %v6897_v42 = vpop.f32.mrf.mxu1  ;;  %v6940_v47 = vpop.f32.mrf.mxu0 }
 0x206   : > { %v2855_v15 = vadd.f32 %v6897_v42, %v9342_v35  ;;  %v9509_v20 = vadd.f32 %v3473_v27, %v2850_v46 }
 0x207   : > { %v2762_v39 = vpop.f32.mrf.mxu1  ;;  %v3521_v40 = vpop.f32.mrf.mxu0 }
 0x208   : > { %v2853_v8 = vadd.f32 %v2762_v39, %v9356_v23  ;;  %v9512_v9 = vadd.f32 %v6931_v38, %v2855_v15 }
 0x209   : > { %v6898_v37 = vpop.f32.mrf.mxu1  ;;  %v6943_v5 = vpop.f32.mrf.mxu0 }
 0x20a   : > { %v2856_v25 = vadd.f32 %v6898_v37, %v9365_v3  ;;  %v9515_v30 = vadd.f32 %v3486_v16, %v2853_v8 }
 0x20b   : > { %v2765_v6 = vpop.f32.mrf.mxu1  ;;  %v3534_v43 = vpop.f32.mrf.mxu0 }
 0x20c   : > { %v2854_v49 = vadd.f32 %v2765_v6, %v9376_v45  ;;  %v9518_v35 = vadd.f32 %v6932_v32, %v2856_v25 }
 0x20d   : > { %v6901_v27 = vpop.f32.mrf.mxu1  ;;  %v6944_v56 = vpop.f32.mrf.mxu0 }
 0x20e   : > { %v2859_v21 = vadd.f32 %v6901_v27, %v9385_v0  ;;  %v9521_v28 = vadd.f32 %v3489_v29, %v2854_v49 }
 0x20f   : > { %v2778_v23 = vpop.f32.mrf.mxu1  ;;  %v3537_v61 = vpop.f32.mrf.mxu0 }
 0x210   : > { %v2857_v38 = vadd.f32 %v2778_v23, %v9394_v57  ;;  %v9524_v2 = vadd.f32 %v6935_v33, %v2859_v21 }
 0x211   : > { %v6902_v3 = vpop.f32.mrf.mxu1 }
 0x212   : > { %v2860_v16 = vadd.f32 %v6902_v3, %v9403_v31  ;;  %v9527_v17 = vadd.f32 %v3502_v54, %v2857_v38 }
 0x213   : > { %v2781_v45 = vpop.f32.mrf.mxu1 }
 0x214   : > { %10361 = vst [vmem:[#allocation5_spill] sm:$0xff] %v9527_v17  ;;  %v2858_v32 = vadd.f32 %v2781_v45, %v9419_v19  ;;  %v9530_v46 = vadd.f32 %v6936_v1, %v2860_v16 }
 0x215   : > { %v6905_v0 = vpop.f32.mrf.mxu1 }
 0x216   : > { %10362 = vst [vmem:[#allocation6_spill] sm:$0xff] %v9530_v46  ;;  %v2863_v29 = vadd.f32 %v6905_v0, %v9424_v51  ;;  %v9533_v42 = vadd.f32 %v3505_v59, %v2858_v32 }
 0x217   : > { %v2794_v57 = vpop.f32.mrf.mxu1  ;;  %v6947_v15 = vpop.f32.mrf.mxu0 }
 0x218   : > { %10363 = vst [vmem:[#allocation7_spill] sm:$0xff] %v9533_v42  ;;  %v2861_v33 = vadd.f32 %v2794_v57, %v9428_v41  ;;  %v9536_v39 = vadd.f32 %v6939_v12, %v2863_v29 }
 0x219   : > { %v6906_v31 = vpop.f32.mrf.mxu1  ;;  %v3550_v8 = vpop.f32.mrf.mxu0 }
 0x21a   : > { %10364 = vst [vmem:[#allocation8_spill] sm:$0xff] %v9536_v39  ;;  %v2864_v54 = vadd.f32 %v6906_v31, %v9432_v44  ;;  %v9539_v37 = vadd.f32 %v3518_v4, %v2861_v33 }
 0x21b   : > { %v2797_v19 = vpop.f32.mrf.mxu1  ;;  %v6948_v25 = vpop.f32.mrf.mxu0 }
 0x21c   : > { %10365 = vst [vmem:[#allocation10_spill] sm:$0xff] %v9539_v37  ;;  %v2862_v1 = vadd.f32 %v2797_v19, %v9442_v11  ;;  %v9542_v6 = vadd.f32 %v6940_v47, %v2864_v54 }
 0x21d   : > { %v6909_v51 = vpop.f32.mrf.mxu1  ;;  %v3553_v49 = vpop.f32.mrf.mxu0 }
 0x21e   : > { %10366 = vst [vmem:[#allocation15_spill] sm:$0xff] %v9542_v6  ;;  %v2867_v59 = vadd.f32 %v6909_v51, %v9446_v52  ;;  %v9545_v41 = vadd.f32 %v3521_v40, %v2862_v1 }
 0x21f   : > { %v2810_v12 = vpop.f32.mrf.mxu1  ;;  %v9548_v21 = vpop.f32.mrf.mxu0 }
 0x220   : > { %10367 = vst [vmem:[#allocation31_spill] sm:$0xff] %v9545_v41  ;;  %v2865_v27 = vadd.f32 %v2810_v12, %v9450_v60  ;;  %v9550_v44 = vadd.f32 %v6943_v5, %v2867_v59 }
 0x221   : > { %v6910_v4 = vpop.f32.mrf.mxu1  ;;  %v9553_v11 = vpop.f32.mrf.mxu0 }
 0x222   : > { %10368 = vst [vmem:[#allocation17_spill] sm:$0xff] %v9550_v44  ;;  %v2868_v23 = vadd.f32 %v6910_v4, %v9454_v22  ;;  %v9555_v47 = vadd.f32 %v3534_v43, %v2865_v27 }
 0x223   : > { %v2813_v38 = vpop.f32.mrf.mxu1  ;;  %v9558_v3 = vpop.f32.mrf.mxu0 }
 0x224   : > { %10369 = vst [vmem:[#allocation34_spill] sm:$0xff] %v9555_v47  ;;  %v2866_v52 = vadd.f32 %v2813_v38, %v9459_v10  ;;  %v9560_v40 = vadd.f32 %v6944_v56, %v2868_v23 }
 0x225   : > { %v6913_v16 = vpop.f32.mrf.mxu1  ;;  %v9563_v45 = vpop.f32.mrf.mxu0 }
 0x226   : > { %10370 = vst [vmem:[#allocation19_spill] sm:$0xff] %v9560_v40  ;;  %v2871_v60 = vadd.f32 %v6913_v16, %v9463_v26  ;;  %v9565_v5 = vadd.f32 %v3537_v61, %v2866_v52 }
 0x227   : > { %v2826_v32 = vpop.f32.mrf.mxu1  ;;  %v9568_v0 = vpop.f32.mrf.mxu0 }
 0x228   : > { %10371 = vst [vmem:[#allocation35_spill] sm:$0xff] %v9565_v5  ;;  %v2869_v22 = vadd.f32 %v2826_v32, %v9467_v55  ;;  %v9570_v43 = vadd.f32 %v6947_v15, %v2871_v60 }
 0x229   : > { %v6914_v29 = vpop.f32.mrf.mxu1  ;;  %v9573_v57 = vpop.f32.mrf.mxu0 }
 0x22a   : > { %10372 = vst [vmem:[#allocation29_spill] sm:$0xff] %v9570_v43  ;;  %v2872_v10 = vadd.f32 %v6914_v29, %v9470_v7  ;;  %v9575_v56 = vadd.f32 %v3550_v8, %v2869_v22 }
 0x22b   : > { %v2829_v33 = vpop.f32.mrf.mxu1  ;;  %v9578_v31 = vpop.f32.mrf.mxu0 }
 0x22c   : > { %10373 = vst [vmem:[#allocation21_spill] sm:$0xff] %v9575_v56  ;;  %v2870_v26 = vadd.f32 %v2829_v33, %v9473_v24  ;;  %v9580_v61 = vadd.f32 %v6948_v25, %v2872_v10 }
 0x22d   : > { %v6953_v54 = vpop.f32.mrf.mxu1  ;;  %v9582_v55 = vpop.f32.mrf.mxu0 }
 0x22e   : > { %10374 = vst [vmem:[#allocation36_spill] sm:$0xff] %v9580_v61  ;;  %v9584_v19 = vadd.f32 %v3553_v49, %v2870_v26 }
 0x22f   : > { %v3906_v15 = vpop.f32.mrf.mxu1  ;;  %v9586_v1 = vpop.f32.mrf.mxu0 }
 0x230   : > { %10375 = vst [vmem:[#allocation22_spill] sm:$0xff] %v9584_v19 }
 0x231   : > { %v6954_v7 = vpop.f32.mrf.mxu1  ;;  %v9588_v51 = vpop.f32.mrf.mxu0 }
 0x233   : > { %v3909_v8 = vpop.f32.mrf.mxu1  ;;  %v9590_v59 = vpop.f32.mrf.mxu0 }
 0x235   : > { %v9592_v12 = vpop.f32.mrf.mxu1  ;;  %v9594_v24 = vpop.f32.mrf.mxu0 }
 0x237   : > { %v9596_v25 = vpop.f32.mrf.mxu1  ;;  %v9598_v27 = vpop.f32.mrf.mxu0 }
 0x239   : > { %v9600_v4 = vpop.f32.mrf.mxu1  ;;  %v9602_v49 = vpop.f32.mrf.mxu0 }
 0x23b   : > { %v9604_v23 = vpop.f32.mrf.mxu1  ;;  %v9606_v38 = vpop.f32.mrf.mxu0 }
 0x23c   : > { %10376 = vst [vmem:[#allocation24_spill] sm:$0xff] %v9606_v38 }
 0x23d   : > { %v9608_v52 = vpop.f32.mrf.mxu1  ;;  %v9610_v16 = vpop.f32.mrf.mxu0 }
 0x23e   : > { %10377 = vst [vmem:[#allocation25_spill] sm:$0xff] %v9610_v16 }
 0x23f   : > { %v9612_v60 = vpop.f32.mrf.mxu1  ;;  %v9614_v32 = vpop.f32.mrf.mxu0 }
 0x240   : > { %10378 = vst [vmem:[#allocation9_spill] sm:$0xff] %v9614_v32 }
 0x241   : > { %v9616_v22 = vpop.f32.mrf.mxu1  ;;  %v9618_v29 = vpop.f32.mrf.mxu0 }
 0x242   : > { %10379 = vst [vmem:[#allocation11_spill] sm:$0xff] %v9618_v29 }
 0x243   : > { %v9620_v10 = vpop.f32.mrf.mxu1  ;;  %v9622_v33 = vpop.f32.mrf.mxu0 }
 0x244   : > { %10380 = vst [vmem:[#allocation12_spill] sm:$0xff] %v9622_v33 }
 0x245   : > { %v9624_v26 = vpop.f32.mrf.mxu1  ;;  %v9626_v19 = vpop.f32.mrf.mxu0 }
 0x246   : > { %10381 = vst [vmem:[#allocation13_spill] sm:$0xff] %v9626_v19 }
 0x247   : > { %v9628_v61 = vpop.f32.mrf.mxu1  ;;  %v9630_v56 = vpop.f32.mrf.mxu0 }
 0x248   : > { %10382 = vst [vmem:[#allocation14_spill] sm:$0xff] %v9630_v56 }
 0x249   : > { %v9632_v43 = vpop.f32.mrf.mxu1  ;;  %v9634_v5 = vpop.f32.mrf.mxu0 }
 0x24a   : > { %10383 = vst [vmem:[#allocation16_spill] sm:$0xff] %v9634_v5 }
 0x24b   : > { %v9636_v40 = vpop.f32.mrf.mxu1  ;;  %v9638_v47 = vpop.f32.mrf.mxu0 }
 0x24c   : > { %10384 = vst [vmem:[#allocation18_spill] sm:$0xff] %v9638_v47 }
 0x24d   : > { %v9640_v44 = vpop.f32.mrf.mxu1  ;;  %v9642_v41 = vpop.f32.mrf.mxu0 }
 0x24e   : > { %10385 = vst [vmem:[#allocation20_spill] sm:$0xff] %v9640_v44  ;;  %10386 = vst [vmem:[#allocation23_spill] sm:$0xff] %v9642_v41 }
 0x24f   : > { %v9644_v6 = vpop.f32.mrf.mxu1  ;;  %v9646_v37 = vpop.f32.mrf.mxu0 }
 0x250   : > { %10387 = vst [vmem:[#allocation26_spill] sm:$0xff] %v9644_v6  ;;  %10388 = vst [vmem:[#allocation27_spill] sm:$0xff] %v9646_v37 }
 0x251   : > { %v9648_v19 = vpop.f32.mrf.mxu1  ;;  %v9650_v33 = vpop.f32.mrf.mxu0 }
 0x252   : > { %10389 = vst [vmem:[#allocation28_spill] sm:$0xff] %v9648_v19  ;;  %10390 = vst [vmem:[#allocation30_spill] sm:$0xff] %v9650_v33 }
 0x253   : > { %v9652_v56 = vpop.f32.mrf.mxu1  ;;  %v9654_v39 = vpop.f32.mrf.mxu0 }
 0x254   : > { %10391 = vst [vmem:[#allocation4_spill] sm:$0xff] %v9652_v56  ;;  %10392 = vst [vmem:[#allocation32_spill] sm:$0xff] %v9654_v39 }
 0x255   : > { %v9656_v5 = vpop.f32.mrf.mxu1  ;;  %v9658_v29 = vpop.f32.mrf.mxu0 }
 0x256   : > { %10393 = vst [vmem:[#allocation33_spill] sm:$0xff] %v9656_v5  ;;  %10394 = vst [vmem:[#allocation3_spill] sm:$0xff] %v9658_v29 }
 0x257   : > { %v9660_v47 = vpop.f32.mrf.mxu1  ;;  %v9662_v42 = vpop.f32.mrf.mxu0 }
 0x258   : > { %10395 = vst [vmem:[#allocation37_spill] sm:$0xff] %v9660_v47  ;;  %10396 = vst [vmem:[#allocation38_spill] sm:$0xff] %v9662_v42 }
 0x259   : > { %v9664_v41 = vpop.f32.mrf.mxu1  ;;  %v9666_v32 = vpop.f32.mrf.mxu0 }
 0x25a   : > { %10397 = vst [vmem:[#allocation39_spill] sm:$0xff] %v9664_v41  ;;  %10398 = vst [vmem:[#allocation40_spill] sm:$0xff] %v9666_v32 }
 0x25b   : > { %v9668_v37 = vpop.f32.mrf.mxu1  ;;  %v9670_v19 = vpop.f32.mrf.mxu0 }
 0x25c   : > { %10399 = vst [vmem:[#allocation41_spill] sm:$0xff] %v9668_v37  ;;  %10400 = vst [vmem:[#allocation42_spill] sm:$0xff] %v9670_v19  ;;  %v4035_v19 = vadd.f32 %v6953_v54, %v9476_v53 }
 0x25d   : > { %v9672_v33 = vpop.f32.mrf.mxu1  ;;  %v9674_v56 = vpop.f32.mrf.mxu0 }
 0x25e   : > { %10401 = vst [vmem:[#allocation43_spill] sm:$0xff] %v9672_v33  ;;  %10402 = vst [vmem:[#allocation44_spill] sm:$0xff] %v9674_v56  ;;  %v4033_v56 = vadd.f32 %v3906_v15, %v9479_v62  ;;  %v4039_v62 = vadd.f32 %v9592_v12, %v9488_v50 }
 0x25f   : > { %v9676_v39 = vpop.f32.mrf.mxu1  ;;  %v7055_v5 = vpop.f32.mrf.mxu0 }
 0x260   : > { %10403 = vst [vmem:[#allocation45_spill] sm:$0xff] %v9676_v39 }
 0x261   : > { %v9678_v29 = vpop.f32.mrf.mxu1  ;;  %v5455_v47 = vpop.f32.mrf.mxu0 }
 0x262   : > { %10404 = vst [vmem:[#allocation46_spill] sm:$0xff] %v9678_v29  ;;  %v4036_v29 = vadd.f32 %v6954_v7, %v9482_v36  ;;  %v4396_v7 = vadd.f32 %v9568_v0, %v4039_v62  ;;  %v4043_v0 = vadd.f32 %v9608_v52, %v9500_v63  ;;  %v4041_v63 = vadd.f32 %v9612_v60, %v9503_v58 }
 0x263   : > { %v9680_v46 = vpop.f32.mrf.mxu1  ;;  %v7056_v42 = vpop.f32.mrf.mxu0  ;;  %v4044_v58 = vadd.f32 %v9616_v22, %v9506_v34  ;;  %v4042_v34 = vadd.f32 %v9620_v10, %v9509_v20  ;;  %v4047_v20 = vadd.f32 %v9624_v26, %v9512_v9  ;;  %v4045_v9 = vadd.f32 %v9628_v61, %v9515_v30 }
 0x264   : > { %10405 = vst [vmem:[#allocation47_spill] sm:$0xff] %v9680_v46  ;;  %v4392_v46 = vadd.f32 %v9548_v21, %v4035_v19  ;;  %v4393_v36 = vadd.f32 %v9558_v3, %v4036_v29  ;;  %v4040_v3 = vadd.f32 %v9600_v4, %v9494_v48  ;;  %v4048_v30 = vadd.f32 %v9632_v43, %v9518_v35 }
 0x265   : > { %v9682_v41 = vpop.f32.mrf.mxu1  ;;  %v5458_v32 = vpop.f32.mrf.mxu0  ;;  %v4046_v35 = vadd.f32 %v9636_v40, %v9521_v28  ;;  %v10409_v28 = vld [vmem:[#allocation20_spill] sm:$0xff] }
 0x266   : > { %10406 = vst [vmem:[#allocation48_spill] sm:$0xff] %v9682_v41  ;;  %v4034_v41 = vadd.f32 %v3909_v8, %v9485_v13  ;;  %v4051_v40 = vadd.f32 %v10409_v28, %v9524_v2  ;;  %v10412_v2 = vld [vmem:[#allocation26_spill] sm:$0xff] }
 0x267   : > { %v9684_v16 = vpop.f32.mrf.mxu1  ;;  %v7059_v37 = vpop.f32.mrf.mxu0 }
 0x268   : > { %10407 = vst [vmem:[#allocation49_spill] sm:$0xff] %v9684_v16  ;;  %v4390_v16 = vadd.f32 %v9553_v11, %v4033_v56  ;;  %v4391_v13 = vadd.f32 %v9563_v45, %v4034_v41 }
 0x269   : > { %v9687_v33 = vpop.f32.mrf.mxu1  ;;  %v5471_v39 = vpop.f32.mrf.mxu0 }
 0x26b   : > { %v9690_v6 = vpop.f32.mrf.mxu1  ;;  %v7060_v17 = vpop.f32.mrf.mxu0 }
 0x26c   : > { %10408 = vst [vmem:[#allocation50_spill] sm:$0xff] %v9690_v6 }
 0x26d   : > { %v7021_v38 = vpop.f32.mrf.mxu1  ;;  %v9696_v53 = vpop.f32.mrf.mxu0 }
 0x26e   : > { %v5116_v44 = vadd.f32 %v7021_v38, %v4392_v46  ;;  %v4037_v46 = vadd.f32 %v9596_v25, %v9491_v14  ;;  %v4397_v38 = vadd.f32 %v9578_v31, %v4040_v3 }
 0x26f   : > { %v4987_v54 = vpop.f32.mrf.mxu1 }
 0x270   : > { %v9700_v15 = vadd.f32 %v7055_v5, %v5116_v44  ;;  %v5114_v6 = vadd.f32 %v4987_v54, %v4390_v16  ;;  %v9703_v21 = vpop.f32.mrf.mxu0 }
 0x271   : > { %v7022_v19 = vpop.f32.mrf.mxu1 }
 0x272   : > { %v6517_v11 = vpack.c.bf16 %v9700_v15, %v9700_v15  ;;  %v9710_v56 = vadd.f32 %v5455_v47, %v5114_v6  ;;  %v5117_v50 = vadd.f32 %v7022_v19, %v4393_v36  ;;  %v9712_v44 = vpop.f32.mrf.mxu0  ;;  %v4038_v47 = vadd.f32 %v9604_v23, %v9497_v18 }
 0x273   : > { %v4990_v5 = vpop.f32.mrf.mxu1  ;;  %v5777_v36 = vsel %vm1556_vm9, %v9700_v15, 0.0 }
 0x274   : > { %5744 = vst.msk [vmem:[%s7223_s28 + $0x8] sm:$0xf] %vm946_vm13, %v6517_v11  ;;  %v6515_v41 = vpack.c.bf16 %v9710_v56, %v9710_v56  ;;  %v9720_v45 = vadd.f32 %v7056_v42, %v5117_v50  ;;  %v5115_v14 = vadd.f32 %v4990_v5, %v4391_v13  ;;  %v9723_v6 = vpop.f32.mrf.mxu0  ;;  %v4394_v42 = vadd.f32 %v9573_v57, %v4037_v46 }
 0x275   : > { %v7025_v8 = vpop.f32.mrf.mxu1  ;;  %v5774_v18 = vsel %vm1556_vm9, %v9710_v56, 0.0  ;;  %v4395_v31 = vadd.f32 %v9582_v55, %v4038_v47  ;;  %v4400_v55 = vadd.f32 %v9586_v1, %v4043_v0  ;;  %v4398_v1 = vadd.f32 %v9588_v51, %v4041_v63 }
 0x276   : > { %5742 = vst.msk [vmem:[%s7223_s28] sm:$0xf] %vm946_vm13, %v6515_v41  ;;  %v6518_v48 = vpack.c.bf16 %v9720_v45, %v9720_v45  ;;  %v9731_v12 = vadd.f32 %v5458_v32, %v5115_v14  ;;  %v5120_v25 = vadd.f32 %v7025_v8, %v4396_v7  ;;  %v9734_v4 = vpop.f32.mrf.mxu0  ;;  %v5779_v50 = vsel %vm1556_vm9, %v9720_v45, 0.0 }
 0x277   : > { %v5003_v23 = vpop.f32.mrf.mxu1 }
 0x278   : > { %5745 = vst.msk [vmem:[%s7223_s28 + $0xc] sm:$0xf] %vm946_vm13, %v6518_v48  ;;  %v6516_v16 = vpack.c.bf16 %v9731_v12, %v9731_v12  ;;  %v5775_v57 = vsel %vm1556_vm9, %v9731_v12, 0.0  ;;  %v9747_v32 = vadd.f32 %v7059_v37, %v5120_v25  ;;  %v5118_v29 = vadd.f32 %v5003_v23, %v4394_v42  ;;  %v9749_v54 = vpop.f32.mrf.mxu0 }
 0x279   : > { %v5776_v52 = vadd.f32 %v5775_v57, %v5774_v18  ;;  %v7026_v62 = vpop.f32.mrf.mxu1  ;;  %v4401_v25 = vadd.f32 %v9590_v59, %v4044_v58 }
 0x27a   : > { %5743 = vst.msk [vmem:[%s7223_s28 + $0x4] sm:$0xf] %vm946_vm13, %v6516_v16  ;;  %v6521_v37 = vpack.c.bf16 %v9747_v32, %v9747_v32  ;;  %v9760_v19 = vadd.f32 %v5471_v39, %v5118_v29  ;;  %v5121_v13 = vadd.f32 %v7026_v62, %v4397_v38  ;;  %v9762_v46 = vpop.f32.mrf.mxu0  ;;  %v4399_v38 = vadd.f32 %v9594_v24, %v4042_v34 }
 0x27b   : > { %v5778_v60 = vadd.f32 %v5777_v36, %v5776_v52  ;;  %v5006_v11 = vpop.f32.mrf.mxu1  ;;  %v5785_v16 = vsel %vm1556_vm9, %v9747_v32, 0.0  ;;  %v4404_v52 = vadd.f32 %v9598_v27, %v4047_v20 }
 0x27c   : > { %5748 = vst.msk [vmem:[%s7223_s28 + $0x18] sm:$0xf] %vm946_vm13, %v6521_v37  ;;  %v6519_v39 = vpack.c.bf16 %v9760_v19, %v9760_v19  ;;  %v9773_v3 = vadd.f32 %v7060_v17, %v5121_v13  ;;  %v5119_v5 = vadd.f32 %v5006_v11, %v4395_v31  ;;  %v9775_v41 = vpop.f32.mrf.mxu0  ;;  %v5781_v7 = vsel %vm1556_vm9, %v9760_v19, 0.0 }
 0x27d   : > { %v5780_v22 = vadd.f32 %v5779_v50, %v5778_v60  ;;  %v7029_v14 = vpop.f32.mrf.mxu1  ;;  %v4402_v13 = vadd.f32 %v9602_v49, %v4045_v9  ;;  %v10414_v9 = vld [vmem:[#allocation6_spill] sm:$0xff] }
 0x27e   : > { %5746 = vst.msk [vmem:[%s7223_s28 + $0x10] sm:$0xf] %vm946_vm13, %v6519_v39  ;;  %v6522_v17 = vpack.c.bf16 %v9773_v3, %v9773_v3  ;;  %v9787_v47 = vadd.f32 %v9696_v53, %v5119_v5  ;;  %v5124_v8 = vadd.f32 %v7029_v14, %v4400_v55  ;;  %v9789_v48 = vpop.f32.mrf.mxu0  ;;  %v5787_v62 = vsel %vm1556_vm9, %v9773_v3, 0.0  ;;  %v10410_v39 = vld [vmem:[#allocation24_spill] sm:$0xff] }
 0x27f   : > { %v5782_v10 = vadd.f32 %v5781_v7, %v5780_v22  ;;  %v5019_v51 = vpop.f32.mrf.mxu1  ;;  %v4405_v5 = vadd.f32 %v10410_v39, %v4048_v30  ;;  %v10411_v7 = vld [vmem:[#allocation5_spill] sm:$0xff] }
 0x280   : > { %5749 = vst.msk [vmem:[%s7223_s28 + $0x1c] sm:$0xf] %vm946_vm13, %v6522_v17  ;;  %v6520_v42 = vpack.c.bf16 %v9787_v47, %v9787_v47  ;;  %v5783_v53 = vsel %vm1556_vm9, %v9787_v47, 0.0  ;;  %v9801_v0 = vadd.f32 %v9703_v21, %v5124_v8  ;;  %v5122_v18 = vadd.f32 %v5019_v51, %v4398_v1  ;;  %v9803_v23 = vpop.f32.mrf.mxu0 }
 0x281   : > { %v5784_v26 = vadd.f32 %v5783_v53, %v5782_v10  ;;  %v7030_v59 = vpop.f32.mrf.mxu1  ;;  %v4049_v17 = vadd.f32 %v10412_v2, %v10411_v7  ;;  %v10413_v10 = vld [vmem:[#allocation25_spill] sm:$0xff] }
 0x282   : > { %5747 = vst.msk [vmem:[%s7223_s28 + $0x14] sm:$0xf] %vm946_vm13, %v6520_v42  ;;  %v6525_v21 = vpack.c.bf16 %v9801_v0, %v9801_v0  ;;  %v9815_v57 = vadd.f32 %v9712_v44, %v5122_v18  ;;  %v5125_v29 = vadd.f32 %v7030_v59, %v4401_v25  ;;  %v9817_v63 = vpop.f32.mrf.mxu0  ;;  %v4403_v51 = vadd.f32 %v10413_v10, %v4046_v35 }
 0x283   : > { %v5786_v61 = vadd.f32 %v5785_v16, %v5784_v26  ;;  %v5022_v24 = vpop.f32.mrf.mxu1  ;;  %v5793_v25 = vsel %vm1556_vm9, %v9801_v0, 0.0  ;;  %v10415_v26 = vld [vmem:[#allocation28_spill] sm:$0xff] }
 0x284   : > { %5752 = vst.msk [vmem:[%s7223_s28 + $0x28] sm:$0xf] %vm946_vm13, %v6525_v21  ;;  %v6523_v44 = vpack.c.bf16 %v9815_v57, %v9815_v57  ;;  %v9829_v31 = vadd.f32 %v9723_v6, %v5125_v29  ;;  %v5123_v36 = vadd.f32 %v5022_v24, %v4399_v38  ;;  %v9831_v37 = vpop.f32.mrf.mxu0  ;;  %v5789_v58 = vsel %vm1556_vm9, %v9815_v57, 0.0  ;;  %v10416_v21 = vld [vmem:[#allocation9_spill] sm:$0xff] }
 0x285   : > { %v5788_v43 = vadd.f32 %v5787_v62, %v5786_v61  ;;  %v7033_v27 = vpop.f32.mrf.mxu1  ;;  %v4052_v59 = vadd.f32 %v10415_v26, %v10414_v9  ;;  %v4408_v29 = vadd.f32 %v10416_v21, %v4051_v40  ;;  %v10417_v62 = vld [vmem:[#allocation7_spill] sm:$0xff]  ;;  %v10420_v40 = vld [vmem:[#allocation8_spill] sm:$0xff] }
 0x286   : > { %5750 = vst.msk [vmem:[%s7223_s28 + $0x20] sm:$0xf] %vm946_vm13, %v6523_v44  ;;  %v6526_v6 = vpack.c.bf16 %v9829_v31, %v9829_v31  ;;  %v9843_v60 = vadd.f32 %v9734_v4, %v5123_v36  ;;  %v5128_v11 = vadd.f32 %v7033_v27, %v4404_v52  ;;  %v9845_v55 = vpop.f32.mrf.mxu0  ;;  %v5795_v30 = vsel %vm1556_vm9, %v9829_v31, 0.0  ;;  %v10418_v44 = vld [vmem:[#allocation4_spill] sm:$0xff]  ;;  %v10419_v27 = vld [vmem:[#allocation11_spill] sm:$0xff] }
 0x287   : > { %v5790_v50 = vadd.f32 %v5789_v58, %v5788_v43  ;;  %v5035_v49 = vpop.f32.mrf.mxu1  ;;  %v4050_v36 = vadd.f32 %v10418_v44, %v10417_v62 }
 0x288   : > { %5753 = vst.msk [vmem:[%s7223_s28 + $0x2c] sm:$0xf] %vm946_vm13, %v6526_v6  ;;  %v6524_v34 = vpack.c.bf16 %v9843_v60, %v9843_v60  ;;  %v5791_v4 = vsel %vm1556_vm9, %v9843_v60, 0.0  ;;  %v9857_v22 = vadd.f32 %v9749_v54, %v5128_v11  ;;  %v5126_v14 = vadd.f32 %v5035_v49, %v4402_v13  ;;  %v9859_v1 = vpop.f32.mrf.mxu0 }
 0x289   : > { %v5792_v8 = vadd.f32 %v5791_v4, %v5790_v50  ;;  %v7034_v20 = vpop.f32.mrf.mxu1  ;;  %v4406_v13 = vadd.f32 %v10419_v27, %v4049_v17  ;;  %v10421_v50 = vld [vmem:[#allocation33_spill] sm:$0xff]  ;;  %v10423_v17 = vld [vmem:[#allocation10_spill] sm:$0xff] }
 0x28a   : > { %5751 = vst.msk [vmem:[%s7223_s28 + $0x24] sm:$0xf] %vm946_vm13, %v6524_v34  ;;  %v6529_v54 = vpack.c.bf16 %v9857_v22, %v9857_v22  ;;  %v9871_v42 = vadd.f32 %v9762_v46, %v5126_v14  ;;  %v5129_v53 = vadd.f32 %v7034_v20, %v4405_v5  ;;  %v9873_v18 = vpop.f32.mrf.mxu0  ;;  %v4055_v49 = vadd.f32 %v10421_v50, %v10420_v40  ;;  %v10422_v34 = vld [vmem:[#allocation12_spill] sm:$0xff] }
 0x28b   : > { %v5794_v38 = vadd.f32 %v5793_v25, %v5792_v8  ;;  %v5038_v16 = vpop.f32.mrf.mxu1  ;;  %v4409_v4 = vadd.f32 %v10422_v34, %v4052_v59  ;;  %v10424_v8 = vld [vmem:[#allocation37_spill] sm:$0xff]  ;;  %v5801_v9 = vsel %vm1556_vm9, %v9857_v22, 0.0  ;;  %v10433_v34 = vld [vmem:[#allocation43_spill] sm:$0xff] }
 0x28c   : > { %5756 = vst.msk [vmem:[%s7223_s28 + $0x38] sm:$0xf] %vm946_vm13, %v6529_v54  ;;  %v6527_v46 = vpack.c.bf16 %v9871_v42, %v9871_v42  ;;  %v9885_v61 = vadd.f32 %v9775_v41, %v5129_v53  ;;  %v5127_v24 = vadd.f32 %v5038_v16, %v4403_v51  ;;  %v9887_v52 = vpop.f32.mrf.mxu0  ;;  %v5797_v58 = vsel %vm1556_vm9, %v9871_v42, 0.0  ;;  %v10425_v25 = vld [vmem:[#allocation13_spill] sm:$0xff]  ;;  %v10427_v16 = vld [vmem:[#allocation39_spill] sm:$0xff] }
 0x28d   : > { %v5796_v35 = vadd.f32 %v5795_v30, %v5794_v38  ;;  %v7037_v43 = vpop.f32.mrf.mxu1  ;;  %v4053_v20 = vadd.f32 %v10424_v8, %v10423_v17  ;;  %v4407_v54 = vadd.f32 %v10425_v25, %v4050_v36  ;;  %v10426_v38 = vld [vmem:[#allocation15_spill] sm:$0xff]  ;;  %v10436_v25 = vld [vmem:[#allocation45_spill] sm:$0xff] }
 0x28e   : > { %5754 = vst.msk [vmem:[%s7223_s28 + $0x30] sm:$0xf] %vm946_vm13, %v6527_v46  ;;  %v6530_v41 = vpack.c.bf16 %v9885_v61, %v9885_v61  ;;  %v9899_v6 = vadd.f32 %v9789_v48, %v5127_v24  ;;  %v5132_v11 = vadd.f32 %v7037_v43, %v4408_v29  ;;  %v9901_v28 = vpop.f32.mrf.mxu0  ;;  %v4056_v21 = vadd.f32 %v10427_v16, %v10426_v38  ;;  %v10428_v46 = vld [vmem:[#allocation14_spill] sm:$0xff]  ;;  %v10430_v43 = vld [vmem:[#allocation41_spill] sm:$0xff] }
 0x28f   : > { %v5798_v39 = vadd.f32 %v5797_v58, %v5796_v35  ;;  %v5051_v5 = vpop.f32.mrf.mxu1  ;;  %v4412_v24 = vadd.f32 %v10428_v46, %v4055_v49  ;;  %v5803_v62 = vsel %vm1556_vm9, %v9885_v61, 0.0  ;;  %v10429_v35 = vld [vmem:[#allocation31_spill] sm:$0xff] }
 0x290   : > { %5757 = vst.msk [vmem:[%s7223_s28 + $0x3c] sm:$0xf] %vm946_vm13, %v6530_v41  ;;  %v6528_v14 = vpack.c.bf16 %v9899_v6, %v9899_v6  ;;  %v5799_v48 = vsel %vm1556_vm9, %v9899_v6, 0.0  ;;  %v9913_v7 = vadd.f32 %v9803_v23, %v5132_v11  ;;  %v5130_v2 = vadd.f32 %v5051_v5, %v4406_v13  ;;  %v9918_v53 = vpop.f32.mrf.mxu0  ;;  %v10431_v41 = vld [vmem:[#allocation16_spill] sm:$0xff]  ;;  %v10432_v5 = vld [vmem:[#allocation17_spill] sm:$0xff]  ;;  %v10438_v46 = vld [vmem:[#allocation19_spill] sm:$0xff] }
 0x291   : > { %v5800_v10 = vadd.f32 %v5799_v48, %v5798_v39  ;;  %v7038_v51 = vpop.f32.mrf.mxu1  ;;  %v4054_v27 = vadd.f32 %v10430_v43, %v10429_v35  ;;  %v4410_v11 = vadd.f32 %v10431_v41, %v4053_v20  ;;  %v10440_v35 = vld [vmem:[#allocation27_spill] sm:$0xff] }
 0x292   : > { %5755 = vst.msk [vmem:[%s7223_s28 + $0x34] sm:$0xf] %vm946_vm13, %v6528_v14  ;;  %v6533_v23 = vpack.c.bf16 %v9913_v7, %v9913_v7  ;;  %v9927_v26 = vadd.f32 %v9817_v63, %v5130_v2  ;;  %v5133_v59 = vadd.f32 %v7038_v51, %v4409_v4  ;;  %v5551_v40 = vpop.f32.mrf.mxu0  ;;  %v4059_v4 = vadd.f32 %v10433_v34, %v10432_v5  ;;  %v10434_v2 = vld [vmem:[#allocation18_spill] sm:$0xff]  ;;  %v10441_v41 = vld [vmem:[#allocation35_spill] sm:$0xff] }
 0x293   : > { %v5802_v29 = vadd.f32 %v5801_v9, %v5800_v10  ;;  %v5054_v30 = vpop.f32.mrf.mxu1  ;;  %v4413_v17 = vadd.f32 %v10434_v2, %v4056_v21  ;;  %v10435_v51 = vld [vmem:[#allocation34_spill] sm:$0xff]  ;;  %v5809_v21 = vsel %vm1556_vm9, %v9913_v7, 0.0 }
 0x294   : > { %5760 = vst.msk [vmem:[%s7223_s28 + $0x48] sm:$0xf] %vm946_vm13, %v6533_v23  ;;  %v6531_v44 = vpack.c.bf16 %v9927_v26, %v9927_v26  ;;  %v9939_v63 = vadd.f32 %v9831_v37, %v5133_v59  ;;  %v5131_v36 = vadd.f32 %v5054_v30, %v4407_v54  ;;  %v5805_v50 = vsel %vm1556_vm9, %v9927_v26, 0.0  ;;  %v10437_v59 = vld [vmem:[#allocation23_spill] sm:$0xff]  ;;  %v7080_v16 = vpop.f32.mrf.mxu0  ;;  %v10443_v5 = vld [vmem:[#allocation30_spill] sm:$0xff] }
 0x295   : > { %v5804_v13 = vadd.f32 %v5803_v62, %v5802_v29  ;;  %v7041_v58 = vpop.f32.mrf.mxu1  ;;  %v4057_v54 = vadd.f32 %v10436_v25, %v10435_v51  ;;  %v4411_v38 = vadd.f32 %v10437_v59, %v4054_v27  ;;  %v4416_v43 = vadd.f32 %v10440_v35, %v4059_v4  ;;  %v10446_v25 = vld [vmem:[#allocation32_spill] sm:$0xff] }
 0x296   : > { %5758 = vst.msk [vmem:[%s7223_s28 + $0x40] sm:$0xf] %vm946_vm13, %v6531_v44  ;;  %v6534_v49 = vpack.c.bf16 %v9939_v63, %v9939_v63  ;;  %v9951_v37 = vadd.f32 %v9845_v55, %v5131_v36  ;;  %v5136_v39 = vadd.f32 %v7041_v58, %v4412_v24  ;;  %v10439_v24 = vld [vmem:[#allocation46_spill] sm:$0xff]  ;;  %v5811_v27 = vsel %vm1556_vm9, %v9939_v63, 0.0  ;;  %v5554_v4 = vpop.f32.mrf.mxu0 }
 0x297   : > { %v5806_v14 = vadd.f32 %v5805_v50, %v5804_v13  ;;  %v5067_v48 = vpop.f32.mrf.mxu1  ;;  %v4060_v62 = vadd.f32 %v10439_v24, %v10438_v46  ;;  %v4414_v34 = vadd.f32 %v10443_v5, %v4057_v54  ;;  %v10449_v24 = vld [vmem:[#allocation3_spill] sm:$0xff] }
 0x298   : > { %5761 = vst.msk [vmem:[%s7223_s28 + $0x4c] sm:$0xf] %vm946_vm13, %v6534_v49  ;;  %v6532_v8 = vpack.c.bf16 %v9951_v37, %v9951_v37  ;;  %v5807_v20 = vsel %vm1556_vm9, %v9951_v37, 0.0  ;;  %v9963_v55 = vadd.f32 %v9859_v1, %v5136_v39  ;;  %v5134_v10 = vadd.f32 %v5067_v48, %v4410_v11  ;;  %v10442_v11 = vld [vmem:[#allocation47_spill] sm:$0xff] }
 0x299   : > { %v5808_v9 = vadd.f32 %v5807_v20, %v5806_v14  ;;  %v7042_v23 = vpop.f32.mrf.mxu1  ;;  %v4058_v50 = vadd.f32 %v10442_v11, %v10441_v41  ;;  %v4417_v54 = vadd.f32 %v10446_v25, %v4060_v62  ;;  %v10451_v11 = vld [vmem:[#allocation38_spill] sm:$0xff] }
 0x29a   : > { %5759 = vst.msk [vmem:[%s7223_s28 + $0x44] sm:$0xf] %vm946_vm13, %v6532_v8  ;;  %v6537_v29 = vpack.c.bf16 %v9963_v55, %v9963_v55  ;;  %v9975_v1 = vadd.f32 %v9873_v18, %v5134_v10  ;;  %v5137_v30 = vadd.f32 %v7042_v23, %v4413_v17  ;;  %v10444_v17 = vld [vmem:[#allocation29_spill] sm:$0xff]  ;;  %v10445_v8 = vld [vmem:[#allocation48_spill] sm:$0xff] }
 0x29b   : > { %v5810_v44 = vadd.f32 %v5809_v21, %v5808_v9  ;;  %v5070_v36 = vpop.f32.mrf.mxu1  ;;  %v4063_v20 = vadd.f32 %v10445_v8, %v10444_v17  ;;  %v10448_v21 = vld [vmem:[#allocation49_spill] sm:$0xff]  ;;  %v4415_v62 = vadd.f32 %v10449_v24, %v4058_v50  ;;  %v10454_v8 = vld [vmem:[#allocation40_spill] sm:$0xff] }
 0x29c   : > { %5764 = vst.msk [vmem:[%s7223_s28 + $0x58] sm:$0xf] %vm946_vm13, %v6537_v29  ;;  %v6535_v13 = vpack.c.bf16 %v9975_v1, %v9975_v1  ;;  %v9987_v18 = vadd.f32 %v9887_v52, %v5137_v30  ;;  %v5135_v58 = vadd.f32 %v5070_v36, %v4411_v38  ;;  %v5813_v14 = vsel %vm1556_vm9, %v9975_v1, 0.0  ;;  %v10447_v38 = vld [vmem:[#allocation21_spill] sm:$0xff] }
 0x29d   : > { %v5812_v49 = vadd.f32 %v5811_v27, %v5810_v44  ;;  %v7045_v39 = vpop.f32.mrf.mxu1  ;;  %v4061_v29 = vadd.f32 %v10448_v21, %v10447_v38  ;;  %v7083_v44 = vpop.f32.mrf.mxu0  ;;  %v5817_v36 = vsel %vm1556_vm9, %v9963_v55, 0.0  ;;  %v10450_v27 = vld [vmem:[#allocation36_spill] sm:$0xff]  ;;  %v4420_v50 = vadd.f32 %v10451_v11, %v4063_v20 }
 0x29e   : > { %5762 = vst.msk [vmem:[%s7223_s28 + $0x50] sm:$0xf] %vm946_vm13, %v6535_v13  ;;  %v6538_v48 = vpack.c.bf16 %v9987_v18, %v9987_v18  ;;  %v9999_v52 = vadd.f32 %v9901_v28, %v5135_v58  ;;  %v5140_v2 = vadd.f32 %v7045_v39, %v4416_v43  ;;  %v4064_v13 = vadd.f32 %v9687_v33, %v10450_v27 }
 0x29f   : > { %v5814_v10 = vadd.f32 %v5813_v14, %v5812_v49  ;;  %v5083_v51 = vpop.f32.mrf.mxu1  ;;  %v5819_v49 = vsel %vm1556_vm9, %v9987_v18, 0.0  ;;  %v10453_v14 = vld [vmem:[#allocation50_spill] sm:$0xff]  ;;  %v5567_v17 = vpop.f32.mrf.mxu0  ;;  %v4418_v20 = vadd.f32 %v10454_v8, %v4061_v29 }
 0x2a0   : > { %5765 = vst.msk [vmem:[%s7223_s28 + $0x5c] sm:$0xf] %vm946_vm13, %v6538_v48  ;;  %v6536_v9 = vpack.c.bf16 %v9999_v52, %v9999_v52  ;;  %v5815_v23 = vsel %vm1556_vm9, %v9999_v52, 0.0  ;;  %v10011_v28 = vadd.f32 %v9918_v53, %v5140_v2  ;;  %v5138_v59 = vadd.f32 %v5083_v51, %v4414_v34  ;;  %v10452_v34 = vld [vmem:[#allocation22_spill] sm:$0xff] }
 0x2a1   : > { %v5816_v30 = vadd.f32 %v5815_v23, %v5814_v10  ;;  %v7046_v46 = vpop.f32.mrf.mxu1  ;;  %v4062_v48 = vadd.f32 %v10453_v14, %v10452_v34  ;;  %v10455_v23 = vld [vmem:[#allocation42_spill] sm:$0xff]  ;;  %v7084_v24 = vpop.f32.mrf.mxu0 }
 0x2a2   : > { %5763 = vst.msk [vmem:[%s7223_s28 + $0x54] sm:$0xf] %vm946_vm13, %v6536_v9  ;;  %v6541_v35 = vpack.c.bf16 %v10011_v28, %v10011_v28  ;;  %v10022_v53 = vadd.f32 %v5551_v40, %v5138_v59  ;;  %v5141_v43 = vadd.f32 %v7046_v46, %v4417_v54  ;;  %v4421_v59 = vadd.f32 %v10455_v23, %v4064_v13 }
 0x2a3   : > { %v5818_v58 = vadd.f32 %v5817_v36, %v5816_v30  ;;  %v5086_v41 = vpop.f32.mrf.mxu1 }
 0x2a4   : > { %5768 = vst.msk [vmem:[%s7223_s28 + $0x68] sm:$0xf] %vm946_vm13, %v6541_v35  ;;  %v6539_v39 = vpack.c.bf16 %v10022_v53, %v10022_v53  ;;  %v10033_v40 = vadd.f32 %v7080_v16, %v5141_v43  ;;  %v5139_v5 = vadd.f32 %v5086_v41, %v4415_v62  ;;  %v5821_v10 = vsel %vm1556_vm9, %v10022_v53, 0.0  ;;  %v10456_v62 = vld [vmem:[#allocation44_spill] sm:$0xff] }
 0x2a5   : > { %v5820_v33 = vadd.f32 %v5819_v49, %v5818_v58  ;;  %v7049_v2 = vpop.f32.mrf.mxu1  ;;  %v4419_v36 = vadd.f32 %v10456_v62, %v4062_v48  ;;  %v5825_v35 = vsel %vm1556_vm9, %v10011_v28, 0.0 }
 0x2a6   : > { %5766 = vst.msk [vmem:[%s7223_s28 + $0x60] sm:$0xf] %vm946_vm13, %v6539_v39  ;;  %v6542_v51 = vpack.c.bf16 %v10033_v40, %v10033_v40  ;;  %v10044_v16 = vadd.f32 %v5554_v4, %v5139_v5  ;;  %v5144_v25 = vadd.f32 %v7049_v2, %v4420_v50  ;;  %v5570_v5 = vpop.f32.mrf.mxu0 }
 0x2a7   : > { %v5822_v54 = vadd.f32 %v5821_v10, %v5820_v33  ;;  %v5099_v9 = vpop.f32.mrf.mxu1 }
 0x2a8   : > { %5769 = vst.msk [vmem:[%s7223_s28 + $0x6c] sm:$0xf] %vm946_vm13, %v6542_v51  ;;  %v6540_v38 = vpack.c.bf16 %v10044_v16, %v10044_v16  ;;  %v5823_v21 = vsel %vm1556_vm9, %v10044_v16, 0.0  ;;  %v5612_v29 = vadd.f32 %v7083_v44, %v5144_v25  ;;  %v5142_v30 = vadd.f32 %v5099_v9, %v4418_v20 }
 0x2a9   : > { %v5824_v46 = vadd.f32 %v5823_v21, %v5822_v54  ;;  %v7050_v4 = vpop.f32.mrf.mxu1  ;;  %v5827_v44 = vsel %vm1556_vm9, %v10033_v40, 0.0 }
 0x2aa   : > { %5767 = vst.msk [vmem:[%s7223_s28 + $0x64] sm:$0xf] %vm946_vm13, %v6540_v38  ;;  %v6545_v43 = vpack.c.bf16 %v5612_v29, %v5612_v29  ;;  %v5610_v27 = vadd.f32 %v5567_v17, %v5142_v30  ;;  %v5145_v13 = vadd.f32 %v7050_v4, %v4421_v59  ;;  %v5833_v20 = vsel %vm1556_vm9, %v5612_v29, 0.0 }
 0x2ab   : > { %v5826_v58 = vadd.f32 %v5825_v35, %v5824_v46  ;;  %v5102_v41 = vpop.f32.mrf.mxu1 }
 0x2ac   : > { %5772 = vst.msk [vmem:[%s7223_s28 + $0x78] sm:$0xf] %vm946_vm13, %v6545_v43  ;;  %v6543_v11 = vpack.c.bf16 %v5610_v27, %v5610_v27  ;;  %v5613_v50 = vadd.f32 %v7084_v24, %v5145_v13  ;;  %v5143_v49 = vadd.f32 %v5102_v41, %v4419_v36  ;;  %v5829_v34 = vsel %vm1556_vm9, %v5610_v27, 0.0 }
 0x2ad   : > { %v5828_v39 = vadd.f32 %v5827_v44, %v5826_v58 }
 0x2ae   : > { %5770 = vst.msk [vmem:[%s7223_s28 + $0x70] sm:$0xf] %vm946_vm13, %v6543_v11  ;;  %v6546_v14 = vpack.c.bf16 %v5613_v50, %v5613_v50  ;;  %v5611_v48 = vadd.f32 %v5570_v5, %v5143_v49  ;;  %v5835_v51 = vsel %vm1556_vm9, %v5613_v50, 0.0 }
 0x2af   : > { %v5830_v33 = vadd.f32 %v5829_v34, %v5828_v39 }
 0x2b0   : > { %5773 = vst.msk [vmem:[%s7223_s28 + $0x7c] sm:$0xf] %vm946_vm13, %v6546_v14  ;;  %v6544_v2 = vpack.c.bf16 %v5611_v48, %v5611_v48  ;;  %v5831_v17 = vsel %vm1556_vm9, %v5611_v48, 0.0 }
 0x2b1   : > { %v5832_v8 = vadd.f32 %v5831_v17, %v5830_v33 }
 0x2b2   : > { %5771 = vst.msk [vmem:[%s7223_s28 + $0x74] sm:$0xf] %vm946_vm13, %v6544_v2 }
 0x2b3   : > { %v5834_v10 = vadd.f32 %v5833_v20, %v5832_v8 }
 0x2b5   : > { %v5836_v25 = vadd.f32 %v5835_v51, %v5834_v10 }
 0x2b7   : > { %v5837_v54 = vrot.slane %v5836_v25, 4 }
 0x2b9   : > { %v5838_v9 = vadd.f32 %v5837_v54, %v5836_v25 }
 0x2bb   : > { %v5839_v23 = vrot.slane %v5838_v9, 2 }
 0x2bd   : > { %v5840_v59 = vadd.f32 %v5839_v23, %v5838_v9 }
 0x2bf   : > { %v5841_v38 = vrot.slane %v5840_v59, 1 }
 0x2c1   : > { %v5842_v21 = vadd.f32 %v5841_v38, %v5840_v59 }
 0x2c3   : > { %v5843_v30 = vmul.f32 0.00390625, %v5842_v21  ;;  %5978 = vst.msk [vmem:[%s7228_s6] sm:$0x1] %vm954_vm15, %v5842_v21 }
 0x2c5   : > { %v5853_v46 = vsub.f32 %v9843_v60, %v5843_v30  ;;  %v5856_v24 = vsub.f32 %v9871_v42, %v5843_v30  ;;  %v10077_v4 = vsub.f32 %v9899_v6, %v5843_v30  ;;  %v10080_v62 = vsub.f32 %v9857_v22, %v5843_v30 }
 0x2c6   : > { %v10083_v36 = vsub.f32 %v9885_v61, %v5843_v30  ;;  %v10086_v35 = vsub.f32 %v9927_v26, %v5843_v30  ;;  %v10089_v43 = vsub.f32 %v9951_v37, %v5843_v30  ;;  %v10092_v13 = vsub.f32 %v9913_v7, %v5843_v30 }
 0x2c7   : > { %v10095_v60 = vsub.f32 %v9939_v63, %v5843_v30  ;;  %v10098_v42 = vsub.f32 %v9975_v1, %v5843_v30  ;;  %v10101_v22 = vsub.f32 %v9999_v52, %v5843_v30  ;;  %v10104_v61 = vsub.f32 %v9963_v55, %v5843_v30 }
 0x2c8   : > { %v10107_v6 = vsub.f32 %v9987_v18, %v5843_v30  ;;  %v10110_v26 = vsub.f32 %v10022_v53, %v5843_v30  ;;  %v10113_v7 = vsub.f32 %v10044_v16, %v5843_v30  ;;  %v10116_v63 = vsub.f32 %v10011_v28, %v5843_v30 }
 0x2c9   : > { %v10119_v37 = vsub.f32 %v10033_v40, %v5843_v30  ;;  %v10121_v1 = vsub.f32 %v5610_v27, %v5843_v30  ;;  %v10123_v52 = vsub.f32 %v5611_v48, %v5843_v30  ;;  %v10125_v55 = vsub.f32 %v5612_v29, %v5843_v30 }
 0x2ca   : > { %v10127_v18 = vsub.f32 %v5613_v50, %v5843_v30  ;;  %v5844_v53 = vsub.f32 %v9710_v56, %v5843_v30  ;;  %v5845_v58 = vsub.f32 %v9731_v12, %v5843_v30  ;;  %v5846_v16 = vsub.f32 %v9700_v15, %v5843_v30 }
 0x2cb   : > { %v5847_v28 = vsub.f32 %v9720_v45, %v5843_v30  ;;  %v5848_v40 = vsub.f32 %v9760_v19, %v5843_v30  ;;  %v5849_v11 = vsub.f32 %v9787_v47, %v5843_v30  ;;  %v5850_v56 = vsub.f32 %v9747_v32, %v5843_v30 }
 0x2cc   : > { %v5876_v41 = vmul.f32 %v5844_v53, %v5844_v53  ;;  %v5877_v44 = vmul.f32 %v5845_v58, %v5845_v58  ;;  %v5878_v27 = vmul.f32 %v5846_v16, %v5846_v16  ;;  %v5851_v45 = vsub.f32 %v9773_v3, %v5843_v30 }
 0x2cd   : > { %v5879_v49 = vmul.f32 %v5847_v28, %v5847_v28  ;;  %v5880_v12 = vmul.f32 %v5848_v40, %v5848_v40  ;;  %v5881_v34 = vmul.f32 %v5849_v11, %v5849_v11  ;;  %v5852_v47 = vsub.f32 %v9815_v57, %v5843_v30 }
 0x2ce   : > { %v5908_v29 = vsel %vm1556_vm9, %v5876_v41, 0.0  ;;  %v5909_v50 = vsel %vm1556_vm9, %v5877_v44, 0.0  ;;  %v5911_v15 = vsel %vm1556_vm9, %v5878_v27, 0.0  ;;  %v5882_v48 = vmul.f32 %v5850_v56, %v5850_v56 }
 0x2cf   : > { %v5910_v39 = vadd.f32 %v5909_v50, %v5908_v29  ;;  %v5913_v19 = vsel %vm1556_vm9, %v5879_v49, 0.0  ;;  %v5915_v33 = vsel %vm1556_vm9, %v5880_v12, 0.0  ;;  %v5883_v17 = vmul.f32 %v5851_v45, %v5851_v45 }
 0x2d0   : > { %v5917_v8 = vsel %vm1556_vm9, %v5881_v34, 0.0  ;;  %v5854_v20 = vsub.f32 %v9801_v0, %v5843_v30  ;;  %v5884_v10 = vmul.f32 %v5852_v47, %v5852_v47  ;;  %v5919_v51 = vsel %vm1556_vm9, %v5882_v48, 0.0 }
 0x2d1   : > { %v5912_v5 = vadd.f32 %v5911_v15, %v5910_v39  ;;  %v5855_v25 = vsub.f32 %v9829_v31, %v5843_v30  ;;  %v5885_v54 = vmul.f32 %v5853_v46, %v5853_v46  ;;  %v5921_v9 = vsel %vm1556_vm9, %v5883_v17, 0.0 }
 0x2d2   : > { %v5886_v23 = vmul.f32 %v5854_v20, %v5854_v20  ;;  %v5923_v59 = vsel %vm1556_vm9, %v5884_v10, 0.0  ;;  %v5888_v16 = vmul.f32 %v5856_v24, %v5856_v24  ;;  %v5889_v41 = vmul.f32 %v10077_v4, %v10077_v4 }
 0x2d3   : > { %v5914_v14 = vadd.f32 %v5913_v19, %v5912_v5  ;;  %v5887_v21 = vmul.f32 %v5855_v25, %v5855_v25  ;;  %v5925_v53 = vsel %vm1556_vm9, %v5885_v54, 0.0  ;;  %v5890_v46 = vmul.f32 %v10080_v62, %v10080_v62 }
 0x2d4   : > { %v5927_v0 = vsel %vm1556_vm9, %v5886_v23, 0.0  ;;  %v5931_v44 = vsel %vm1556_vm9, %v5888_v16, 0.0  ;;  %v5891_v27 = vmul.f32 %v10083_v36, %v10083_v36  ;;  %v5933_v24 = vsel %vm1556_vm9, %v5889_v41, 0.0 }
 0x2d5   : > { %v5916_v2 = vadd.f32 %v5915_v33, %v5914_v14  ;;  %v5929_v31 = vsel %vm1556_vm9, %v5887_v21, 0.0  ;;  %v5892_v49 = vmul.f32 %v10086_v35, %v10086_v35  ;;  %v5935_v4 = vsel %vm1556_vm9, %v5890_v46, 0.0 }
 0x2d6   : > { %v5893_v50 = vmul.f32 %v10089_v43, %v10089_v43  ;;  %v5937_v62 = vsel %vm1556_vm9, %v5891_v27, 0.0  ;;  %v5894_v56 = vmul.f32 %v10092_v13, %v10092_v13  ;;  %v5895_v15 = vmul.f32 %v10095_v60, %v10095_v60 }
 0x2d7   : > { %v5918_v32 = vadd.f32 %v5917_v8, %v5916_v2  ;;  %v5939_v36 = vsel %vm1556_vm9, %v5892_v49, 0.0  ;;  %v5896_v45 = vmul.f32 %v10098_v42, %v10098_v42  ;;  %v5897_v19 = vmul.f32 %v10101_v22, %v10101_v22 }
 0x2d8   : > { %v5941_v35 = vsel %vm1556_vm9, %v5893_v50, 0.0  ;;  %v5943_v43 = vsel %vm1556_vm9, %v5894_v56, 0.0  ;;  %v5945_v13 = vsel %vm1556_vm9, %v5895_v15, 0.0  ;;  %v5898_v47 = vmul.f32 %v10104_v61, %v10104_v61 }
 0x2d9   : > { %v5920_v3 = vadd.f32 %v5919_v51, %v5918_v32  ;;  %v5947_v60 = vsel %vm1556_vm9, %v5896_v45, 0.0  ;;  %v5899_v33 = vmul.f32 %v10107_v6, %v10107_v6  ;;  %v5949_v42 = vsel %vm1556_vm9, %v5897_v19, 0.0 }
 0x2da   : > { %v5900_v17 = vmul.f32 %v10110_v26, %v10110_v26  ;;  %v5951_v22 = vsel %vm1556_vm9, %v5898_v47, 0.0  ;;  %v5901_v32 = vmul.f32 %v10113_v7, %v10113_v7  ;;  %v5902_v10 = vmul.f32 %v10116_v63, %v10116_v63 }
 0x2db   : > { %v5922_v57 = vadd.f32 %v5921_v9, %v5920_v3  ;;  %v5953_v61 = vsel %vm1556_vm9, %v5899_v33, 0.0  ;;  %v5903_v3 = vmul.f32 %v10119_v37, %v10119_v37  ;;  %v5904_v54 = vmul.f32 %v10121_v1, %v10121_v1 }
 0x2dc   : > { %v5955_v6 = vsel %vm1556_vm9, %v5900_v17, 0.0  ;;  %v5957_v26 = vsel %vm1556_vm9, %v5901_v32, 0.0  ;;  %v5959_v7 = vsel %vm1556_vm9, %v5902_v10, 0.0  ;;  %v5907_v21 = vmul.f32 %v10127_v18, %v10127_v18 }
 0x2dd   : > { %v5924_v38 = vadd.f32 %v5923_v59, %v5922_v57  ;;  %v5905_v57 = vmul.f32 %v10123_v52, %v10123_v52  ;;  %v5961_v63 = vsel %vm1556_vm9, %v5903_v3, 0.0  ;;  %v5906_v59 = vmul.f32 %v10125_v55, %v10125_v55 }
 0x2de   : > { %v5963_v37 = vsel %vm1556_vm9, %v5904_v54, 0.0  ;;  %v5969_v52 = vsel %vm1556_vm9, %v5907_v21, 0.0 }
 0x2df   : > { %v5926_v58 = vadd.f32 %v5925_v53, %v5924_v38  ;;  %v5965_v1 = vsel %vm1556_vm9, %v5905_v57, 0.0 }
 0x2e1   : > { %v5928_v28 = vadd.f32 %v5927_v0, %v5926_v58  ;;  %v5967_v58 = vsel %vm1556_vm9, %v5906_v59, 0.0 }
 0x2e3   : > { %v5930_v30 = vadd.f32 %v5929_v31, %v5928_v28 }
 0x2e5   : > { %v5932_v40 = vadd.f32 %v5931_v44, %v5930_v30 }
 0x2e7   : > { %v5934_v11 = vadd.f32 %v5933_v24, %v5932_v40 }
 0x2e9   : > { %v5936_v29 = vadd.f32 %v5935_v4, %v5934_v11 }
 0x2eb   : > { %v5938_v39 = vadd.f32 %v5937_v62, %v5936_v29 }
 0x2ed   : > { %v5940_v12 = vadd.f32 %v5939_v36, %v5938_v39 }
 0x2ef   : > { %v5942_v5 = vadd.f32 %v5941_v35, %v5940_v12 }
 0x2f1   : > { %v5944_v34 = vadd.f32 %v5943_v43, %v5942_v5 }
 0x2f3   : > { %v5946_v14 = vadd.f32 %v5945_v13, %v5944_v34 }
 0x2f5   : > { %v5948_v48 = vadd.f32 %v5947_v60, %v5946_v14 }
 0x2f7   : > { %v5950_v2 = vadd.f32 %v5949_v42, %v5948_v48 }
 0x2f9   : > { %v5952_v8 = vadd.f32 %v5951_v22, %v5950_v2 }
 0x2fb   : > { %v5954_v20 = vadd.f32 %v5953_v61, %v5952_v8 }
 0x2fd   : > { %v5956_v51 = vadd.f32 %v5955_v6, %v5954_v20 }
 0x2ff   : > { %v5958_v25 = vadd.f32 %v5957_v26, %v5956_v51 }
 0x301   : > { %v5960_v9 = vadd.f32 %v5959_v7, %v5958_v25 }
 0x303   : > { %v5962_v23 = vadd.f32 %v5961_v63, %v5960_v9 }
 0x305   : > { %v5964_v38 = vadd.f32 %v5963_v37, %v5962_v23 }
 0x307   : > { %v5966_v53 = vadd.f32 %v5965_v1, %v5964_v38 }
 0x309   : > { %v5968_v16 = vadd.f32 %v5967_v58, %v5966_v53 }
 0x30b   : > { %v5970_v0 = vadd.f32 %v5969_v52, %v5968_v16 }
 0x30d   : > { %v5971_v28 = vrot.slane %v5970_v0, 4 }
 0x30f   : > { %v5972_v41 = vadd.f32 %v5971_v28, %v5970_v0 }
 0x311   : > { %v5973_v31 = vrot.slane %v5972_v41, 2 }
 0x313   : > { %v5974_v55 = vadd.f32 %v5973_v31, %v5972_v41 }
 0x315   : > { %v5975_v30 = vrot.slane %v5974_v55, 1 }
 0x317   : > { %v5976_v46 = vadd.f32 %v5975_v30, %v5974_v55 }
 0x319   : > { %5979 = vst.msk [vmem:[%s7228_s6 + $0x1] sm:$0x1] %vm954_vm15, %v5976_v46 }
 0x31a PF: > { %s16_s18 = sadd.s32 1, %s7174_s18  }
 0x31b   : > { %p13_p5 = scmp.ge.s32.totalorder %s16_s18, 4  }
 0x31d   :  { %15 = sbr.rel (!%p13_p5) target bundleno = 1 (0x1), region = 86 }

</bundles_post_ra>
